<compile_context>
chip_gen: v7x
topology: tpu7x:2x2x1
jax: 0.10.0
libtpu: 0.0.40
codegen_flags: <defaults>
</compile_context>

<pallas_src>
import jax
import jax.numpy as jnp
from jax import lax
from jax.experimental import pallas as pl
from jax.experimental.pallas import tpu as pltpu

# ---- static shape configuration (forced by fc1's 1024-dim input) ------------
N_BATCH = 4
BLOCK_BS = 2                                   # samples per grid step (tunable:
                                               # bigger on v5e/v6e, ~n/2 on v7x)
H_IN, W_IN = 20, 277
C1, KH, KW = 6, 3, 20
C2 = 16
POOL = 6
H1, W1 = H_IN - KH + 1, W_IN - KW + 1          # 18, 258
W1P = W1 // POOL                               # 43
H2, W2 = H1 - KH + 1, W1P - KW + 1             # 16, 24
W2P = W2 // POOL                               # 4
P1C = C1 * W1P                                 # 258 pooled conv1 feature columns
P2C = C2 * W2P                                 # 64  pooled conv2 feature columns
K1 = KH * W_IN                                 # 831 conv1 contraction (taps merged)
FLAT = C2 * H2 * W2P                           # 1024
N_CLS = 5
FC_DIMS = [(FLAT, 200), (200, 200), (200, 50), (50, 50), (50, 10), (10, N_CLS)]


# ----------------------- single fused per-block kernel ------------------------
def entwork_kernel(lhs1_ref, t1_ref, b1p_ref, t2_ref, b2p_ref,
                   fw1, fb1, fw2, fb2, fw3, fb3, fw4, fb4, fw5, fb5, fw6, fb6,
                   o_ref):
    """One batch block (BS samples): conv1+pool1+conv2+pool2+MLP+softmax.

    lhs1_ref: (1, H1*BS, 831) bf16  im2row'd conv1 LHS, rows ordered (h, b)
    t1_ref:   (831, 1548)     bf16  conv1 Toeplitz, 3 taps stacked along K
    b1p_ref:  (1, 258)        f32   conv1 bias per pooled column
    t2_ref:   (3, 258, 384)   bf16  conv2 Toeplitz (one slab per height tap)
    b2p_ref:  (1, 64)         f32   conv2 bias per pooled column
    fw1:      (16, 64, 200)   bf16  fc1 weight, indexed by conv2 output row h
    fw2..fw6: (in, out)       bf16; fb*: (1, out) f32
    o_ref:    (1, BS, 5)      f32   softmax output
    """
    bs = lhs1_ref.shape[1] // H1

    # ---- conv1: ONE MXU matmul (kernel-height taps pre-merged along K) ------
    y1 = jnp.dot(lhs1_ref[0], t1_ref[...],
                 preferred_element_type=jnp.float32)        # (H1*bs, 6*258)

    # ---- pool1: max over 6 contiguous column blocks, then bias + ReLU (f32) -
    p1 = y1[:, 0:P1C]
    for j in range(1, POOL):
        p1 = jnp.maximum(p1, y1[:, j * P1C:(j + 1) * P1C])
    p1 = jnp.maximum(p1 + b1p_ref[...], 0.0)                # (H1*bs, 258) f32
    p1b = p1.astype(jnp.bfloat16)

    # ---- conv2: 3 taps; rows are h-major so each tap LHS is a contiguous slice
    y2 = jnp.dot(p1b[0:H2 * bs, :], t2_ref[0],
                 preferred_element_type=jnp.float32)
    for ki in range(1, KH):
        y2 = y2 + jnp.dot(p1b[ki * bs:ki * bs + H2 * bs, :], t2_ref[ki],
                          preferred_element_type=jnp.float32)
    # y2: (H2*bs, 6*64), rows ordered (h2, b)

    # ---- pool2 + bias + ReLU (f32) ------------------------------------------
    p2 = y2[:, 0:P2C]
    for j in range(1, POOL):
        p2 = jnp.maximum(p2, y2[:, j * P2C:(j + 1) * P2C])
    p2 = jnp.maximum(p2 + b2p_ref[...], 0.0)                # (H2*bs, 64) f32
    p2b = p2.astype(jnp.bfloat16)

    # ---- fc1: contract directly against the (16, 64, 200) weight ------------
    # (no flatten scratch, no masked (1,64) stores; one small dot per h row)
    a = fb1[...]                                            # (1, 200) f32
    for h in range(H2):
        a = a + jnp.dot(p2b[h * bs:(h + 1) * bs, :], fw1[h],
                        preferred_element_type=jnp.float32)
    a = jnp.maximum(a, 0.0)                                 # (bs, 200)

    # ---- fc2..fc6 (bf16 operands, f32 accumulate/bias/ReLU) + softmax --------
    def dense(v, w_ref, b_ref):
        return jnp.dot(v.astype(jnp.bfloat16), w_ref[...],
                       preferred_element_type=jnp.float32) + b_ref[...]

    a = jnp.maximum(dense(a, fw2, fb2), 0.0)
    a = jnp.maximum(dense(a, fw3, fb3), 0.0)
    a = jnp.maximum(dense(a, fw4, fb4), 0.0)
    a = jnp.maximum(dense(a, fw5, fb5), 0.0)
    logits = dense(a, fw6, fb6)                             # (bs, 5)

    m = jnp.max(logits, axis=-1, keepdims=True)
    e = jnp.exp(logits - m)
    o_ref[0] = e / jnp.sum(e, axis=-1, keepdims=True)


# ------------------- one-time weight preprocessing (no jit) -------------------
def prepare_params(params):
    """Build bf16 Toeplitz conv matrices (conv1 taps merged along K), pooled
    bias vectors (f32), the fc1 weight as (16,64,200) bf16, and (in,out) bf16
    fc2..fc6 weights.  Run once, outside the jitted forward."""
    w1, b1 = params["cv1"]            # (6, 1, 3, 20), (6,)
    w2, b2 = params["cv2"]            # (16, 6, 3, 20), (16,)
    bf16, f32 = jnp.bfloat16, jnp.float32

    # conv1 Toeplitz: T1[ki*277 + w, j*P1C + cin*W1P + w'] =
    #                 w1[cin, 0, ki, w - (w'*6 + j)]
    w1s = w1[:, 0]                                           # (6, 3, 20)
    ki = jnp.arange(KH)[:, None, None]                       # (3,1,1)
    w_in = jnp.arange(W_IN)[None, :, None]                   # (1,277,1)
    col = jnp.arange(POOL * P1C)[None, None, :]              # (1,1,1548)
    j = col // P1C
    rem = col % P1C
    cin = rem // W1P
    wp = rem % W1P
    kj = w_in - (wp * POOL + j)
    valid = (kj >= 0) & (kj < KW)
    t1 = jnp.where(valid, w1s[cin, ki, jnp.clip(kj, 0, KW - 1)], 0.0)
    t1 = t1.reshape(K1, POOL * P1C).astype(bf16)             # (831, 1548) bf16
    b1p = jnp.repeat(b1, W1P)[None, :].astype(f32)           # (1, 258)

    # conv2 Toeplitz: T2[ki, cin*W1P + wcol, j*P2C + c*W2P + w'] =
    #                 w2[c, cin, ki, wcol - (w'*6 + j)]
    ki2 = jnp.arange(KH)[:, None, None]                      # (3,1,1)
    row = jnp.arange(P1C)[None, :, None]                     # (1,258,1)
    cin2 = row // W1P
    wcol = row % W1P
    col2 = jnp.arange(POOL * P2C)[None, None, :]             # (1,1,384)
    j2 = col2 // P2C
    rem2 = col2 % P2C
    c2 = rem2 // W2P
    wp2 = rem2 % W2P
    kj2 = wcol - (wp2 * POOL + j2)
    valid2 = (kj2 >= 0) & (kj2 < KW)
    t2 = jnp.where(valid2, w2[c2, cin2, ki2, jnp.clip(kj2, 0, KW - 1)], 0.0)
    t2 = t2.astype(bf16)                                     # (3, 258, 384) bf16
    b2p = jnp.repeat(b2, W2P)[None, :].astype(f32)           # (1, 64)

    # fc1 weight as (H2, C2*W2P, 200): w1_3d[h, c*W2P + w', o] matches the
    # kernel's (h-row, (c,w')-column) conv2 output layout and torch's (c,h,w')
    # flatten order.
    f1_out = FC_DIMS[0][1]
    wfc1, bfc1 = params["fc1"]                               # (200, 1024), (200,)
    w1_3d = (wfc1.T.reshape(C2, H2, W2P, f1_out)
                   .transpose(1, 0, 2, 3)
                   .reshape(H2, P2C, f1_out).astype(bf16))
    fc_w = [w1_3d]
    fc_b = [bfc1.reshape(1, -1).astype(f32)]
    for i in range(1, 6):
        w, b = params[f"fc{i + 1}"]                          # (out, in), (out,)
        fc_w.append(w.T.astype(bf16))                        # (in, out) bf16
        fc_b.append(b.reshape(1, -1).astype(f32))

    return {"t1": t1, "b1p": b1p, "t2": t2, "b2p": b2p,
            "fc_w": tuple(fc_w), "fc_b": tuple(fc_b)}


# --------------------------------- wrapper ------------------------------------
def entwork_forward(x, prep):
    n = x.shape[0]
    bs = min(BLOCK_BS, n)
    nblk = -(-n // bs)
    n_pad = nblk * bs
    if n_pad != n:
        x = jnp.pad(x, ((0, n_pad - n), (0, 0), (0, 0), (0, 0)))

    # im2row for conv1 (3 height taps merged along K) + h-major sample stacking
    # inside each block.  Pure layout plumbing -> done once in XLA, bf16 input.
    win = jnp.concatenate([x[:, 0, ki:ki + H1, :] for ki in range(KH)], axis=-1)
    lhs1 = (win.reshape(nblk, bs, H1, K1)
               .transpose(0, 2, 1, 3)                        # (nblk, H1, bs, K1)
               .reshape(nblk, H1 * bs, K1)
               .astype(jnp.bfloat16))

    weights = [prep["t1"], prep["b1p"], prep["t2"], prep["b2p"]]
    for w, b in zip(prep["fc_w"], prep["fc_b"]):
        weights += [w, b]

    def full_spec(a):
        nd = a.ndim
        return pl.BlockSpec(a.shape, lambda blk, nd=nd: (0,) * nd)

    in_specs = [pl.BlockSpec((1, H1 * bs, K1), lambda blk: (blk, 0, 0))]
    in_specs += [full_spec(a) for a in weights]

    out = pl.pallas_call(
        entwork_kernel,
        out_shape=jax.ShapeDtypeStruct((nblk, bs, N_CLS), jnp.float32),
        grid=(nblk,),
        in_specs=in_specs,
        out_specs=pl.BlockSpec((1, bs, N_CLS), lambda blk: (blk, 0, 0)),
        compiler_params=pltpu.CompilerParams(
            dimension_semantics=("parallel",),        # v7x: one block per core
            vmem_limit_bytes=24 * 1024 * 1024),       # bf16 weights ~3.7 MiB x2
    )(lhs1, *weights)
    return out.reshape(n_pad, N_CLS)[:n]


# ------------------------- params / references / main --------------------------
def init_params(key):
    def u(k, shape, fan_in):
        bound = float(fan_in) ** -0.5
        return jax.random.uniform(k, shape, jnp.float32, -bound, bound)

    ks = jax.random.split(key, 16)
    p = {}
    p["cv1"] = (u(ks[0], (C1, 1, KH, KW), 1 * KH * KW), u(ks[1], (C1,), 1 * KH * KW))
    p["cv2"] = (u(ks[2], (C2, C1, KH, KW), C1 * KH * KW), u(ks[3], (C2,), C1 * KH * KW))
    for i, (fin, fout) in enumerate(FC_DIMS):
        p[f"fc{i + 1}"] = (u(ks[4 + 2 * i], (fout, fin), fin),
                           u(ks[5 + 2 * i], (fout,), fin))
    return p


def reference_forward_f32(x, params):
    """Exact f32 reference of the PyTorch module."""
    hp = jax.lax.Precision.HIGHEST

    def conv(v, w, b):
        y = lax.conv_general_dilated(
            v, w, window_strides=(1, 1), padding="VALID",
            dimension_numbers=("NCHW", "OIHW", "NCHW"), precision=hp)
        return y + b[None, :, None, None]

    def pool(v):
        return lax.reduce_window(v, -jnp.inf, lax.max,
                                 (1, 1, 1, 6), (1, 1, 1, 6), "VALID")

    h = pool(jax.nn.relu(conv(x, *params["cv1"])))
    h = pool(jax.nn.relu(conv(h, *params["cv2"])))
    h = h.reshape(h.shape[0], -1)
    for name in ("fc1", "fc2", "fc3", "fc4", "fc5"):
        w, b = params[name]
        h = jax.nn.relu(jnp.dot(h, w.T, precision=hp) + b)
    w, b = params["fc6"]
    return jax.nn.softmax(jnp.dot(h, w.T, precision=hp) + b, axis=1)


def reference_forward_bf16(x, params):
    """Reference with the kernel's quantization: bf16 matmul operands,
    f32 accumulation / bias / ReLU / softmax."""
    bf16, f32 = jnp.bfloat16, jnp.float32

    def conv(v, w, b):
        y = lax.conv_general_dilated(
            v.astype(bf16), w.astype(bf16), window_strides=(1, 1),
            padding="VALID", dimension_numbers=("NCHW", "OIHW", "NCHW"),
            preferred_element_type=f32)
        return y + b[None, :, None, None]

    def pool(v):
        return lax.reduce_window(v, -jnp.inf, lax.max,
                                 (1, 1, 1, 6), (1, 1, 1, 6), "VALID")

    h = pool(jax.nn.relu(conv(x, *params["cv1"])))
    h = pool(jax.nn.relu(conv(h, *params["cv2"])))
    h = h.reshape(h.shape[0], -1)
    for name in ("fc1", "fc2", "fc3", "fc4", "fc5"):
        w, b = params[name]
        h = jax.nn.relu(jnp.dot(h.astype(bf16), w.T.astype(bf16),
                                preferred_element_type=f32) + b)
    w, b = params["fc6"]
    logits = jnp.dot(h.astype(bf16), w.T.astype(bf16),
                     preferred_element_type=f32) + b
    return jax.nn.softmax(logits, axis=1)


if __name__ == "__main__":
    key = jax.random.PRNGKey(0)
    pkey, xkey = jax.random.split(key)
    params = init_params(pkey)
    x = jax.random.normal(xkey, (N_BATCH, 1, H_IN, W_IN), jnp.float32)

    prep = prepare_params(params)                  # one-time, outside jit
    fwd = jax.jit(entwork_forward)
    out = jax.block_until_ready(fwd(x, prep))

    assert out.shape == (N_BATCH, N_CLS)
    assert bool(jnp.all(jnp.isfinite(out)))
    # Tight check against a reference using the same bf16-operand / f32-accum math.
    ref_bf16 = reference_forward_bf16(x, params)
    assert jnp.allclose(out, ref_bf16, rtol=5e-3, atol=5e-3), (out, ref_bf16)
    # Looser sanity check against the exact f32 module semantics.
    ref_f32 = reference_forward_f32(x, params)
    assert jnp.allclose(out, ref_f32, rtol=3e-2, atol=3e-2), (out, ref_f32)
    print("KERNEL_OK")
</pallas_src>

<mosaic_0001>
module attributes {stable_mosaic.version = 11 : i64} {
  func.func @entwork_kernel(%arg0: i32, %arg1: memref<1x36x831xbf16, #tpu.memory_space<vmem>>, %arg2: memref<831x1548xbf16, #tpu.memory_space<vmem>>, %arg3: memref<1x258xf32, #tpu.memory_space<vmem>>, %arg4: memref<3x258x384xbf16, #tpu.memory_space<vmem>>, %arg5: memref<1x64xf32, #tpu.memory_space<vmem>>, %arg6: memref<16x64x200xbf16, #tpu.memory_space<vmem>>, %arg7: memref<1x200xf32, #tpu.memory_space<vmem>>, %arg8: memref<200x200xbf16, #tpu.memory_space<vmem>>, %arg9: memref<1x200xf32, #tpu.memory_space<vmem>>, %arg10: memref<200x50xbf16, #tpu.memory_space<vmem>>, %arg11: memref<1x50xf32, #tpu.memory_space<vmem>>, %arg12: memref<50x50xbf16, #tpu.memory_space<vmem>>, %arg13: memref<1x50xf32, #tpu.memory_space<vmem>>, %arg14: memref<50x10xbf16, #tpu.memory_space<vmem>>, %arg15: memref<1x10xf32, #tpu.memory_space<vmem>>, %arg16: memref<10x5xbf16, #tpu.memory_space<vmem>>, %arg17: memref<1x5xf32, #tpu.memory_space<vmem>>, %arg18: memref<1x2x5xf32, #tpu.memory_space<vmem>>) attributes {dimension_semantics = [#tpu.dimension_semantics<parallel>], iteration_bounds = array<i64: 2>, scalar_prefetch = 0 : i64, scratch_operands = 0 : i64, tpu.core_type = #tpu.core_type<tc>, window_params = [{transform_indices = @transform_0, window_bounds = array<i64: 1, 36, 831>}, {pipeline_mode = #tpu.pipeline_mode<synchronous>, transform_indices = @transform_1, window_bounds = array<i64: 831, 1548>}, {pipeline_mode = #tpu.pipeline_mode<synchronous>, transform_indices = @transform_2, window_bounds = array<i64: 1, 258>}, {pipeline_mode = #tpu.pipeline_mode<synchronous>, transform_indices = @transform_3, window_bounds = array<i64: 3, 258, 384>}, {pipeline_mode = #tpu.pipeline_mode<synchronous>, transform_indices = @transform_4, window_bounds = array<i64: 1, 64>}, {pipeline_mode = #tpu.pipeline_mode<synchronous>, transform_indices = @transform_5, window_bounds = array<i64: 16, 64, 200>}, {pipeline_mode = #tpu.pipeline_mode<synchronous>, transform_indices = @transform_6, window_bounds = array<i64: 1, 200>}, {pipeline_mode = #tpu.pipeline_mode<synchronous>, transform_indices = @transform_7, window_bounds = array<i64: 200, 200>}, {pipeline_mode = #tpu.pipeline_mode<synchronous>, transform_indices = @transform_8, window_bounds = array<i64: 1, 200>}, {pipeline_mode = #tpu.pipeline_mode<synchronous>, transform_indices = @transform_9, window_bounds = array<i64: 200, 50>}, {pipeline_mode = #tpu.pipeline_mode<synchronous>, transform_indices = @transform_10, window_bounds = array<i64: 1, 50>}, {pipeline_mode = #tpu.pipeline_mode<synchronous>, transform_indices = @transform_11, window_bounds = array<i64: 50, 50>}, {pipeline_mode = #tpu.pipeline_mode<synchronous>, transform_indices = @transform_12, window_bounds = array<i64: 1, 50>}, {pipeline_mode = #tpu.pipeline_mode<synchronous>, transform_indices = @transform_13, window_bounds = array<i64: 50, 10>}, {pipeline_mode = #tpu.pipeline_mode<synchronous>, transform_indices = @transform_14, window_bounds = array<i64: 1, 10>}, {pipeline_mode = #tpu.pipeline_mode<synchronous>, transform_indices = @transform_15, window_bounds = array<i64: 10, 5>}, {pipeline_mode = #tpu.pipeline_mode<synchronous>, transform_indices = @transform_16, window_bounds = array<i64: 1, 5>}, {transform_indices = @transform_17, window_bounds = array<i64: 1, 2, 5>}]} {
    %c0 = arith.constant 0 : index
    %c0_0 = arith.constant 0 : index
    %c0_1 = arith.constant 0 : index
    %0 = vector.load %arg1[%c0, %c0_0, %c0_1] : memref<1x36x831xbf16, #tpu.memory_space<vmem>>, vector<1x36x831xbf16>
    %1 = vector.shape_cast %0 : vector<1x36x831xbf16> to vector<36x831xbf16>
    %c0_2 = arith.constant 0 : index
    %c0_3 = arith.constant 0 : index
    %2 = vector.load %arg2[%c0_2, %c0_3] : memref<831x1548xbf16, #tpu.memory_space<vmem>>, vector<831x1548xbf16>
    %cst = arith.constant dense<0.000000e+00> : vector<36x1548xf32>
    %3 = tpu.matmul %1, %2, %cst {dimension_numbers = #tpu.dot_dimension_numbers<[1], [0], [0], [1], [0, 0, 1, 1], [], []>} : vector<36x831xbf16>, vector<831x1548xbf16>, vector<36x1548xf32> -> vector<36x1548xf32>
    %4 = vector.extract_strided_slice %3 {offsets = [0, 0], sizes = [36, 258], strides = [1, 1]} : vector<36x1548xf32> to vector<36x258xf32>
    %5 = vector.extract_strided_slice %3 {offsets = [0, 258], sizes = [36, 258], strides = [1, 1]} : vector<36x1548xf32> to vector<36x258xf32>
    %6 = arith.maximumf %4, %5 : vector<36x258xf32>
    %7 = vector.extract_strided_slice %3 {offsets = [0, 516], sizes = [36, 258], strides = [1, 1]} : vector<36x1548xf32> to vector<36x258xf32>
    %8 = arith.maximumf %6, %7 : vector<36x258xf32>
    %9 = vector.extract_strided_slice %3 {offsets = [0, 774], sizes = [36, 258], strides = [1, 1]} : vector<36x1548xf32> to vector<36x258xf32>
    %10 = arith.maximumf %8, %9 : vector<36x258xf32>
    %11 = vector.extract_strided_slice %3 {offsets = [0, 1032], sizes = [36, 258], strides = [1, 1]} : vector<36x1548xf32> to vector<36x258xf32>
    %12 = arith.maximumf %10, %11 : vector<36x258xf32>
    %13 = vector.extract_strided_slice %3 {offsets = [0, 1290], sizes = [36, 258], strides = [1, 1]} : vector<36x1548xf32> to vector<36x258xf32>
    %14 = arith.maximumf %12, %13 : vector<36x258xf32>
    %c0_4 = arith.constant 0 : index
    %c0_5 = arith.constant 0 : index
    %15 = vector.load %arg3[%c0_4, %c0_5] : memref<1x258xf32, #tpu.memory_space<vmem>>, vector<1x258xf32>
    %16 = vector.broadcast %15 : vector<1x258xf32> to vector<36x258xf32>
    %17 = arith.addf %14, %16 : vector<36x258xf32>
    %cst_6 = arith.constant 0.000000e+00 : f32
    %18 = vector.broadcast %cst_6 : f32 to vector<36x258xf32>
    %19 = arith.maximumf %17, %18 : vector<36x258xf32>
    %20 = arith.truncf %19 : vector<36x258xf32> to vector<36x258xbf16>
    %21 = vector.extract_strided_slice %20 {offsets = [0, 0], sizes = [32, 258], strides = [1, 1]} : vector<36x258xbf16> to vector<32x258xbf16>
    %c0_7 = arith.constant 0 : index
    %c0_8 = arith.constant 0 : index
    %c0_9 = arith.constant 0 : index
    %22 = vector.load %arg4[%c0_7, %c0_8, %c0_9] : memref<3x258x384xbf16, #tpu.memory_space<vmem>>, vector<1x258x384xbf16>
    %23 = vector.shape_cast %22 : vector<1x258x384xbf16> to vector<258x384xbf16>
    %cst_10 = arith.constant dense<0.000000e+00> : vector<32x384xf32>
    %24 = tpu.matmul %21, %23, %cst_10 {dimension_numbers = #tpu.dot_dimension_numbers<[1], [0], [0], [1], [0, 0, 1, 1], [], []>} : vector<32x258xbf16>, vector<258x384xbf16>, vector<32x384xf32> -> vector<32x384xf32>
    %25 = vector.extract_strided_slice %20 {offsets = [2, 0], sizes = [32, 258], strides = [1, 1]} : vector<36x258xbf16> to vector<32x258xbf16>
    %c1 = arith.constant 1 : index
    %c0_11 = arith.constant 0 : index
    %c0_12 = arith.constant 0 : index
    %26 = vector.load %arg4[%c1, %c0_11, %c0_12] : memref<3x258x384xbf16, #tpu.memory_space<vmem>>, vector<1x258x384xbf16>
    %27 = vector.shape_cast %26 : vector<1x258x384xbf16> to vector<258x384xbf16>
    %cst_13 = arith.constant dense<0.000000e+00> : vector<32x384xf32>
    %28 = tpu.matmul %25, %27, %cst_13 {dimension_numbers = #tpu.dot_dimension_numbers<[1], [0], [0], [1], [0, 0, 1, 1], [], []>} : vector<32x258xbf16>, vector<258x384xbf16>, vector<32x384xf32> -> vector<32x384xf32>
    %29 = arith.addf %24, %28 : vector<32x384xf32>
    %30 = vector.extract_strided_slice %20 {offsets = [4, 0], sizes = [32, 258], strides = [1, 1]} : vector<36x258xbf16> to vector<32x258xbf16>
    %c2 = arith.constant 2 : index
    %c0_14 = arith.constant 0 : index
    %c0_15 = arith.constant 0 : index
    %31 = vector.load %arg4[%c2, %c0_14, %c0_15] : memref<3x258x384xbf16, #tpu.memory_space<vmem>>, vector<1x258x384xbf16>
    %32 = vector.shape_cast %31 : vector<1x258x384xbf16> to vector<258x384xbf16>
    %cst_16 = arith.constant dense<0.000000e+00> : vector<32x384xf32>
    %33 = tpu.matmul %30, %32, %cst_16 {dimension_numbers = #tpu.dot_dimension_numbers<[1], [0], [0], [1], [0, 0, 1, 1], [], []>} : vector<32x258xbf16>, vector<258x384xbf16>, vector<32x384xf32> -> vector<32x384xf32>
    %34 = arith.addf %29, %33 : vector<32x384xf32>
    %35 = vector.extract_strided_slice %34 {offsets = [0, 0], sizes = [32, 64], strides = [1, 1]} : vector<32x384xf32> to vector<32x64xf32>
    %36 = vector.extract_strided_slice %34 {offsets = [0, 64], sizes = [32, 64], strides = [1, 1]} : vector<32x384xf32> to vector<32x64xf32>
    %37 = arith.maximumf %35, %36 : vector<32x64xf32>
    %38 = vector.extract_strided_slice %34 {offsets = [0, 128], sizes = [32, 64], strides = [1, 1]} : vector<32x384xf32> to vector<32x64xf32>
    %39 = arith.maximumf %37, %38 : vector<32x64xf32>
    %40 = vector.extract_strided_slice %34 {offsets = [0, 192], sizes = [32, 64], strides = [1, 1]} : vector<32x384xf32> to vector<32x64xf32>
    %41 = arith.maximumf %39, %40 : vector<32x64xf32>
    %42 = vector.extract_strided_slice %34 {offsets = [0, 256], sizes = [32, 64], strides = [1, 1]} : vector<32x384xf32> to vector<32x64xf32>
    %43 = arith.maximumf %41, %42 : vector<32x64xf32>
    %44 = vector.extract_strided_slice %34 {offsets = [0, 320], sizes = [32, 64], strides = [1, 1]} : vector<32x384xf32> to vector<32x64xf32>
    %45 = arith.maximumf %43, %44 : vector<32x64xf32>
    %c0_17 = arith.constant 0 : index
    %c0_18 = arith.constant 0 : index
    %46 = vector.load %arg5[%c0_17, %c0_18] : memref<1x64xf32, #tpu.memory_space<vmem>>, vector<1x64xf32>
    %47 = vector.broadcast %46 : vector<1x64xf32> to vector<32x64xf32>
    %48 = arith.addf %45, %47 : vector<32x64xf32>
    %cst_19 = arith.constant 0.000000e+00 : f32
    %49 = vector.broadcast %cst_19 : f32 to vector<32x64xf32>
    %50 = arith.maximumf %48, %49 : vector<32x64xf32>
    %51 = arith.truncf %50 : vector<32x64xf32> to vector<32x64xbf16>
    %c0_20 = arith.constant 0 : index
    %c0_21 = arith.constant 0 : index
    %52 = vector.load %arg7[%c0_20, %c0_21] : memref<1x200xf32, #tpu.memory_space<vmem>>, vector<1x200xf32>
    %53 = vector.extract_strided_slice %51 {offsets = [0, 0], sizes = [2, 64], strides = [1, 1]} : vector<32x64xbf16> to vector<2x64xbf16>
    %c0_22 = arith.constant 0 : index
    %c0_23 = arith.constant 0 : index
    %c0_24 = arith.constant 0 : index
    %54 = vector.load %arg6[%c0_22, %c0_23, %c0_24] : memref<16x64x200xbf16, #tpu.memory_space<vmem>>, vector<1x64x200xbf16>
    %55 = vector.shape_cast %54 : vector<1x64x200xbf16> to vector<64x200xbf16>
    %cst_25 = arith.constant dense<0.000000e+00> : vector<2x200xf32>
    %56 = tpu.matmul %53, %55, %cst_25 {dimension_numbers = #tpu.dot_dimension_numbers<[1], [0], [0], [1], [0, 0, 1, 1], [], []>} : vector<2x64xbf16>, vector<64x200xbf16>, vector<2x200xf32> -> vector<2x200xf32>
    %57 = vector.broadcast %52 : vector<1x200xf32> to vector<2x200xf32>
    %58 = arith.addf %57, %56 : vector<2x200xf32>
    %59 = vector.extract_strided_slice %51 {offsets = [2, 0], sizes = [2, 64], strides = [1, 1]} : vector<32x64xbf16> to vector<2x64xbf16>
    %c1_26 = arith.constant 1 : index
    %c0_27 = arith.constant 0 : index
    %c0_28 = arith.constant 0 : index
    %60 = vector.load %arg6[%c1_26, %c0_27, %c0_28] : memref<16x64x200xbf16, #tpu.memory_space<vmem>>, vector<1x64x200xbf16>
    %61 = vector.shape_cast %60 : vector<1x64x200xbf16> to vector<64x200xbf16>
    %cst_29 = arith.constant dense<0.000000e+00> : vector<2x200xf32>
    %62 = tpu.matmul %59, %61, %cst_29 {dimension_numbers = #tpu.dot_dimension_numbers<[1], [0], [0], [1], [0, 0, 1, 1], [], []>} : vector<2x64xbf16>, vector<64x200xbf16>, vector<2x200xf32> -> vector<2x200xf32>
    %63 = arith.addf %58, %62 : vector<2x200xf32>
    %64 = vector.extract_strided_slice %51 {offsets = [4, 0], sizes = [2, 64], strides = [1, 1]} : vector<32x64xbf16> to vector<2x64xbf16>
    %c2_30 = arith.constant 2 : index
    %c0_31 = arith.constant 0 : index
    %c0_32 = arith.constant 0 : index
    %65 = vector.load %arg6[%c2_30, %c0_31, %c0_32] : memref<16x64x200xbf16, #tpu.memory_space<vmem>>, vector<1x64x200xbf16>
    %66 = vector.shape_cast %65 : vector<1x64x200xbf16> to vector<64x200xbf16>
    %cst_33 = arith.constant dense<0.000000e+00> : vector<2x200xf32>
    %67 = tpu.matmul %64, %66, %cst_33 {dimension_numbers = #tpu.dot_dimension_numbers<[1], [0], [0], [1], [0, 0, 1, 1], [], []>} : vector<2x64xbf16>, vector<64x200xbf16>, vector<2x200xf32> -> vector<2x200xf32>
    %68 = arith.addf %63, %67 : vector<2x200xf32>
    %69 = vector.extract_strided_slice %51 {offsets = [6, 0], sizes = [2, 64], strides = [1, 1]} : vector<32x64xbf16> to vector<2x64xbf16>
    %c3 = arith.constant 3 : index
    %c0_34 = arith.constant 0 : index
    %c0_35 = arith.constant 0 : index
    %70 = vector.load %arg6[%c3, %c0_34, %c0_35] : memref<16x64x200xbf16, #tpu.memory_space<vmem>>, vector<1x64x200xbf16>
    %71 = vector.shape_cast %70 : vector<1x64x200xbf16> to vector<64x200xbf16>
    %cst_36 = arith.constant dense<0.000000e+00> : vector<2x200xf32>
    %72 = tpu.matmul %69, %71, %cst_36 {dimension_numbers = #tpu.dot_dimension_numbers<[1], [0], [0], [1], [0, 0, 1, 1], [], []>} : vector<2x64xbf16>, vector<64x200xbf16>, vector<2x200xf32> -> vector<2x200xf32>
    %73 = arith.addf %68, %72 : vector<2x200xf32>
    %74 = vector.extract_strided_slice %51 {offsets = [8, 0], sizes = [2, 64], strides = [1, 1]} : vector<32x64xbf16> to vector<2x64xbf16>
    %c4 = arith.constant 4 : index
    %c0_37 = arith.constant 0 : index
    %c0_38 = arith.constant 0 : index
    %75 = vector.load %arg6[%c4, %c0_37, %c0_38] : memref<16x64x200xbf16, #tpu.memory_space<vmem>>, vector<1x64x200xbf16>
    %76 = vector.shape_cast %75 : vector<1x64x200xbf16> to vector<64x200xbf16>
    %cst_39 = arith.constant dense<0.000000e+00> : vector<2x200xf32>
    %77 = tpu.matmul %74, %76, %cst_39 {dimension_numbers = #tpu.dot_dimension_numbers<[1], [0], [0], [1], [0, 0, 1, 1], [], []>} : vector<2x64xbf16>, vector<64x200xbf16>, vector<2x200xf32> -> vector<2x200xf32>
    %78 = arith.addf %73, %77 : vector<2x200xf32>
    %79 = vector.extract_strided_slice %51 {offsets = [10, 0], sizes = [2, 64], strides = [1, 1]} : vector<32x64xbf16> to vector<2x64xbf16>
    %c5 = arith.constant 5 : index
    %c0_40 = arith.constant 0 : index
    %c0_41 = arith.constant 0 : index
    %80 = vector.load %arg6[%c5, %c0_40, %c0_41] : memref<16x64x200xbf16, #tpu.memory_space<vmem>>, vector<1x64x200xbf16>
    %81 = vector.shape_cast %80 : vector<1x64x200xbf16> to vector<64x200xbf16>
    %cst_42 = arith.constant dense<0.000000e+00> : vector<2x200xf32>
    %82 = tpu.matmul %79, %81, %cst_42 {dimension_numbers = #tpu.dot_dimension_numbers<[1], [0], [0], [1], [0, 0, 1, 1], [], []>} : vector<2x64xbf16>, vector<64x200xbf16>, vector<2x200xf32> -> vector<2x200xf32>
    %83 = arith.addf %78, %82 : vector<2x200xf32>
    %84 = vector.extract_strided_slice %51 {offsets = [12, 0], sizes = [2, 64], strides = [1, 1]} : vector<32x64xbf16> to vector<2x64xbf16>
    %c6 = arith.constant 6 : index
    %c0_43 = arith.constant 0 : index
    %c0_44 = arith.constant 0 : index
    %85 = vector.load %arg6[%c6, %c0_43, %c0_44] : memref<16x64x200xbf16, #tpu.memory_space<vmem>>, vector<1x64x200xbf16>
    %86 = vector.shape_cast %85 : vector<1x64x200xbf16> to vector<64x200xbf16>
    %cst_45 = arith.constant dense<0.000000e+00> : vector<2x200xf32>
    %87 = tpu.matmul %84, %86, %cst_45 {dimension_numbers = #tpu.dot_dimension_numbers<[1], [0], [0], [1], [0, 0, 1, 1], [], []>} : vector<2x64xbf16>, vector<64x200xbf16>, vector<2x200xf32> -> vector<2x200xf32>
    %88 = arith.addf %83, %87 : vector<2x200xf32>
    %89 = vector.extract_strided_slice %51 {offsets = [14, 0], sizes = [2, 64], strides = [1, 1]} : vector<32x64xbf16> to vector<2x64xbf16>
    %c7 = arith.constant 7 : index
    %c0_46 = arith.constant 0 : index
    %c0_47 = arith.constant 0 : index
    %90 = vector.load %arg6[%c7, %c0_46, %c0_47] : memref<16x64x200xbf16, #tpu.memory_space<vmem>>, vector<1x64x200xbf16>
    %91 = vector.shape_cast %90 : vector<1x64x200xbf16> to vector<64x200xbf16>
    %cst_48 = arith.constant dense<0.000000e+00> : vector<2x200xf32>
    %92 = tpu.matmul %89, %91, %cst_48 {dimension_numbers = #tpu.dot_dimension_numbers<[1], [0], [0], [1], [0, 0, 1, 1], [], []>} : vector<2x64xbf16>, vector<64x200xbf16>, vector<2x200xf32> -> vector<2x200xf32>
    %93 = arith.addf %88, %92 : vector<2x200xf32>
    %94 = vector.extract_strided_slice %51 {offsets = [16, 0], sizes = [2, 64], strides = [1, 1]} : vector<32x64xbf16> to vector<2x64xbf16>
    %c8 = arith.constant 8 : index
    %c0_49 = arith.constant 0 : index
    %c0_50 = arith.constant 0 : index
    %95 = vector.load %arg6[%c8, %c0_49, %c0_50] : memref<16x64x200xbf16, #tpu.memory_space<vmem>>, vector<1x64x200xbf16>
    %96 = vector.shape_cast %95 : vector<1x64x200xbf16> to vector<64x200xbf16>
    %cst_51 = arith.constant dense<0.000000e+00> : vector<2x200xf32>
    %97 = tpu.matmul %94, %96, %cst_51 {dimension_numbers = #tpu.dot_dimension_numbers<[1], [0], [0], [1], [0, 0, 1, 1], [], []>} : vector<2x64xbf16>, vector<64x200xbf16>, vector<2x200xf32> -> vector<2x200xf32>
    %98 = arith.addf %93, %97 : vector<2x200xf32>
    %99 = vector.extract_strided_slice %51 {offsets = [18, 0], sizes = [2, 64], strides = [1, 1]} : vector<32x64xbf16> to vector<2x64xbf16>
    %c9 = arith.constant 9 : index
    %c0_52 = arith.constant 0 : index
    %c0_53 = arith.constant 0 : index
    %100 = vector.load %arg6[%c9, %c0_52, %c0_53] : memref<16x64x200xbf16, #tpu.memory_space<vmem>>, vector<1x64x200xbf16>
    %101 = vector.shape_cast %100 : vector<1x64x200xbf16> to vector<64x200xbf16>
    %cst_54 = arith.constant dense<0.000000e+00> : vector<2x200xf32>
    %102 = tpu.matmul %99, %101, %cst_54 {dimension_numbers = #tpu.dot_dimension_numbers<[1], [0], [0], [1], [0, 0, 1, 1], [], []>} : vector<2x64xbf16>, vector<64x200xbf16>, vector<2x200xf32> -> vector<2x200xf32>
    %103 = arith.addf %98, %102 : vector<2x200xf32>
    %104 = vector.extract_strided_slice %51 {offsets = [20, 0], sizes = [2, 64], strides = [1, 1]} : vector<32x64xbf16> to vector<2x64xbf16>
    %c10 = arith.constant 10 : index
    %c0_55 = arith.constant 0 : index
    %c0_56 = arith.constant 0 : index
    %105 = vector.load %arg6[%c10, %c0_55, %c0_56] : memref<16x64x200xbf16, #tpu.memory_space<vmem>>, vector<1x64x200xbf16>
    %106 = vector.shape_cast %105 : vector<1x64x200xbf16> to vector<64x200xbf16>
    %cst_57 = arith.constant dense<0.000000e+00> : vector<2x200xf32>
    %107 = tpu.matmul %104, %106, %cst_57 {dimension_numbers = #tpu.dot_dimension_numbers<[1], [0], [0], [1], [0, 0, 1, 1], [], []>} : vector<2x64xbf16>, vector<64x200xbf16>, vector<2x200xf32> -> vector<2x200xf32>
    %108 = arith.addf %103, %107 : vector<2x200xf32>
    %109 = vector.extract_strided_slice %51 {offsets = [22, 0], sizes = [2, 64], strides = [1, 1]} : vector<32x64xbf16> to vector<2x64xbf16>
    %c11 = arith.constant 11 : index
    %c0_58 = arith.constant 0 : index
    %c0_59 = arith.constant 0 : index
    %110 = vector.load %arg6[%c11, %c0_58, %c0_59] : memref<16x64x200xbf16, #tpu.memory_space<vmem>>, vector<1x64x200xbf16>
    %111 = vector.shape_cast %110 : vector<1x64x200xbf16> to vector<64x200xbf16>
    %cst_60 = arith.constant dense<0.000000e+00> : vector<2x200xf32>
    %112 = tpu.matmul %109, %111, %cst_60 {dimension_numbers = #tpu.dot_dimension_numbers<[1], [0], [0], [1], [0, 0, 1, 1], [], []>} : vector<2x64xbf16>, vector<64x200xbf16>, vector<2x200xf32> -> vector<2x200xf32>
    %113 = arith.addf %108, %112 : vector<2x200xf32>
    %114 = vector.extract_strided_slice %51 {offsets = [24, 0], sizes = [2, 64], strides = [1, 1]} : vector<32x64xbf16> to vector<2x64xbf16>
    %c12 = arith.constant 12 : index
    %c0_61 = arith.constant 0 : index
    %c0_62 = arith.constant 0 : index
    %115 = vector.load %arg6[%c12, %c0_61, %c0_62] : memref<16x64x200xbf16, #tpu.memory_space<vmem>>, vector<1x64x200xbf16>
    %116 = vector.shape_cast %115 : vector<1x64x200xbf16> to vector<64x200xbf16>
    %cst_63 = arith.constant dense<0.000000e+00> : vector<2x200xf32>
    %117 = tpu.matmul %114, %116, %cst_63 {dimension_numbers = #tpu.dot_dimension_numbers<[1], [0], [0], [1], [0, 0, 1, 1], [], []>} : vector<2x64xbf16>, vector<64x200xbf16>, vector<2x200xf32> -> vector<2x200xf32>
    %118 = arith.addf %113, %117 : vector<2x200xf32>
    %119 = vector.extract_strided_slice %51 {offsets = [26, 0], sizes = [2, 64], strides = [1, 1]} : vector<32x64xbf16> to vector<2x64xbf16>
    %c13 = arith.constant 13 : index
    %c0_64 = arith.constant 0 : index
    %c0_65 = arith.constant 0 : index
    %120 = vector.load %arg6[%c13, %c0_64, %c0_65] : memref<16x64x200xbf16, #tpu.memory_space<vmem>>, vector<1x64x200xbf16>
    %121 = vector.shape_cast %120 : vector<1x64x200xbf16> to vector<64x200xbf16>
    %cst_66 = arith.constant dense<0.000000e+00> : vector<2x200xf32>
    %122 = tpu.matmul %119, %121, %cst_66 {dimension_numbers = #tpu.dot_dimension_numbers<[1], [0], [0], [1], [0, 0, 1, 1], [], []>} : vector<2x64xbf16>, vector<64x200xbf16>, vector<2x200xf32> -> vector<2x200xf32>
    %123 = arith.addf %118, %122 : vector<2x200xf32>
    %124 = vector.extract_strided_slice %51 {offsets = [28, 0], sizes = [2, 64], strides = [1, 1]} : vector<32x64xbf16> to vector<2x64xbf16>
    %c14 = arith.constant 14 : index
    %c0_67 = arith.constant 0 : index
    %c0_68 = arith.constant 0 : index
    %125 = vector.load %arg6[%c14, %c0_67, %c0_68] : memref<16x64x200xbf16, #tpu.memory_space<vmem>>, vector<1x64x200xbf16>
    %126 = vector.shape_cast %125 : vector<1x64x200xbf16> to vector<64x200xbf16>
    %cst_69 = arith.constant dense<0.000000e+00> : vector<2x200xf32>
    %127 = tpu.matmul %124, %126, %cst_69 {dimension_numbers = #tpu.dot_dimension_numbers<[1], [0], [0], [1], [0, 0, 1, 1], [], []>} : vector<2x64xbf16>, vector<64x200xbf16>, vector<2x200xf32> -> vector<2x200xf32>
    %128 = arith.addf %123, %127 : vector<2x200xf32>
    %129 = vector.extract_strided_slice %51 {offsets = [30, 0], sizes = [2, 64], strides = [1, 1]} : vector<32x64xbf16> to vector<2x64xbf16>
    %c15 = arith.constant 15 : index
    %c0_70 = arith.constant 0 : index
    %c0_71 = arith.constant 0 : index
    %130 = vector.load %arg6[%c15, %c0_70, %c0_71] : memref<16x64x200xbf16, #tpu.memory_space<vmem>>, vector<1x64x200xbf16>
    %131 = vector.shape_cast %130 : vector<1x64x200xbf16> to vector<64x200xbf16>
    %cst_72 = arith.constant dense<0.000000e+00> : vector<2x200xf32>
    %132 = tpu.matmul %129, %131, %cst_72 {dimension_numbers = #tpu.dot_dimension_numbers<[1], [0], [0], [1], [0, 0, 1, 1], [], []>} : vector<2x64xbf16>, vector<64x200xbf16>, vector<2x200xf32> -> vector<2x200xf32>
    %133 = arith.addf %128, %132 : vector<2x200xf32>
    %cst_73 = arith.constant 0.000000e+00 : f32
    %134 = vector.broadcast %cst_73 : f32 to vector<2x200xf32>
    %135 = arith.maximumf %133, %134 : vector<2x200xf32>
    %136 = arith.truncf %135 : vector<2x200xf32> to vector<2x200xbf16>
    %c0_74 = arith.constant 0 : index
    %c0_75 = arith.constant 0 : index
    %137 = vector.load %arg8[%c0_74, %c0_75] : memref<200x200xbf16, #tpu.memory_space<vmem>>, vector<200x200xbf16>
    %cst_76 = arith.constant dense<0.000000e+00> : vector<2x200xf32>
    %138 = tpu.matmul %136, %137, %cst_76 {dimension_numbers = #tpu.dot_dimension_numbers<[1], [0], [0], [1], [0, 0, 1, 1], [], []>} : vector<2x200xbf16>, vector<200x200xbf16>, vector<2x200xf32> -> vector<2x200xf32>
    %c0_77 = arith.constant 0 : index
    %c0_78 = arith.constant 0 : index
    %139 = vector.load %arg9[%c0_77, %c0_78] : memref<1x200xf32, #tpu.memory_space<vmem>>, vector<1x200xf32>
    %140 = vector.broadcast %139 : vector<1x200xf32> to vector<2x200xf32>
    %141 = arith.addf %138, %140 : vector<2x200xf32>
    %cst_79 = arith.constant 0.000000e+00 : f32
    %142 = vector.broadcast %cst_79 : f32 to vector<2x200xf32>
    %143 = arith.maximumf %141, %142 : vector<2x200xf32>
    %144 = arith.truncf %143 : vector<2x200xf32> to vector<2x200xbf16>
    %c0_80 = arith.constant 0 : index
    %c0_81 = arith.constant 0 : index
    %145 = vector.load %arg10[%c0_80, %c0_81] : memref<200x50xbf16, #tpu.memory_space<vmem>>, vector<200x50xbf16>
    %cst_82 = arith.constant dense<0.000000e+00> : vector<2x50xf32>
    %146 = tpu.matmul %144, %145, %cst_82 {dimension_numbers = #tpu.dot_dimension_numbers<[1], [0], [0], [1], [0, 0, 1, 1], [], []>} : vector<2x200xbf16>, vector<200x50xbf16>, vector<2x50xf32> -> vector<2x50xf32>
    %c0_83 = arith.constant 0 : index
    %c0_84 = arith.constant 0 : index
    %147 = vector.load %arg11[%c0_83, %c0_84] : memref<1x50xf32, #tpu.memory_space<vmem>>, vector<1x50xf32>
    %148 = vector.broadcast %147 : vector<1x50xf32> to vector<2x50xf32>
    %149 = arith.addf %146, %148 : vector<2x50xf32>
    %cst_85 = arith.constant 0.000000e+00 : f32
    %150 = vector.broadcast %cst_85 : f32 to vector<2x50xf32>
    %151 = arith.maximumf %149, %150 : vector<2x50xf32>
    %152 = arith.truncf %151 : vector<2x50xf32> to vector<2x50xbf16>
    %c0_86 = arith.constant 0 : index
    %c0_87 = arith.constant 0 : index
    %153 = vector.load %arg12[%c0_86, %c0_87] : memref<50x50xbf16, #tpu.memory_space<vmem>>, vector<50x50xbf16>
    %cst_88 = arith.constant dense<0.000000e+00> : vector<2x50xf32>
    %154 = tpu.matmul %152, %153, %cst_88 {dimension_numbers = #tpu.dot_dimension_numbers<[1], [0], [0], [1], [0, 0, 1, 1], [], []>} : vector<2x50xbf16>, vector<50x50xbf16>, vector<2x50xf32> -> vector<2x50xf32>
    %c0_89 = arith.constant 0 : index
    %c0_90 = arith.constant 0 : index
    %155 = vector.load %arg13[%c0_89, %c0_90] : memref<1x50xf32, #tpu.memory_space<vmem>>, vector<1x50xf32>
    %156 = vector.broadcast %155 : vector<1x50xf32> to vector<2x50xf32>
    %157 = arith.addf %154, %156 : vector<2x50xf32>
    %cst_91 = arith.constant 0.000000e+00 : f32
    %158 = vector.broadcast %cst_91 : f32 to vector<2x50xf32>
    %159 = arith.maximumf %157, %158 : vector<2x50xf32>
    %160 = arith.truncf %159 : vector<2x50xf32> to vector<2x50xbf16>
    %c0_92 = arith.constant 0 : index
    %c0_93 = arith.constant 0 : index
    %161 = vector.load %arg14[%c0_92, %c0_93] : memref<50x10xbf16, #tpu.memory_space<vmem>>, vector<50x10xbf16>
    %cst_94 = arith.constant dense<0.000000e+00> : vector<2x10xf32>
    %162 = tpu.matmul %160, %161, %cst_94 {dimension_numbers = #tpu.dot_dimension_numbers<[1], [0], [0], [1], [0, 0, 1, 1], [], []>} : vector<2x50xbf16>, vector<50x10xbf16>, vector<2x10xf32> -> vector<2x10xf32>
    %c0_95 = arith.constant 0 : index
    %c0_96 = arith.constant 0 : index
    %163 = vector.load %arg15[%c0_95, %c0_96] : memref<1x10xf32, #tpu.memory_space<vmem>>, vector<1x10xf32>
    %164 = vector.broadcast %163 : vector<1x10xf32> to vector<2x10xf32>
    %165 = arith.addf %162, %164 : vector<2x10xf32>
    %cst_97 = arith.constant 0.000000e+00 : f32
    %166 = vector.broadcast %cst_97 : f32 to vector<2x10xf32>
    %167 = arith.maximumf %165, %166 : vector<2x10xf32>
    %168 = arith.truncf %167 : vector<2x10xf32> to vector<2x10xbf16>
    %c0_98 = arith.constant 0 : index
    %c0_99 = arith.constant 0 : index
    %169 = vector.load %arg16[%c0_98, %c0_99] : memref<10x5xbf16, #tpu.memory_space<vmem>>, vector<10x5xbf16>
    %cst_100 = arith.constant dense<0.000000e+00> : vector<2x5xf32>
    %170 = tpu.matmul %168, %169, %cst_100 {dimension_numbers = #tpu.dot_dimension_numbers<[1], [0], [0], [1], [0, 0, 1, 1], [], []>} : vector<2x10xbf16>, vector<10x5xbf16>, vector<2x5xf32> -> vector<2x5xf32>
    %c0_101 = arith.constant 0 : index
    %c0_102 = arith.constant 0 : index
    %171 = vector.load %arg17[%c0_101, %c0_102] : memref<1x5xf32, #tpu.memory_space<vmem>>, vector<1x5xf32>
    %172 = vector.broadcast %171 : vector<1x5xf32> to vector<2x5xf32>
    %173 = arith.addf %170, %172 : vector<2x5xf32>
    %cst_103 = arith.constant dense<0xFF800000> : vector<2xf32>
    %174 = vector.multi_reduction <maximumf>, %173, %cst_103 [1] : vector<2x5xf32> to vector<2xf32>
    %175 = vector.shape_cast %174 : vector<2xf32> to vector<2x1xf32>
    %176 = vector.broadcast %175 : vector<2x1xf32> to vector<2x5xf32>
    %177 = arith.subf %173, %176 : vector<2x5xf32>
    %178 = math.exp %177 : vector<2x5xf32>
    %cst_104 = arith.constant dense<0.000000e+00> : vector<2xf32>
    %179 = vector.multi_reduction <add>, %178, %cst_104 [1] : vector<2x5xf32> to vector<2xf32>
    %180 = vector.shape_cast %179 : vector<2xf32> to vector<2x1xf32>
    %181 = vector.broadcast %180 : vector<2x1xf32> to vector<2x5xf32>
    %182 = arith.divf %178, %181 : vector<2x5xf32>
    %c0_105 = arith.constant 0 : index
    %c0_106 = arith.constant 0 : index
    %c0_107 = arith.constant 0 : index
    %183 = vector.load %arg18[%c0_105, %c0_106, %c0_107] : memref<1x2x5xf32, #tpu.memory_space<vmem>>, vector<1x2x5xf32>
    %184 = vector.shape_cast %183 : vector<1x2x5xf32> to vector<2x5xf32>
    %185 = vector.shape_cast %182 : vector<2x5xf32> to vector<1x2x5xf32>
    tpu.vector_store %arg18[%c0_105, %c0_106, %c0_107], %185 {strides = array<i32>} : memref<1x2x5xf32, #tpu.memory_space<vmem>>, vector<1x2x5xf32>,
    return
  }
  func.func @transform_0(%arg0: i32) -> (i32, i32, i32) {
    %c0_i32 = arith.constant 0 : i32
    %c0_i32_0 = arith.constant 0 : i32
    %c0_i32_1 = arith.constant 0 : i32
    return %arg0, %c0_i32, %c0_i32_0 : i32, i32, i32
  }
  func.func @transform_1(%arg0: i32) -> (i32, i32) {
    %c0_i32 = arith.constant 0 : i32
    %c0_i32_0 = arith.constant 0 : i32
    %c0_i32_1 = arith.constant 0 : i32
    return %c0_i32, %c0_i32_0 : i32, i32
  }
  func.func @transform_2(%arg0: i32) -> (i32, i32) {
    %c0_i32 = arith.constant 0 : i32
    %c0_i32_0 = arith.constant 0 : i32
    %c0_i32_1 = arith.constant 0 : i32
    return %c0_i32, %c0_i32_0 : i32, i32
  }
  func.func @transform_3(%arg0: i32) -> (i32, i32, i32) {
    %c0_i32 = arith.constant 0 : i32
    %c0_i32_0 = arith.constant 0 : i32
    %c0_i32_1 = arith.constant 0 : i32
    %c0_i32_2 = arith.constant 0 : i32
    return %c0_i32, %c0_i32_0, %c0_i32_1 : i32, i32, i32
  }
  func.func @transform_4(%arg0: i32) -> (i32, i32) {
    %c0_i32 = arith.constant 0 : i32
    %c0_i32_0 = arith.constant 0 : i32
    %c0_i32_1 = arith.constant 0 : i32
    return %c0_i32, %c0_i32_0 : i32, i32
  }
  func.func @transform_5(%arg0: i32) -> (i32, i32, i32) {
    %c0_i32 = arith.constant 0 : i32
    %c0_i32_0 = arith.constant 0 : i32
    %c0_i32_1 = arith.constant 0 : i32
    %c0_i32_2 = arith.constant 0 : i32
    return %c0_i32, %c0_i32_0, %c0_i32_1 : i32, i32, i32
  }
  func.func @transform_6(%arg0: i32) -> (i32, i32) {
    %c0_i32 = arith.constant 0 : i32
    %c0_i32_0 = arith.constant 0 : i32
    %c0_i32_1 = arith.constant 0 : i32
    return %c0_i32, %c0_i32_0 : i32, i32
  }
  func.func @transform_7(%arg0: i32) -> (i32, i32) {
    %c0_i32 = arith.constant 0 : i32
    %c0_i32_0 = arith.constant 0 : i32
    %c0_i32_1 = arith.constant 0 : i32
    return %c0_i32, %c0_i32_0 : i32, i32
  }
  func.func @transform_8(%arg0: i32) -> (i32, i32) {
    %c0_i32 = arith.constant 0 : i32
    %c0_i32_0 = arith.constant 0 : i32
    %c0_i32_1 = arith.constant 0 : i32
    return %c0_i32, %c0_i32_0 : i32, i32
  }
  func.func @transform_9(%arg0: i32) -> (i32, i32) {
    %c0_i32 = arith.constant 0 : i32
    %c0_i32_0 = arith.constant 0 : i32
    %c0_i32_1 = arith.constant 0 : i32
    return %c0_i32, %c0_i32_0 : i32, i32
  }
  func.func @transform_10(%arg0: i32) -> (i32, i32) {
    %c0_i32 = arith.constant 0 : i32
    %c0_i32_0 = arith.constant 0 : i32
    %c0_i32_1 = arith.constant 0 : i32
    return %c0_i32, %c0_i32_0 : i32, i32
  }
  func.func @transform_11(%arg0: i32) -> (i32, i32) {
    %c0_i32 = arith.constant 0 : i32
    %c0_i32_0 = arith.constant 0 : i32
    %c0_i32_1 = arith.constant 0 : i32
    return %c0_i32, %c0_i32_0 : i32, i32
  }
  func.func @transform_12(%arg0: i32) -> (i32, i32) {
    %c0_i32 = arith.constant 0 : i32
    %c0_i32_0 = arith.constant 0 : i32
    %c0_i32_1 = arith.constant 0 : i32
    return %c0_i32, %c0_i32_0 : i32, i32
  }
  func.func @transform_13(%arg0: i32) -> (i32, i32) {
    %c0_i32 = arith.constant 0 : i32
    %c0_i32_0 = arith.constant 0 : i32
    %c0_i32_1 = arith.constant 0 : i32
    return %c0_i32, %c0_i32_0 : i32, i32
  }
  func.func @transform_14(%arg0: i32) -> (i32, i32) {
    %c0_i32 = arith.constant 0 : i32
    %c0_i32_0 = arith.constant 0 : i32
    %c0_i32_1 = arith.constant 0 : i32
    return %c0_i32, %c0_i32_0 : i32, i32
  }
  func.func @transform_15(%arg0: i32) -> (i32, i32) {
    %c0_i32 = arith.constant 0 : i32
    %c0_i32_0 = arith.constant 0 : i32
    %c0_i32_1 = arith.constant 0 : i32
    return %c0_i32, %c0_i32_0 : i32, i32
  }
  func.func @transform_16(%arg0: i32) -> (i32, i32) {
    %c0_i32 = arith.constant 0 : i32
    %c0_i32_0 = arith.constant 0 : i32
    %c0_i32_1 = arith.constant 0 : i32
    return %c0_i32, %c0_i32_0 : i32, i32
  }
  func.func @transform_17(%arg0: i32) -> (i32, i32, i32) {
    %c0_i32 = arith.constant 0 : i32
    %c0_i32_0 = arith.constant 0 : i32
    %c0_i32_1 = arith.constant 0 : i32
    return %arg0, %c0_i32, %c0_i32_0 : i32, i32, i32
  }
}

</mosaic_0001>

<bundles_post_ra>
// kernel: entwork_forward.1
= control target key start
LH: loop header
LB: loop body
LE: loop exit
PB: predicated region body
PF: predicated region fallthrough
CT: control target
= control target key end

     0   :  { %s17733_s0 = inlined_call_operand.vmem [shape: bf16[2,36,831], index: 0, kind: input, shape index: {}]   ;;  %s17734_s1 = inlined_call_operand.hbm [shape: bf16[831,1548], index: 1, kind: input, shape index: {}]   ;;  %s17735_s2 = inlined_call_operand.hbm [shape: f32[1,258], index: 2, kind: input, shape index: {}]   ;;  %s17736_s3 = inlined_call_operand.vmem [shape: bf16[3,258,384], index: 3, kind: input, shape index: {}]   ;;  %s17737_s4 = inlined_call_operand.hbm [shape: f32[1,64], index: 4, kind: input, shape index: {}]   ;;  %s17738_s5 = inlined_call_operand.vmem [shape: bf16[16,64,200], index: 5, kind: input, shape index: {}]   ;;  %s17739_s6 = inlined_call_operand.hbm [shape: f32[1,200], index: 6, kind: input, shape index: {}]   ;;  %s17740_s7 = inlined_call_operand.hbm [shape: bf16[200,200], index: 7, kind: input, shape index: {}]   ;;  %s17741_s8 = inlined_call_operand.hbm [shape: f32[1,200], index: 8, kind: input, shape index: {}]   ;;  %s17742_s9 = inlined_call_operand.vmem [shape: bf16[200,50], index: 9, kind: input, shape index: {}]   ;;  %s17743_s10 = inlined_call_operand.hbm [shape: f32[1,50], index: 10, kind: input, shape index: {}]   ;;  %s17744_s11 = inlined_call_operand.hbm [shape: bf16[50,50], index: 11, kind: input, shape index: {}]   ;;  %s17745_s12 = inlined_call_operand.hbm [shape: f32[1,50], index: 12, kind: input, shape index: {}]   ;;  %s17746_s13 = inlined_call_operand.vmem [shape: bf16[50,10], index: 13, kind: input, shape index: {}]   ;;  %s17747_s14 = inlined_call_operand.hbm [shape: f32[1,10], index: 14, kind: input, shape index: {}]   ;;  %s17748_s15 = inlined_call_operand.vmem [shape: bf16[10,5], index: 15, kind: input, shape index: {}]   ;;  %s17749_s16 = inlined_call_operand.hbm [shape: f32[1,5], index: 16, kind: input, shape index: {}]   ;;  %s17750_s17 = inlined_call_operand.hbm [shape: f32[2,2,5], index: 17, kind: output, shape index: {}]  }
   0x1   :  { %17769 = sst [smem:[#allocation36_spill]] %s17733_s0 }
   0x2   :  { %17770 = sst [smem:[#allocation37_spill]] %s17734_s1 }
   0x3   :  { %17771 = sst [smem:[#allocation38_spill]] %s17735_s2 }
   0x4   :  { %17772 = sst [smem:[#allocation39_spill]] %s17739_s6 }
   0x5   :  { %17773 = sst [smem:[#allocation40_spill]] %s17741_s8 }
   0x6   :  { %17774 = sst [smem:[#allocation41_spill]] %s17750_s17 }
   0x7   :  { %22 = vsyncpa [#allocation3], 0 }
   0x8   :  { %23 = vsyncpa [#allocation6], 0 }
   0x9   :  { %24 = vsyncpa [#allocation9], 0 }
   0xa   :  { %25 = vsyncpa [#allocation12], 0 }
   0xb   :  { %26 = vsyncpa [#allocation15], 0 }
   0xc   :  { %27 = vsyncpa [#allocation18], 0 }
   0xd   :  { %28 = vsyncpa [#allocation4], 0 }
   0xe   :  { %30 = vsyncpa [#allocation4 + $0x1], 0  ;;  %s15492_s24 = smov 0   ;;  %s15494_s25 = smov 0  }
   0xf   :  { %s15496_s26 = smov 0   ;;  %s15498_s27 = smov 0  }
  0x10 LB: > { %17775 = sst [smem:[#allocation28_spill]] %s15360_s24  ;;  %s15513_s28 = sadd.s32 4294967295, %s15372_s27   ;;  %s15372_s27 = sphi %s15498_s27, %s17817_s27   ;;  %s15368_s26 = sphi %s15496_s26, %s17820_s26   ;;  %s15364_s25 = sphi %s15494_s25, %s17819_s25   ;;  %s15360_s24 = sphi %s15492_s24, %s17818_s24  }
  0x11   : > { %17776 = sst [smem:[#allocation29_spill]] %s15364_s25  ;;  %s11304_s29 = sadd.s32 4294967294, %s15372_s27  }
  0x12   : > { %17777 = sst [smem:[#allocation30_spill]] %s15368_s26  ;;  %s15517_s0 = sadd.s32 1, %s15372_s27  }
  0x13   : > { %17778 = sst [smem:[#allocation31_spill]] %s15372_s27  ;;  %s405_s30 = sadd.s32 1, %s15368_s26 }
  0x14   : > { %17779 = sst [smem:[#allocation32_spill]] %s15517_s0  ;;  %s402_s18 = ssub.s32 %s15372_s27, %s15517_s0 }
  0x15   : > { %p415_p0 = scmp.ne.s32.totalorder %s15368_s26, %s15364_s25  ;;  %p403_p1 = scmp.eq.s32.totalorder %s402_s18, 0 }
  0x16   : > { %p416_p2 = scmp.eq.s32.totalorder %s15513_s28, 1  ;;  %p421_p3 = scmp.ne.s32.totalorder %s15364_s25, %s15360_s24 }
  0x17   : > { %p422_p4 = scmp.eq.s32.totalorder %s11304_s29, 1  ;;  %p11305_p7 = scmp.ge.s32.totalorder %s15372_s27, 1 }
  0x18   : > { %s15528_s19 = scalar_select %p403_p1, %s15368_s26, %s405_s30  }
  0x19   : > { %p15530_p5 = por %p416_p2, %p415_p0  ;;  %p15534_p6 = por %p422_p4, %p421_p3 }
  0x1a   : > { %17780 = sst [smem:[#allocation33_spill]] %s15528_s19  ;;  %p429_p8 = scmp.lt.s32.totalorder %s15372_s27, 3 }
  0x1b   : > { %s17781_s1 = scalar_select %p15530_p5, 1, 0 }
  0x1c   : > { %s17783_s20 = scalar_select %p15534_p6, 1, 0 }
  0x1d   : > { %17782 = sst [smem:[#allocation34_spill]] %s17781_s1  ;;  %p17759_p9 = scmp.eq.s32.totalorder %s15513_s28, 0 }
  0x1e   : > { %17784 = sst [smem:[#allocation35_spill]] %s17783_s20  ;;  %p15541_p10 = pnand %p11305_p7, %p429_p8 }
  0x1f   : > { %s15374_s22 = smov [#allocation5]   ;;  %s15375_s29 = smov [#allocation8]  }
  0x20   : > { %s17785_s21 = scalar_select %p15541_p10, 1, 0 }
  0x21   : > { %s455_s23 = sshll.u32 %s15374_s22, 4  ;;  %p13345_p11 = pneg %p15541_p10  ;;  %s456_s23 = int_to_ptr.vmem [resolvable:$true] %s455_s23 }
  0x22   : > { %s483_s30 = sshll.u32 %s15375_s29, 4  ;;  %s15376_s19 = smov [#allocation11]   ;;  %s15553_s30 = int_to_ptr.vmem [resolvable:$true] %s483_s30 }
  0x23   : > { %p15549_p12 = pnand %p17759_p9, %p13345_p11  ;;  %s507_s26 = sshll.u32 %s15376_s19, 4  ;;  %s15555_s26 = int_to_ptr.vmem [resolvable:$true] %s507_s26 }
  0x24   : > { %s17787_s2 = sld [smem:[#allocation38_spill]] }
  0x25   : > { %p15565_p0 = pneg %p15549_p12 }
  0x2a   : > { %s14978_s22 = scalar_lea.hbm %s17787_s2, 48 }
  0x2b   : > { %p14979_p13 = scmp.ne.s32.totalorder %s17787_s2, %s14978_s22  ;;  %p14985_p3 = scmp.lt.u32.totalorder %s14978_s22, %s17787_s2 }
  0x2d   : > { %p14981_p1 = pnand %p15565_p0, %p14979_p13 }
  0x2f   : > { %p14982_p2 = pneg %p14981_p1 }
  0x31   : > { %p14987_p4 = pnand %p14985_p3, %p14982_p2 }
  0x33   : > { %14990 = shalt.err (!%p14987_p4)
}
  0x34   : > { %s14991_s0 = scalar_lea.vmem %s456_s23, 48  ;;  %s14998_s24 = scalar_lea.vmem %s456_s23, 64 }
  0x35   : > { %p14992_p7 = scmp.ne.s32.totalorder %s456_s23, %s14991_s0  ;;  %p14999_p9 = scmp.lt.s32.totalorder %s456_s23, %s456_s23 }
  0x36   : > { %p15000_p6 = scmp.lt.s32.totalorder %s14998_s24, %s14991_s0 }
  0x37   : > { %p14994_p8 = pnand %p14992_p7, %p15565_p0 }
  0x38   : > { %p15001_p5 = por %p15000_p6, %p14999_p9 }
  0x39   : > { %p14995_p11 = pneg %p14994_p8 }
  0x3b   : > { %p15002_p10 = pnand %p15001_p5, %p14995_p11 }
  0x3d   : > { %15005 = shalt.err (!%p15002_p10)
}
  0x3e   : > { %13351 = dma.hbm_to_vmem [thread:$0]  (!%p15549_p12), %s17787_s2, 48, %s456_s23, [#allocation6]  }
  0x3f   : > { %s17789_s6 = sld [smem:[#allocation39_spill]] }
  0x45   : > { %s15006_s19 = scalar_lea.hbm %s17789_s6, 32 }
  0x46   : > { %p15007_p13 = scmp.ne.s32.totalorder %s17789_s6, %s15006_s19  ;;  %p15013_p5 = scmp.lt.u32.totalorder %s15006_s19, %s17789_s6 }
  0x48   : > { %p15009_p1 = pnand %p15007_p13, %p15565_p0 }
  0x4a   : > { %p15010_p6 = pneg %p15009_p1 }
  0x4c   : > { %p15015_p9 = pnand %p15013_p5, %p15010_p6 }
  0x4e   : > { %15018 = shalt.err (!%p15015_p9)
}
  0x4f   : > { %s15019_s23 = scalar_lea.vmem %s15553_s30, 32  ;;  %p15027_p4 = scmp.lt.s32.totalorder %s15553_s30, %s15553_s30 }
  0x50   : > { %p15020_p10 = scmp.ne.s32.totalorder %s15553_s30, %s15019_s23  ;;  %p15028_p7 = scmp.lt.s32.totalorder %s15019_s23, %s15019_s23 }
  0x52   : > { %p15022_p2 = pnand %p15020_p10, %p15565_p0  ;;  %p15029_p8 = por %p15028_p7, %p15027_p4 }
  0x54   : > { %p15023_p3 = pneg %p15022_p2 }
  0x56   : > { %p15030_p11 = pnand %p15029_p8, %p15023_p3 }
  0x58   : > { %15033 = shalt.err (!%p15030_p11)
}
  0x59   : > { %13357 = dma.hbm_to_vmem [thread:$0]  (!%p15549_p12), %s17789_s6, 32, %s15553_s30, [#allocation9]  }
  0x5a   : > { %s17790_s8 = sld [smem:[#allocation40_spill]] }
  0x60   : > { %s15034_s17 = scalar_lea.hbm %s17790_s8, 32 }
  0x61   : > { %p15035_p13 = scmp.ne.s32.totalorder %s17790_s8, %s15034_s17  ;;  %p15041_p5 = scmp.lt.u32.totalorder %s15034_s17, %s17790_s8 }
  0x63   : > { %p15037_p1 = pnand %p15035_p13, %p15565_p0 }
  0x65   : > { %p15038_p6 = pneg %p15037_p1 }
  0x67   : > { %p15043_p9 = pnand %p15041_p5, %p15038_p6 }
  0x69   : > { %15046 = shalt.err (!%p15043_p9)
}
  0x6a   : > { %s15047_s30 = scalar_lea.vmem %s15555_s26, 32  ;;  %p15055_p4 = scmp.lt.s32.totalorder %s15555_s26, %s15555_s26 }
  0x6b   : > { %p15048_p10 = scmp.ne.s32.totalorder %s15555_s26, %s15047_s30  ;;  %p15056_p7 = scmp.lt.s32.totalorder %s15047_s30, %s15047_s30 }
  0x6d   : > { %p15050_p2 = pnand %p15048_p10, %p15565_p0  ;;  %p15057_p8 = por %p15056_p7, %p15055_p4 }
  0x6f   : > { %p15051_p3 = pneg %p15050_p2 }
  0x71   : > { %p15058_p11 = pnand %p15057_p8, %p15051_p3 }
  0x73   : > { %15061 = shalt.err (!%p15058_p11)
}
  0x74   : > { %13363 = dma.hbm_to_vmem [thread:$0]  (!%p15549_p12), %s17790_s8, 32, %s15555_s26, [#allocation12]  }
  0x75   : > { %s15377_s1 = smov [#allocation14]   ;;  %s15062_s22 = scalar_lea.hbm %s17744_s11, 448 }
  0x76   : > { %s531_s27 = sshll.u32 %s15377_s1, 4  ;;  %p15063_p13 = scmp.ne.s32.totalorder %s17744_s11, %s15062_s22  ;;  %s532_s27 = int_to_ptr.vmem [resolvable:$true] %s531_s27 }
  0x77   : > { %p15069_p5 = scmp.lt.u32.totalorder %s15062_s22, %s17744_s11 }
  0x78   : > { %p15065_p1 = pnand %p15063_p13, %p15565_p0 }
  0x7a   : > { %p15066_p6 = pneg %p15065_p1 }
  0x7c   : > { %p15071_p9 = pnand %p15069_p5, %p15066_p6 }
  0x7e   : > { %15074 = shalt.err (!%p15071_p9)
}
  0x7f   : > { %s15075_s26 = scalar_lea.vmem %s532_s27, 448  ;;  %p15083_p4 = scmp.lt.s32.totalorder %s532_s27, %s532_s27 }
  0x80   : > { %p15076_p10 = scmp.ne.s32.totalorder %s532_s27, %s15075_s26  ;;  %p15084_p7 = scmp.lt.s32.totalorder %s15075_s26, %s15075_s26 }
  0x82   : > { %p15078_p2 = pnand %p15076_p10, %p15565_p0  ;;  %p15085_p8 = por %p15084_p7, %p15083_p4 }
  0x84   : > { %p15079_p3 = pneg %p15078_p2 }
  0x86   : > { %p15086_p11 = pnand %p15085_p8, %p15079_p3 }
  0x88   : > { %15089 = shalt.err (!%p15086_p11)
}
  0x89   : > { %s15378_s23 = smov 64   ;;  %s15379_s25 = smov 4  }
  0x8a   : > { %13369 = dma.hbm_to_vmem [thread:$0]  (!%p15549_p12), %s17744_s11, 448, %s532_s27, [#allocation15], %s15378_s23, %s15378_s23, %s15379_s25  }
  0x8b   : > { %s15380_s17 = smov [#allocation17]   ;;  %s15381_s19 = smov [#allocation2]  }
  0x8c   : > { %s559_s22 = sshll.u32 %s15380_s17, 4  ;;  %s441_s0 = sshll.u32 %s15381_s19, 4  ;;  %s560_s22 = int_to_ptr.vmem [resolvable:$true] %s559_s22  ;;  %s15645_s0 = int_to_ptr.vmem [resolvable:$true] %s441_s0 }
  0x8d   : > { %s15090_s26 = scalar_lea.hbm %s17747_s14, 16 }
  0x8e   : > { %p15091_p13 = scmp.ne.s32.totalorder %s17747_s14, %s15090_s26  ;;  %p15097_p5 = scmp.lt.u32.totalorder %s15090_s26, %s17747_s14 }
  0x90   : > { %p15093_p1 = pnand %p15091_p13, %p15565_p0 }
  0x92   : > { %p15094_p6 = pneg %p15093_p1 }
  0x94   : > { %p15099_p9 = pnand %p15097_p5, %p15094_p6 }
  0x96   : > { %15102 = shalt.err (!%p15099_p9)
}
  0x97   : > { %s15103_s23 = scalar_lea.vmem %s560_s22, 16  ;;  %s15110_s25 = scalar_lea.vmem %s560_s22, 32 }
  0x98   : > { %p15104_p10 = scmp.ne.s32.totalorder %s560_s22, %s15103_s23  ;;  %p15111_p4 = scmp.lt.s32.totalorder %s560_s22, %s560_s22 }
  0x99   : > { %p15112_p7 = scmp.lt.s32.totalorder %s15110_s25, %s15103_s23 }
  0x9a   : > { %p15106_p2 = pnand %p15104_p10, %p15565_p0 }
  0x9b   : > { %p15113_p8 = por %p15112_p7, %p15111_p4 }
  0x9c   : > { %p15107_p3 = pneg %p15106_p2 }
  0x9e   : > { %p15114_p11 = pnand %p15113_p8, %p15107_p3 }
  0xa0   : > { %15117 = shalt.err (!%p15114_p11)
}
  0xa1   : > { %13375 = dma.hbm_to_vmem [thread:$0]  (!%p15549_p12), %s17747_s14, 16, %s560_s22, [#allocation18]  }
  0xa2   : > { %s17791_s19 = sld [smem:[#allocation37_spill]] }
  0xa8   : > { %s15118_s24 = scalar_lea.hbm %s17791_s19, 86528 }
  0xa9   : > { %p15119_p13 = scmp.ne.s32.totalorder %s17791_s19, %s15118_s24  ;;  %p15125_p5 = scmp.lt.u32.totalorder %s15118_s24, %s17791_s19 }
  0xab   : > { %p15121_p1 = pnand %p15119_p13, %p15565_p0 }
  0xad   : > { %p15122_p6 = pneg %p15121_p1 }
  0xaf   : > { %p15127_p9 = pnand %p15125_p5, %p15122_p6 }
  0xb1   : > { %15130 = shalt.err (!%p15127_p9)
}
  0xb2   : > { %s15131_s22 = scalar_lea.vmem %s15645_s0, 86528  ;;  %p15139_p4 = scmp.lt.s32.totalorder %s15645_s0, %s15645_s0 }
  0xb3   : > { %p15132_p10 = scmp.ne.s32.totalorder %s15645_s0, %s15131_s22  ;;  %p15140_p7 = scmp.lt.s32.totalorder %s15131_s22, %s15131_s22 }
  0xb5   : > { %p15134_p2 = pnand %p15132_p10, %p15565_p0  ;;  %p15141_p8 = por %p15140_p7, %p15139_p4 }
  0xb7   : > { %p15135_p3 = pneg %p15134_p2 }
  0xb9   : > { %p15142_p11 = pnand %p15141_p8, %p15135_p3 }
  0xbb   : > { %15145 = shalt.err (!%p15142_p11)
}
  0xbc   : > { %s15382_s23 = smov 832   ;;  %s15383_s25 = smov 52  }
  0xbd   : > { %13348 = dma.hbm_to_vmem [thread:$0]  (!%p15549_p12), %s17791_s19, 86528, %s15645_s0, [#allocation3], %s15382_s23, %s15382_s23, %s15383_s25  }
  0xbe   : > { %s15384_s20 = smov [#allocation7]   ;;  %s15385_s24 = smov [#allocation10]  }
  0xbf   : > { %s469_s17 = sshll.u32 %s15384_s20, 4  ;;  %s493_s30 = sshll.u32 %s15385_s24, 4  ;;  %s470_s17 = int_to_ptr.vmem [resolvable:$true] %s469_s17  ;;  %s15688_s30 = int_to_ptr.vmem [resolvable:$true] %s493_s30 }
  0xc0   : > { %s15146_s27 = scalar_lea.hbm %s17737_s4, 16 }
  0xc1   : > { %p15147_p13 = scmp.ne.s32.totalorder %s17737_s4, %s15146_s27  ;;  %p15153_p5 = scmp.lt.u32.totalorder %s15146_s27, %s17737_s4 }
  0xc3   : > { %p15149_p1 = pnand %p15147_p13, %p15565_p0 }
  0xc5   : > { %p15150_p6 = pneg %p15149_p1 }
  0xc7   : > { %p15155_p9 = pnand %p15153_p5, %p15150_p6 }
  0xc9   : > { %15158 = shalt.err (!%p15155_p9)
}
  0xca   : > { %s15159_s23 = scalar_lea.vmem %s470_s17, 16  ;;  %s15166_s25 = scalar_lea.vmem %s470_s17, 32 }
  0xcb   : > { %p15160_p10 = scmp.ne.s32.totalorder %s470_s17, %s15159_s23  ;;  %p15167_p4 = scmp.lt.s32.totalorder %s470_s17, %s470_s17 }
  0xcc   : > { %p15168_p7 = scmp.lt.s32.totalorder %s15166_s25, %s15159_s23 }
  0xcd   : > { %p15162_p2 = pnand %p15160_p10, %p15565_p0 }
  0xce   : > { %p15169_p8 = por %p15168_p7, %p15167_p4 }
  0xcf   : > { %p15163_p3 = pneg %p15162_p2 }
  0xd1   : > { %p15170_p11 = pnand %p15169_p8, %p15163_p3 }
  0xd3   : > { %15173 = shalt.err (!%p15170_p11)
}
  0xd4   : > { %13354 = dma.hbm_to_vmem [thread:$0]  (!%p15549_p12), %s17737_s4, 16, %s470_s17, [#allocation6]  }
  0xd5   : > { %s15174_s26 = scalar_lea.hbm %s17740_s7, 3200 }
  0xd6   : > { %p15175_p13 = scmp.ne.s32.totalorder %s17740_s7, %s15174_s26  ;;  %p15181_p5 = scmp.lt.u32.totalorder %s15174_s26, %s17740_s7 }
  0xd8   : > { %p15177_p1 = pnand %p15175_p13, %p15565_p0 }
  0xda   : > { %p15178_p6 = pneg %p15177_p1 }
  0xdc   : > { %p15183_p9 = pnand %p15181_p5, %p15178_p6 }
  0xde   : > { %15186 = shalt.err (!%p15183_p9)
}
  0xdf   : > { %s15187_s17 = scalar_lea.vmem %s15688_s30, 3200  ;;  %p15195_p4 = scmp.lt.s32.totalorder %s15688_s30, %s15688_s30 }
  0xe0   : > { %p15188_p10 = scmp.ne.s32.totalorder %s15688_s30, %s15187_s17  ;;  %p15196_p7 = scmp.lt.s32.totalorder %s15187_s17, %s15187_s17 }
  0xe2   : > { %p15190_p2 = pnand %p15188_p10, %p15565_p0  ;;  %p15197_p8 = por %p15196_p7, %p15195_p4 }
  0xe4   : > { %p15191_p3 = pneg %p15190_p2 }
  0xe6   : > { %p15198_p11 = pnand %p15197_p8, %p15191_p3 }
  0xe8   : > { %15201 = shalt.err (!%p15198_p11)
}
  0xe9   : > { %s15386_s0 = smov 128   ;;  %s15387_s23 = smov 8  }
  0xea   : > { %13360 = dma.hbm_to_vmem [thread:$0]  (!%p15549_p12), %s17740_s7, 3200, %s15688_s30, [#allocation9], %s15386_s0, %s15386_s0, %s15387_s23  }
  0xeb   : > { %s15388_s6 = smov [#allocation13]   ;;  %s15389_s24 = smov [#allocation16]  }
  0xec   : > { %s521_s20 = sshll.u32 %s15388_s6, 4  ;;  %s545_s26 = sshll.u32 %s15389_s24, 4  ;;  %s522_s20 = int_to_ptr.vmem [resolvable:$true] %s521_s20  ;;  %s15731_s26 = int_to_ptr.vmem [resolvable:$true] %s545_s26 }
  0xed   : > { %s15202_s22 = scalar_lea.hbm %s17743_s10, 16 }
  0xee   : > { %p15203_p13 = scmp.ne.s32.totalorder %s17743_s10, %s15202_s22  ;;  %p15209_p5 = scmp.lt.u32.totalorder %s15202_s22, %s17743_s10 }
  0xf0   : > { %p15205_p1 = pnand %p15203_p13, %p15565_p0 }
  0xf2   : > { %p15206_p6 = pneg %p15205_p1 }
  0xf4   : > { %p15211_p9 = pnand %p15209_p5, %p15206_p6 }
  0xf6   : > { %15214 = shalt.err (!%p15211_p9)
}
  0xf7   : > { %s15215_s0 = scalar_lea.vmem %s522_s20, 16  ;;  %s15222_s23 = scalar_lea.vmem %s522_s20, 32 }
  0xf8   : > { %p15216_p10 = scmp.ne.s32.totalorder %s522_s20, %s15215_s0  ;;  %p15223_p4 = scmp.lt.s32.totalorder %s522_s20, %s522_s20 }
  0xf9   : > { %p15224_p7 = scmp.lt.s32.totalorder %s15222_s23, %s15215_s0 }
  0xfa   : > { %p15218_p2 = pnand %p15216_p10, %p15565_p0 }
  0xfb   : > { %p15225_p8 = por %p15224_p7, %p15223_p4 }
  0xfc   : > { %p15219_p3 = pneg %p15218_p2 }
  0xfe   : > { %p15226_p11 = pnand %p15225_p8, %p15219_p3 }
 0x100   : > { %15229 = shalt.err (!%p15226_p11)
}
 0x101   : > { %13366 = dma.hbm_to_vmem [thread:$0]  (!%p15549_p12), %s17743_s10, 16, %s522_s20, [#allocation12]  }
 0x102   : > { %s15230_s27 = scalar_lea.hbm %s17745_s12, 16 }
 0x103   : > { %p15231_p13 = scmp.ne.s32.totalorder %s17745_s12, %s15230_s27  ;;  %p15237_p5 = scmp.lt.u32.totalorder %s15230_s27, %s17745_s12 }
 0x105   : > { %p15233_p1 = pnand %p15231_p13, %p15565_p0 }
 0x107   : > { %p15234_p6 = pneg %p15233_p1 }
 0x109   : > { %p15239_p9 = pnand %p15237_p5, %p15234_p6 }
 0x10b   : > { %15242 = shalt.err (!%p15239_p9)
}
 0x10c   : > { %s15243_s20 = scalar_lea.vmem %s15731_s26, 16  ;;  %s15250_s30 = scalar_lea.vmem %s15731_s26, 32 }
 0x10d   : > { %p15244_p10 = scmp.ne.s32.totalorder %s15731_s26, %s15243_s20  ;;  %p15251_p4 = scmp.lt.s32.totalorder %s15731_s26, %s15731_s26 }
 0x10e   : > { %p15252_p7 = scmp.lt.s32.totalorder %s15250_s30, %s15243_s20 }
 0x10f   : > { %p15246_p2 = pnand %p15244_p10, %p15565_p0 }
 0x110   : > { %p15253_p8 = por %p15252_p7, %p15251_p4 }
 0x111   : > { %p15247_p3 = pneg %p15246_p2 }
 0x113   : > { %p15254_p11 = pnand %p15253_p8, %p15247_p3 }
 0x115   : > { %15257 = shalt.err (!%p15254_p11)
}
 0x116   : > { %13372 = dma.hbm_to_vmem [thread:$0]  (!%p15549_p12), %s17745_s12, 16, %s15731_s26, [#allocation15]  }
 0x117   : > { %s15390_s8 = smov [#allocation19]   ;;  %s15258_s27 = scalar_lea.hbm %s17749_s16, 16 }
 0x118   : > { %s573_s6 = sshll.u32 %s15390_s8, 4  ;;  %p15259_p13 = scmp.ne.s32.totalorder %s17749_s16, %s15258_s27  ;;  %s574_s6 = int_to_ptr.vmem [resolvable:$true] %s573_s6 }
 0x119   : > { %p15265_p5 = scmp.lt.u32.totalorder %s15258_s27, %s17749_s16 }
 0x11a   : > { %p15261_p1 = pnand %p15259_p13, %p15565_p0 }
 0x11c   : > { %p15262_p6 = pneg %p15261_p1 }
 0x11e   : > { %p15267_p9 = pnand %p15265_p5, %p15262_p6 }
 0x120   : > { %15270 = shalt.err (!%p15267_p9)
}
 0x121   : > { %s15271_s26 = scalar_lea.vmem %s574_s6, 16  ;;  %s15278_s20 = scalar_lea.vmem %s574_s6, 32 }
 0x122   : > { %p15272_p10 = scmp.ne.s32.totalorder %s574_s6, %s15271_s26  ;;  %p15279_p4 = scmp.lt.s32.totalorder %s574_s6, %s574_s6 }
 0x123   : > { %p15280_p7 = scmp.lt.s32.totalorder %s15278_s20, %s15271_s26 }
 0x124   : > { %p15274_p2 = pnand %p15272_p10, %p15565_p0 }
 0x125   : > { %p15281_p8 = por %p15280_p7, %p15279_p4 }
 0x126   : > { %p15275_p3 = pneg %p15274_p2 }
 0x128   : > { %p15282_p11 = pnand %p15281_p8, %p15275_p3 }
 0x12a   : > { %15285 = shalt.err (!%p15282_p11)
}
 0x12b   : > { %13378 = dma.hbm_to_vmem [thread:$0]  (!%p15549_p12), %s17749_s16, 16, %s574_s6, [#allocation18]  }
 0x12c   : > { %p17792_p13 = scmp.ne.s32.totalorder %s17785_s21, 0 }
 0x12d   : > { %p17793_p1 = scmp.eq.s32.totalorder (!%p17792_p13), %s15513_s28, 0 }
 0x12e   : > { %594 = sbr.rel (%p17792_p13) target bundleno = 3786 (0xeca), region = 88 }
 0x135   : > { %15331 = dma.done.wait (%p17793_p1), [#allocation3], 86528   ;;  %p17794_p0 = pmov %p17793_p1 }
 0x137   : > { %15333 = vsyncadd (%p17794_p0), [#allocation3], 4294880768  ;;  %p17795_p6 = pmov %p17794_p0 }
 0x138   : > { %p17796_p5 = pmov %p17794_p0 }
 0x139   : > { %15335 = dma.done.wait (%p17795_p6), [#allocation6], 64  }
 0x13a   : > { %15337 = vsyncadd (%p17796_p5), [#allocation6], 4294967232  ;;  %p17797_p9 = pmov %p17794_p0 }
 0x13b   : > { %p17798_p12 = pmov %p17794_p0 }
 0x13c   : > { %15339 = dma.done.wait (%p17797_p9), [#allocation9], 3232  }
 0x13d   : > { %15341 = vsyncadd (%p17798_p12), [#allocation9], 4294964064  ;;  %p17799_p10 = pmov %p17794_p0 }
 0x13e   : > { %p17800_p2 = pmov %p17794_p0 }
 0x13f   : > { %15343 = dma.done.wait (%p17799_p10), [#allocation12], 48  }
 0x140   : > { %15345 = vsyncadd (%p17800_p2), [#allocation12], 4294967248  ;;  %p17801_p3 = pmov %p17794_p0 }
 0x141   : > { %p17802_p4 = pmov %p17794_p0 }
 0x142   : > { %15347 = dma.done.wait (%p17801_p3), [#allocation15], 464  }
 0x143   : > { %15349 = vsyncadd (%p17802_p4), [#allocation15], 4294966832  ;;  %p17803_p7 = pmov %p17794_p0 }
 0x144   : > { %p17804_p8 = pmov %p17794_p0 }
 0x145   : > { %15351 = dma.done.wait (%p17803_p7), [#allocation18], 32  }
 0x146   : > { %15353 = vsyncadd (%p17804_p8), [#allocation18], 4294967264  ;;  %v17767_v0 = vmov 0   ;;  %p686_p11 = scmp.lt.s32.totalorder %s15513_s28, 1  ;;  %v13465_v1 = vld [vmem:[#allocation2 + $0x4] ss:$52 sps:$4 sm:$0xff]  }
 0x147   : > { %5221 = vmatprep.mubr.bf16.mxu1 %v17767_v0  ;;  %v13467_v2 = vld [vmem:[#allocation2 + $0x1384] ss:$52 sps:$4 sm:$0xff]   ;;  %vm4963_vm0 = vcmask 1046528   ;;  %5006 = vmatprep.subr.bf16.mxu0 %v13465_v1  ;;  %v13469_v3 = vld [vmem:[#allocation2] ss:$52 sps:$4 sm:$0xff]   ;;  %vm4964_vm1 = vcmask 1047552  }
 0x148   : > { %v13470_v4 = vld [vmem:[#allocation2 + $0x1380] ss:$52 sps:$4 sm:$0xff]   ;;  %s687_s21 = scalar_select %p686_p11, %s15513_s28, 1  ;;  %5189 = vmatprep.subr.bf16.mxu1 %v13467_v2  ;;  %5007 = vmatpush1.bf16.msra.mxu0 %v13469_v3  ;;  %v13475_v7 = vld [vmem:[#allocation2 + $0x68] ss:$52 sps:$4 sm:$0xff]   ;;  %v15392_v9 = vmov 65535  }
 0x149   : > { %v13471_v5 = vld [vmem:[#allocation2 + $0x6c] ss:$52 sps:$4 sm:$0xff]   ;;  %5190 = vmatpush1.bf16.msra.mxu1 %v13470_v4  ;;  %v13476_v8 = vld [vmem:[#allocation2 + $0x13e8] ss:$52 sps:$4 sm:$0xff]   ;;  %v4965_v10 = vsel %vm4963_vm0, 4294967295, %v15392_v9  ;;  %s17805_s8 = sld [smem:[#allocation36_spill]] }
 0x14a   : > { %v13473_v6 = vld [vmem:[#allocation2 + $0x13ec] ss:$52 sps:$4 sm:$0xff]   ;;  %5008 = vmatprep.subr.bf16.mxu0 %v13471_v5  ;;  %v13477_v11 = vld [vmem:[#allocation2 + $0xd4] ss:$52 sps:$4 sm:$0xff]   ;;  %s13298_s18 = smul.u32 140, %s687_s21  ;;  %v15823_v16 = vsel %vm4964_vm1, %v4965_v10, 0 }
 0x14b   : > { %5191 = vmatprep.subr.bf16.mxu1 %v13473_v6  ;;  %v13479_v12 = vld [vmem:[#allocation2 + $0x1454] ss:$52 sps:$4 sm:$0xff]   ;;  %v13481_v13 = vld [vmem:[#allocation2 + $0xd0] ss:$52 sps:$4 sm:$0xff]   ;;  %v13488_v18 = vld [vmem:[#allocation2 + $0x14b8] ss:$52 sps:$4 sm:$0xff]  }
 0x14c   : > { %v13482_v14 = vld [vmem:[#allocation2 + $0x1450] ss:$52 sps:$4 sm:$0xff]   ;;  %5009 = vmatpush1.bf16.msra.mxu0 %v13475_v7  ;;  %v13487_v20 = vld [vmem:[#allocation2 + $0x138] ss:$52 sps:$4 sm:$0xff]   ;;  %v4968_v21 = vand.u32 %v13488_v18, %v15823_v16  ;;  %vm4953_vm2 = vcmask 515072   ;;  %s15393_s24 = smov 126  }
 0x14d   : > { %5192 = vmatpush1.bf16.msra.mxu1 %v13476_v8  ;;  %v13483_v15 = vld [vmem:[#allocation2 + $0x13c] ss:$52 sps:$4 sm:$0xff]   ;;  %5010 = vmatprep.subr.bf16.mxu0 %v13477_v11  ;;  %v13489_v22 = vld [vmem:[#allocation2 + $0x1a4] ss:$52 sps:$4 sm:$0xff]   ;;  %v13494_v23 = vld [vmem:[#allocation2 + $0xc] ss:$52 sps:$4 sm:$0xff]  }
 0x14e   : > { %5193 = vmatprep.subr.bf16.mxu1 %v13479_v12  ;;  %v13485_v17 = vld [vmem:[#allocation2 + $0x14bc] ss:$52 sps:$4 sm:$0xff]   ;;  %v13495_v26 = vld [vmem:[#allocation2 + $0x1a0] ss:$52 sps:$4 sm:$0xff]   ;;  %v13504_v33 = vld [vmem:[#allocation2 + $0xd8] ss:$52 sps:$4 sm:$0xff]  }
 0x14f   : > { %s15828_s6 = scalar_lea.vmem %s17805_s8, %s13298_s18  ;;  %v4971_v19 = vand.u32 %v13485_v17, %v15823_v16  ;;  %v13492_v25 = vld [vmem:[#allocation2 + $0x8] ss:$52 sps:$4 sm:$0xff]   ;;  %v13496_v27 = vld [vmem:[#allocation2 + $0x20c] ss:$52 sps:$4 sm:$0xff]   ;;  %v13498_v29 = vld [vmem:[#allocation2 + $0x70] ss:$52 sps:$4 sm:$0xff]  }
 0x150   : > { %5011 = vmatpush1.bf16.msra.mxu0 %v13481_v13  ;;  %v13491_v24 = vld [vmem:[%s15828_s6 + $0x18] ss:$28 sps:$4 sm:$0xff]   ;;  %v13501_v30 = vld [vmem:[#allocation2 + $0x208] ss:$52 sps:$4 sm:$0xff]   ;;  %v13507_v34 = vld [vmem:[#allocation2 + $0x270] ss:$52 sps:$4 sm:$0xff]  }
 0x151   : > { %5194 = vmatpush1.bf16.msra.mxu1 %v13482_v14  ;;  %5012 = vmatprep.subr.bf16.mxu0 %v13483_v15  ;;  %v13500_v28 = vld [vmem:[#allocation2 + $0x74] ss:$52 sps:$4 sm:$0xff]   ;;  %v13506_v32 = vld [vmem:[#allocation2 + $0xdc] ss:$52 sps:$4 sm:$0xff]   ;;  %v13512_v36 = vld [vmem:[#allocation2 + $0x144] ss:$52 sps:$4 sm:$0xff]  }
 0x152   : > { %5195 = vmatprep.subr.bf16.mxu1 %v4971_v19  ;;  %v13502_v31 = vld [vmem:[#allocation2 + $0x274] ss:$52 sps:$4 sm:$0xff]   ;;  %v13508_v35 = vld [vmem:[#allocation2 + $0x2dc] ss:$52 sps:$4 sm:$0xff]   ;;  %v13513_v38 = vld [vmem:[#allocation2 + $0x2d8] ss:$52 sps:$4 sm:$0xff]  }
 0x153   : > { %v13510_v37 = vld [vmem:[#allocation2 + $0x140] ss:$52 sps:$4 sm:$0xff]   ;;  %v13514_v39 = vld [vmem:[#allocation2 + $0x344] ss:$52 sps:$4 sm:$0xff]   ;;  %v13516_v41 = vld [vmem:[#allocation2 + $0x1a8] ss:$52 sps:$4 sm:$0xff]  }
 0x154   : > { %5013 = vmatpush1.bf16.msra.mxu0 %v13487_v20  ;;  %v13518_v40 = vld [vmem:[#allocation2 + $0x1ac] ss:$52 sps:$4 sm:$0xff]   ;;  %v13524_v44 = vld [vmem:[#allocation2 + $0x214] ss:$52 sps:$4 sm:$0xff]   ;;  %v13522_v45 = vld [vmem:[#allocation2 + $0x210] ss:$52 sps:$4 sm:$0xff]  }
 0x155   : > { %5196 = vmatpush1.bf16.msra.mxu1 %v4968_v21  ;;  %5014 = vmatprep.subr.bf16.mxu0 %v13489_v22  ;;  %v13519_v42 = vld [vmem:[#allocation2 + $0x340] ss:$52 sps:$4 sm:$0xff]   ;;  %v13525_v46 = vld [vmem:[#allocation2 + $0x3a8] ss:$52 sps:$4 sm:$0xff]   ;;  %v13528_v49 = vld [vmem:[#allocation2 + $0x278] ss:$52 sps:$4 sm:$0xff]  }
 0x156   : > { %5250 = vmatprep.subr.bf16.mxu1 %v13494_v23  ;;  %v13520_v43 = vld [vmem:[#allocation2 + $0x3ac] ss:$52 sps:$4 sm:$0xff]   ;;  %v13526_v47 = vld [vmem:[#allocation2 + $0x414] ss:$52 sps:$4 sm:$0xff]   ;;  %v13530_v48 = vld [vmem:[#allocation2 + $0x27c] ss:$52 sps:$4 sm:$0xff]  }
 0x157   : > { %v13531_v50 = vld [vmem:[#allocation2 + $0x410] ss:$52 sps:$4 sm:$0xff]   ;;  %v13534_v53 = vld [vmem:[#allocation2 + $0x2e0] ss:$52 sps:$4 sm:$0xff]   ;;  %v13537_v54 = vld [vmem:[#allocation2 + $0x478] ss:$52 sps:$4 sm:$0xff]  }
 0x158   : > { %12029 = vmatmul.mubr.msk.bf16.vlgmr.msra.gmra.mrb[0].mxu1 %vm4953_vm2, %v13491_v24  ;;  %5015 = vmatpush1.bf16.msra.mxu0 %v13495_v26  ;;  %v13532_v51 = vld [vmem:[#allocation2 + $0x47c] ss:$52 sps:$4 sm:$0xff]   ;;  %v13536_v52 = vld [vmem:[#allocation2 + $0x2e4] ss:$52 sps:$4 sm:$0xff]   ;;  %v13542_v56 = vld [vmem:[#allocation2 + $0x34c] ss:$52 sps:$4 sm:$0xff]  }
 0x159   : > { %5251 = vmatpush1.bf16.msra.mxu1 %v13492_v25  ;;  %5016 = vmatprep.subr.bf16.mxu0 %v13496_v27  ;;  %v13538_v55 = vld [vmem:[#allocation2 + $0x4e4] ss:$52 sps:$4 sm:$0xff]   ;;  %v13562_v57 = vld [vmem:[%s15828_s6 + $0x50] ss:$28 sps:$4 sm:$0xff]   ;;  %v13540_v59 = vld [vmem:[#allocation2 + $0x348] ss:$52 sps:$4 sm:$0xff]  }
 0x15a   : > { %5252 = vmatprep.subr.bf16.mxu1 %v13500_v28  ;;  %5231 = vmatprep.mubr.bf16.mxu1 %v17767_v0  ;;  %v13563_v58 = vld [vmem:[%s15828_s6 + $0x4] ss:$28 sps:$4 sm:$0xff]   ;;  %v13548_v62 = vld [vmem:[#allocation2 + $0x3b4] ss:$52 sps:$4 sm:$0xff]   ;;  %v13554_v4 = vld [vmem:[#allocation2 + $0x41c] ss:$52 sps:$4 sm:$0xff]  }
 0x15b   : > { %5038 = vmatprep.mubr.bf16.mxu0 %v13563_v58  ;;  %v13543_v60 = vld [vmem:[#allocation2 + $0x4e0] ss:$52 sps:$4 sm:$0xff]   ;;  %v13546_v63 = vld [vmem:[#allocation2 + $0x3b0] ss:$52 sps:$4 sm:$0xff]   ;;  %v13549_v1 = vld [vmem:[#allocation2 + $0x548] ss:$52 sps:$4 sm:$0xff]  }
 0x15c   : > { %5017 = vmatpush1.bf16.msra.mxu0 %v13501_v30  ;;  %v13544_v61 = vld [vmem:[#allocation2 + $0x54c] ss:$52 sps:$4 sm:$0xff]   ;;  %v13550_v2 = vld [vmem:[#allocation2 + $0x5b4] ss:$52 sps:$4 sm:$0xff]   ;;  %v13555_v6 = vld [vmem:[#allocation2 + $0x5b0] ss:$52 sps:$4 sm:$0xff]  }
 0x15d   : > { %5253 = vmatpush1.bf16.msra.mxu1 %v13498_v29  ;;  %5018 = vmatprep.subr.bf16.mxu0 %v13502_v31  ;;  %v13578_v3 = vld [vmem:[%s15828_s6 + $0x88] ss:$0 sps:$4 sm:$0x33]   ;;  %v13552_v5 = vld [vmem:[#allocation2 + $0x418] ss:$52 sps:$4 sm:$0xff]   ;;  %vm6739_vm3 = vcmask 1031168  }
 0x15e   : > { %5254 = vmatprep.subr.bf16.mxu1 %v13506_v32  ;;  %v13556_v7 = vld [vmem:[#allocation2 + $0x61c] ss:$52 sps:$4 sm:$0xff]   ;;  %v13560_v8 = vld [vmem:[#allocation2 + $0x484] ss:$52 sps:$4 sm:$0xff]   ;;  %v13558_v9 = vld [vmem:[#allocation2 + $0x480] ss:$52 sps:$4 sm:$0xff]  }
 0x15f   : > { %v13561_v10 = vld [vmem:[#allocation2 + $0x618] ss:$52 sps:$4 sm:$0xff]   ;;  %v13565_v13 = vld [vmem:[#allocation2 + $0x680] ss:$52 sps:$4 sm:$0xff]   ;;  %v13568_v14 = vld [vmem:[#allocation2 + $0x4e8] ss:$52 sps:$4 sm:$0xff]  }
 0x160   : > { %5019 = vmatpush1.bf16.msra.mxu0 %v13507_v34  ;;  %12030 = vmatmul.mubr.msk.bf16.gmra.mrb[4].mxu1 %vm4953_vm2, %v13562_v57  ;;  %v13567_v11 = vld [vmem:[#allocation2 + $0x684] ss:$52 sps:$4 sm:$0xff]   ;;  %v13570_v12 = vld [vmem:[#allocation2 + $0x4ec] ss:$52 sps:$4 sm:$0xff]   ;;  %v13577_v18 = vld [vmem:[#allocation2 + $0x554] ss:$52 sps:$4 sm:$0xff]  }
 0x161   : > { %5255 = vmatpush1.bf16.msra.mxu1 %v13504_v33  ;;  %5020 = vmatprep.subr.bf16.mxu0 %v13508_v35  ;;  %v13571_v15 = vld [vmem:[%s15828_s6] ss:$28 sps:$4 sm:$0xff]   ;;  %v13575_v20 = vld [vmem:[#allocation2 + $0x550] ss:$52 sps:$4 sm:$0xff]   ;;  %v13581_v21 = vld [vmem:[#allocation2 + $0x754] ss:$52 sps:$4 sm:$0xff]  }
 0x162   : > { %5256 = vmatprep.subr.bf16.mxu1 %v13512_v36  ;;  %5241 = vmatprep.mubr.bf16.mxu1 %v17767_v0  ;;  %v13574_v17 = vld [vmem:[#allocation2 + $0x6ec] ss:$52 sps:$4 sm:$0xff]   ;;  %v13572_v19 = vld [vmem:[#allocation2 + $0x6e8] ss:$52 sps:$4 sm:$0xff]   ;;  %v13579_v23 = vld [vmem:[#allocation2 + $0x750] ss:$52 sps:$4 sm:$0xff]  }
 0x163   : > { %v13584_v22 = vld [vmem:[#allocation2 + $0x5bc] ss:$52 sps:$4 sm:$0xff]   ;;  %v13582_v24 = vld [vmem:[#allocation2 + $0x5b8] ss:$52 sps:$4 sm:$0xff]   ;;  %v13588_v28 = vld [vmem:[#allocation2 + $0x620] ss:$52 sps:$4 sm:$0xff]  }
 0x164   : > { %5021 = vmatpush1.bf16.msra.mxu0 %v13513_v38  ;;  %v13587_v25 = vld [vmem:[#allocation2 + $0x7bc] ss:$52 sps:$4 sm:$0xff]   ;;  %v13590_v26 = vld [vmem:[#allocation2 + $0x624] ss:$52 sps:$4 sm:$0xff]   ;;  %v13596_v30 = vld [vmem:[#allocation2 + $0x68c] ss:$52 sps:$4 sm:$0xff]  }
 0x165   : > { %5257 = vmatpush1.bf16.msra.mxu1 %v13510_v37  ;;  %5022 = vmatprep.subr.bf16.mxu0 %v13514_v39  ;;  %v13585_v27 = vld [vmem:[#allocation2 + $0x7b8] ss:$52 sps:$4 sm:$0xff]   ;;  %v13591_v31 = vld [vmem:[#allocation2 + $0x820] ss:$52 sps:$4 sm:$0xff]   ;;  %v13594_v33 = vld [vmem:[#allocation2 + $0x688] ss:$52 sps:$4 sm:$0xff]  }
 0x166   : > { %5258 = vmatprep.subr.bf16.mxu1 %v13518_v40  ;;  %v13593_v29 = vld [vmem:[#allocation2 + $0x824] ss:$52 sps:$4 sm:$0xff]   ;;  %v13599_v34 = vld [vmem:[#allocation2 + $0x88c] ss:$52 sps:$4 sm:$0xff]   ;;  %v13602_v35 = vld [vmem:[#allocation2 + $0x6f4] ss:$52 sps:$4 sm:$0xff]  }
 0x167   : > { %v13639_v32 = vld [vmem:[%s15828_s6 + $0x3c] ss:$28 sps:$4 sm:$0xff]   ;;  %v13600_v38 = vld [vmem:[#allocation2 + $0x6f0] ss:$52 sps:$4 sm:$0xff]   ;;  %v13605_v39 = vld [vmem:[#allocation2 + $0x8f4] ss:$52 sps:$4 sm:$0xff]  }
 0x168   : > { %5023 = vmatpush1.bf16.msra.mxu0 %v13519_v42  ;;  %12031 = vmatmul.mubr.msk.bf16.gmra.mrb[8].mxu1 %vm4953_vm2, %v13578_v3  ;;  %v13647_v36 = vld [vmem:[%s15828_s6 + $0x38] ss:$28 sps:$4 sm:$0xff]   ;;  %v13597_v37 = vld [vmem:[#allocation2 + $0x888] ss:$52 sps:$4 sm:$0xff]   ;;  %s15394_s1 = smov 124   ;;  %s15395_s27 = smov 122  }
 0x169   : > { %5259 = vmatpush1.bf16.msra.mxu1 %v13516_v41  ;;  %5024 = vmatprep.subr.bf16.mxu0 %v13520_v43  ;;  %v13608_v40 = vld [vmem:[#allocation2 + $0x75c] ss:$52 sps:$4 sm:$0xff]   ;;  %v13636_v3 = vld [vmem:[#allocation2 + $0x960] ss:$52 sps:$4 sm:$0xff]   ;;  %vm15397_vm4 = vmmov 0   ;;  %vm6820_vm5 = vcmask 1014784  }
 0x16a   : > { %5260 = vmatprep.subr.bf16.mxu1 %v13524_v44  ;;  %5282 = vmatprep.mubr.bf16.mxu1 %v13563_v58  ;;  %v708_v41 = vld [vmem:[%s15828_s6 + $0x70] sm:$0x33]  ;;  %v13606_v44 = vld [vmem:[#allocation2 + $0x758] ss:$52 sps:$4 sm:$0xff]   ;;  %v13621_v57 = vld [vmem:[#allocation2 + $0xa28] ss:$52 sps:$4 sm:$0xff]  }
 0x16b   : > { %v15845_v42 = vcombine.high %v708_v41, %v708_v41  ;;  %v13603_v43 = vld [vmem:[#allocation2 + $0x8f0] ss:$52 sps:$4 sm:$0xff]   ;;  %vm6901_vm6 = vcmask 998400   ;;  %s15398_s22 = smov 120   ;;  %s15399_s2 = smov 118   ;;  %vm7593_vm7 = vcmask 1040384  }
 0x16c   : > { %5025 = vmatpush1.bf16.msra.mxu0 %v13525_v46  ;;  %v13614_v46 = vld [vmem:[#allocation2 + $0x7c4] ss:$52 sps:$4 sm:$0xff]   ;;  %vm6982_vm8 = vcmask 982016   ;;  %vm7063_vm9 = vcmask 965632   ;;  %vm7586_vm10 = vcmask 15360   ;;  %vm8357_vm11 = vcmask 1045504  }
 0x16d   : > { %5261 = vmatpush1.bf16.msra.mxu1 %v13522_v45  ;;  %5026 = vmatprep.subr.bf16.mxu0 %v13526_v47  ;;  %v13611_v45 = vld [vmem:[#allocation2 + $0x95c] ss:$52 sps:$4 sm:$0xff]   ;;  %v13609_v47 = vld [vmem:[#allocation2 + $0x958] ss:$52 sps:$4 sm:$0xff]   ;;  %s15400_s0 = smov 64   ;;  %vm9006_vm12 = vcmask 523264  }
 0x16e   : > { %5262 = vmatprep.subr.bf16.mxu1 %v13530_v48  ;;  %v13612_v48 = vld [vmem:[#allocation2 + $0x7c0] ss:$52 sps:$4 sm:$0xff]   ;;  %v13624_v58 = vld [vmem:[#allocation2 + $0x890] ss:$52 sps:$4 sm:$0xff]   ;;  %vm10675_vm13 = vcmask 1043456   ;;  %vm10671_vm14 = vcmask 588800  }
 0x16f   : > { %vm10917_vm15 = vcmask 408576   ;;  %vm11063_vm1 = vcmask 80896   ;;  %s17809_s23 = sld [smem:[#allocation34_spill]]  ;;  %s17810_s26 = sld [smem:[#allocation41_spill]] }
 0x170   : > { %5027 = vmatpush1.bf16.msra.mxu0 %v13531_v50  ;;  %v13668_v50 = vld [vmem:[%s15828_s6 + $0xc] ss:$28 sps:$4 sm:$0xff]  }
 0x171   : > { %5263 = vmatpush1.bf16.msra.mxu1 %v13528_v49  ;;  %5028 = vmatprep.subr.bf16.mxu0 %v13532_v51  ;;  %v15848_v49 = vcombine.low %v708_v41, %v708_v41  ;;  %v13617_v51 = vld [vmem:[#allocation2 + $0x9c4] ss:$52 sps:$4 sm:$0xff]   ;;  %v13692_v41 = vld [vmem:[#allocation2 + $0xca0] ss:$52 sps:$4 sm:$0xff]  }
 0x172   : > { %5264 = vmatprep.subr.bf16.mxu1 %v13536_v52  ;;  %v13620_v52 = vld [vmem:[#allocation2 + $0x82c] ss:$52 sps:$4 sm:$0xff]  }
 0x174   : > { %5029 = vmatpush1.bf16.msra.mxu0 %v13537_v54  ;;  %v13618_v54 = vld [vmem:[#allocation2 + $0x828] ss:$52 sps:$4 sm:$0xff]  }
 0x175   : > { %5265 = vmatpush1.bf16.msra.mxu1 %v13534_v53  ;;  %5030 = vmatprep.subr.bf16.mxu0 %v13538_v55  ;;  %v13615_v53 = vld [vmem:[#allocation2 + $0x9c0] ss:$52 sps:$4 sm:$0xff]   ;;  %s17811_s20 = smov %s17810_s26  ;;  %p17812_p1 = scmp.ne.s32.totalorder %s17809_s23, 0 }
 0x176   : > { %5266 = vmatprep.subr.bf16.mxu1 %v13542_v56  ;;  %v13623_v55 = vld [vmem:[#allocation2 + $0xa2c] ss:$52 sps:$4 sm:$0xff]   ;;  %v13626_v56 = vld [vmem:[#allocation2 + $0x894] ss:$52 sps:$4 sm:$0xff]  }
 0x178   : > { %5031 = vmatpush1.bf16.msra.mxu0 %v13543_v60  ;;  %v13632_v60 = vld [vmem:[#allocation2 + $0x8fc] ss:$52 sps:$4 sm:$0xff]  }
 0x179   : > { %5267 = vmatpush1.bf16.msra.mxu1 %v13540_v59  ;;  %5032 = vmatprep.subr.bf16.mxu0 %v13544_v61  ;;  %v13629_v59 = vld [vmem:[#allocation2 + $0xa94] ss:$52 sps:$4 sm:$0xff]   ;;  %v13627_v61 = vld [vmem:[#allocation2 + $0xa90] ss:$52 sps:$4 sm:$0xff]  }
 0x17a   : > { %5268 = vmatprep.subr.bf16.mxu1 %v13548_v62  ;;  %v13630_v62 = vld [vmem:[#allocation2 + $0x8f8] ss:$52 sps:$4 sm:$0xff]  }
 0x17c   : > { %5033 = vmatpush1.bf16.msra.mxu0 %v13549_v1  ;;  %v13638_v1 = vld [vmem:[#allocation2 + $0x964] ss:$52 sps:$4 sm:$0xff]  }
 0x17d   : > { %5269 = vmatpush1.bf16.msra.mxu1 %v13546_v63  ;;  %5034 = vmatprep.subr.bf16.mxu0 %v13550_v2  ;;  %v13635_v63 = vld [vmem:[#allocation2 + $0xafc] ss:$52 sps:$4 sm:$0xff]   ;;  %v13633_v2 = vld [vmem:[#allocation2 + $0xaf8] ss:$52 sps:$4 sm:$0xff]  }
 0x17e   : > { %5270 = vmatprep.subr.bf16.mxu1 %v13554_v4  ;;  %v13643_v4 = vld [vmem:[#allocation2 + $0xb64] ss:$52 sps:$4 sm:$0xff]  }
 0x180   : > { %5035 = vmatpush1.bf16.msra.mxu0 %v13555_v6  ;;  %v13641_v6 = vld [vmem:[#allocation2 + $0xb60] ss:$52 sps:$4 sm:$0xff]  }
 0x181   : > { %5271 = vmatpush1.bf16.msra.mxu1 %v13552_v5  ;;  %5036 = vmatprep.subr.bf16.mxu0 %v13556_v7  ;;  %v13646_v5 = vld [vmem:[#allocation2 + $0x9cc] ss:$52 sps:$4 sm:$0xff]   ;;  %v13644_v7 = vld [vmem:[#allocation2 + $0x9c8] ss:$52 sps:$4 sm:$0xff]  }
 0x182   : > { %5272 = vmatprep.subr.bf16.mxu1 %v13560_v8  ;;  %v13650_v8 = vld [vmem:[#allocation2 + $0xbcc] ss:$52 sps:$4 sm:$0xff]  }
 0x184   : > { %5037 = vmatpush1.bf16.msra.mxu0 %v13561_v10  ;;  %v13648_v10 = vld [vmem:[#allocation2 + $0xbc8] ss:$52 sps:$4 sm:$0xff]  }
 0x185   : > { %5273 = vmatpush1.bf16.msra.mxu1 %v13558_v9  ;;  %5067 = vmatprep.subr.bf16.mxu0 %v13567_v11  ;;  %v13653_v9 = vld [vmem:[#allocation2 + $0xa34] ss:$52 sps:$4 sm:$0xff]   ;;  %v13651_v11 = vld [vmem:[#allocation2 + $0xa30] ss:$52 sps:$4 sm:$0xff]  }
 0x186   : > { %5274 = vmatprep.subr.bf16.mxu1 %v13570_v12  ;;  %v13657_v12 = vld [vmem:[#allocation2 + $0xc34] ss:$52 sps:$4 sm:$0xff]  }
 0x187   : > { %5039 = vmatmul.mubr.bf16.vlgmr.msra.gmra.mrb[0].mxu0 %v13571_v15 }
 0x188   : > { %5068 = vmatpush1.bf16.msra.mxu0 %v13565_v13  ;;  %5048 = vmatprep.mubr.bf16.mxu0 %v13639_v32  ;;  %v13660_v13 = vld [vmem:[#allocation2 + $0xa9c] ss:$52 sps:$4 sm:$0xff]  }
 0x189   : > { %5275 = vmatpush1.bf16.msra.mxu1 %v13568_v14  ;;  %5069 = vmatprep.subr.bf16.mxu0 %v13574_v17  ;;  %v13655_v14 = vld [vmem:[#allocation2 + $0xc30] ss:$52 sps:$4 sm:$0xff]  }
 0x18a   : > { %5276 = vmatprep.subr.bf16.mxu1 %v13577_v18  ;;  %v13664_v17 = vld [vmem:[#allocation2 + $0xc9c] ss:$52 sps:$4 sm:$0xff]   ;;  %v13667_v18 = vld [vmem:[#allocation2 + $0xb04] ss:$52 sps:$4 sm:$0xff]  }
 0x18c   : > { %5070 = vmatpush1.bf16.msra.mxu0 %v13572_v19  ;;  %v13662_v19 = vld [vmem:[#allocation2 + $0xc98] ss:$52 sps:$4 sm:$0xff]  }
 0x18d   : > { %5277 = vmatpush1.bf16.msra.mxu1 %v13575_v20  ;;  %5071 = vmatprep.subr.bf16.mxu0 %v13581_v21  ;;  %v13665_v20 = vld [vmem:[#allocation2 + $0xb00] ss:$52 sps:$4 sm:$0xff]   ;;  %v13672_v21 = vld [vmem:[#allocation2 + $0xd04] ss:$52 sps:$4 sm:$0xff]  }
 0x18e   : > { %5278 = vmatprep.subr.bf16.mxu1 %v13584_v22  ;;  %v13675_v22 = vld [vmem:[#allocation2 + $0xb6c] ss:$52 sps:$4 sm:$0xff]  }
 0x18f   : > { %5049 = vmatmul.mubr.bf16.gmra.mrb[4].mxu0 %v13647_v36 }
 0x190   : > { %5072 = vmatpush1.bf16.msra.mxu0 %v13579_v23  ;;  %5058 = vmatprep.mubr.bf16.mxu0 %v15845_v42  ;;  %v13670_v23 = vld [vmem:[#allocation2 + $0xd00] ss:$52 sps:$4 sm:$0xff]  }
 0x191   : > { %5279 = vmatpush1.bf16.msra.mxu1 %v13582_v24  ;;  %5073 = vmatprep.subr.bf16.mxu0 %v13587_v25  ;;  %v13676_v24 = vld [vmem:[%s15828_s6 + $0x8] ss:$28 sps:$4 sm:$0xff]  }
 0x192   : > { %5280 = vmatprep.subr.bf16.mxu1 %v13590_v26  ;;  %v13673_v25 = vld [vmem:[#allocation2 + $0xb68] ss:$52 sps:$4 sm:$0xff]   ;;  %v13679_v26 = vld [vmem:[#allocation2 + $0xd6c] ss:$52 sps:$4 sm:$0xff]  }
 0x194   : > { %5074 = vmatpush1.bf16.msra.mxu0 %v13585_v27  ;;  %v13682_v27 = vld [vmem:[#allocation2 + $0xbd4] ss:$52 sps:$4 sm:$0xff]  }
 0x195   : > { %5281 = vmatpush1.bf16.msra.mxu1 %v13588_v28  ;;  %5075 = vmatprep.subr.bf16.mxu0 %v13593_v29  ;;  %v13743_v28 = vld [vmem:[%s15828_s6 + $0x44] ss:$28 sps:$4 sm:$0xff]   ;;  %v13677_v29 = vld [vmem:[#allocation2 + $0xd68] ss:$52 sps:$4 sm:$0xff]  }
 0x196   : > { %5311 = vmatprep.subr.bf16.mxu1 %v13596_v30  ;;  %v13680_v30 = vld [vmem:[#allocation2 + $0xbd0] ss:$52 sps:$4 sm:$0xff]  }
 0x197   : > { %5059 = vmatmul.mubr.bf16.gmra.mrb[8].mxu0 %v15848_v49 }
 0x198   : > { %5283 = vmatmul.mubr.bf16.vlgmr.msra.gmra.mrb[12].mxu1 %v13571_v15  ;;  %5076 = vmatpush1.bf16.msra.mxu0 %v13591_v31  ;;  %v13658_v15 = vld [vmem:[#allocation2 + $0xa98] ss:$52 sps:$4 sm:$0xff]   ;;  %v13685_v31 = vld [vmem:[#allocation2 + $0xdd4] ss:$52 sps:$4 sm:$0xff]  }
 0x199   : > { %5312 = vmatpush1.bf16.msra.mxu1 %v13594_v33  ;;  %5077 = vmatprep.subr.bf16.mxu0 %v13599_v34  ;;  %v13745_v33 = vld [vmem:[%s15828_s6 + $0x40] ss:$28 sps:$4 sm:$0xff]  }
 0x19a   : > { %5313 = vmatprep.subr.bf16.mxu1 %v13602_v35  ;;  %5292 = vmatprep.mubr.bf16.mxu1 %v13639_v32  ;;  %v13688_v32 = vld [vmem:[#allocation2 + $0xc3c] ss:$52 sps:$4 sm:$0xff]  }
 0x19b   : > { %5099 = vmatprep.mubr.bf16.mxu0 %v13668_v50  ;;  %v709_v34 = vld [vmem:[%s15828_s6 + $0x78] sm:$0x33]  ;;  %v13683_v35 = vld [vmem:[#allocation2 + $0xdd0] ss:$52 sps:$4 sm:$0xff]  }
 0x19c   : > { %5078 = vmatpush1.bf16.msra.mxu0 %v13597_v37  ;;  %v13691_v37 = vld [vmem:[#allocation2 + $0xe3c] ss:$52 sps:$4 sm:$0xff]  }
 0x19d   : > { %5314 = vmatpush1.bf16.msra.mxu1 %v13600_v38  ;;  %5079 = vmatprep.subr.bf16.mxu0 %v13605_v39  ;;  %v13694_v38 = vld [vmem:[#allocation2 + $0xca4] ss:$52 sps:$4 sm:$0xff]   ;;  %v15858_v39 = vcombine.high %v709_v34, %v709_v34 }
 0x19e   : > { %5315 = vmatprep.subr.bf16.mxu1 %v13608_v40  ;;  %v13689_v40 = vld [vmem:[#allocation2 + $0xe38] ss:$52 sps:$4 sm:$0xff]  }
 0x1a0   : > { %5293 = vmatmul.mubr.bf16.gmra.mrb[16].mxu1 %v13647_v36  ;;  %5080 = vmatpush1.bf16.msra.mxu0 %v13603_v43  ;;  %v13686_v36 = vld [vmem:[#allocation2 + $0xc38] ss:$52 sps:$4 sm:$0xff]  }
 0x1a1   : > { %5316 = vmatpush1.bf16.msra.mxu1 %v13606_v44  ;;  %5081 = vmatprep.subr.bf16.mxu0 %v13611_v45  ;;  %v13697_v43 = vld [vmem:[#allocation2 + $0xea4] ss:$52 sps:$4 sm:$0xff]   ;;  %v13700_v44 = vld [vmem:[#allocation2 + $0xd0c] ss:$52 sps:$4 sm:$0xff]   ;;  %v15861_v45 = vcombine.low %v709_v34, %v709_v34 }
 0x1a2   : > { %5317 = vmatprep.subr.bf16.mxu1 %v13614_v46  ;;  %5302 = vmatprep.mubr.bf16.mxu1 %v15845_v42  ;;  %v13695_v46 = vld [vmem:[#allocation2 + $0xea0] ss:$52 sps:$4 sm:$0xff]   ;;  %v13774_v34 = vld [vmem:[%s15828_s6 + $0x10] ss:$28 sps:$4 sm:$0xff]  }
 0x1a4   : > { %5082 = vmatpush1.bf16.msra.mxu0 %v13609_v47  ;;  %v13698_v47 = vld [vmem:[#allocation2 + $0xd08] ss:$52 sps:$4 sm:$0xff]  }
 0x1a5   : > { %5318 = vmatpush1.bf16.msra.mxu1 %v13612_v48  ;;  %5083 = vmatprep.subr.bf16.mxu0 %v13617_v51  ;;  %v13703_v48 = vld [vmem:[#allocation2 + $0xf0c] ss:$52 sps:$4 sm:$0xff]   ;;  %v13772_v51 = vld [vmem:[%s15828_s6 + $0x14] ss:$28 sps:$4 sm:$0xff]  }
 0x1a6   : > { %5319 = vmatprep.subr.bf16.mxu1 %v13620_v52  ;;  %v13701_v52 = vld [vmem:[#allocation2 + $0xf08] ss:$52 sps:$4 sm:$0xff]  }
 0x1a8   : > { %5303 = vmatmul.mubr.bf16.gmra.mrb[20].mxu1 %v15848_v49  ;;  %5084 = vmatpush1.bf16.msra.mxu0 %v13615_v53  ;;  %v13704_v53 = vld [vmem:[#allocation2 + $0xd70] ss:$52 sps:$4 sm:$0xff]  }
 0x1a9   : > { %5320 = vmatpush1.bf16.msra.mxu1 %v13618_v54  ;;  %5085 = vmatprep.subr.bf16.mxu0 %v13623_v55  ;;  %v13709_v54 = vld [vmem:[#allocation2 + $0xf74] ss:$52 sps:$4 sm:$0xff]   ;;  %v13712_v55 = vld [vmem:[#allocation2 + $0xddc] ss:$52 sps:$4 sm:$0xff]  }
 0x1aa   : > { %5321 = vmatprep.subr.bf16.mxu1 %v13626_v56  ;;  %5343 = vmatprep.mubr.bf16.mxu1 %v13668_v50  ;;  %v13706_v50 = vld [vmem:[#allocation2 + $0xd74] ss:$52 sps:$4 sm:$0xff]   ;;  %v13707_v56 = vld [vmem:[#allocation2 + $0xf70] ss:$52 sps:$4 sm:$0xff]  }
 0x1ac   : > { %5086 = vmatpush1.bf16.msra.mxu0 %v13621_v57  ;;  %v13710_v57 = vld [vmem:[#allocation2 + $0xdd8] ss:$52 sps:$4 sm:$0xff]  }
 0x1ad   : > { %5322 = vmatpush1.bf16.msra.mxu1 %v13624_v58  ;;  %5087 = vmatprep.subr.bf16.mxu0 %v13629_v59  ;;  %v13715_v58 = vld [vmem:[#allocation2 + $0xfdc] ss:$52 sps:$4 sm:$0xff]   ;;  %v13718_v59 = vld [vmem:[#allocation2 + $0xe44] ss:$52 sps:$4 sm:$0xff]  }
 0x1ae   : > { %5323 = vmatprep.subr.bf16.mxu1 %v13632_v60  ;;  %v13713_v60 = vld [vmem:[#allocation2 + $0xfd8] ss:$52 sps:$4 sm:$0xff]  }
 0x1b0   : > { %5088 = vmatpush1.bf16.msra.mxu0 %v13627_v61  ;;  %v13716_v61 = vld [vmem:[#allocation2 + $0xe40] ss:$52 sps:$4 sm:$0xff]  }
 0x1b1   : > { %5324 = vmatpush1.bf16.msra.mxu1 %v13630_v62  ;;  %5089 = vmatprep.subr.bf16.mxu0 %v13635_v63  ;;  %v13721_v62 = vld [vmem:[#allocation2 + $0x1044] ss:$52 sps:$4 sm:$0xff]   ;;  %v13724_v63 = vld [vmem:[#allocation2 + $0xeac] ss:$52 sps:$4 sm:$0xff]  }
 0x1b2   : > { %5325 = vmatprep.subr.bf16.mxu1 %v13638_v1  ;;  %v13719_v1 = vld [vmem:[#allocation2 + $0x1040] ss:$52 sps:$4 sm:$0xff]  }
 0x1b4   : > { %5090 = vmatpush1.bf16.msra.mxu0 %v13633_v2  ;;  %v13722_v2 = vld [vmem:[#allocation2 + $0xea8] ss:$52 sps:$4 sm:$0xff]  }
 0x1b5   : > { %5326 = vmatpush1.bf16.msra.mxu1 %v13636_v3  ;;  %5091 = vmatprep.subr.bf16.mxu0 %v13643_v4  ;;  %v13727_v3 = vld [vmem:[#allocation2 + $0x10ac] ss:$52 sps:$4 sm:$0xff]   ;;  %v13730_v4 = vld [vmem:[#allocation2 + $0xf14] ss:$52 sps:$4 sm:$0xff]  }
 0x1b6   : > { %5327 = vmatprep.subr.bf16.mxu1 %v13646_v5  ;;  %v13725_v5 = vld [vmem:[#allocation2 + $0x10a8] ss:$52 sps:$4 sm:$0xff]  }
 0x1b8   : > { %5092 = vmatpush1.bf16.msra.mxu0 %v13641_v6  ;;  %v13728_v6 = vld [vmem:[#allocation2 + $0xf10] ss:$52 sps:$4 sm:$0xff]  }
 0x1b9   : > { %5328 = vmatpush1.bf16.msra.mxu1 %v13644_v7  ;;  %5093 = vmatprep.subr.bf16.mxu0 %v13650_v8  ;;  %v13733_v7 = vld [vmem:[#allocation2 + $0x1114] ss:$52 sps:$4 sm:$0xff]   ;;  %v13736_v8 = vld [vmem:[#allocation2 + $0xf7c] ss:$52 sps:$4 sm:$0xff]  }
 0x1ba   : > { %5329 = vmatprep.subr.bf16.mxu1 %v13653_v9  ;;  %v13731_v9 = vld [vmem:[#allocation2 + $0x1110] ss:$52 sps:$4 sm:$0xff]  }
 0x1bc   : > { %5094 = vmatpush1.bf16.msra.mxu0 %v13648_v10  ;;  %v13734_v10 = vld [vmem:[#allocation2 + $0xf78] ss:$52 sps:$4 sm:$0xff]  }
 0x1bd   : > { %5330 = vmatpush1.bf16.msra.mxu1 %v13651_v11  ;;  %5095 = vmatprep.subr.bf16.mxu0 %v13657_v12  ;;  %v13739_v11 = vld [vmem:[#allocation2 + $0x117c] ss:$52 sps:$4 sm:$0xff]   ;;  %v13742_v12 = vld [vmem:[#allocation2 + $0xfe4] ss:$52 sps:$4 sm:$0xff]  }
 0x1be   : > { %5331 = vmatprep.subr.bf16.mxu1 %v13660_v13  ;;  %v13737_v13 = vld [vmem:[#allocation2 + $0x1178] ss:$52 sps:$4 sm:$0xff]  }
 0x1c0   : > { %5096 = vmatpush1.bf16.msra.mxu0 %v13655_v14  ;;  %v13740_v14 = vld [vmem:[#allocation2 + $0xfe0] ss:$52 sps:$4 sm:$0xff]  }
 0x1c1   : > { %5332 = vmatpush1.bf16.msra.mxu1 %v13658_v15  ;;  %5097 = vmatprep.subr.bf16.mxu0 %v13664_v17  ;;  %v13748_v15 = vld [vmem:[#allocation2 + $0x11e4] ss:$52 sps:$4 sm:$0xff]   ;;  %v13751_v17 = vld [vmem:[#allocation2 + $0x104c] ss:$52 sps:$4 sm:$0xff]  }
 0x1c2   : > { %5333 = vmatprep.subr.bf16.mxu1 %v13667_v18  ;;  %v13746_v18 = vld [vmem:[#allocation2 + $0x11e0] ss:$52 sps:$4 sm:$0xff]  }
 0x1c4   : > { %5098 = vmatpush1.bf16.msra.mxu0 %v13662_v19  ;;  %v13749_v19 = vld [vmem:[#allocation2 + $0x1048] ss:$52 sps:$4 sm:$0xff]  }
 0x1c5   : > { %5334 = vmatpush1.bf16.msra.mxu1 %v13665_v20  ;;  %5128 = vmatprep.subr.bf16.mxu0 %v13672_v21  ;;  %v13754_v20 = vld [vmem:[#allocation2 + $0x124c] ss:$52 sps:$4 sm:$0xff]   ;;  %v13757_v21 = vld [vmem:[#allocation2 + $0x10b4] ss:$52 sps:$4 sm:$0xff]  }
 0x1c6   : > { %5335 = vmatprep.subr.bf16.mxu1 %v13675_v22  ;;  %v13752_v22 = vld [vmem:[#allocation2 + $0x1248] ss:$52 sps:$4 sm:$0xff]  }
 0x1c7   : > { %5100 = vmatmul.mubr.bf16.vlgmr.msra.gmra.mrb[0].mxu0 %v13676_v24 }
 0x1c8   : > { %5129 = vmatpush1.bf16.msra.mxu0 %v13670_v23  ;;  %5109 = vmatprep.mubr.bf16.mxu0 %v13743_v28  ;;  %v13755_v23 = vld [vmem:[#allocation2 + $0x10b0] ss:$52 sps:$4 sm:$0xff]  }
 0x1c9   : > { %5336 = vmatpush1.bf16.msra.mxu1 %v13673_v25  ;;  %5130 = vmatprep.subr.bf16.mxu0 %v13679_v26  ;;  %v13765_v25 = vld [vmem:[#allocation2 + $0x111c] ss:$52 sps:$4 sm:$0xff]  }
 0x1ca   : > { %5337 = vmatprep.subr.bf16.mxu1 %v13682_v27  ;;  %v13760_v26 = vld [vmem:[#allocation2 + $0x12b0] ss:$52 sps:$4 sm:$0xff]   ;;  %v13763_v27 = vld [vmem:[#allocation2 + $0x1118] ss:$52 sps:$4 sm:$0xff]  }
 0x1cc   : > { %5131 = vmatpush1.bf16.msra.mxu0 %v13677_v29  ;;  %v13771_v29 = vld [vmem:[#allocation2 + $0x1184] ss:$52 sps:$4 sm:$0xff]  }
 0x1cd   : > { %5338 = vmatpush1.bf16.msra.mxu1 %v13680_v30  ;;  %5132 = vmatprep.subr.bf16.mxu0 %v13685_v31  ;;  %v13766_v30 = vld [vmem:[#allocation2 + $0x1318] ss:$52 sps:$4 sm:$0xff]   ;;  %v13769_v31 = vld [vmem:[#allocation2 + $0x1180] ss:$52 sps:$4 sm:$0xff]  }
 0x1ce   : > { %5339 = vmatprep.subr.bf16.mxu1 %v13688_v32  ;;  %v13777_v32 = vld [vmem:[#allocation2 + $0x11ec] ss:$52 sps:$4 sm:$0xff]  }
 0x1cf   : > { %5110 = vmatmul.mubr.bf16.gmra.mrb[4].mxu0 %v13745_v33 }
 0x1d0   : > { %5133 = vmatpush1.bf16.msra.mxu0 %v13683_v35  ;;  %5119 = vmatprep.mubr.bf16.mxu0 %v15858_v39  ;;  %v13775_v35 = vld [vmem:[#allocation2 + $0x11e8] ss:$52 sps:$4 sm:$0xff]  }
 0x1d1   : > { %5340 = vmatpush1.bf16.msra.mxu1 %v13686_v36  ;;  %5134 = vmatprep.subr.bf16.mxu0 %v13691_v37  ;;  %v13778_v36 = vld [vmem:[#allocation2 + $0x10] ss:$52 sps:$4 sm:$0xff]   ;;  %v13783_v37 = vld [vmem:[#allocation2 + $0x1254] ss:$52 sps:$4 sm:$0xff]  }
 0x1d2   : > { %5341 = vmatprep.subr.bf16.mxu1 %v13694_v38  ;;  %v13786_v38 = vld [vmem:[#allocation2 + $0x7c] ss:$52 sps:$4 sm:$0xff]  }
 0x1d4   : > { %5135 = vmatpush1.bf16.msra.mxu0 %v13689_v40  ;;  %v13787_v40 = vld [vmem:[%s15828_s6 + $0x4c] ss:$28 sps:$4 sm:$0xff]  }
 0x1d5   : > { %5342 = vmatpush1.bf16.msra.mxu1 %v13692_v41  ;;  %5136 = vmatprep.subr.bf16.mxu0 %v13697_v43  ;;  %v13781_v41 = vld [vmem:[#allocation2 + $0x1250] ss:$52 sps:$4 sm:$0xff]   ;;  %v13784_v43 = vld [vmem:[#allocation2 + $0x78] ss:$52 sps:$4 sm:$0xff]  }
 0x1d6   : > { %5372 = vmatprep.subr.bf16.mxu1 %v13700_v44  ;;  %v13792_v44 = vld [vmem:[#allocation2 + $0x12bc] ss:$52 sps:$4 sm:$0xff]  }
 0x1d7   : > { %5120 = vmatmul.mubr.bf16.gmra.mrb[8].mxu0 %v15861_v45 }
 0x1d8   : > { %5344 = vmatmul.mubr.bf16.vlgmr.msra.gmra.mrb[12].mxu1 %v13676_v24  ;;  %5137 = vmatpush1.bf16.msra.mxu0 %v13695_v46  ;;  %v13762_v24 = vld [vmem:[#allocation2 + $0x12b4] ss:$52 sps:$4 sm:$0xff]   ;;  %v13795_v46 = vld [vmem:[#allocation2 + $0xe4] ss:$52 sps:$4 sm:$0xff]  }
 0x1d9   : > { %5373 = vmatpush1.bf16.msra.mxu1 %v13698_v47  ;;  %5138 = vmatprep.subr.bf16.mxu0 %v13703_v48  ;;  %v13789_v47 = vld [vmem:[%s15828_s6 + $0x48] ss:$28 sps:$4 sm:$0xff]   ;;  %v13790_v48 = vld [vmem:[#allocation2 + $0x12b8] ss:$52 sps:$4 sm:$0xff]  }
 0x1da   : > { %5374 = vmatprep.subr.bf16.mxu1 %v13706_v50  ;;  %5160 = vmatprep.mubr.bf16.mxu0 %v13772_v51  ;;  %v710_v50 = vld [vmem:[%s15828_s6 + $0x80] sm:$0x33] }
 0x1db   : > { %5353 = vmatprep.mubr.bf16.mxu1 %v13743_v28  ;;  %v13768_v28 = vld [vmem:[#allocation2 + $0x131c] ss:$52 sps:$4 sm:$0xff]  }
 0x1dc   : > { %5139 = vmatpush1.bf16.msra.mxu0 %v13701_v52  ;;  %v13798_v52 = vld [vmem:[#allocation2 + $0x1324] ss:$52 sps:$4 sm:$0xff]  }
 0x1dd   : > { %5375 = vmatpush1.bf16.msra.mxu1 %v13704_v53  ;;  %5140 = vmatprep.subr.bf16.mxu0 %v13709_v54  ;;  %v13801_v53 = vld [vmem:[#allocation2 + $0x14c] ss:$52 sps:$4 sm:$0xff]   ;;  %v15871_v54 = vcombine.high %v710_v50, %v710_v50 }
 0x1de   : > { %5376 = vmatprep.subr.bf16.mxu1 %v13712_v55  ;;  %v13796_v55 = vld [vmem:[#allocation2 + $0x1320] ss:$52 sps:$4 sm:$0xff]  }
 0x1e0   : > { %5354 = vmatmul.mubr.bf16.gmra.mrb[16].mxu1 %v13745_v33  ;;  %5141 = vmatpush1.bf16.msra.mxu0 %v13707_v56  ;;  %v13780_v33 = vld [vmem:[#allocation2 + $0x14] ss:$52 sps:$4 sm:$0xff]  }
 0x1e1   : > { %5377 = vmatpush1.bf16.msra.mxu1 %v13710_v57  ;;  %5142 = vmatprep.subr.bf16.mxu0 %v13715_v58  ;;  %v13799_v56 = vld [vmem:[#allocation2 + $0x148] ss:$52 sps:$4 sm:$0xff]   ;;  %v13806_v57 = vld [vmem:[#allocation2 + $0x138c] ss:$52 sps:$4 sm:$0xff]  }
 0x1e2   : > { %5378 = vmatprep.subr.bf16.mxu1 %v13718_v59  ;;  %5363 = vmatprep.mubr.bf16.mxu1 %v15858_v39  ;;  %v13809_v58 = vld [vmem:[#allocation2 + $0x1b4] ss:$52 sps:$4 sm:$0xff]   ;;  %v15874_v59 = vcombine.low %v710_v50, %v710_v50  ;;  %v13869_v50 = vld [vmem:[#allocation2 + $0x62c] ss:$52 sps:$4 sm:$0xff]  }
 0x1e4   : > { %5143 = vmatpush1.bf16.msra.mxu0 %v13713_v60  ;;  %v13804_v60 = vld [vmem:[#allocation2 + $0x1388] ss:$52 sps:$4 sm:$0xff]  }
 0x1e5   : > { %5379 = vmatpush1.bf16.msra.mxu1 %v13716_v61  ;;  %5144 = vmatprep.subr.bf16.mxu0 %v13721_v62  ;;  %v13807_v61 = vld [vmem:[#allocation2 + $0x1b0] ss:$52 sps:$4 sm:$0xff]  }
 0x1e6   : > { %5380 = vmatprep.subr.bf16.mxu1 %v13724_v63  ;;  %v13812_v62 = vld [vmem:[#allocation2 + $0x21c] ss:$52 sps:$4 sm:$0xff]   ;;  %v13815_v63 = vld [vmem:[#allocation2 + $0x13f4] ss:$52 sps:$4 sm:$0xff]  }
 0x1e8   : > { %5364 = vmatmul.mubr.bf16.gmra.mrb[20].mxu1 %v15861_v45  ;;  %5145 = vmatpush1.bf16.msra.mxu0 %v13719_v1  ;;  %v13810_v1 = vld [vmem:[#allocation2 + $0x218] ss:$52 sps:$4 sm:$0xff]  }
 0x1e9   : > { %5381 = vmatpush1.bf16.msra.mxu1 %v13722_v2  ;;  %5146 = vmatprep.subr.bf16.mxu0 %v13727_v3  ;;  %v13813_v2 = vld [vmem:[#allocation2 + $0x13f0] ss:$52 sps:$4 sm:$0xff]  }
 0x1ea   : > { %5382 = vmatprep.subr.bf16.mxu1 %v13730_v4  ;;  %5404 = vmatprep.mubr.bf16.mxu1 %v13772_v51  ;;  %v13793_v51 = vld [vmem:[#allocation2 + $0xe0] ss:$52 sps:$4 sm:$0xff]   ;;  %v13818_v3 = vld [vmem:[#allocation2 + $0x284] ss:$52 sps:$4 sm:$0xff]   ;;  %v13821_v4 = vld [vmem:[#allocation2 + $0x145c] ss:$52 sps:$4 sm:$0xff]  }
 0x1ec   : > { %5147 = vmatpush1.bf16.msra.mxu0 %v13725_v5  ;;  %v13830_v5 = vld [vmem:[#allocation2 + $0x14c4] ss:$52 sps:$4 sm:$0xff]  }
 0x1ed   : > { %5383 = vmatpush1.bf16.msra.mxu1 %v13728_v6  ;;  %5148 = vmatprep.subr.bf16.mxu0 %v13733_v7  ;;  %v15878_v6 = vld [vmem:[%s15828_s6 + $0x4] ss:$28 sps:$4 sm:$0xff]  }
 0x1ee   : > { %5384 = vmatprep.subr.bf16.mxu1 %v13736_v8  ;;  %v13816_v7 = vld [vmem:[#allocation2 + $0x280] ss:$52 sps:$4 sm:$0xff]   ;;  %v13819_v8 = vld [vmem:[#allocation2 + $0x1458] ss:$52 sps:$4 sm:$0xff]  }
 0x1f0   : > { %5149 = vmatpush1.bf16.msra.mxu0 %v13731_v9  ;;  %v13828_v9 = vld [vmem:[#allocation2 + $0x14c0] ss:$52 sps:$4 sm:$0xff]  }
 0x1f1   : > { %5385 = vmatpush1.bf16.msra.mxu1 %v13734_v10  ;;  %5150 = vmatprep.subr.bf16.mxu0 %v13739_v11  ;;  %v13824_v10 = vld [vmem:[#allocation2 + $0x2ec] ss:$52 sps:$4 sm:$0xff]   ;;  %v4977_v11 = vand.u32 %v13830_v5, %v15823_v16  ;;  %v13884_v5 = vld [vmem:[#allocation2 + $0x35c] ss:$52 sps:$4 sm:$0xff]  }
 0x1f2   : > { %5386 = vmatprep.subr.bf16.mxu1 %v13742_v12  ;;  %v13822_v12 = vld [vmem:[#allocation2 + $0x2e8] ss:$52 sps:$4 sm:$0xff]  }
 0x1f4   : > { %5151 = vmatpush1.bf16.msra.mxu0 %v13737_v13  ;;  %v13827_v13 = vld [vmem:[#allocation2 + $0x354] ss:$52 sps:$4 sm:$0xff]  }
 0x1f5   : > { %5387 = vmatpush1.bf16.msra.mxu1 %v13740_v14  ;;  %5152 = vmatprep.subr.bf16.mxu0 %v13748_v15  ;;  %v4974_v14 = vand.u32 %v13828_v9, %v15823_v16  ;;  %v13836_v15 = vld [vmem:[#allocation2 + $0x1c] ss:$52 sps:$4 sm:$0xff]   ;;  %v13882_v9 = vld [vmem:[#allocation2 + $0x358] ss:$52 sps:$4 sm:$0xff]  }
 0x1f6   : > { %5388 = vmatprep.subr.bf16.mxu1 %v13751_v17  ;;  %v13825_v17 = vld [vmem:[#allocation2 + $0x350] ss:$52 sps:$4 sm:$0xff]  }
 0x1f8   : > { %5153 = vmatpush1.bf16.msra.mxu0 %v13746_v18  ;;  %v13833_v18 = vld [vmem:[#allocation2 + $0x3bc] ss:$52 sps:$4 sm:$0xff]  }
 0x1f9   : > { %5389 = vmatpush1.bf16.msra.mxu1 %v13749_v19  ;;  %5154 = vmatprep.subr.bf16.mxu0 %v13754_v20  ;;  %v13831_v19 = vld [vmem:[#allocation2 + $0x3b8] ss:$52 sps:$4 sm:$0xff]  }
 0x1fa   : > { %5390 = vmatprep.subr.bf16.mxu1 %v13757_v21  ;;  %v13839_v20 = vld [vmem:[#allocation2 + $0x424] ss:$52 sps:$4 sm:$0xff]  }
 0x1fc   : > { %5155 = vmatpush1.bf16.msra.mxu0 %v13752_v22 }
 0x1fd   : > { %5391 = vmatpush1.bf16.msra.mxu1 %v13755_v23  ;;  %5156 = vmatprep.subr.bf16.mxu0 %v13762_v24  ;;  %v13834_v23 = vld [vmem:[#allocation2 + $0x18] ss:$52 sps:$4 sm:$0xff]  }
 0x1fe   : > { %5392 = vmatprep.subr.bf16.mxu1 %v13765_v25  ;;  %v13837_v25 = vld [vmem:[#allocation2 + $0x420] ss:$52 sps:$4 sm:$0xff]  }
 0x200   : > { %5157 = vmatpush1.bf16.msra.mxu0 %v13760_v26  ;;  %v13842_v26 = vld [vmem:[#allocation2 + $0x84] ss:$52 sps:$4 sm:$0xff]  }
 0x201   : > { %5393 = vmatpush1.bf16.msra.mxu1 %v13763_v27  ;;  %5158 = vmatprep.subr.bf16.mxu0 %v13768_v28  ;;  %v13845_v28 = vld [vmem:[#allocation2 + $0x48c] ss:$52 sps:$4 sm:$0xff]  }
 0x202   : > { %5394 = vmatprep.subr.bf16.mxu1 %v13771_v29  ;;  %v14938_v29 = vld [vmem:[%s15828_s6 + $0x18] ss:$28 sps:$4 sm:$0xff]  }
 0x204   : > { %5159 = vmatpush1.bf16.msra.mxu0 %v13766_v30  ;;  %v13840_v30 = vld [vmem:[#allocation2 + $0x80] ss:$52 sps:$4 sm:$0xff]  }
 0x205   : > { %5395 = vmatpush1.bf16.msra.mxu1 %v13769_v31  ;;  %5494 = vmatprep.subr.bf16.mxu0 %v13780_v33  ;;  %v13843_v31 = vld [vmem:[#allocation2 + $0x488] ss:$52 sps:$4 sm:$0xff]  }
 0x206   : > { %5396 = vmatprep.subr.bf16.mxu1 %v13777_v32  ;;  %v13848_v32 = vld [vmem:[#allocation2 + $0xec] ss:$52 sps:$4 sm:$0xff]   ;;  %v13851_v33 = vld [vmem:[#allocation2 + $0x4f4] ss:$52 sps:$4 sm:$0xff]  }
 0x207   : > { %5161 = vmatmul.mubr.bf16.vlgmr.msra.gmra.mrb[0].mxu0 %v13774_v34 }
 0x208   : > { %5495 = vmatpush1.bf16.msra.mxu0 %v13778_v36  ;;  %5170 = vmatprep.mubr.bf16.mxu0 %v13787_v40  ;;  %v13854_v36 = vld [vmem:[#allocation2 + $0x154] ss:$52 sps:$4 sm:$0xff]  }
 0x209   : > { %5397 = vmatpush1.bf16.msra.mxu1 %v13775_v35  ;;  %5496 = vmatprep.subr.bf16.mxu0 %v13786_v38  ;;  %v13849_v35 = vld [vmem:[#allocation2 + $0x4f0] ss:$52 sps:$4 sm:$0xff]  }
 0x20a   : > { %5398 = vmatprep.subr.bf16.mxu1 %v13783_v37  ;;  %v13857_v37 = vld [vmem:[#allocation2 + $0x55c] ss:$52 sps:$4 sm:$0xff]  }
 0x20b   : > { %v14939_v38 = vld [vmem:[%s15828_s6 + $0x50] ss:$28 sps:$4 sm:$0xff]  }
 0x20c   : > { %5497 = vmatpush1.bf16.msra.mxu0 %v13784_v43  ;;  %v13860_v43 = vld [vmem:[#allocation2 + $0x1bc] ss:$52 sps:$4 sm:$0xff]  }
 0x20d   : > { %5399 = vmatpush1.bf16.msra.mxu1 %v13781_v41  ;;  %5498 = vmatprep.subr.bf16.mxu0 %v13795_v46  ;;  %v13855_v41 = vld [vmem:[#allocation2 + $0x558] ss:$52 sps:$4 sm:$0xff]  }
 0x20e   : > { %5400 = vmatprep.subr.bf16.mxu1 %v13792_v44  ;;  %v13863_v44 = vld [vmem:[#allocation2 + $0x5c4] ss:$52 sps:$4 sm:$0xff]  }
 0x20f   : > { %5171 = vmatmul.mubr.bf16.gmra.mrb[4].mxu0 %v13789_v47  ;;  %v13858_v46 = vld [vmem:[#allocation2 + $0x1b8] ss:$52 sps:$4 sm:$0xff]  }
 0x210   : > { %5499 = vmatpush1.bf16.msra.mxu0 %v13793_v51  ;;  %5180 = vmatprep.mubr.bf16.mxu0 %v15871_v54  ;;  %v14940_v51 = vld [vmem:[%s15828_s6 + $0x88] ss:$0 sps:$4 sm:$0x33]  }
 0x211   : > { %5401 = vmatpush1.bf16.msra.mxu1 %v13790_v48  ;;  %5500 = vmatprep.subr.bf16.mxu0 %v13801_v53  ;;  %v13866_v48 = vld [vmem:[#allocation2 + $0x224] ss:$52 sps:$4 sm:$0xff]   ;;  %v13867_v53 = vld [vmem:[#allocation2 + $0x628] ss:$52 sps:$4 sm:$0xff]  }
 0x212   : > { %5402 = vmatprep.subr.bf16.mxu1 %v13798_v52  ;;  %v13864_v52 = vld [vmem:[#allocation2 + $0x220] ss:$52 sps:$4 sm:$0xff]  }
 0x214   : > { %5501 = vmatpush1.bf16.msra.mxu0 %v13799_v56  ;;  %v13875_v56 = vld [vmem:[#allocation2 + $0x694] ss:$52 sps:$4 sm:$0xff]  }
 0x215   : > { %5403 = vmatpush1.bf16.msra.mxu1 %v13796_v55  ;;  %5502 = vmatprep.subr.bf16.mxu0 %v13809_v58  ;;  %v13872_v55 = vld [vmem:[#allocation2 + $0x28c] ss:$52 sps:$4 sm:$0xff]   ;;  %v13873_v58 = vld [vmem:[#allocation2 + $0x690] ss:$52 sps:$4 sm:$0xff]  }
 0x216   : > { %5433 = vmatprep.subr.bf16.mxu1 %v13806_v57  ;;  %v13870_v57 = vld [vmem:[#allocation2 + $0x288] ss:$52 sps:$4 sm:$0xff]  }
 0x217   : > { %5181 = vmatmul.mubr.bf16.gmra.mrb[8].mxu0 %v15874_v59 }
 0x218   : > { %5405 = vmatmul.mubr.bf16.vlgmr.msra.gmra.mrb[12].mxu1 %v13774_v34  ;;  %5503 = vmatpush1.bf16.msra.mxu0 %v13807_v61  ;;  %v13846_v34 = vld [vmem:[#allocation2 + $0xe8] ss:$52 sps:$4 sm:$0xff]  }
 0x219   : > { %5434 = vmatpush1.bf16.msra.mxu1 %v13804_v60  ;;  %5504 = vmatprep.subr.bf16.mxu0 %v13812_v62  ;;  %v13878_v60 = vld [vmem:[#allocation2 + $0x2f4] ss:$52 sps:$4 sm:$0xff]   ;;  %v13881_v61 = vld [vmem:[#allocation2 + $0x6fc] ss:$52 sps:$4 sm:$0xff]  }
 0x21a   : > { %5435 = vmatprep.subr.bf16.mxu1 %v13815_v63  ;;  %5414 = vmatprep.mubr.bf16.mxu1 %v13787_v40  ;;  %v13852_v40 = vld [vmem:[#allocation2 + $0x150] ss:$52 sps:$4 sm:$0xff]  }
 0x21b   : > { %5526 = vmatprep.mubr.bf16.mxu0 %v15878_v6 }
 0x21c   : > { %5505 = vmatpush1.bf16.msra.mxu0 %v13810_v1  ;;  %v15908_v1 = vld [vmem:[%s15828_s6] ss:$28 sps:$4 sm:$0xff]  }
 0x21d   : > { %5436 = vmatpush1.bf16.msra.mxu1 %v13813_v2  ;;  %5506 = vmatprep.subr.bf16.mxu0 %v13818_v3  ;;  %v13876_v2 = vld [vmem:[#allocation2 + $0x2f0] ss:$52 sps:$4 sm:$0xff]  }
 0x21e   : > { %5437 = vmatprep.subr.bf16.mxu1 %v13821_v4  ;;  %v13879_v4 = vld [vmem:[#allocation2 + $0x6f8] ss:$52 sps:$4 sm:$0xff]  }
 0x220   : > { %5415 = vmatmul.mubr.bf16.gmra.mrb[16].mxu1 %v13789_v47  ;;  %5507 = vmatpush1.bf16.msra.mxu0 %v13816_v7  ;;  %v13861_v47 = vld [vmem:[#allocation2 + $0x5c0] ss:$52 sps:$4 sm:$0xff]   ;;  %v13887_v7 = vld [vmem:[#allocation2 + $0x764] ss:$52 sps:$4 sm:$0xff]  }
 0x221   : > { %5438 = vmatpush1.bf16.msra.mxu1 %v13819_v8  ;;  %5508 = vmatprep.subr.bf16.mxu0 %v13824_v10  ;;  %v15916_v8 = vld [vmem:[%s15828_s6 + $0x3c] ss:$28 sps:$4 sm:$0xff]   ;;  %v13885_v10 = vld [vmem:[#allocation2 + $0x760] ss:$52 sps:$4 sm:$0xff]  }
 0x222   : > { %5424 = vmatprep.mubr.bf16.mxu1 %v15871_v54  ;;  %5439 = vmatprep.subr.bf16.mxu1 %v4977_v11  ;;  %v13890_v11 = vld [vmem:[#allocation2 + $0x3c4] ss:$52 sps:$4 sm:$0xff]  }
 0x224   : > { %5509 = vmatpush1.bf16.msra.mxu0 %v13822_v12  ;;  %v13893_v12 = vld [vmem:[#allocation2 + $0x7cc] ss:$52 sps:$4 sm:$0xff]  }
 0x225   : > { %5440 = vmatpush1.bf16.msra.mxu1 %v4974_v14  ;;  %5510 = vmatprep.subr.bf16.mxu0 %v13827_v13 }
 0x226   : > { %5738 = vmatprep.subr.bf16.mxu1 %v13836_v15  ;;  %v13888_v15 = vld [vmem:[#allocation2 + $0x3c0] ss:$52 sps:$4 sm:$0xff]  }
 0x228   : > { %5425 = vmatmul.mubr.bf16.gmra.mrb[20].mxu1 %v15874_v59  ;;  %5511 = vmatpush1.bf16.msra.mxu0 %v13825_v17 }
 0x229   : > { %5465 = vmatprep.mubr.bf16.mxu1 %v17767_v0  ;;  %5512 = vmatprep.subr.bf16.mxu0 %v13833_v18  ;;  %v15924_v18 = vld [vmem:[%s15828_s6 + $0x38] ss:$28 sps:$4 sm:$0xff]  }
 0x22b   : > { %v15886_v21 = vpop.f32.mrb[0].mxu1 }
 0x22c   : > { %v15888_v22 = vpop.f32.mrb[1].mxu1  ;;  %5513 = vmatpush1.bf16.msra.mxu0 %v13831_v19  ;;  %v13891_v19 = vld [vmem:[#allocation2 + $0x7c8] ss:$52 sps:$4 sm:$0xff]  }
 0x22d   : > { %v15890_v24 = vpop.f32.mrb[2].mxu1  ;;  %5514 = vmatprep.subr.bf16.mxu0 %v13839_v20  ;;  %v13896_v20 = vld [vmem:[#allocation2 + $0x42c] ss:$52 sps:$4 sm:$0xff]  }
 0x22e   : > { %v15892_v27 = vpop.f32.mrb[3].mxu1 }
 0x230   : > { %12032 = vmatmul.mubr.msk.bf16.vlgmr.msra.gmra.mrb[12].mxu1 %vm4953_vm2, %v14938_v29  ;;  %5515 = vmatpush1.bf16.msra.mxu0 %v13837_v25  ;;  %v13899_v25 = vld [vmem:[#allocation2 + $0x834] ss:$52 sps:$4 sm:$0xff]  }
 0x231   : > { %5739 = vmatpush1.bf16.msra.mxu1 %v13834_v23  ;;  %5516 = vmatprep.subr.bf16.mxu0 %v13845_v28  ;;  %v13897_v28 = vld [vmem:[#allocation2 + $0x830] ss:$52 sps:$4 sm:$0xff]   ;;  %v13902_v29 = vld [vmem:[#allocation2 + $0x494] ss:$52 sps:$4 sm:$0xff]  }
 0x232   : > { %5740 = vmatprep.subr.bf16.mxu1 %v13842_v26  ;;  %5475 = vmatprep.mubr.bf16.mxu1 %v17767_v0  ;;  %v13894_v26 = vld [vmem:[#allocation2 + $0x428] ss:$52 sps:$4 sm:$0xff]  }
 0x233   : > { %v15903_v62 = vpop.f32.mrb[4].mxu1 }
 0x234   : > { %5517 = vmatpush1.bf16.msra.mxu0 %v13843_v31  ;;  %v15905_v63 = vpop.f32.mrb[5].mxu1  ;;  %v13900_v31 = vld [vmem:[#allocation2 + $0x490] ss:$52 sps:$4 sm:$0xff]  }
 0x235   : > { %5741 = vmatpush1.bf16.msra.mxu1 %v13840_v30  ;;  %5518 = vmatprep.subr.bf16.mxu0 %v13851_v33  ;;  %v15911_v3 = vpop.f32.mrb[6].mxu1  ;;  %v13905_v30 = vld [vmem:[#allocation2 + $0x89c] ss:$52 sps:$4 sm:$0xff]  }
 0x236   : > { %5742 = vmatprep.subr.bf16.mxu1 %v13848_v32  ;;  %v13903_v32 = vld [vmem:[#allocation2 + $0x898] ss:$52 sps:$4 sm:$0xff]   ;;  %v13908_v33 = vld [vmem:[#allocation2 + $0x4fc] ss:$52 sps:$4 sm:$0xff]  }
 0x238   : > { %12033 = vmatmul.mubr.msk.bf16.gmra.mrb[16].mxu1 %vm4953_vm2, %v14939_v38  ;;  %5519 = vmatpush1.bf16.msra.mxu0 %v13849_v35  ;;  %v13906_v35 = vld [vmem:[#allocation2 + $0x4f8] ss:$52 sps:$4 sm:$0xff]  }
 0x239   : > { %5743 = vmatpush1.bf16.msra.mxu1 %v13846_v34  ;;  %5520 = vmatprep.subr.bf16.mxu0 %v13857_v37  ;;  %v13911_v34 = vld [vmem:[#allocation2 + $0x904] ss:$52 sps:$4 sm:$0xff]   ;;  %v15930_v37 = vld [vmem:[%s15828_s6 + $0xc] ss:$28 sps:$4 sm:$0xff]  }
 0x23a   : > { %5744 = vmatprep.subr.bf16.mxu1 %v13854_v36  ;;  %5485 = vmatprep.mubr.bf16.mxu1 %v17767_v0  ;;  %v13909_v36 = vld [vmem:[#allocation2 + $0x900] ss:$52 sps:$4 sm:$0xff]   ;;  %v13914_v38 = vld [vmem:[#allocation2 + $0x564] ss:$52 sps:$4 sm:$0xff]  }
 0x23c   : > { %5521 = vmatpush1.bf16.msra.mxu0 %v13855_v41  ;;  %v13912_v41 = vld [vmem:[#allocation2 + $0x560] ss:$52 sps:$4 sm:$0xff]  }
 0x23d   : > { %5745 = vmatpush1.bf16.msra.mxu1 %v13852_v40  ;;  %5522 = vmatprep.subr.bf16.mxu0 %v13863_v44  ;;  %v13917_v40 = vld [vmem:[#allocation2 + $0x96c] ss:$52 sps:$4 sm:$0xff]  }
 0x23e   : > { %5746 = vmatprep.subr.bf16.mxu1 %v13860_v43  ;;  %v13915_v43 = vld [vmem:[#allocation2 + $0x968] ss:$52 sps:$4 sm:$0xff]   ;;  %v13920_v44 = vld [vmem:[#allocation2 + $0x5cc] ss:$52 sps:$4 sm:$0xff]  }
 0x240   : > { %12034 = vmatmul.mubr.msk.bf16.gmra.mrb[20].mxu1 %vm4953_vm2, %v14940_v51  ;;  %5523 = vmatpush1.bf16.msra.mxu0 %v13861_v47  ;;  %v13918_v47 = vld [vmem:[#allocation2 + $0x5c8] ss:$52 sps:$4 sm:$0xff]  }
 0x241   : > { %5747 = vmatpush1.bf16.msra.mxu1 %v13858_v46  ;;  %5524 = vmatprep.subr.bf16.mxu0 %v13869_v50  ;;  %v13923_v46 = vld [vmem:[#allocation2 + $0x9d4] ss:$52 sps:$4 sm:$0xff]   ;;  %v13929_v51 = vld [vmem:[#allocation2 + $0xa3c] ss:$52 sps:$4 sm:$0xff]  }
 0x242   : > { %5748 = vmatprep.subr.bf16.mxu1 %v13866_v48  ;;  %5770 = vmatprep.mubr.bf16.mxu1 %v15878_v6  ;;  %v15913_v6 = vpop.f32.mrb[7].mxu1  ;;  %v13921_v48 = vld [vmem:[#allocation2 + $0x9d0] ss:$52 sps:$4 sm:$0xff]   ;;  %v13926_v50 = vld [vmem:[#allocation2 + $0x634] ss:$52 sps:$4 sm:$0xff]  }
 0x243   : > { %v15919_v13 = vpop.f32.mrb[8].mxu1 }
 0x244   : > { %5525 = vmatpush1.bf16.msra.mxu0 %v13867_v53  ;;  %v15921_v14 = vpop.f32.mrb[9].mxu1  ;;  %v13927_v53 = vld [vmem:[#allocation2 + $0xa38] ss:$52 sps:$4 sm:$0xff]  }
 0x245   : > { %5749 = vmatpush1.bf16.msra.mxu1 %v13864_v52  ;;  %5555 = vmatprep.subr.bf16.mxu0 %v13875_v56  ;;  %v5247_v17 = vpop.f32.mrb[10].mxu1  ;;  %v13924_v52 = vld [vmem:[#allocation2 + $0x630] ss:$52 sps:$4 sm:$0xff]  }
 0x246   : > { %5750 = vmatprep.subr.bf16.mxu1 %v13872_v55  ;;  %v5248_v23 = vpop.f32.mrb[11].mxu1  ;;  %v13932_v55 = vld [vmem:[#allocation2 + $0x69c] ss:$52 sps:$4 sm:$0xff]   ;;  %v13935_v56 = vld [vmem:[#allocation2 + $0xaa4] ss:$52 sps:$4 sm:$0xff]  }
 0x247   : > { %5527 = vmatmul.mubr.bf16.vlgmr.msra.gmra.mrb[12].mxu0 %v15908_v1  ;;  %v13956_v17 = vld [vmem:[#allocation2 + $0x83c] ss:$52 sps:$4 sm:$0xff]   ;;  %v13957_v23 = vld [vmem:[#allocation2 + $0xc40] ss:$52 sps:$4 sm:$0xff]  }
 0x248   : > { %5556 = vmatpush1.bf16.msra.mxu0 %v13873_v58  ;;  %5536 = vmatprep.mubr.bf16.mxu0 %v15916_v8  ;;  %v13933_v58 = vld [vmem:[#allocation2 + $0xaa0] ss:$52 sps:$4 sm:$0xff]  }
 0x249   : > { %5751 = vmatpush1.bf16.msra.mxu1 %v13870_v57  ;;  %5557 = vmatprep.subr.bf16.mxu0 %v13881_v61  ;;  %v13930_v57 = vld [vmem:[#allocation2 + $0x698] ss:$52 sps:$4 sm:$0xff]  }
 0x24a   : > { %5752 = vmatprep.subr.bf16.mxu1 %v13878_v60  ;;  %v13938_v60 = vld [vmem:[#allocation2 + $0x704] ss:$52 sps:$4 sm:$0xff]   ;;  %v13941_v61 = vld [vmem:[#allocation2 + $0xb0c] ss:$52 sps:$4 sm:$0xff]  }
 0x24c   : > { %5558 = vmatpush1.bf16.msra.mxu0 %v13879_v4  ;;  %v13939_v4 = vld [vmem:[#allocation2 + $0xb08] ss:$52 sps:$4 sm:$0xff]  }
 0x24d   : > { %5753 = vmatpush1.bf16.msra.mxu1 %v13876_v2  ;;  %5559 = vmatprep.subr.bf16.mxu0 %v13887_v7  ;;  %v13936_v2 = vld [vmem:[#allocation2 + $0x700] ss:$52 sps:$4 sm:$0xff]  }
 0x24e   : > { %5754 = vmatprep.subr.bf16.mxu1 %v13884_v5  ;;  %v13944_v5 = vld [vmem:[#allocation2 + $0x76c] ss:$52 sps:$4 sm:$0xff]   ;;  %v13947_v7 = vld [vmem:[#allocation2 + $0xb74] ss:$52 sps:$4 sm:$0xff]  }
 0x24f   : > { %5537 = vmatmul.mubr.bf16.gmra.mrb[16].mxu0 %v15924_v18 }
 0x250   : > { %5560 = vmatpush1.bf16.msra.mxu0 %v13885_v10  ;;  %5546 = vmatprep.mubr.bf16.mxu0 %v15845_v42  ;;  %v13945_v10 = vld [vmem:[#allocation2 + $0xb70] ss:$52 sps:$4 sm:$0xff]  }
 0x251   : > { %5755 = vmatpush1.bf16.msra.mxu1 %v13882_v9  ;;  %5561 = vmatprep.subr.bf16.mxu0 %v13893_v12  ;;  %v13942_v9 = vld [vmem:[#allocation2 + $0x768] ss:$52 sps:$4 sm:$0xff]  }
 0x252   : > { %5756 = vmatprep.subr.bf16.mxu1 %v13890_v11  ;;  %v13950_v11 = vld [vmem:[#allocation2 + $0x7d4] ss:$52 sps:$4 sm:$0xff]   ;;  %v13953_v12 = vld [vmem:[#allocation2 + $0xbdc] ss:$52 sps:$4 sm:$0xff]  }
 0x254   : > { %5562 = vmatpush1.bf16.msra.mxu0 %v13891_v19  ;;  %v13959_v19 = vld [vmem:[#allocation2 + $0xc44] ss:$52 sps:$4 sm:$0xff]  }
 0x255   : > { %5757 = vmatpush1.bf16.msra.mxu1 %v13888_v15  ;;  %5563 = vmatprep.subr.bf16.mxu0 %v13899_v25  ;;  %v13951_v15 = vld [vmem:[#allocation2 + $0xbd8] ss:$52 sps:$4 sm:$0xff]  }
 0x256   : > { %5758 = vmatprep.subr.bf16.mxu1 %v13896_v20  ;;  %v13954_v20 = vld [vmem:[#allocation2 + $0x838] ss:$52 sps:$4 sm:$0xff]  }
 0x257   : > { %5547 = vmatmul.mubr.bf16.gmra.mrb[20].mxu0 %v15848_v49  ;;  %v13965_v25 = vld [vmem:[#allocation2 + $0xcac] ss:$52 sps:$4 sm:$0xff]  }
 0x258   : > { %5564 = vmatpush1.bf16.msra.mxu0 %v13897_v28  ;;  %5587 = vmatprep.mubr.bf16.mxu0 %v15930_v37  ;;  %v13968_v28 = vld [vmem:[#allocation2 + $0x90c] ss:$52 sps:$4 sm:$0xff]  }
 0x259   : > { %5759 = vmatpush1.bf16.msra.mxu1 %v13894_v26  ;;  %5565 = vmatprep.subr.bf16.mxu0 %v13905_v30  ;;  %v13960_v26 = vld [vmem:[#allocation2 + $0x8a0] ss:$52 sps:$4 sm:$0xff]   ;;  %v13966_v30 = vld [vmem:[#allocation2 + $0x908] ss:$52 sps:$4 sm:$0xff]  }
 0x25a   : > { %5760 = vmatprep.subr.bf16.mxu1 %v13902_v29  ;;  %v13971_v29 = vld [vmem:[#allocation2 + $0xd14] ss:$52 sps:$4 sm:$0xff]  }
 0x25c   : > { %5566 = vmatpush1.bf16.msra.mxu0 %v13903_v32  ;;  %v13974_v32 = vld [vmem:[#allocation2 + $0x974] ss:$52 sps:$4 sm:$0xff]  }
 0x25d   : > { %5761 = vmatpush1.bf16.msra.mxu1 %v13900_v31  ;;  %5567 = vmatprep.subr.bf16.mxu0 %v13911_v34  ;;  %v13969_v31 = vld [vmem:[#allocation2 + $0xd10] ss:$52 sps:$4 sm:$0xff]  }
 0x25e   : > { %5762 = vmatprep.subr.bf16.mxu1 %v13908_v33  ;;  %v13977_v33 = vld [vmem:[#allocation2 + $0xd7c] ss:$52 sps:$4 sm:$0xff]  }
 0x25f   : > { %v13972_v34 = vld [vmem:[#allocation2 + $0x970] ss:$52 sps:$4 sm:$0xff]  }
 0x260   : > { %5568 = vmatpush1.bf16.msra.mxu0 %v13909_v36  ;;  %v15940_v36 = vld [vmem:[%s15828_s6 + $0x8] ss:$28 sps:$4 sm:$0xff]  }
 0x261   : > { %5763 = vmatpush1.bf16.msra.mxu1 %v13906_v35  ;;  %5569 = vmatprep.subr.bf16.mxu0 %v13917_v40  ;;  %v13975_v35 = vld [vmem:[#allocation2 + $0xd78] ss:$52 sps:$4 sm:$0xff]  }
 0x262   : > { %5764 = vmatprep.subr.bf16.mxu1 %v13914_v38  ;;  %v13980_v38 = vld [vmem:[#allocation2 + $0x9dc] ss:$52 sps:$4 sm:$0xff]   ;;  %v13983_v40 = vld [vmem:[#allocation2 + $0xde4] ss:$52 sps:$4 sm:$0xff]  }
 0x264   : > { %5570 = vmatpush1.bf16.msra.mxu0 %v13915_v43  ;;  %v15944_v43 = vld [vmem:[%s15828_s6 + $0x44] ss:$28 sps:$4 sm:$0xff]  }
 0x265   : > { %5765 = vmatpush1.bf16.msra.mxu1 %v13912_v41  ;;  %5571 = vmatprep.subr.bf16.mxu0 %v13923_v46  ;;  %v13981_v41 = vld [vmem:[#allocation2 + $0xde0] ss:$52 sps:$4 sm:$0xff]  }
 0x266   : > { %5766 = vmatprep.subr.bf16.mxu1 %v13920_v44  ;;  %v13986_v44 = vld [vmem:[#allocation2 + $0xa44] ss:$52 sps:$4 sm:$0xff]   ;;  %v13989_v46 = vld [vmem:[#allocation2 + $0xe4c] ss:$52 sps:$4 sm:$0xff]  }
 0x268   : > { %5572 = vmatpush1.bf16.msra.mxu0 %v13921_v48  ;;  %v13987_v48 = vld [vmem:[#allocation2 + $0xe48] ss:$52 sps:$4 sm:$0xff]  }
 0x269   : > { %5767 = vmatpush1.bf16.msra.mxu1 %v13918_v47  ;;  %5573 = vmatprep.subr.bf16.mxu0 %v13929_v51  ;;  %v13984_v47 = vld [vmem:[#allocation2 + $0xa40] ss:$52 sps:$4 sm:$0xff]  }
 0x26a   : > { %5768 = vmatprep.subr.bf16.mxu1 %v13926_v50  ;;  %v15948_v50 = vld [vmem:[%s15828_s6 + $0x40] ss:$28 sps:$4 sm:$0xff]  }
 0x26b   : > { %v13992_v51 = vld [vmem:[#allocation2 + $0xaac] ss:$52 sps:$4 sm:$0xff]  }
 0x26c   : > { %5574 = vmatpush1.bf16.msra.mxu0 %v13927_v53  ;;  %v13990_v53 = vld [vmem:[#allocation2 + $0xaa8] ss:$52 sps:$4 sm:$0xff]  }
 0x26d   : > { %5769 = vmatpush1.bf16.msra.mxu1 %v13924_v52  ;;  %5575 = vmatprep.subr.bf16.mxu0 %v13935_v56  ;;  %v13995_v52 = vld [vmem:[#allocation2 + $0xeb4] ss:$52 sps:$4 sm:$0xff]  }
 0x26e   : > { %5799 = vmatprep.subr.bf16.mxu1 %v13932_v55  ;;  %v13993_v55 = vld [vmem:[#allocation2 + $0xeb0] ss:$52 sps:$4 sm:$0xff]   ;;  %v13998_v56 = vld [vmem:[#allocation2 + $0xb14] ss:$52 sps:$4 sm:$0xff]  }
 0x270   : > { %5771 = vmatmul.mubr.bf16.vlgmr.msra.gmra.mrb[24].mxu1 %v15908_v1  ;;  %5576 = vmatpush1.bf16.msra.mxu0 %v13933_v58  ;;  %v13948_v1 = vld [vmem:[#allocation2 + $0x7d0] ss:$52 sps:$4 sm:$0xff]  }
 0x271   : > { %5800 = vmatpush1.bf16.msra.mxu1 %v13930_v57  ;;  %5577 = vmatprep.subr.bf16.mxu0 %v13941_v61  ;;  %v14001_v57 = vld [vmem:[#allocation2 + $0xf1c] ss:$52 sps:$4 sm:$0xff]  }
 0x272   : > { %5801 = vmatprep.subr.bf16.mxu1 %v13938_v60  ;;  %5780 = vmatprep.mubr.bf16.mxu1 %v15916_v8  ;;  %v13962_v8 = vld [vmem:[#allocation2 + $0x8a4] ss:$52 sps:$4 sm:$0xff]   ;;  %v14004_v61 = vld [vmem:[#allocation2 + $0xb7c] ss:$52 sps:$4 sm:$0xff]  }
 0x273   : > { %v13996_v58 = vld [vmem:[#allocation2 + $0xb10] ss:$52 sps:$4 sm:$0xff]   ;;  %v13999_v60 = vld [vmem:[#allocation2 + $0xf18] ss:$52 sps:$4 sm:$0xff]  }
 0x274   : > { %5578 = vmatpush1.bf16.msra.mxu0 %v13939_v4  ;;  %v15954_v4 = vld [vmem:[%s15828_s6 + $0x14] ss:$28 sps:$4 sm:$0xff]  }
 0x275   : > { %5802 = vmatpush1.bf16.msra.mxu1 %v13936_v2  ;;  %5579 = vmatprep.subr.bf16.mxu0 %v13947_v7  ;;  %v14007_v2 = vld [vmem:[#allocation2 + $0xf84] ss:$52 sps:$4 sm:$0xff]   ;;  %v14005_v7 = vld [vmem:[#allocation2 + $0xf80] ss:$52 sps:$4 sm:$0xff]  }
 0x276   : > { %5803 = vmatprep.subr.bf16.mxu1 %v13944_v5  ;;  %v14002_v5 = vld [vmem:[#allocation2 + $0xb78] ss:$52 sps:$4 sm:$0xff]  }
 0x278   : > { %5781 = vmatmul.mubr.bf16.gmra.mrb[28].mxu1 %v15924_v18  ;;  %5580 = vmatpush1.bf16.msra.mxu0 %v13945_v10  ;;  %v13963_v18 = vld [vmem:[#allocation2 + $0xca8] ss:$52 sps:$4 sm:$0xff]   ;;  %v14013_v10 = vld [vmem:[#allocation2 + $0xfec] ss:$52 sps:$4 sm:$0xff]  }
 0x279   : > { %5804 = vmatpush1.bf16.msra.mxu1 %v13942_v9  ;;  %5581 = vmatprep.subr.bf16.mxu0 %v13953_v12  ;;  %v14010_v9 = vld [vmem:[#allocation2 + $0xbe4] ss:$52 sps:$4 sm:$0xff]   ;;  %v14011_v12 = vld [vmem:[#allocation2 + $0xfe8] ss:$52 sps:$4 sm:$0xff]  }
 0x27a   : > { %5805 = vmatprep.subr.bf16.mxu1 %v13950_v11  ;;  %5790 = vmatprep.mubr.bf16.mxu1 %v15845_v42  ;;  %v14008_v11 = vld [vmem:[#allocation2 + $0xbe0] ss:$52 sps:$4 sm:$0xff]  }
 0x27c   : > { %5582 = vmatpush1.bf16.msra.mxu0 %v13951_v15  ;;  %v14019_v15 = vld [vmem:[#allocation2 + $0x1054] ss:$52 sps:$4 sm:$0xff]  }
 0x27d   : > { %5806 = vmatpush1.bf16.msra.mxu1 %v13948_v1  ;;  %5583 = vmatprep.subr.bf16.mxu0 %v13959_v19  ;;  %v14016_v1 = vld [vmem:[#allocation2 + $0xc4c] ss:$52 sps:$4 sm:$0xff]   ;;  %v14017_v19 = vld [vmem:[#allocation2 + $0x1050] ss:$52 sps:$4 sm:$0xff]  }
 0x27e   : > { %5807 = vmatprep.subr.bf16.mxu1 %v13956_v17  ;;  %v14014_v17 = vld [vmem:[#allocation2 + $0xc48] ss:$52 sps:$4 sm:$0xff]  }
 0x280   : > { %5791 = vmatmul.mubr.bf16.gmra.mrb[32].mxu1 %v15848_v49  ;;  %5584 = vmatpush1.bf16.msra.mxu0 %v13957_v23  ;;  %v14025_v23 = vld [vmem:[#allocation2 + $0x10bc] ss:$52 sps:$4 sm:$0xff]  }
 0x281   : > { %5808 = vmatpush1.bf16.msra.mxu1 %v13954_v20  ;;  %5585 = vmatprep.subr.bf16.mxu0 %v13965_v25  ;;  %v14022_v20 = vld [vmem:[#allocation2 + $0xcb4] ss:$52 sps:$4 sm:$0xff]   ;;  %v14023_v25 = vld [vmem:[#allocation2 + $0x10b8] ss:$52 sps:$4 sm:$0xff]  }
 0x282   : > { %5809 = vmatprep.subr.bf16.mxu1 %v13962_v8  ;;  %5831 = vmatprep.mubr.bf16.mxu1 %v15930_v37  ;;  %v13978_v37 = vld [vmem:[#allocation2 + $0x9d8] ss:$52 sps:$4 sm:$0xff]   ;;  %v14020_v8 = vld [vmem:[#allocation2 + $0xcb0] ss:$52 sps:$4 sm:$0xff]  }
 0x284   : > { %5586 = vmatpush1.bf16.msra.mxu0 %v13963_v18  ;;  %v14031_v18 = vld [vmem:[#allocation2 + $0x1124] ss:$52 sps:$4 sm:$0xff]  }
 0x285   : > { %5810 = vmatpush1.bf16.msra.mxu1 %v13960_v26  ;;  %5616 = vmatprep.subr.bf16.mxu0 %v13971_v29  ;;  %v14028_v26 = vld [vmem:[#allocation2 + $0xd1c] ss:$52 sps:$4 sm:$0xff]   ;;  %v14029_v29 = vld [vmem:[#allocation2 + $0x1120] ss:$52 sps:$4 sm:$0xff]  }
 0x286   : > { %5811 = vmatprep.subr.bf16.mxu1 %v13968_v28  ;;  %v14026_v28 = vld [vmem:[#allocation2 + $0xd18] ss:$52 sps:$4 sm:$0xff]  }
 0x287   : > { %5588 = vmatmul.mubr.bf16.vlgmr.msra.gmra.mrb[12].mxu0 %v15940_v36 }
 0x288   : > { %5617 = vmatpush1.bf16.msra.mxu0 %v13969_v31  ;;  %5597 = vmatprep.mubr.bf16.mxu0 %v15944_v43  ;;  %v14037_v31 = vld [vmem:[#allocation2 + $0x118c] ss:$52 sps:$4 sm:$0xff]  }
 0x289   : > { %5812 = vmatpush1.bf16.msra.mxu1 %v13966_v30  ;;  %5618 = vmatprep.subr.bf16.mxu0 %v13977_v33  ;;  %v14034_v30 = vld [vmem:[#allocation2 + $0xd84] ss:$52 sps:$4 sm:$0xff]   ;;  %v14035_v33 = vld [vmem:[#allocation2 + $0x1188] ss:$52 sps:$4 sm:$0xff]  }
 0x28a   : > { %5813 = vmatprep.subr.bf16.mxu1 %v13974_v32  ;;  %v14032_v32 = vld [vmem:[#allocation2 + $0xd80] ss:$52 sps:$4 sm:$0xff]  }
 0x28c   : > { %5619 = vmatpush1.bf16.msra.mxu0 %v13975_v35  ;;  %v14043_v35 = vld [vmem:[#allocation2 + $0x11f4] ss:$52 sps:$4 sm:$0xff]  }
 0x28d   : > { %5814 = vmatpush1.bf16.msra.mxu1 %v13972_v34  ;;  %5620 = vmatprep.subr.bf16.mxu0 %v13983_v40  ;;  %v14040_v34 = vld [vmem:[#allocation2 + $0xdec] ss:$52 sps:$4 sm:$0xff]   ;;  %v14041_v40 = vld [vmem:[#allocation2 + $0x11f0] ss:$52 sps:$4 sm:$0xff]  }
 0x28e   : > { %5815 = vmatprep.subr.bf16.mxu1 %v13980_v38  ;;  %v14038_v38 = vld [vmem:[#allocation2 + $0xde8] ss:$52 sps:$4 sm:$0xff]  }
 0x28f   : > { %5598 = vmatmul.mubr.bf16.gmra.mrb[16].mxu0 %v15948_v50 }
 0x290   : > { %5621 = vmatpush1.bf16.msra.mxu0 %v13981_v41  ;;  %5607 = vmatprep.mubr.bf16.mxu0 %v15858_v39  ;;  %v14049_v41 = vld [vmem:[#allocation2 + $0x125c] ss:$52 sps:$4 sm:$0xff]  }
 0x291   : > { %5816 = vmatpush1.bf16.msra.mxu1 %v13978_v37  ;;  %5622 = vmatprep.subr.bf16.mxu0 %v13989_v46  ;;  %v14046_v37 = vld [vmem:[#allocation2 + $0xe54] ss:$52 sps:$4 sm:$0xff]   ;;  %v14052_v46 = vld [vmem:[#allocation2 + $0xebc] ss:$52 sps:$4 sm:$0xff]  }
 0x292   : > { %5817 = vmatprep.subr.bf16.mxu1 %v13986_v44  ;;  %v14047_v44 = vld [vmem:[#allocation2 + $0x1258] ss:$52 sps:$4 sm:$0xff]  }
 0x294   : > { %5623 = vmatpush1.bf16.msra.mxu0 %v13987_v48  ;;  %v14053_v48 = vld [vmem:[#allocation2 + $0x12c0] ss:$52 sps:$4 sm:$0xff]  }
 0x295   : > { %5818 = vmatpush1.bf16.msra.mxu1 %v13984_v47  ;;  %5624 = vmatprep.subr.bf16.mxu0 %v13995_v52  ;;  %v14055_v47 = vld [vmem:[#allocation2 + $0x12c4] ss:$52 sps:$4 sm:$0xff]   ;;  %v14061_v52 = vld [vmem:[#allocation2 + $0x132c] ss:$52 sps:$4 sm:$0xff]  }
 0x296   : > { %5819 = vmatprep.subr.bf16.mxu1 %v13992_v51  ;;  %v14058_v51 = vld [vmem:[#allocation2 + $0xf24] ss:$52 sps:$4 sm:$0xff]  }
 0x297   : > { %5608 = vmatmul.mubr.bf16.gmra.mrb[20].mxu0 %v15861_v45 }
 0x298   : > { %5625 = vmatpush1.bf16.msra.mxu0 %v13993_v55  ;;  %5648 = vmatprep.mubr.bf16.mxu0 %v15954_v4  ;;  %v14064_v55 = vld [vmem:[#allocation2 + $0xf8c] ss:$52 sps:$4 sm:$0xff]  }
 0x299   : > { %5820 = vmatpush1.bf16.msra.mxu1 %v13990_v53  ;;  %5626 = vmatprep.subr.bf16.mxu0 %v14001_v57  ;;  %v14059_v53 = vld [vmem:[#allocation2 + $0x1328] ss:$52 sps:$4 sm:$0xff]  }
 0x29a   : > { %5821 = vmatprep.subr.bf16.mxu1 %v13998_v56  ;;  %v14070_v56 = vld [vmem:[#allocation2 + $0x1394] ss:$52 sps:$4 sm:$0xff]  }
 0x29b   : > { %v14062_v57 = vld [vmem:[#allocation2 + $0xf88] ss:$52 sps:$4 sm:$0xff]  }
 0x29c   : > { %5627 = vmatpush1.bf16.msra.mxu0 %v13999_v60  ;;  %v14068_v60 = vld [vmem:[#allocation2 + $0x1390] ss:$52 sps:$4 sm:$0xff]  }
 0x29d   : > { %5822 = vmatpush1.bf16.msra.mxu1 %v13996_v58  ;;  %5628 = vmatprep.subr.bf16.mxu0 %v14007_v2  ;;  %v14067_v58 = vld [vmem:[#allocation2 + $0xff4] ss:$52 sps:$4 sm:$0xff]   ;;  %v14065_v2 = vld [vmem:[#allocation2 + $0xff0] ss:$52 sps:$4 sm:$0xff]  }
 0x29e   : > { %5823 = vmatprep.subr.bf16.mxu1 %v14004_v61  ;;  %v14076_v61 = vld [vmem:[#allocation2 + $0x13fc] ss:$52 sps:$4 sm:$0xff]  }
 0x2a0   : > { %5629 = vmatpush1.bf16.msra.mxu0 %v14005_v7  ;;  %v15968_v7 = vld [vmem:[%s15828_s6 + $0x4c] ss:$28 sps:$4 sm:$0xff]  }
 0x2a1   : > { %5824 = vmatpush1.bf16.msra.mxu1 %v14002_v5  ;;  %5630 = vmatprep.subr.bf16.mxu0 %v14013_v10  ;;  %v15964_v5 = vld [vmem:[%s15828_s6 + $0x10] ss:$28 sps:$4 sm:$0xff]   ;;  %v14082_v10 = vld [vmem:[#allocation2 + $0x1464] ss:$52 sps:$4 sm:$0xff]  }
 0x2a2   : > { %5825 = vmatprep.subr.bf16.mxu1 %v14010_v9  ;;  %v14073_v9 = vld [vmem:[#allocation2 + $0x105c] ss:$52 sps:$4 sm:$0xff]  }
 0x2a4   : > { %5631 = vmatpush1.bf16.msra.mxu0 %v14011_v12  ;;  %v14071_v12 = vld [vmem:[#allocation2 + $0x1058] ss:$52 sps:$4 sm:$0xff]  }
 0x2a5   : > { %5826 = vmatpush1.bf16.msra.mxu1 %v14008_v11  ;;  %5632 = vmatprep.subr.bf16.mxu0 %v14019_v15  ;;  %v14088_v11 = vld [vmem:[#allocation2 + $0x14cc] ss:$52 sps:$4 sm:$0xff]  }
 0x2a6   : > { %5827 = vmatprep.subr.bf16.mxu1 %v14016_v1  ;;  %v14079_v1 = vld [vmem:[#allocation2 + $0x10c4] ss:$52 sps:$4 sm:$0xff]   ;;  %v14080_v15 = vld [vmem:[#allocation2 + $0x1460] ss:$52 sps:$4 sm:$0xff]  }
 0x2a8   : > { %5633 = vmatpush1.bf16.msra.mxu0 %v14017_v19  ;;  %v4983_v19 = vand.u32 %v14088_v11, %v15823_v16 }
 0x2a9   : > { %5828 = vmatpush1.bf16.msra.mxu1 %v14014_v17  ;;  %5634 = vmatprep.subr.bf16.mxu0 %v14025_v23  ;;  %v14086_v17 = vld [vmem:[#allocation2 + $0x14c8] ss:$52 sps:$4 sm:$0xff]   ;;  %v14077_v23 = vld [vmem:[#allocation2 + $0x10c0] ss:$52 sps:$4 sm:$0xff]  }
 0x2aa   : > { %5829 = vmatprep.subr.bf16.mxu1 %v14022_v20  ;;  %v15973_v20 = vld [vmem:[%s15828_s6 + $0x48] ss:$28 sps:$4 sm:$0xff]  }
 0x2ac   : > { %5635 = vmatpush1.bf16.msra.mxu0 %v14023_v25  ;;  %v4980_v25 = vand.u32 %v14086_v17, %v15823_v16 }
 0x2ad   : > { %5830 = vmatpush1.bf16.msra.mxu1 %v14020_v8  ;;  %5636 = vmatprep.subr.bf16.mxu0 %v14031_v18  ;;  %v14085_v8 = vld [vmem:[#allocation2 + $0x112c] ss:$52 sps:$4 sm:$0xff]   ;;  %v14083_v18 = vld [vmem:[#allocation2 + $0x1128] ss:$52 sps:$4 sm:$0xff]  }
 0x2ae   : > { %5860 = vmatprep.subr.bf16.mxu1 %v14028_v26  ;;  %v14097_v26 = vld [vmem:[#allocation2 + $0x24] ss:$52 sps:$4 sm:$0xff]  }
 0x2b0   : > { %5832 = vmatmul.mubr.bf16.vlgmr.msra.gmra.mrb[24].mxu1 %v15940_v36  ;;  %5637 = vmatpush1.bf16.msra.mxu0 %v14029_v29  ;;  %v14044_v36 = vld [vmem:[#allocation2 + $0xe50] ss:$52 sps:$4 sm:$0xff]  }
 0x2b1   : > { %5861 = vmatpush1.bf16.msra.mxu1 %v14026_v28  ;;  %5638 = vmatprep.subr.bf16.mxu0 %v14037_v31  ;;  %v14091_v28 = vld [vmem:[#allocation2 + $0x1194] ss:$52 sps:$4 sm:$0xff]   ;;  %v14089_v29 = vld [vmem:[#allocation2 + $0x1190] ss:$52 sps:$4 sm:$0xff]  }
 0x2b2   : > { %5862 = vmatprep.subr.bf16.mxu1 %v14034_v30  ;;  %5841 = vmatprep.mubr.bf16.mxu1 %v15944_v43  ;;  %v14050_v43 = vld [vmem:[#allocation2 + $0xeb8] ss:$52 sps:$4 sm:$0xff]   ;;  %v14094_v30 = vld [vmem:[#allocation2 + $0x11fc] ss:$52 sps:$4 sm:$0xff]  }
 0x2b4   : > { %5639 = vmatpush1.bf16.msra.mxu0 %v14035_v33 }
 0x2b5   : > { %5863 = vmatpush1.bf16.msra.mxu1 %v14032_v32  ;;  %5640 = vmatprep.subr.bf16.mxu0 %v14043_v35 }
 0x2b6   : > { %5864 = vmatprep.subr.bf16.mxu1 %v14040_v34 }
 0x2b8   : > { %5842 = vmatmul.mubr.bf16.gmra.mrb[28].mxu1 %v15948_v50  ;;  %5641 = vmatpush1.bf16.msra.mxu0 %v14041_v40  ;;  %v14056_v50 = vld [vmem:[#allocation2 + $0xf20] ss:$52 sps:$4 sm:$0xff]  }
 0x2b9   : > { %5865 = vmatpush1.bf16.msra.mxu1 %v14038_v38  ;;  %5642 = vmatprep.subr.bf16.mxu0 %v14049_v41  ;;  %v14092_v38 = vld [vmem:[#allocation2 + $0x11f8] ss:$52 sps:$4 sm:$0xff]   ;;  %v14095_v40 = vld [vmem:[#allocation2 + $0x20] ss:$52 sps:$4 sm:$0xff]  }
 0x2ba   : > { %5866 = vmatprep.subr.bf16.mxu1 %v14046_v37  ;;  %5851 = vmatprep.mubr.bf16.mxu1 %v15858_v39 }
 0x2bc   : > { %5643 = vmatpush1.bf16.msra.mxu0 %v14047_v44  ;;  %v14103_v44 = vld [vmem:[#allocation2 + $0x8c] ss:$52 sps:$4 sm:$0xff]  }
 0x2bd   : > { %5867 = vmatpush1.bf16.msra.mxu1 %v14044_v36  ;;  %5644 = vmatprep.subr.bf16.mxu0 %v14055_v47  ;;  %v14100_v36 = vld [vmem:[#allocation2 + $0x1264] ss:$52 sps:$4 sm:$0xff]   ;;  %v14101_v47 = vld [vmem:[#allocation2 + $0x88] ss:$52 sps:$4 sm:$0xff]  }
 0x2be   : > { %5868 = vmatprep.subr.bf16.mxu1 %v14052_v46 }
 0x2c0   : > { %5852 = vmatmul.mubr.bf16.gmra.mrb[32].mxu1 %v15861_v45  ;;  %5645 = vmatpush1.bf16.msra.mxu0 %v14053_v48 }
 0x2c1   : > { %5869 = vmatpush1.bf16.msra.mxu1 %v14050_v43  ;;  %5646 = vmatprep.subr.bf16.mxu0 %v14061_v52  ;;  %v14109_v43 = vld [vmem:[#allocation2 + $0xf4] ss:$52 sps:$4 sm:$0xff]  }
 0x2c2   : > { %5870 = vmatprep.subr.bf16.mxu1 %v14058_v51  ;;  %5892 = vmatprep.mubr.bf16.mxu1 %v15954_v4  ;;  %v14074_v4 = vld [vmem:[#allocation2 + $0x13f8] ss:$52 sps:$4 sm:$0xff]  }
 0x2c4   : > { %5647 = vmatpush1.bf16.msra.mxu0 %v14059_v53  ;;  %v14104_v53 = vld [vmem:[#allocation2 + $0x12c8] ss:$52 sps:$4 sm:$0xff]  }
 0x2c5   : > { %5871 = vmatpush1.bf16.msra.mxu1 %v14056_v50  ;;  %5677 = vmatprep.subr.bf16.mxu0 %v14070_v56 }
 0x2c6   : > { %5872 = vmatprep.subr.bf16.mxu1 %v14064_v55  ;;  %v14107_v55 = vld [vmem:[#allocation2 + $0xf0] ss:$52 sps:$4 sm:$0xff]  }
 0x2c7   : > { %5649 = vmatmul.mubr.bf16.vlgmr.msra.gmra.mrb[12].mxu0 %v15964_v5 }
 0x2c8   : > { %5658 = vmatprep.mubr.bf16.mxu0 %v15968_v7  ;;  %5678 = vmatpush1.bf16.msra.mxu0 %v14068_v60  ;;  %v14115_v60 = vld [vmem:[#allocation2 + $0x15c] ss:$52 sps:$4 sm:$0xff]  }
 0x2c9   : > { %5873 = vmatpush1.bf16.msra.mxu1 %v14062_v57  ;;  %5679 = vmatprep.subr.bf16.mxu0 %v14076_v61  ;;  %v16011_v61 = vld [vmem:[%s15828_s6 + $0x50] ss:$28 sps:$4 sm:$0xff]  }
 0x2ca   : > { %5874 = vmatprep.subr.bf16.mxu1 %v14067_v58  ;;  %v14112_v58 = vld [vmem:[#allocation2 + $0x1334] ss:$52 sps:$4 sm:$0xff]  }
 0x2cc   : > { %5680 = vmatpush1.bf16.msra.mxu0 %v14074_v4 }
 0x2cd   : > { %5875 = vmatpush1.bf16.msra.mxu1 %v14065_v2  ;;  %5681 = vmatprep.subr.bf16.mxu0 %v14082_v10  ;;  %v14113_v2 = vld [vmem:[#allocation2 + $0x158] ss:$52 sps:$4 sm:$0xff]  }
 0x2ce   : > { %5876 = vmatprep.subr.bf16.mxu1 %v14073_v9  ;;  %v14121_v9 = vld [vmem:[#allocation2 + $0x1c4] ss:$52 sps:$4 sm:$0xff]  }
 0x2cf   : > { %5659 = vmatmul.mubr.bf16.gmra.mrb[16].mxu0 %v15973_v20 }
 0x2d0   : > { %5668 = vmatprep.mubr.bf16.mxu0 %v15871_v54  ;;  %5682 = vmatpush1.bf16.msra.mxu0 %v14080_v15  ;;  %v14119_v15 = vld [vmem:[#allocation2 + $0x1c0] ss:$52 sps:$4 sm:$0xff]  }
 0x2d1   : > { %5877 = vmatpush1.bf16.msra.mxu1 %v14071_v12  ;;  %5683 = vmatprep.subr.bf16.mxu0 %v4983_v19  ;;  %v14124_v19 = vld [vmem:[#allocation2 + $0x22c] ss:$52 sps:$4 sm:$0xff]  }
 0x2d2   : > { %5878 = vmatprep.subr.bf16.mxu1 %v14079_v1  ;;  %v14116_v1 = vld [vmem:[#allocation2 + $0x1398] ss:$52 sps:$4 sm:$0xff]  }
 0x2d4   : > { %5684 = vmatpush1.bf16.msra.mxu0 %v4980_v25  ;;  %v14130_v25 = vld [vmem:[#allocation2 + $0x294] ss:$52 sps:$4 sm:$0xff]  }
 0x2d5   : > { %5879 = vmatpush1.bf16.msra.mxu1 %v14077_v23  ;;  %5982 = vmatprep.subr.bf16.mxu0 %v14097_v26  ;;  %v14127_v23 = vld [vmem:[#allocation2 + $0x1404] ss:$52 sps:$4 sm:$0xff]   ;;  %v14133_v26 = vld [vmem:[#allocation2 + $0x146c] ss:$52 sps:$4 sm:$0xff]  }
 0x2d6   : > { %5880 = vmatprep.subr.bf16.mxu1 %v14085_v8  ;;  %v14122_v8 = vld [vmem:[#allocation2 + $0x228] ss:$52 sps:$4 sm:$0xff]  }
 0x2d7   : > { %5669 = vmatmul.mubr.bf16.gmra.mrb[20].mxu0 %v15874_v59 }
 0x2d8   : > { %5709 = vmatprep.mubr.bf16.mxu0 %v17767_v0 }
 0x2d9   : > { %5881 = vmatpush1.bf16.msra.mxu1 %v14083_v18  ;;  %v14142_v18 = vld [vmem:[#allocation2 + $0x14d4] ss:$52 sps:$4 sm:$0xff]  }
 0x2da   : > { %5882 = vmatprep.subr.bf16.mxu1 %v14091_v28  ;;  %v5162_v31 = vpop.f32.mrb[0].mxu0  ;;  %v14128_v28 = vld [vmem:[#allocation2 + $0x290] ss:$52 sps:$4 sm:$0xff]  }
 0x2db   : > { %v15981_v32 = vadd.f32 %v15886_v21, %v5162_v31  ;;  %v5164_v33 = vpop.f32.mrb[1].mxu0  ;;  %v15993_v21 = vld [vmem:[%s15828_s6 + $0x18] ss:$28 sps:$4 sm:$0xff]   ;;  %v14136_v31 = vld [vmem:[#allocation2 + $0x2fc] ss:$52 sps:$4 sm:$0xff]  }
 0x2dc   : > { %v15984_v34 = vadd.f32 %v15888_v22, %v5164_v33  ;;  %v5166_v35 = vpop.f32.mrb[2].mxu0  ;;  %v14098_v22 = vld [vmem:[#allocation2 + $0x1260] ss:$52 sps:$4 sm:$0xff]   ;;  %v14134_v33 = vld [vmem:[#allocation2 + $0x2f8] ss:$52 sps:$4 sm:$0xff]  }
 0x2dd   : > { %5883 = vmatpush1.bf16.msra.mxu1 %v14089_v29  ;;  %v15987_v37 = vadd.f32 %v15890_v24, %v5166_v35  ;;  %v5168_v41 = vpop.f32.mrb[3].mxu0  ;;  %v14106_v24 = vld [vmem:[#allocation2 + $0x12cc] ss:$52 sps:$4 sm:$0xff]   ;;  %v4989_v35 = vand.u32 %v14142_v18, %v15823_v16  ;;  %v14178_v18 = vld [vmem:[#allocation2 + $0x234] ss:$52 sps:$4 sm:$0xff]  }
 0x2de   : > { %5884 = vmatprep.subr.bf16.mxu1 %v14094_v30  ;;  %v15990_v46 = vadd.f32 %v15892_v27, %v5168_v41  ;;  %v16030_v29 = vld [vmem:[%s15828_s6 + $0x4] ss:$28 sps:$4 sm:$0xff]  }
 0x2df   : > { %12035 = vmatmul.mubr.msk.bf16.vlgmr.msra.gmra.mrb[12].mxu0 %vm4953_vm2, %v15993_v21  ;;  %v14140_v30 = vld [vmem:[#allocation2 + $0x14d0] ss:$52 sps:$4 sm:$0xff]   ;;  %v14137_v41 = vld [vmem:[#allocation2 + $0x360] ss:$52 sps:$4 sm:$0xff]  }
 0x2e0   : > { %5983 = vmatpush1.bf16.msra.mxu0 %v14095_v40  ;;  %5719 = vmatprep.mubr.bf16.mxu0 %v17767_v0  ;;  %v14148_v40 = vld [vmem:[#allocation2 + $0x2c] ss:$52 sps:$4 sm:$0xff]  }
 0x2e1   : > { %5885 = vmatpush1.bf16.msra.mxu1 %v14092_v38  ;;  %5984 = vmatprep.subr.bf16.mxu0 %v14103_v44  ;;  %v4986_v38 = vand.u32 %v14140_v30, %v15823_v16  ;;  %v14143_v44 = vld [vmem:[#allocation2 + $0x3c8] ss:$52 sps:$4 sm:$0xff]   ;;  %v14179_v30 = vld [vmem:[#allocation2 + $0x638] ss:$52 sps:$4 sm:$0xff]  }
 0x2e2   : > { %5886 = vmatprep.subr.bf16.mxu1 %v14100_v36  ;;  %v5172_v48 = vpop.f32.mrb[4].mxu0  ;;  %v14145_v36 = vld [vmem:[#allocation2 + $0x3cc] ss:$52 sps:$4 sm:$0xff]  }
 0x2e3   : > { %v15999_v27 = vadd.f32 %v15903_v62, %v5172_v48  ;;  %v5174_v51 = vpop.f32.mrb[5].mxu0  ;;  %v14149_v48 = vld [vmem:[#allocation2 + $0x430] ss:$52 sps:$4 sm:$0xff]  }
 0x2e4   : > { %v16002_v52 = vadd.f32 %v15905_v63, %v5174_v51  ;;  %5985 = vmatpush1.bf16.msra.mxu0 %v14101_v47  ;;  %v5176_v50 = vpop.f32.mrb[6].mxu0  ;;  %v14110_v63 = vld [vmem:[#allocation2 + $0x1330] ss:$52 sps:$4 sm:$0xff]   ;;  %v14154_v51 = vld [vmem:[#allocation2 + $0x94] ss:$52 sps:$4 sm:$0xff]  }
 0x2e5   : > { %5887 = vmatpush1.bf16.msra.mxu1 %v14098_v22  ;;  %v16005_v56 = vadd.f32 %v15911_v3, %v5176_v50  ;;  %v5178_v57 = vpop.f32.mrb[7].mxu0  ;;  %5986 = vmatprep.subr.bf16.mxu0 %v14109_v43  ;;  %v14118_v3 = vld [vmem:[#allocation2 + $0x139c] ss:$52 sps:$4 sm:$0xff]  }
 0x2e6   : > { %5888 = vmatprep.subr.bf16.mxu1 %v14106_v24  ;;  %v16008_v62 = vadd.f32 %v15913_v6, %v5178_v57  ;;  %v14146_v24 = vld [vmem:[#allocation2 + $0x28] ss:$52 sps:$4 sm:$0xff]   ;;  %v14155_v57 = vld [vmem:[#allocation2 + $0x498] ss:$52 sps:$4 sm:$0xff]  }
 0x2e7   : > { %12036 = vmatmul.mubr.msk.bf16.gmra.mrb[16].mxu0 %vm4953_vm2, %v16011_v61 }
 0x2e8   : > { %5987 = vmatpush1.bf16.msra.mxu0 %v14107_v55  ;;  %5729 = vmatprep.mubr.bf16.mxu0 %v17767_v0  ;;  %v14152_v55 = vld [vmem:[#allocation2 + $0x90] ss:$52 sps:$4 sm:$0xff]  }
 0x2e9   : > { %5889 = vmatpush1.bf16.msra.mxu1 %v14104_v53  ;;  %5988 = vmatprep.subr.bf16.mxu0 %v14115_v60  ;;  %v14157_v53 = vld [vmem:[#allocation2 + $0x49c] ss:$52 sps:$4 sm:$0xff]   ;;  %v14163_v60 = vld [vmem:[#allocation2 + $0x504] ss:$52 sps:$4 sm:$0xff]  }
 0x2ea   : > { %5890 = vmatprep.subr.bf16.mxu1 %v14112_v58  ;;  %v5182_v4 = vpop.f32.mrb[8].mxu0  ;;  %v14160_v58 = vld [vmem:[#allocation2 + $0xfc] ss:$52 sps:$4 sm:$0xff]  }
 0x2eb   : > { %v16017_v6 = vadd.f32 %v15919_v13, %v5182_v4  ;;  %v5184_v10 = vpop.f32.mrb[9].mxu0  ;;  %v16024_v13 = vld [vmem:[%s15828_s6 + $0x88] ss:$0 sps:$4 sm:$0x33]   ;;  %v14166_v4 = vld [vmem:[#allocation2 + $0x164] ss:$52 sps:$4 sm:$0xff]  }
 0x2ec   : > { %v16020_v11 = vadd.f32 %v15921_v14, %v5184_v10  ;;  %5989 = vmatpush1.bf16.msra.mxu0 %v14113_v2  ;;  %v5186_v12 = vpop.f32.mrb[10].mxu0  ;;  %v14125_v14 = vld [vmem:[#allocation2 + $0x1400] ss:$52 sps:$4 sm:$0xff]   ;;  %v14158_v2 = vld [vmem:[#allocation2 + $0xf8] ss:$52 sps:$4 sm:$0xff]  }
 0x2ed   : > { %5891 = vmatpush1.bf16.msra.mxu1 %v14110_v63  ;;  %v5187_v17 = vpop.f32.mrb[11].mxu0  ;;  %5990 = vmatprep.subr.bf16.mxu0 %v14121_v9  ;;  %v14169_v10 = vld [vmem:[#allocation2 + $0x56c] ss:$52 sps:$4 sm:$0xff]  }
 0x2ee   : > { %5921 = vmatprep.subr.bf16.mxu1 %v14118_v3  ;;  %v14161_v3 = vld [vmem:[#allocation2 + $0x500] ss:$52 sps:$4 sm:$0xff]  }
 0x2ef   : > { %12037 = vmatmul.mubr.msk.bf16.gmra.mrb[20].mxu0 %vm4953_vm2, %v16024_v13  ;;  %v14172_v17 = vld [vmem:[#allocation2 + $0x1cc] ss:$52 sps:$4 sm:$0xff]  }
 0x2f0   : > { %5893 = vmatmul.mubr.bf16.vlgmr.msra.gmra.mrb[24].mxu1 %v15964_v5  ;;  %5991 = vmatpush1.bf16.msra.mxu0 %v14119_v15  ;;  %v14131_v5 = vld [vmem:[#allocation2 + $0x1468] ss:$52 sps:$4 sm:$0xff]  }
 0x2f1   : > { %5922 = vmatpush1.bf16.msra.mxu1 %v14116_v1  ;;  %5992 = vmatprep.subr.bf16.mxu0 %v14124_v19  ;;  %v14164_v1 = vld [vmem:[#allocation2 + $0x160] ss:$52 sps:$4 sm:$0xff]   ;;  %v14167_v15 = vld [vmem:[#allocation2 + $0x568] ss:$52 sps:$4 sm:$0xff]  }
 0x2f2   : > { %5923 = vmatprep.subr.bf16.mxu1 %v14127_v23  ;;  %5902 = vmatprep.mubr.bf16.mxu1 %v15968_v7  ;;  %v14139_v7 = vld [vmem:[#allocation2 + $0x364] ss:$52 sps:$4 sm:$0xff]   ;;  %v14175_v19 = vld [vmem:[#allocation2 + $0x5d4] ss:$52 sps:$4 sm:$0xff]  }
 0x2f3   : > { %6014 = vmatprep.mubr.bf16.mxu0 %v16030_v29 }
 0x2f4   : > { %5993 = vmatpush1.bf16.msra.mxu0 %v14122_v8 }
 0x2f5   : > { %5924 = vmatpush1.bf16.msra.mxu1 %v14125_v14  ;;  %5994 = vmatprep.subr.bf16.mxu0 %v14130_v25  ;;  %v14170_v14 = vld [vmem:[#allocation2 + $0x1c8] ss:$52 sps:$4 sm:$0xff]   ;;  %v14173_v25 = vld [vmem:[#allocation2 + $0x5d0] ss:$52 sps:$4 sm:$0xff]  }
 0x2f6   : > { %5925 = vmatprep.subr.bf16.mxu1 %v14133_v26 }
 0x2f8   : > { %5903 = vmatmul.mubr.bf16.gmra.mrb[28].mxu1 %v15973_v20  ;;  %5995 = vmatpush1.bf16.msra.mxu0 %v14128_v28  ;;  %v14151_v20 = vld [vmem:[#allocation2 + $0x434] ss:$52 sps:$4 sm:$0xff]   ;;  %v14181_v28 = vld [vmem:[#allocation2 + $0x63c] ss:$52 sps:$4 sm:$0xff]  }
 0x2f9   : > { %5926 = vmatpush1.bf16.msra.mxu1 %v14131_v5  ;;  %5996 = vmatprep.subr.bf16.mxu0 %v14136_v31  ;;  %v14176_v5 = vld [vmem:[#allocation2 + $0x230] ss:$52 sps:$4 sm:$0xff]  }
 0x2fa   : > { %5912 = vmatprep.mubr.bf16.mxu1 %v15871_v54  ;;  %5927 = vmatprep.subr.bf16.mxu1 %v4989_v35  ;;  %v14184_v31 = vld [vmem:[#allocation2 + $0x29c] ss:$52 sps:$4 sm:$0xff]   ;;  %v14182_v35 = vld [vmem:[#allocation2 + $0x298] ss:$52 sps:$4 sm:$0xff]  }
 0x2fc   : > { %5997 = vmatpush1.bf16.msra.mxu0 %v14134_v33  ;;  %v14187_v33 = vld [vmem:[#allocation2 + $0x6a4] ss:$52 sps:$4 sm:$0xff]  }
 0x2fd   : > { %5928 = vmatpush1.bf16.msra.mxu1 %v4986_v38  ;;  %5998 = vmatprep.subr.bf16.mxu0 %v14139_v7  ;;  %v14185_v7 = vld [vmem:[#allocation2 + $0x6a0] ss:$52 sps:$4 sm:$0xff]  }
 0x2fe   : > { %6226 = vmatprep.subr.bf16.mxu1 %v14148_v40  ;;  %v14193_v38 = vld [vmem:[#allocation2 + $0x70c] ss:$52 sps:$4 sm:$0xff]  }
 0x2ff   : > { %v14188_v40 = vld [vmem:[#allocation2 + $0x300] ss:$52 sps:$4 sm:$0xff]  }
 0x300   : > { %5913 = vmatmul.mubr.bf16.gmra.mrb[32].mxu1 %v15874_v59  ;;  %5999 = vmatpush1.bf16.msra.mxu0 %v14137_v41  ;;  %v14191_v41 = vld [vmem:[#allocation2 + $0x708] ss:$52 sps:$4 sm:$0xff]  }
 0x301   : > { %5953 = vmatprep.mubr.bf16.mxu1 %v17767_v0  ;;  %6000 = vmatprep.subr.bf16.mxu0 %v14145_v36  ;;  %v16074_v36 = vld [vmem:[%s15828_s6] ss:$28 sps:$4 sm:$0xff]  }
 0x303   : > { %v16039_v22 = vpop.f32.mrb[12].mxu1 }
 0x304   : > { %6709 = vrot.lane.b32.xlu0 %v16039_v22, %s15393_s24  ;;  %v5469_v47 = vpop.f32.mrb[13].mxu1  ;;  %6001 = vmatpush1.bf16.msra.mxu0 %v14143_v44  ;;  %v14196_v44 = vld [vmem:[#allocation2 + $0x36c] ss:$52 sps:$4 sm:$0xff]  }
 0x305   : > { %v16043_v43 = vpop.f32.mrb[14].mxu1  ;;  %6002 = vmatprep.subr.bf16.mxu0 %v14151_v20  ;;  %v14194_v20 = vld [vmem:[#allocation2 + $0x368] ss:$52 sps:$4 sm:$0xff]  }
 0x306   : > { %6715 = vrot.lane.b32.xlu1 %v16043_v43, %s15393_s24  ;;  %v5473_v50 = vpop.f32.mrb[15].mxu1 }
 0x308   : > { %12038 = vmatmul.mubr.msk.bf16.vlgmr.msra.gmra.mrb[24].mxu1 %vm4953_vm2, %v15993_v21  ;;  %6711 = vrot.lane.b32.xlu0 %v5469_v47, %s15393_s24  ;;  %v14197_v47 = vld [vmem:[#allocation2 + $0x770] ss:$52 sps:$4 sm:$0xff]  }
 0x309   : > { %6227 = vmatpush1.bf16.msra.mxu1 %v14146_v24  ;;  %6003 = vmatpush1.bf16.msra.mxu0 %v14149_v48  ;;  %v16078_v24 = vld [vmem:[%s15828_s6 + $0x3c] ss:$28 sps:$4 sm:$0xff]   ;;  %v14202_v48 = vld [vmem:[#allocation2 + $0x3d4] ss:$52 sps:$4 sm:$0xff]  }
 0x30a   : > { %6228 = vmatprep.subr.bf16.mxu1 %v14154_v51  ;;  %6717 = vrot.lane.b32.xlu1 %v5473_v50, %s15393_s24  ;;  %v14205_v51 = vld [vmem:[#allocation2 + $0x7dc] ss:$52 sps:$4 sm:$0xff]   ;;  %v16082_v50 = vld [vmem:[%s15828_s6 + $0x38] ss:$28 sps:$4 sm:$0xff]  }
 0x30b   : > { %v16051_v63 = vpop.f32.mrb[16].mxu1  ;;  %6004 = vmatprep.subr.bf16.mxu0 %v14157_v53  ;;  %5963 = vmatprep.mubr.bf16.mxu1 %v17767_v0  ;;  %v14200_v53 = vld [vmem:[#allocation2 + $0x3d0] ss:$52 sps:$4 sm:$0xff]  }
 0x30c   : > { %6721 = vrot.lane.b32.xlu0 %v16051_v63, %s15393_s24  ;;  %v5479_v21 = vpop.f32.mrb[17].mxu1 }
 0x30d   : > { %6229 = vmatpush1.bf16.msra.mxu1 %v14152_v55  ;;  %6005 = vmatpush1.bf16.msra.mxu0 %v14155_v57  ;;  %v16056_v9 = vpop.f32.mrb[18].mxu1  ;;  %v14203_v55 = vld [vmem:[#allocation2 + $0x7d8] ss:$52 sps:$4 sm:$0xff]   ;;  %v14208_v57 = vld [vmem:[#allocation2 + $0x43c] ss:$52 sps:$4 sm:$0xff]  }
 0x30e   : > { %6230 = vmatprep.subr.bf16.mxu1 %v14160_v58  ;;  %6727 = vrot.lane.b32.xlu1 %v16056_v9, %s15393_s24  ;;  %v5483_v12 = vpop.f32.mrb[19].mxu1  ;;  %v14211_v58 = vld [vmem:[#allocation2 + $0x844] ss:$52 sps:$4 sm:$0xff]  }
 0x30f   : > { %6006 = vmatprep.subr.bf16.mxu0 %v14163_v60  ;;  %v14206_v60 = vld [vmem:[#allocation2 + $0x438] ss:$52 sps:$4 sm:$0xff]  }
 0x310   : > { %12039 = vmatmul.mubr.msk.bf16.gmra.mrb[28].mxu1 %vm4953_vm2, %v16011_v61  ;;  %6723 = vrot.lane.b32.xlu0 %v5479_v21, %s15393_s24  ;;  %v14217_v21 = vld [vmem:[#allocation2 + $0x8ac] ss:$52 sps:$4 sm:$0xff]  }
 0x311   : > { %6231 = vmatpush1.bf16.msra.mxu1 %v14158_v2  ;;  %6007 = vmatpush1.bf16.msra.mxu0 %v14161_v3  ;;  %v14209_v2 = vld [vmem:[#allocation2 + $0x840] ss:$52 sps:$4 sm:$0xff]   ;;  %v14214_v3 = vld [vmem:[#allocation2 + $0x4a4] ss:$52 sps:$4 sm:$0xff]  }
 0x312   : > { %6232 = vmatprep.subr.bf16.mxu1 %v14166_v4  ;;  %6008 = vmatprep.subr.bf16.mxu0 %v14169_v10  ;;  %v14212_v4 = vld [vmem:[#allocation2 + $0x4a0] ss:$52 sps:$4 sm:$0xff]   ;;  %v14215_v10 = vld [vmem:[#allocation2 + $0x8a8] ss:$52 sps:$4 sm:$0xff]  }
 0x313   : > { %v16063_v23 = vpop.f32.mrb[20].mxu1  ;;  %5973 = vmatprep.mubr.bf16.mxu1 %v17767_v0 }
 0x314   : > { %6729 = vrot.lane.b32.xlu0 %v5483_v12, %s15393_s24  ;;  %v5489_v8 = vpop.f32.mrb[21].mxu1  ;;  %v14220_v12 = vld [vmem:[#allocation2 + $0x50c] ss:$52 sps:$4 sm:$0xff]  }
 0x315   : > { %6233 = vmatpush1.bf16.msra.mxu1 %v14164_v1  ;;  %6009 = vmatpush1.bf16.msra.mxu0 %v14167_v15  ;;  %v5491_v61 = vpop.f32.mrb[22].mxu1  ;;  %v14223_v1 = vld [vmem:[#allocation2 + $0x914] ss:$52 sps:$4 sm:$0xff]  }
 0x316   : > { %v5492_v26 = vpop.f32.mrb[23].mxu1  ;;  %6234 = vmatprep.subr.bf16.mxu1 %v14172_v17  ;;  %6010 = vmatprep.subr.bf16.mxu0 %v14175_v19  ;;  %v14218_v15 = vld [vmem:[#allocation2 + $0x508] ss:$52 sps:$4 sm:$0xff]   ;;  %v14221_v17 = vld [vmem:[#allocation2 + $0x910] ss:$52 sps:$4 sm:$0xff]  }
 0x317   : > { %v16088_v19 = vld [vmem:[%s15828_s6 + $0xc] ss:$28 sps:$4 sm:$0xff]   ;;  %v14229_v61 = vld [vmem:[#allocation2 + $0x97c] ss:$52 sps:$4 sm:$0xff]  }
 0x318   : > { %12040 = vmatmul.mubr.msk.bf16.gmra.mrb[32].mxu1 %vm4953_vm2, %v16024_v13  ;;  %6733 = vrot.lane.b32.xlu0 %v16063_v23, %s15393_s24  ;;  %v14190_v13 = vld [vmem:[#allocation2 + $0x304] ss:$52 sps:$4 sm:$0xff]   ;;  %v14232_v26 = vld [vmem:[#allocation2 + $0x5dc] ss:$52 sps:$4 sm:$0xff]  }
 0x319   : > { %6235 = vmatpush1.bf16.msra.mxu1 %v14170_v14  ;;  %6011 = vmatpush1.bf16.msra.mxu0 %v14173_v25  ;;  %v14224_v14 = vld [vmem:[#allocation2 + $0x570] ss:$52 sps:$4 sm:$0xff]   ;;  %v14227_v25 = vld [vmem:[#allocation2 + $0x978] ss:$52 sps:$4 sm:$0xff]  }
 0x31a   : > { %6236 = vmatprep.subr.bf16.mxu1 %v14178_v18  ;;  %6012 = vmatprep.subr.bf16.mxu0 %v14181_v28  ;;  %v14235_v18 = vld [vmem:[#allocation2 + $0x9e4] ss:$52 sps:$4 sm:$0xff]  }
 0x31b   : > { %6258 = vmatprep.mubr.bf16.mxu1 %v16030_v29  ;;  %v14199_v29 = vld [vmem:[#allocation2 + $0x774] ss:$52 sps:$4 sm:$0xff]   ;;  %v14230_v28 = vld [vmem:[#allocation2 + $0x5d8] ss:$52 sps:$4 sm:$0xff]  }
 0x31c   : > { %6735 = vrot.lane.b32.xlu0 %v5489_v8, %s15393_s24  ;;  %v14226_v8 = vld [vmem:[#allocation2 + $0x574] ss:$52 sps:$4 sm:$0xff]  }
 0x31d   : > { %6237 = vmatpush1.bf16.msra.mxu1 %v14176_v5  ;;  %6013 = vmatpush1.bf16.msra.mxu0 %v14179_v30  ;;  %v14233_v5 = vld [vmem:[#allocation2 + $0x9e0] ss:$52 sps:$4 sm:$0xff]   ;;  %v14238_v30 = vld [vmem:[#allocation2 + $0x644] ss:$52 sps:$4 sm:$0xff]  }
 0x31e   : > { %6238 = vmatprep.subr.bf16.mxu1 %v14184_v31  ;;  %6043 = vmatprep.subr.bf16.mxu0 %v14187_v33  ;;  %v14241_v31 = vld [vmem:[#allocation2 + $0xa4c] ss:$52 sps:$4 sm:$0xff]  }
 0x31f   : > { %v14236_v33 = vld [vmem:[#allocation2 + $0x640] ss:$52 sps:$4 sm:$0xff]  }
 0x320   : > { %6015 = vmatmul.mubr.bf16.vlgmr.msra.gmra.mrb[24].mxu0 %v16074_v36 }
 0x321   : > { %6239 = vmatpush1.bf16.msra.mxu1 %v14182_v35  ;;  %6044 = vmatpush1.bf16.msra.mxu0 %v14185_v7  ;;  %v14239_v35 = vld [vmem:[#allocation2 + $0xa48] ss:$52 sps:$4 sm:$0xff]   ;;  %v14244_v7 = vld [vmem:[#allocation2 + $0x6ac] ss:$52 sps:$4 sm:$0xff]  }
 0x322   : > { %6240 = vmatprep.subr.bf16.mxu1 %v14190_v13  ;;  %6045 = vmatprep.subr.bf16.mxu0 %v14193_v38  ;;  %v14247_v13 = vld [vmem:[#allocation2 + $0xab4] ss:$52 sps:$4 sm:$0xff]  }
 0x323   : > { %6024 = vmatprep.mubr.bf16.mxu0 %v16078_v24  ;;  %v14242_v38 = vld [vmem:[#allocation2 + $0x6a8] ss:$52 sps:$4 sm:$0xff]  }
 0x325   : > { %6241 = vmatpush1.bf16.msra.mxu1 %v14188_v40  ;;  %6046 = vmatpush1.bf16.msra.mxu0 %v14191_v41  ;;  %v14245_v40 = vld [vmem:[#allocation2 + $0xab0] ss:$52 sps:$4 sm:$0xff]   ;;  %v14250_v41 = vld [vmem:[#allocation2 + $0x714] ss:$52 sps:$4 sm:$0xff]  }
 0x326   : > { %6242 = vmatprep.subr.bf16.mxu1 %v14196_v44  ;;  %6047 = vmatprep.subr.bf16.mxu0 %v14199_v29  ;;  %v14253_v44 = vld [vmem:[#allocation2 + $0xb1c] ss:$52 sps:$4 sm:$0xff]  }
 0x327   : > { %v14248_v29 = vld [vmem:[#allocation2 + $0x710] ss:$52 sps:$4 sm:$0xff]  }
 0x328   : > { %6025 = vmatmul.mubr.bf16.gmra.mrb[28].mxu0 %v16082_v50 }
 0x329   : > { %6243 = vmatpush1.bf16.msra.mxu1 %v14194_v20  ;;  %6048 = vmatpush1.bf16.msra.mxu0 %v14197_v47  ;;  %v14251_v20 = vld [vmem:[#allocation2 + $0xb18] ss:$52 sps:$4 sm:$0xff]   ;;  %v14256_v47 = vld [vmem:[#allocation2 + $0x77c] ss:$52 sps:$4 sm:$0xff]  }
 0x32a   : > { %6244 = vmatprep.subr.bf16.mxu1 %v14202_v48  ;;  %6049 = vmatprep.subr.bf16.mxu0 %v14205_v51  ;;  %v14259_v48 = vld [vmem:[#allocation2 + $0xb84] ss:$52 sps:$4 sm:$0xff]  }
 0x32b   : > { %6034 = vmatprep.mubr.bf16.mxu0 %v15845_v42  ;;  %v14254_v51 = vld [vmem:[#allocation2 + $0x778] ss:$52 sps:$4 sm:$0xff]  }
 0x32d   : > { %6245 = vmatpush1.bf16.msra.mxu1 %v14200_v53  ;;  %6050 = vmatpush1.bf16.msra.mxu0 %v14203_v55  ;;  %v14257_v53 = vld [vmem:[#allocation2 + $0xb80] ss:$52 sps:$4 sm:$0xff]   ;;  %v14262_v55 = vld [vmem:[#allocation2 + $0x7e4] ss:$52 sps:$4 sm:$0xff]  }
 0x32e   : > { %6246 = vmatprep.subr.bf16.mxu1 %v14208_v57  ;;  %6051 = vmatprep.subr.bf16.mxu0 %v14211_v58  ;;  %v14265_v57 = vld [vmem:[#allocation2 + $0xbec] ss:$52 sps:$4 sm:$0xff]  }
 0x32f   : > { %v14260_v58 = vld [vmem:[#allocation2 + $0x7e0] ss:$52 sps:$4 sm:$0xff]  }
 0x330   : > { %6035 = vmatmul.mubr.bf16.gmra.mrb[32].mxu0 %v15848_v49 }
 0x331   : > { %6247 = vmatpush1.bf16.msra.mxu1 %v14206_v60  ;;  %6052 = vmatpush1.bf16.msra.mxu0 %v14209_v2  ;;  %v14268_v60 = vld [vmem:[#allocation2 + $0x84c] ss:$52 sps:$4 sm:$0xff]   ;;  %v14271_v2 = vld [vmem:[#allocation2 + $0xc54] ss:$52 sps:$4 sm:$0xff]  }
 0x332   : > { %6248 = vmatprep.subr.bf16.mxu1 %v14214_v3  ;;  %6053 = vmatprep.subr.bf16.mxu0 %v14217_v21  ;;  %v14266_v3 = vld [vmem:[#allocation2 + $0x848] ss:$52 sps:$4 sm:$0xff]   ;;  %v14269_v21 = vld [vmem:[#allocation2 + $0xc50] ss:$52 sps:$4 sm:$0xff]  }
 0x333   : > { %6075 = vmatprep.mubr.bf16.mxu0 %v16088_v19 }
 0x335   : > { %6249 = vmatpush1.bf16.msra.mxu1 %v14212_v4  ;;  %6054 = vmatpush1.bf16.msra.mxu0 %v14215_v10  ;;  %v14277_v4 = vld [vmem:[#allocation2 + $0xcbc] ss:$52 sps:$4 sm:$0xff]  }
 0x336   : > { %6250 = vmatprep.subr.bf16.mxu1 %v14220_v12  ;;  %6055 = vmatprep.subr.bf16.mxu0 %v14223_v1  ;;  %v14272_v10 = vld [vmem:[#allocation2 + $0x8b0] ss:$52 sps:$4 sm:$0xff]   ;;  %v14275_v12 = vld [vmem:[#allocation2 + $0xcb8] ss:$52 sps:$4 sm:$0xff]  }
 0x337   : > { %v14280_v1 = vld [vmem:[#allocation2 + $0x91c] ss:$52 sps:$4 sm:$0xff]  }
 0x339   : > { %6251 = vmatpush1.bf16.msra.mxu1 %v14218_v15  ;;  %6056 = vmatpush1.bf16.msra.mxu0 %v14221_v17  ;;  %v14278_v15 = vld [vmem:[#allocation2 + $0x918] ss:$52 sps:$4 sm:$0xff]   ;;  %v14281_v17 = vld [vmem:[#allocation2 + $0xd20] ss:$52 sps:$4 sm:$0xff]  }
 0x33a   : > { %6252 = vmatprep.subr.bf16.mxu1 %v14226_v8  ;;  %6057 = vmatprep.subr.bf16.mxu0 %v14229_v61  ;;  %v14286_v8 = vld [vmem:[#allocation2 + $0x984] ss:$52 sps:$4 sm:$0xff]   ;;  %v14289_v61 = vld [vmem:[#allocation2 + $0xd8c] ss:$52 sps:$4 sm:$0xff]  }
 0x33d   : > { %6253 = vmatpush1.bf16.msra.mxu1 %v14224_v14  ;;  %6058 = vmatpush1.bf16.msra.mxu0 %v14227_v25  ;;  %v14284_v14 = vld [vmem:[#allocation2 + $0x980] ss:$52 sps:$4 sm:$0xff]   ;;  %v16098_v25 = vld [vmem:[%s15828_s6 + $0x8] ss:$28 sps:$4 sm:$0xff]  }
 0x33e   : > { %6254 = vmatprep.subr.bf16.mxu1 %v14232_v26  ;;  %6059 = vmatprep.subr.bf16.mxu0 %v14235_v18  ;;  %v14287_v26 = vld [vmem:[#allocation2 + $0xd88] ss:$52 sps:$4 sm:$0xff]   ;;  %v14292_v18 = vld [vmem:[#allocation2 + $0x9ec] ss:$52 sps:$4 sm:$0xff]  }
 0x341   : > { %6255 = vmatpush1.bf16.msra.mxu1 %v14230_v28  ;;  %6060 = vmatpush1.bf16.msra.mxu0 %v14233_v5  ;;  %v14295_v28 = vld [vmem:[#allocation2 + $0xdf4] ss:$52 sps:$4 sm:$0xff]   ;;  %v16102_v5 = vld [vmem:[%s15828_s6 + $0x44] ss:$28 sps:$4 sm:$0xff]  }
 0x342   : > { %6256 = vmatprep.subr.bf16.mxu1 %v14238_v30  ;;  %6061 = vmatprep.subr.bf16.mxu0 %v14241_v31  ;;  %v14293_v30 = vld [vmem:[#allocation2 + $0xdf0] ss:$52 sps:$4 sm:$0xff]   ;;  %v14298_v31 = vld [vmem:[#allocation2 + $0xa54] ss:$52 sps:$4 sm:$0xff]  }
 0x345   : > { %6257 = vmatpush1.bf16.msra.mxu1 %v14236_v33  ;;  %6062 = vmatpush1.bf16.msra.mxu0 %v14239_v35  ;;  %v14301_v33 = vld [vmem:[#allocation2 + $0xe5c] ss:$52 sps:$4 sm:$0xff]  }
 0x346   : > { %6287 = vmatprep.subr.bf16.mxu1 %v14244_v7  ;;  %6063 = vmatprep.subr.bf16.mxu0 %v14247_v13  ;;  %v14296_v35 = vld [vmem:[#allocation2 + $0xa50] ss:$52 sps:$4 sm:$0xff]   ;;  %v14299_v7 = vld [vmem:[#allocation2 + $0xe58] ss:$52 sps:$4 sm:$0xff]   ;;  %v16106_v13 = vld [vmem:[%s15828_s6 + $0x40] ss:$28 sps:$4 sm:$0xff]  }
 0x348   : > { %6259 = vmatmul.mubr.bf16.vlgmr.msra.gmra.mrb[36].mxu1 %v16074_v36  ;;  %v14263_v36 = vld [vmem:[#allocation2 + $0xbe8] ss:$52 sps:$4 sm:$0xff]  }
 0x349   : > { %6288 = vmatpush1.bf16.msra.mxu1 %v14242_v38  ;;  %6064 = vmatpush1.bf16.msra.mxu0 %v14245_v40  ;;  %v14304_v38 = vld [vmem:[#allocation2 + $0xabc] ss:$52 sps:$4 sm:$0xff]   ;;  %v14307_v40 = vld [vmem:[#allocation2 + $0xec4] ss:$52 sps:$4 sm:$0xff]  }
 0x34a   : > { %6289 = vmatprep.subr.bf16.mxu1 %v14250_v41  ;;  %6065 = vmatprep.subr.bf16.mxu0 %v14253_v44  ;;  %v14302_v41 = vld [vmem:[#allocation2 + $0xab8] ss:$52 sps:$4 sm:$0xff]   ;;  %v14305_v44 = vld [vmem:[#allocation2 + $0xec0] ss:$52 sps:$4 sm:$0xff]  }
 0x34b   : > { %6268 = vmatprep.mubr.bf16.mxu1 %v16078_v24  ;;  %v14274_v24 = vld [vmem:[#allocation2 + $0x8b4] ss:$52 sps:$4 sm:$0xff]  }
 0x34d   : > { %6290 = vmatpush1.bf16.msra.mxu1 %v14248_v29  ;;  %6066 = vmatpush1.bf16.msra.mxu0 %v14251_v20  ;;  %v14310_v29 = vld [vmem:[#allocation2 + $0xb24] ss:$52 sps:$4 sm:$0xff]   ;;  %v14313_v20 = vld [vmem:[#allocation2 + $0xf2c] ss:$52 sps:$4 sm:$0xff]  }
 0x34e   : > { %6291 = vmatprep.subr.bf16.mxu1 %v14256_v47  ;;  %6067 = vmatprep.subr.bf16.mxu0 %v14259_v48  ;;  %v14308_v47 = vld [vmem:[#allocation2 + $0xb20] ss:$52 sps:$4 sm:$0xff]   ;;  %v14311_v48 = vld [vmem:[#allocation2 + $0xf28] ss:$52 sps:$4 sm:$0xff]  }
 0x350   : > { %6269 = vmatmul.mubr.bf16.gmra.mrb[40].mxu1 %v16082_v50  ;;  %v14283_v50 = vld [vmem:[#allocation2 + $0xd24] ss:$52 sps:$4 sm:$0xff]  }
 0x351   : > { %6292 = vmatpush1.bf16.msra.mxu1 %v14254_v51  ;;  %6068 = vmatpush1.bf16.msra.mxu0 %v14257_v53  ;;  %v14316_v51 = vld [vmem:[#allocation2 + $0xb8c] ss:$52 sps:$4 sm:$0xff]   ;;  %v14319_v53 = vld [vmem:[#allocation2 + $0xf94] ss:$52 sps:$4 sm:$0xff]  }
 0x352   : > { %6293 = vmatprep.subr.bf16.mxu1 %v14262_v55  ;;  %6069 = vmatprep.subr.bf16.mxu0 %v14265_v57  ;;  %v16112_v55 = vld [vmem:[%s15828_s6 + $0x14] ss:$28 sps:$4 sm:$0xff]   ;;  %v14314_v57 = vld [vmem:[#allocation2 + $0xb88] ss:$52 sps:$4 sm:$0xff]  }
 0x353   : > { %6278 = vmatprep.mubr.bf16.mxu1 %v15845_v42 }
 0x355   : > { %6294 = vmatpush1.bf16.msra.mxu1 %v14260_v58  ;;  %6070 = vmatpush1.bf16.msra.mxu0 %v14263_v36  ;;  %v14317_v58 = vld [vmem:[#allocation2 + $0xf90] ss:$52 sps:$4 sm:$0xff]   ;;  %v14322_v36 = vld [vmem:[#allocation2 + $0xbf4] ss:$52 sps:$4 sm:$0xff]  }
 0x356   : > { %6295 = vmatprep.subr.bf16.mxu1 %v14268_v60  ;;  %6071 = vmatprep.subr.bf16.mxu0 %v14271_v2  ;;  %v14325_v2 = vld [vmem:[#allocation2 + $0xffc] ss:$52 sps:$4 sm:$0xff]  }
 0x358   : > { %6279 = vmatmul.mubr.bf16.gmra.mrb[44].mxu1 %v15848_v49 }
 0x359   : > { %6296 = vmatpush1.bf16.msra.mxu1 %v14266_v3  ;;  %6072 = vmatpush1.bf16.msra.mxu0 %v14269_v21  ;;  %v14320_v21 = vld [vmem:[#allocation2 + $0xbf0] ss:$52 sps:$4 sm:$0xff]  }
 0x35a   : > { %6297 = vmatprep.subr.bf16.mxu1 %v14274_v24  ;;  %6073 = vmatprep.subr.bf16.mxu0 %v14277_v4  ;;  %v14323_v24 = vld [vmem:[#allocation2 + $0xff8] ss:$52 sps:$4 sm:$0xff]   ;;  %v14328_v4 = vld [vmem:[#allocation2 + $0xc5c] ss:$52 sps:$4 sm:$0xff]  }
 0x35b   : > { %6319 = vmatprep.mubr.bf16.mxu1 %v16088_v19  ;;  %v14290_v19 = vld [vmem:[#allocation2 + $0x9e8] ss:$52 sps:$4 sm:$0xff]  }
 0x35d   : > { %6298 = vmatpush1.bf16.msra.mxu1 %v14272_v10  ;;  %6074 = vmatpush1.bf16.msra.mxu0 %v14275_v12  ;;  %v14331_v12 = vld [vmem:[#allocation2 + $0x1064] ss:$52 sps:$4 sm:$0xff]  }
 0x35e   : > { %6299 = vmatprep.subr.bf16.mxu1 %v14280_v1  ;;  %6104 = vmatprep.subr.bf16.mxu0 %v14283_v50  ;;  %v14326_v50 = vld [vmem:[#allocation2 + $0xc58] ss:$52 sps:$4 sm:$0xff]  }
 0x360   : > { %6076 = vmatmul.mubr.bf16.vlgmr.msra.gmra.mrb[24].mxu0 %v16098_v25 }
 0x361   : > { %6300 = vmatpush1.bf16.msra.mxu1 %v14278_v15  ;;  %6105 = vmatpush1.bf16.msra.mxu0 %v14281_v17  ;;  %v14329_v15 = vld [vmem:[#allocation2 + $0x1060] ss:$52 sps:$4 sm:$0xff]  }
 0x362   : > { %6301 = vmatprep.subr.bf16.mxu1 %v14286_v8  ;;  %6106 = vmatprep.subr.bf16.mxu0 %v14289_v61  ;;  %v14334_v61 = vld [vmem:[#allocation2 + $0xcc4] ss:$52 sps:$4 sm:$0xff]  }
 0x363   : > { %6085 = vmatprep.mubr.bf16.mxu0 %v16102_v5 }
 0x365   : > { %6302 = vmatpush1.bf16.msra.mxu1 %v14284_v14  ;;  %6107 = vmatpush1.bf16.msra.mxu0 %v14287_v26  ;;  %v14337_v26 = vld [vmem:[#allocation2 + $0x10cc] ss:$52 sps:$4 sm:$0xff]  }
 0x366   : > { %6303 = vmatprep.subr.bf16.mxu1 %v14292_v18  ;;  %6108 = vmatprep.subr.bf16.mxu0 %v14295_v28 }
 0x368   : > { %6086 = vmatmul.mubr.bf16.gmra.mrb[28].mxu0 %v16106_v13 }
 0x369   : > { %6304 = vmatpush1.bf16.msra.mxu1 %v14290_v19  ;;  %6109 = vmatpush1.bf16.msra.mxu0 %v14293_v30  ;;  %v14332_v19 = vld [vmem:[#allocation2 + $0xcc0] ss:$52 sps:$4 sm:$0xff]   ;;  %v14335_v30 = vld [vmem:[#allocation2 + $0x10c8] ss:$52 sps:$4 sm:$0xff]  }
 0x36a   : > { %6305 = vmatprep.subr.bf16.mxu1 %v14298_v31  ;;  %6110 = vmatprep.subr.bf16.mxu0 %v14301_v33  ;;  %v14340_v31 = vld [vmem:[#allocation2 + $0xd2c] ss:$52 sps:$4 sm:$0xff]  }
 0x36b   : > { %6095 = vmatprep.mubr.bf16.mxu0 %v15858_v39 }
 0x36d   : > { %6306 = vmatpush1.bf16.msra.mxu1 %v14296_v35  ;;  %6111 = vmatpush1.bf16.msra.mxu0 %v14299_v7  ;;  %v14343_v35 = vld [vmem:[#allocation2 + $0x1134] ss:$52 sps:$4 sm:$0xff]  }
 0x36e   : > { %6307 = vmatprep.subr.bf16.mxu1 %v14304_v38  ;;  %6112 = vmatprep.subr.bf16.mxu0 %v14307_v40  ;;  %v14338_v38 = vld [vmem:[#allocation2 + $0xd28] ss:$52 sps:$4 sm:$0xff]   ;;  %v14341_v40 = vld [vmem:[#allocation2 + $0x1130] ss:$52 sps:$4 sm:$0xff]  }
 0x370   : > { %6096 = vmatmul.mubr.bf16.gmra.mrb[32].mxu0 %v15861_v45 }
 0x371   : > { %6308 = vmatpush1.bf16.msra.mxu1 %v14302_v41  ;;  %6113 = vmatpush1.bf16.msra.mxu0 %v14305_v44  ;;  %v14346_v44 = vld [vmem:[#allocation2 + $0xd94] ss:$52 sps:$4 sm:$0xff]  }
 0x372   : > { %6309 = vmatprep.subr.bf16.mxu1 %v14310_v29  ;;  %6114 = vmatprep.subr.bf16.mxu0 %v14313_v20  ;;  %v14349_v29 = vld [vmem:[#allocation2 + $0x119c] ss:$52 sps:$4 sm:$0xff]  }
 0x373   : > { %6136 = vmatprep.mubr.bf16.mxu0 %v16112_v55 }
 0x375   : > { %6310 = vmatpush1.bf16.msra.mxu1 %v14308_v47  ;;  %6115 = vmatpush1.bf16.msra.mxu0 %v14311_v48  ;;  %v14344_v47 = vld [vmem:[#allocation2 + $0xd90] ss:$52 sps:$4 sm:$0xff]   ;;  %v14347_v48 = vld [vmem:[#allocation2 + $0x1198] ss:$52 sps:$4 sm:$0xff]  }
 0x376   : > { %6311 = vmatprep.subr.bf16.mxu1 %v14316_v51  ;;  %v6710_v60 = vpop.permute.xlu0 %6709  ;;  %6116 = vmatprep.subr.bf16.mxu0 %v14319_v53  ;;  %v14352_v51 = vld [vmem:[#allocation2 + $0xdfc] ss:$52 sps:$4 sm:$0xff]   ;;  %v14355_v53 = vld [vmem:[#allocation2 + $0x1204] ss:$52 sps:$4 sm:$0xff]  }
 0x378   : > { %v6716_v3 = vpop.permute.xlu1 %6715 }
 0x379   : > { %6312 = vmatpush1.bf16.msra.mxu1 %v14314_v57  ;;  %6117 = vmatpush1.bf16.msra.mxu0 %v14317_v58  ;;  %v14350_v58 = vld [vmem:[#allocation2 + $0xdf8] ss:$52 sps:$4 sm:$0xff]  }
 0x37a   : > { %6313 = vmatprep.subr.bf16.mxu1 %v14322_v36  ;;  %v16115_v10 = vpop.permute.xlu0 %6711  ;;  %6118 = vmatprep.subr.bf16.mxu0 %v14325_v2  ;;  %v14353_v36 = vld [vmem:[#allocation2 + $0x1200] ss:$52 sps:$4 sm:$0xff]  }
 0x37b   : > { %v16119_v1 = vsel %vm6739_vm3, %v6710_v60, %v16115_v10  ;;  %v14358_v60 = vld [vmem:[#allocation2 + $0xe64] ss:$52 sps:$4 sm:$0xff]   ;;  %v14361_v2 = vld [vmem:[#allocation2 + $0x126c] ss:$52 sps:$4 sm:$0xff]  }
 0x37c   : > { %v6765_v17 = vmax.f32 %v15981_v32, %v16119_v1  ;;  %v16123_v8 = vpop.permute.xlu1 %6717 }
 0x37d   : > { %6314 = vmatpush1.bf16.msra.mxu1 %v14320_v21  ;;  %v16127_v14 = vsel %vm6739_vm3, %v6716_v3, %v16123_v8  ;;  %6119 = vmatpush1.bf16.msra.mxu0 %v14323_v24  ;;  %v14356_v21 = vld [vmem:[#allocation2 + $0xe60] ss:$52 sps:$4 sm:$0xff]   ;;  %v14359_v24 = vld [vmem:[#allocation2 + $0x1268] ss:$52 sps:$4 sm:$0xff]  }
 0x37e   : > { %v6768_v18 = vmax.f32 %v15987_v37, %v16127_v14  ;;  %6315 = vmatprep.subr.bf16.mxu1 %v14328_v4  ;;  %v6722_v28 = vpop.permute.xlu0 %6721  ;;  %6120 = vmatprep.subr.bf16.mxu0 %v14331_v12  ;;  %v14364_v12 = vld [vmem:[#allocation2 + $0xecc] ss:$52 sps:$4 sm:$0xff]  }
 0x381   : > { %6316 = vmatpush1.bf16.msra.mxu1 %v14326_v50  ;;  %6121 = vmatpush1.bf16.msra.mxu0 %v14329_v15  ;;  %v14367_v50 = vld [vmem:[#allocation2 + $0x12d4] ss:$52 sps:$4 sm:$0xff]   ;;  %v14365_v15 = vld [vmem:[#allocation2 + $0x12d0] ss:$52 sps:$4 sm:$0xff]  }
 0x382   : > { %6317 = vmatprep.subr.bf16.mxu1 %v14334_v61  ;;  %v16131_v33 = vpop.permute.xlu0 %6723  ;;  %6122 = vmatprep.subr.bf16.mxu0 %v14337_v26  ;;  %v14370_v61 = vld [vmem:[#allocation2 + $0xf34] ss:$52 sps:$4 sm:$0xff]   ;;  %v14373_v26 = vld [vmem:[#allocation2 + $0x133c] ss:$52 sps:$4 sm:$0xff]  }
 0x383   : > { %v16135_v7 = vsel %vm6739_vm3, %v6722_v28, %v16131_v33  ;;  %v14368_v28 = vld [vmem:[#allocation2 + $0xf30] ss:$52 sps:$4 sm:$0xff]  }
 0x384   : > { %v6771_v41 = vmax.f32 %v15999_v27, %v16135_v7 }
 0x385   : > { %6318 = vmatpush1.bf16.msra.mxu1 %v14332_v19  ;;  %6123 = vmatpush1.bf16.msra.mxu0 %v14335_v30  ;;  %v14371_v19 = vld [vmem:[#allocation2 + $0x1338] ss:$52 sps:$4 sm:$0xff]   ;;  %v14376_v30 = vld [vmem:[#allocation2 + $0xf9c] ss:$52 sps:$4 sm:$0xff]  }
 0x386   : > { %6348 = vmatprep.subr.bf16.mxu1 %v14340_v31  ;;  %v16139_v20 = vpop.permute.xlu0 %6729  ;;  %6124 = vmatprep.subr.bf16.mxu0 %v14343_v35  ;;  %v14385_v31 = vld [vmem:[#allocation2 + $0x13a4] ss:$52 sps:$4 sm:$0xff]  }
 0x387   : > { %v14379_v35 = vld [vmem:[#allocation2 + $0x1004] ss:$52 sps:$4 sm:$0xff]  }
 0x388   : > { %6320 = vmatmul.mubr.bf16.vlgmr.msra.gmra.mrb[36].mxu1 %v16098_v25 }
 0x389   : > { %6349 = vmatpush1.bf16.msra.mxu1 %v14338_v38  ;;  %6125 = vmatpush1.bf16.msra.mxu0 %v14341_v40  ;;  %v14383_v38 = vld [vmem:[#allocation2 + $0x13a0] ss:$52 sps:$4 sm:$0xff]  }
 0x38a   : > { %6350 = vmatprep.subr.bf16.mxu1 %v14346_v44  ;;  %v6734_v57 = vpop.permute.xlu0 %6733  ;;  %6126 = vmatprep.subr.bf16.mxu0 %v14349_v29  ;;  %v14391_v40 = vld [vmem:[#allocation2 + $0x140c] ss:$52 sps:$4 sm:$0xff]  }
 0x38b   : > { %6329 = vmatprep.mubr.bf16.mxu1 %v16102_v5  ;;  %v14362_v5 = vld [vmem:[#allocation2 + $0xec8] ss:$52 sps:$4 sm:$0xff]   ;;  %v14377_v44 = vld [vmem:[#allocation2 + $0x1000] ss:$52 sps:$4 sm:$0xff]   ;;  %v16156_v29 = vld [vmem:[%s15828_s6 + $0x10] ss:$28 sps:$4 sm:$0xff]  }
 0x38d   : > { %6351 = vmatpush1.bf16.msra.mxu1 %v14344_v47  ;;  %6127 = vmatpush1.bf16.msra.mxu0 %v14347_v48  ;;  %v14382_v47 = vld [vmem:[#allocation2 + $0x106c] ss:$52 sps:$4 sm:$0xff]   ;;  %v14389_v48 = vld [vmem:[#allocation2 + $0x1408] ss:$52 sps:$4 sm:$0xff]  }
 0x38e   : > { %6352 = vmatprep.subr.bf16.mxu1 %v14352_v51  ;;  %v16143_v3 = vpop.permute.xlu0 %6735  ;;  %6128 = vmatprep.subr.bf16.mxu0 %v14355_v53  ;;  %v16160_v51 = vld [vmem:[%s15828_s6 + $0x4c] ss:$28 sps:$4 sm:$0xff]  }
 0x38f   : > { %v16147_v25 = vsel %vm6739_vm3, %v6734_v57, %v16143_v3  ;;  %v14397_v53 = vld [vmem:[#allocation2 + $0x1474] ss:$52 sps:$4 sm:$0xff]   ;;  %v14403_v57 = vld [vmem:[#allocation2 + $0x14dc] ss:$52 sps:$4 sm:$0xff]  }
 0x390   : > { %v6777_v4 = vmax.f32 %v16017_v6, %v16147_v25  ;;  %6330 = vmatmul.mubr.bf16.gmra.mrb[40].mxu1 %v16106_v13  ;;  %v14374_v13 = vld [vmem:[#allocation2 + $0xf98] ss:$52 sps:$4 sm:$0xff]  }
 0x391   : > { %6353 = vmatpush1.bf16.msra.mxu1 %v14350_v58  ;;  %6129 = vmatpush1.bf16.msra.mxu0 %v14353_v36  ;;  %v14380_v58 = vld [vmem:[#allocation2 + $0x1068] ss:$52 sps:$4 sm:$0xff]  }
 0x392   : > { %6354 = vmatprep.subr.bf16.mxu1 %v14358_v60  ;;  %6130 = vmatprep.subr.bf16.mxu0 %v14361_v2  ;;  %v14388_v36 = vld [vmem:[#allocation2 + $0x10d4] ss:$52 sps:$4 sm:$0xff]   ;;  %v14395_v60 = vld [vmem:[#allocation2 + $0x1470] ss:$52 sps:$4 sm:$0xff]   ;;  %v14401_v2 = vld [vmem:[#allocation2 + $0x14d8] ss:$52 sps:$4 sm:$0xff]  }
 0x393   : > { %6339 = vmatprep.mubr.bf16.mxu1 %v15858_v39 }
 0x395   : > { %6355 = vmatpush1.bf16.msra.mxu1 %v14356_v21  ;;  %6131 = vmatpush1.bf16.msra.mxu0 %v14359_v24  ;;  %v4995_v21 = vand.u32 %v14403_v57, %v15823_v16  ;;  %v16165_v24 = vld [vmem:[%s15828_s6 + $0x48] ss:$28 sps:$4 sm:$0xff]   ;;  %v14412_v57 = vld [vmem:[#allocation2 + $0x12dc] ss:$52 sps:$4 sm:$0xff]  }
 0x396   : > { %6356 = vmatprep.subr.bf16.mxu1 %v14364_v12  ;;  %6132 = vmatprep.subr.bf16.mxu0 %v14367_v50  ;;  %v14386_v12 = vld [vmem:[#allocation2 + $0x10d0] ss:$52 sps:$4 sm:$0xff]  }
 0x397   : > { %v14394_v50 = vld [vmem:[#allocation2 + $0x113c] ss:$52 sps:$4 sm:$0xff]  }
 0x398   : > { %6340 = vmatmul.mubr.bf16.gmra.mrb[44].mxu1 %v15861_v45 }
 0x399   : > { %6357 = vmatpush1.bf16.msra.mxu1 %v14362_v5  ;;  %6133 = vmatpush1.bf16.msra.mxu0 %v14365_v15  ;;  %v4992_v5 = vand.u32 %v14401_v2, %v15823_v16  ;;  %v14413_v15 = vld [vmem:[#allocation2 + $0x370] ss:$52 sps:$4 sm:$0xff]  }
 0x39a   : > { %6358 = vmatprep.subr.bf16.mxu1 %v14370_v61  ;;  %6134 = vmatprep.subr.bf16.mxu0 %v14373_v26  ;;  %v14392_v61 = vld [vmem:[#allocation2 + $0x1138] ss:$52 sps:$4 sm:$0xff]  }
 0x39b   : > { %6380 = vmatprep.mubr.bf16.mxu1 %v16112_v55  ;;  %v14400_v26 = vld [vmem:[#allocation2 + $0x11a4] ss:$52 sps:$4 sm:$0xff]  }
 0x39d   : > { %6359 = vmatpush1.bf16.msra.mxu1 %v14368_v28  ;;  %6135 = vmatpush1.bf16.msra.mxu0 %v14371_v19  ;;  %v14398_v28 = vld [vmem:[#allocation2 + $0x11a0] ss:$52 sps:$4 sm:$0xff]  }
 0x39e   : > { %6360 = vmatprep.subr.bf16.mxu1 %v14376_v30  ;;  %6165 = vmatprep.subr.bf16.mxu0 %v14385_v31  ;;  %v14406_v19 = vld [vmem:[#allocation2 + $0x120c] ss:$52 sps:$4 sm:$0xff]  }
 0x3a0   : > { %6137 = vmatmul.mubr.bf16.vlgmr.msra.gmra.mrb[24].mxu0 %v16156_v29 }
 0x3a1   : > { %6361 = vmatpush1.bf16.msra.mxu1 %v14374_v13  ;;  %6146 = vmatprep.mubr.bf16.mxu0 %v16160_v51 }
 0x3a2   : > { %6362 = vmatprep.subr.bf16.mxu1 %v14379_v35  ;;  %6166 = vmatpush1.bf16.msra.mxu0 %v14383_v38  ;;  %v14404_v35 = vld [vmem:[#allocation2 + $0x1208] ss:$52 sps:$4 sm:$0xff]  }
 0x3a3   : > { %6167 = vmatprep.subr.bf16.mxu0 %v14391_v40  ;;  %v14409_v40 = vld [vmem:[#allocation2 + $0x1274] ss:$52 sps:$4 sm:$0xff]  }
 0x3a5   : > { %6363 = vmatpush1.bf16.msra.mxu1 %v14377_v44  ;;  %v14414_v44 = vld [vmem:[#allocation2 + $0x30] ss:$52 sps:$4 sm:$0xff]  }
 0x3a6   : > { %6364 = vmatprep.subr.bf16.mxu1 %v14382_v47  ;;  %6168 = vmatpush1.bf16.msra.mxu0 %v14389_v48  ;;  %v16175_v47 = vld [vmem:[%s15828_s6 + $0x18] ss:$28 sps:$4 sm:$0xff]  }
 0x3a7   : > { %6169 = vmatprep.subr.bf16.mxu0 %v14397_v53  ;;  %v14418_v48 = vld [vmem:[#allocation2 + $0x3d8] ss:$52 sps:$4 sm:$0xff]   ;;  %v14407_v53 = vld [vmem:[#allocation2 + $0x1270] ss:$52 sps:$4 sm:$0xff]  }
 0x3a8   : > { %6147 = vmatmul.mubr.bf16.gmra.mrb[28].mxu0 %v16165_v24 }
 0x3a9   : > { %6365 = vmatpush1.bf16.msra.mxu1 %v14380_v58  ;;  %6156 = vmatprep.mubr.bf16.mxu0 %v15871_v54 }
 0x3aa   : > { %6366 = vmatprep.subr.bf16.mxu1 %v14388_v36  ;;  %6170 = vmatpush1.bf16.msra.mxu0 %v14395_v60  ;;  %v14419_v36 = vld [vmem:[#allocation2 + $0x98] ss:$52 sps:$4 sm:$0xff]  }
 0x3ab   : > { %6171 = vmatprep.subr.bf16.mxu0 %v4995_v21  ;;  %v14410_v21 = vld [vmem:[#allocation2 + $0x12d8] ss:$52 sps:$4 sm:$0xff]  }
 0x3ad   : > { %6367 = vmatpush1.bf16.msra.mxu1 %v14386_v12 }
 0x3ae   : > { %6368 = vmatprep.subr.bf16.mxu1 %v14394_v50  ;;  %6172 = vmatpush1.bf16.msra.mxu0 %v4992_v5  ;;  %v14417_v50 = vld [vmem:[#allocation2 + $0x1344] ss:$52 sps:$4 sm:$0xff]   ;;  %v14423_v5 = vld [vmem:[#allocation2 + $0x440] ss:$52 sps:$4 sm:$0xff]  }
 0x3af   : > { %12677 = vmatprep.subr.bf16.mxu0 %v14413_v15  ;;  %v16185_v15 = vld [vmem:[%s15828_s6 + $0x50] ss:$28 sps:$4 sm:$0xff]  }
 0x3b0   : > { %6157 = vmatmul.mubr.bf16.gmra.mrb[32].mxu0 %v15874_v59 }
 0x3b1   : > { %6369 = vmatpush1.bf16.msra.mxu1 %v14392_v61  ;;  %6197 = vmatprep.mubr.bf16.mxu0 %v17767_v0  ;;  %v14424_v61 = vld [vmem:[#allocation2 + $0x100] ss:$52 sps:$4 sm:$0xff]  }
 0x3b2   : > { %6370 = vmatprep.subr.bf16.mxu1 %v14400_v26  ;;  %v5711_v30 = vpop.f32.mrb[12].mxu0  ;;  %v14415_v26 = vld [vmem:[#allocation2 + $0x1340] ss:$52 sps:$4 sm:$0xff]  }
 0x3b3   : > { %6713 = vrot.lane.b32.xlu0 %v5711_v30, %s15393_s24  ;;  %v5713_v31 = vpop.f32.mrb[13].mxu0 }
 0x3b4   : > { %v5715_v13 = vpop.f32.mrb[14].mxu0 }
 0x3b5   : > { %6371 = vmatpush1.bf16.msra.mxu1 %v14398_v28  ;;  %6719 = vrot.lane.b32.xlu1 %v5715_v13, %s15393_s24  ;;  %v5717_v38 = vpop.f32.mrb[15].mxu0  ;;  %v14425_v28 = vld [vmem:[#allocation2 + $0x4a8] ss:$52 sps:$4 sm:$0xff]  }
 0x3b6   : > { %6372 = vmatprep.subr.bf16.mxu1 %v14406_v19  ;;  %v14422_v19 = vld [vmem:[#allocation2 + $0x13ac] ss:$52 sps:$4 sm:$0xff]  }
 0x3b7   : > { %6790 = vrot.lane.b32.xlu0 %v5711_v30, %s15394_s1 }
 0x3b8   : > { %12041 = vmatmul.mubr.msk.bf16.vlgmr.msra.gmra.mrb[24].mxu0 %vm4953_vm2, %v16175_v47 }
 0x3b9   : > { %6373 = vmatpush1.bf16.msra.mxu1 %v14404_v35  ;;  %6207 = vmatprep.mubr.bf16.mxu0 %v17767_v0  ;;  %v14420_v35 = vld [vmem:[#allocation2 + $0x13a8] ss:$52 sps:$4 sm:$0xff]  }
 0x3ba   : > { %6374 = vmatprep.subr.bf16.mxu1 %v14409_v40  ;;  %6796 = vrot.lane.b32.xlu1 %v5715_v13, %s15394_s1  ;;  %v5721_v58 = vpop.f32.mrb[16].mxu0  ;;  %v14428_v40 = vld [vmem:[#allocation2 + $0x1414] ss:$52 sps:$4 sm:$0xff]  }
 0x3bb   : > { %12678 = vmatpush3.bf16.msra.mxu0 %v14414_v44  ;;  %6792 = vrot.lane.b32.xlu0 %v5713_v31, %s15394_s1  ;;  %v5723_v60 = vpop.f32.mrb[17].mxu0  ;;  %v14429_v44 = vld [vmem:[#allocation2 + $0x168] ss:$52 sps:$4 sm:$0xff]  }
 0x3bc   : > { %12679 = vmatprep.subr.bf16.mxu0 %v14418_v48  ;;  %v5725_v2 = vpop.f32.mrb[18].mxu0  ;;  %v16196_v48 = vld [vmem:[%s15828_s6 + $0x88] ss:$0 sps:$4 sm:$0x33]  }
 0x3bd   : > { %6375 = vmatpush1.bf16.msra.mxu1 %v14407_v53  ;;  %v5727_v12 = vpop.f32.mrb[19].mxu0  ;;  %v14430_v53 = vld [vmem:[#allocation2 + $0x510] ss:$52 sps:$4 sm:$0xff]  }
 0x3be   : > { %6376 = vmatprep.subr.bf16.mxu1 %v14412_v57  ;;  %6725 = vrot.lane.b32.xlu1 %v5721_v58, %s15393_s24  ;;  %v14426_v57 = vld [vmem:[#allocation2 + $0x1410] ss:$52 sps:$4 sm:$0xff]  }
 0x3bf   : > { %12680 = vmatpush3.bf16.msra.mxu0 %v14419_v36  ;;  %6798 = vrot.lane.b32.xlu0 %v5717_v38, %s15394_s1  ;;  %v14440_v36 = vld [vmem:[#allocation2 + $0x14e4] ss:$52 sps:$4 sm:$0xff]  }
 0x3c0   : > { %12042 = vmatmul.mubr.msk.bf16.gmra.mrb[28].mxu0 %vm4953_vm2, %v16185_v15  ;;  %12681 = vmatprep.subr.bf16.mxu0 %v14423_v5  ;;  %v14432_v5 = vld [vmem:[#allocation2 + $0x1478] ss:$52 sps:$4 sm:$0xff]  }
 0x3c1   : > { %6377 = vmatpush1.bf16.msra.mxu1 %v14410_v21  ;;  %6217 = vmatprep.mubr.bf16.mxu0 %v17767_v0  ;;  %v14435_v21 = vld [vmem:[#allocation2 + $0x578] ss:$52 sps:$4 sm:$0xff]  }
 0x3c2   : > { %6378 = vmatprep.subr.bf16.mxu1 %v14417_v50  ;;  %6731 = vrot.lane.b32.xlu1 %v5725_v2, %s15393_s24  ;;  %v5731_v30 = vpop.f32.mrb[20].mxu0  ;;  %v14970_v50 = vld [vmem:[%s15828_s6 + $0x4] ss:$28 sps:$4 sm:$0xff]  }
 0x3c3   : > { %6802 = vrot.lane.b32.xlu0 %v5721_v58, %s15394_s1  ;;  %v5733_v31 = vpop.f32.mrb[21].mxu0  ;;  %12682 = vmatpush3.bf16.msra.mxu0 %v14424_v61  ;;  %v14434_v58 = vld [vmem:[#allocation2 + $0x147c] ss:$52 sps:$4 sm:$0xff]   ;;  %v14438_v61 = vld [vmem:[#allocation2 + $0x14e0] ss:$52 sps:$4 sm:$0xff]  }
 0x3c4   : > { %v5735_v13 = vpop.f32.mrb[22].mxu0  ;;  %12683 = vmatprep.subr.bf16.mxu0 %v14425_v28  ;;  %v14437_v28 = vld [vmem:[#allocation2 + $0x5e0] ss:$52 sps:$4 sm:$0xff]  }
 0x3c5   : > { %6379 = vmatpush1.bf16.msra.mxu1 %v14415_v26  ;;  %v5736_v38 = vpop.f32.mrb[23].mxu0  ;;  %v14436_v26 = vld [vmem:[#allocation2 + $0x238] ss:$52 sps:$4 sm:$0xff]   ;;  %v14442_v13 = vld [vmem:[#allocation2 + $0x648] ss:$52 sps:$4 sm:$0xff]  }
 0x3c6   : > { %6409 = vmatprep.subr.bf16.mxu1 %v14422_v19  ;;  %6808 = vrot.lane.b32.xlu1 %v5725_v2, %s15394_s1  ;;  %v14431_v2 = vld [vmem:[#allocation2 + $0x1d0] ss:$52 sps:$4 sm:$0xff]   ;;  %v4998_v19 = vand.u32 %v14438_v61, %v15823_v16  ;;  %v14454_v61 = vld [vmem:[#allocation2 + $0x1140] ss:$52 sps:$4 sm:$0xff]  }
 0x3c7   : > { %6804 = vrot.lane.b32.xlu0 %v5723_v60, %s15394_s1  ;;  %12684 = vmatpush3.bf16.msra.mxu0 %v14429_v44  ;;  %v5001_v60 = vand.u32 %v14440_v36, %v15823_v16  ;;  %v14446_v38 = vld [vmem:[#allocation2 + $0x1070] ss:$52 sps:$4 sm:$0xff]   ;;  %v14971_v36 = vld [vmem:[%s15828_s6] ss:$28 sps:$4 sm:$0xff]  }
 0x3c8   : > { %6381 = vmatmul.mubr.bf16.vlgmr.msra.gmra.mrb[36].mxu1 %v16156_v29  ;;  %12043 = vmatmul.mubr.msk.bf16.gmra.mrb[32].mxu0 %vm4953_vm2, %v16196_v48 }
 0x3c9   : > { %6410 = vmatpush1.bf16.msra.mxu1 %v14420_v35  ;;  %6390 = vmatprep.mubr.bf16.mxu1 %v16160_v51  ;;  %v14443_v35 = vld [vmem:[#allocation2 + $0x308] ss:$52 sps:$4 sm:$0xff]  }
 0x3ca   : > { %6737 = vrot.lane.b32.xlu1 %v5731_v30, %s15393_s24  ;;  %6411 = vmatprep.subr.bf16.mxu1 %v14428_v40  ;;  %s12674_s24 = sshll.u32 %s15513_s28, 5  ;;  %s15401_s28 = smov [#allocation20]  }
 0x3cb   : > { %12685 = vmatprep.subr.bf16.mxu0 %v14430_v53  ;;  %6502 = vmatprep.mubr.bf16.mxu0 %v14970_v50  ;;  %v14451_v50 = vld [vmem:[#allocation2 + $0xd98] ss:$52 sps:$4 sm:$0xff]   ;;  %s17690_s30 = scalar_lea.hbm %s17810_s26, %s12674_s24  ;;  %s15290_s18 = sshll.u32 %s15401_s28, 4  ;;  %s15291_s18 = int_to_ptr.vmem [resolvable:$false] %s15290_s18 }
 0x3cc   : > { %6810 = vrot.lane.b32.xlu0 %v5727_v12, %s15394_s1  ;;  %12686 = vmatpush3.bf16.msra.mxu0 %v14431_v2  ;;  %v14444_v12 = vld [vmem:[#allocation2 + $0x9f0] ss:$52 sps:$4 sm:$0xff]   ;;  %v14448_v2 = vld [vmem:[#allocation2 + $0xa58] ss:$52 sps:$4 sm:$0xff]  }
 0x3cd   : > { %6412 = vmatpush1.bf16.msra.mxu1 %v14426_v57  ;;  %12687 = vmatprep.subr.bf16.mxu0 %v14435_v21  ;;  %v14445_v57 = vld [vmem:[#allocation2 + $0x6b0] ss:$52 sps:$4 sm:$0xff]   ;;  %v14450_v21 = vld [vmem:[#allocation2 + $0x10d8] ss:$52 sps:$4 sm:$0xff]  }
 0x3ce   : > { %6814 = vrot.lane.b32.xlu1 %v5731_v30, %s15394_s1  ;;  %6413 = vmatprep.subr.bf16.mxu1 %v14434_v58  ;;  %v14441_v30 = vld [vmem:[#allocation2 + $0x2a0] ss:$52 sps:$4 sm:$0xff]  }
 0x3d0   : > { %6391 = vmatmul.mubr.bf16.gmra.mrb[40].mxu1 %v16165_v24  ;;  %12688 = vmatpush3.bf16.msra.mxu0 %v14436_v26  ;;  %v14452_v26 = vld [vmem:[#allocation2 + $0xac0] ss:$52 sps:$4 sm:$0xff]  }
 0x3d1   : > { %6414 = vmatpush1.bf16.msra.mxu1 %v14432_v5  ;;  %6400 = vmatprep.mubr.bf16.mxu1 %v15871_v54  ;;  %v14972_v5 = vld [vmem:[%s15828_s6 + $0x3c] ss:$28 sps:$4 sm:$0xff]  }
 0x3d2   : > { %6816 = vrot.lane.b32.xlu1 %v5733_v31, %s15394_s1  ;;  %6415 = vmatprep.subr.bf16.mxu1 %v5001_v60  ;;  %v14447_v31 = vld [vmem:[#allocation2 + $0xd30] ss:$52 sps:$4 sm:$0xff]   ;;  %v14449_v60 = vld [vmem:[#allocation2 + $0x718] ss:$52 sps:$4 sm:$0xff]  }
 0x3d3   : > { %12689 = vmatprep.subr.bf16.mxu0 %v14437_v28 }
 0x3d4   : > { %12690 = vmatpush3.bf16.msra.mxu0 %v14441_v30 }
 0x3d5   : > { %6416 = vmatpush1.bf16.msra.mxu1 %v4998_v19  ;;  %12691 = vmatprep.subr.bf16.mxu0 %v14442_v13  ;;  %v14455_v19 = vld [vmem:[#allocation2 + $0xe00] ss:$52 sps:$4 sm:$0xff]  }
 0x3d6   : > { %12711 = vmatprep.subr.bf16.mxu1 %v14444_v12  ;;  %v14453_v13 = vld [vmem:[#allocation2 + $0x780] ss:$52 sps:$4 sm:$0xff]  }
 0x3d8   : > { %6401 = vmatmul.mubr.bf16.gmra.mrb[44].mxu1 %v15874_v59  ;;  %12692 = vmatpush3.bf16.msra.mxu0 %v14443_v35 }
 0x3d9   : > { %6441 = vmatprep.mubr.bf16.mxu1 %v17767_v0  ;;  %12745 = vmatprep.subr.bf16.mxu0 %v14446_v38  ;;  %v14456_v38 = vld [vmem:[#allocation2 + $0xb28] ss:$52 sps:$4 sm:$0xff]  }
 0x3db   : > { %v5955_v40 = vpop.f32.mrb[24].mxu1  ;;  %6503 = vmatmul.mubr.bf16.vlgmr.msra.gmra.mrb[36].mxu0 %v14971_v36 }
 0x3dc   : > { %v5957_v44 = vpop.f32.mrb[25].mxu1  ;;  %6871 = vrot.lane.b32.xlu0 %v5955_v40, %s15395_s27  ;;  %6794 = vrot.lane.b32.xlu1 %v5955_v40, %s15394_s1  ;;  %v14458_v40 = vld [vmem:[#allocation2 + $0x11a8] ss:$52 sps:$4 sm:$0xff]  }
 0x3dd   : > { %v5959_v53 = vpop.f32.mrb[26].mxu1  ;;  %12746 = vmatpush3.bf16.msra.mxu0 %v14447_v31  ;;  %6510 = vmatprep.mubr.bf16.mxu0 %v14972_v5  ;;  %v14973_v31 = vld [vmem:[%s15828_s6 + $0x38] ss:$28 sps:$4 sm:$0xff]  }
 0x3de   : > { %v5961_v58 = vpop.f32.mrb[27].mxu1  ;;  %12747 = vmatprep.subr.bf16.mxu0 %v14450_v21 }
 0x3e0   : > { %12044 = vmatmul.mubr.msk.bf16.vlgmr.msra.gmra.mrb[36].mxu1 %vm4953_vm2, %v16175_v47  ;;  %6873 = vrot.lane.b32.xlu0 %v5957_v44, %s15395_s27  ;;  %v14459_v44 = vld [vmem:[#allocation2 + $0xe68] ss:$52 sps:$4 sm:$0xff]  }
 0x3e1   : > { %12712 = vmatpush3.bf16.msra.mxu1 %v14445_v57  ;;  %6800 = vrot.lane.b32.xlu1 %v5959_v53, %s15394_s1  ;;  %v14462_v57 = vld [vmem:[#allocation2 + $0x1210] ss:$52 sps:$4 sm:$0xff]  }
 0x3e2   : > { %12713 = vmatprep.subr.bf16.mxu1 %v14448_v2  ;;  %12748 = vmatpush3.bf16.msra.mxu0 %v14451_v50  ;;  %v14463_v2 = vld [vmem:[#allocation2 + $0xed0] ss:$52 sps:$4 sm:$0xff]  }
 0x3e3   : > { %v5965_v28 = vpop.f32.mrb[28].mxu1  ;;  %6451 = vmatprep.mubr.bf16.mxu1 %v17767_v0  ;;  %12749 = vmatprep.subr.bf16.mxu0 %v14454_v61  ;;  %v14461_v50 = vld [vmem:[#allocation2 + $0x850] ss:$52 sps:$4 sm:$0xff]   ;;  %v14464_v61 = vld [vmem:[#allocation2 + $0xbf8] ss:$52 sps:$4 sm:$0xff]  }
 0x3e4   : > { %v5967_v12 = vpop.f32.mrb[29].mxu1  ;;  %6879 = vrot.lane.b32.xlu0 %v5961_v58, %s15395_s27  ;;  %6511 = vmatmul.mubr.bf16.gmra.mrb[40].mxu0 %v14973_v31  ;;  %v14460_v58 = vld [vmem:[#allocation2 + $0xb90] ss:$52 sps:$4 sm:$0xff]  }
 0x3e5   : > { %12714 = vmatpush3.bf16.msra.mxu1 %v14449_v60  ;;  %6877 = vrot.lane.b32.xlu1 %v5959_v53, %s15395_s27  ;;  %v5969_v30 = vpop.f32.mrb[30].mxu1  ;;  %v14457_v53 = vld [vmem:[#allocation2 + $0x7e8] ss:$52 sps:$4 sm:$0xff]   ;;  %v14466_v60 = vld [vmem:[#allocation2 + $0x1278] ss:$52 sps:$4 sm:$0xff]  }
 0x3e6   : > { %v5971_v35 = vpop.f32.mrb[31].mxu1  ;;  %12715 = vmatprep.subr.bf16.mxu1 %v14452_v26  ;;  %12750 = vmatpush3.bf16.msra.mxu0 %v14455_v19  ;;  %v14467_v26 = vld [vmem:[#allocation2 + $0xf38] ss:$52 sps:$4 sm:$0xff]   ;;  %v14476_v31 = vld [vmem:[#allocation2 + $0x13b0] ss:$52 sps:$4 sm:$0xff]  }
 0x3e7   : > { %6518 = vmatprep.mubr.bf16.mxu0 %v15845_v42  ;;  %12751 = vmatprep.subr.bf16.mxu0 %v14458_v40  ;;  %v14465_v19 = vld [vmem:[#allocation2 + $0x8b8] ss:$52 sps:$4 sm:$0xff]   ;;  %v14475_v40 = vld [vmem:[#allocation2 + $0x1008] ss:$52 sps:$4 sm:$0xff]  }
 0x3e8   : > { %12045 = vmatmul.mubr.msk.bf16.gmra.mrb[40].mxu1 %vm4953_vm2, %v16185_v15  ;;  %6883 = vrot.lane.b32.xlu0 %v5965_v28, %s15395_s27 }
 0x3e9   : > { %12716 = vmatpush3.bf16.msra.mxu1 %v14453_v13  ;;  %6806 = vrot.lane.b32.xlu1 %v5965_v28, %s15394_s1  ;;  %v14470_v28 = vld [vmem:[#allocation2 + $0x12e0] ss:$52 sps:$4 sm:$0xff]  }
 0x3ea   : > { %12717 = vmatprep.subr.bf16.mxu1 %v14456_v38  ;;  %12752 = vmatpush3.bf16.msra.mxu0 %v14459_v44  ;;  %v14471_v13 = vld [vmem:[#allocation2 + $0xfa0] ss:$52 sps:$4 sm:$0xff]   ;;  %v17765_v44 = vmov 0.0  }
 0x3eb   : > { %v5975_v36 = vpop.f32.mrb[32].mxu1  ;;  %6461 = vmatprep.mubr.bf16.mxu1 %v17767_v0  ;;  %12753 = vmatprep.subr.bf16.mxu0 %v14462_v57  ;;  %v14469_v38 = vld [vmem:[#allocation2 + $0x920] ss:$52 sps:$4 sm:$0xff]   ;;  %v14975_v57 = vld [vmem:[%s15828_s6 + $0x8] ss:$28 sps:$4 sm:$0xff]  }
 0x3ec   : > { %v5977_v21 = vpop.f32.mrb[33].mxu1  ;;  %6885 = vrot.lane.b32.xlu0 %v5967_v12, %s15395_s27  ;;  %6519 = vmatmul.mubr.bf16.gmra.mrb[44].mxu0 %v15848_v49  ;;  %v14468_v12 = vld [vmem:[#allocation2 + $0xc60] ss:$52 sps:$4 sm:$0xff]   ;;  %v14974_v49 = vld [vmem:[%s15828_s6 + $0xc] ss:$28 sps:$4 sm:$0xff]  }
 0x3ed   : > { %12718 = vmatpush3.bf16.msra.mxu1 %v14457_v53  ;;  %6812 = vrot.lane.b32.xlu1 %v5969_v30, %s15394_s1  ;;  %v5979_v42 = vpop.f32.mrb[34].mxu1  ;;  %v14976_v53 = vld [vmem:[%s15828_s6 + $0x44] ss:$28 sps:$4 sm:$0xff]  }
 0x3ee   : > { %v5980_v5 = vpop.f32.mrb[35].mxu1  ;;  %12719 = vmatprep.subr.bf16.mxu1 %v14460_v58  ;;  %12754 = vmatpush3.bf16.msra.mxu0 %v14463_v2  ;;  %v14477_v58 = vld [vmem:[#allocation2 + $0x1418] ss:$52 sps:$4 sm:$0xff]   ;;  %v14479_v2 = vld [vmem:[#allocation2 + $0x14e8] ss:$52 sps:$4 sm:$0xff]  }
 0x3ef   : > { %6614 = vmatprep.mubr.bf16.mxu0 %v16112_v55  ;;  %12755 = vmatprep.subr.bf16.mxu0 %v14466_v60  ;;  %v14474_v55 = vld [vmem:[#allocation2 + $0x1348] ss:$52 sps:$4 sm:$0xff]  }
 0x3f0   : > { %12046 = vmatmul.mubr.msk.bf16.gmra.mrb[44].mxu1 %vm4953_vm2, %v16196_v48  ;;  %6891 = vrot.lane.b32.xlu0 %v5971_v35, %s15395_s27  ;;  %v14472_v35 = vld [vmem:[#allocation2 + $0xcc8] ss:$52 sps:$4 sm:$0xff]  }
 0x3f1   : > { %12720 = vmatpush3.bf16.msra.mxu1 %v14461_v50  ;;  %6889 = vrot.lane.b32.xlu1 %v5969_v30, %s15395_s27  ;;  %v14473_v30 = vld [vmem:[#allocation2 + $0x988] ss:$52 sps:$4 sm:$0xff]  }
 0x3f2   : > { %12721 = vmatprep.subr.bf16.mxu1 %v14464_v61  ;;  %12756 = vmatpush3.bf16.msra.mxu0 %v14467_v26 }
 0x3f3   : > { %6558 = vmatprep.mubr.bf16.mxu1 %v14974_v49  ;;  %12757 = vmatprep.subr.bf16.mxu0 %v14470_v28 }
 0x3f4   : > { %6818 = vrot.lane.b32.xlu0 %v5975_v36, %s15394_s1 }
 0x3f5   : > { %12722 = vmatpush3.bf16.msra.mxu1 %v14465_v19 }
 0x3f6   : > { %12723 = vmatprep.subr.bf16.mxu1 %v14468_v12  ;;  %12758 = vmatpush3.bf16.msra.mxu0 %v14471_v13 }
 0x3f7   : > { %12759 = vmatprep.subr.bf16.mxu0 %v14474_v55 }
 0x3f8   : > { %6895 = vrot.lane.b32.xlu0 %v5975_v36, %s15395_s27  ;;  %v14478_v36 = vld [vmem:[#allocation2 + $0x1480] ss:$52 sps:$4 sm:$0xff]  }
 0x3f9   : > { %12724 = vmatpush3.bf16.msra.mxu1 %v14469_v38 }
 0x3fa   : > { %12725 = vmatprep.subr.bf16.mxu1 %v14472_v35  ;;  %12760 = vmatpush3.bf16.msra.mxu0 %v14475_v40 }
 0x3fc   : > { %6897 = vrot.lane.b32.xlu0 %v5977_v21, %s15395_s27 }
 0x3fd   : > { %12726 = vmatpush3.bf16.msra.mxu1 %v14473_v30  ;;  %6615 = vmatmul.mubr.bf16.vlgmr.msra.gmra.mrb[48].mxu0 %v16156_v29  ;;  %v14977_v29 = vld [vmem:[%s15828_s6 + $0x40] ss:$28 sps:$4 sm:$0xff]  }
 0x3fe   : > { %12891 = vmatprep.subr.bf16.mxu1 %v17765_v44  ;;  %6622 = vmatprep.mubr.bf16.mxu0 %v16160_v51  ;;  %v5004_v51 = vand.u32 %v14479_v2, %v15823_v16  ;;  %v6728_v16 = vpop.permute.xlu1 %6727 }
 0x400   : > { %6559 = vmatmul.mubr.bf16.vlgmr.msra.gmra.mrb[48].mxu1 %v14975_v57 }
 0x401   : > { %12892 = vmatpush3.bf16.msra.mxu1 %v14476_v31  ;;  %6566 = vmatprep.mubr.bf16.mxu1 %v14976_v53 }
 0x402   : > { %12893 = vmatprep.subr.bf16.mxu1 %v17765_v44 }
 0x405   : > { %12894 = vmatpush3.bf16.msra.mxu1 %v14477_v58  ;;  %6623 = vmatmul.mubr.bf16.gmra.mrb[52].mxu0 %v16165_v24 }
 0x406   : > { %12895 = vmatprep.subr.bf16.mxu1 %v17765_v44  ;;  %6630 = vmatprep.mubr.bf16.mxu0 %v15871_v54 }
 0x408   : > { %6567 = vmatmul.mubr.bf16.gmra.mrb[52].mxu1 %v14977_v29 }
 0x409   : > { %12896 = vmatpush3.bf16.msra.mxu1 %v14478_v36  ;;  %6574 = vmatprep.mubr.bf16.mxu1 %v15858_v39 }
 0x40a   : > { %12897 = vmatprep.subr.bf16.mxu1 %v17765_v44 }
 0x40d   : > { %12898 = vmatpush3.bf16.msra.mxu1 %v5004_v51  ;;  %6631 = vmatmul.mubr.bf16.gmra.mrb[56].mxu0 %v15874_v59 }
 0x410   : > { %6575 = vmatmul.mubr.bf16.gmra.mrb[56].mxu1 %v15861_v45 }
 0x411   : > { %12899 = vmatprep.mubr.msk.bf16.mxu1 %vm15397_vm4, %v17765_v44 }
 0x418   : > { %12900 = vmatmul.mubr.msk.bf16.vlgmr.msra.gmra.mrb[60].mxu1 %vm4953_vm2, %v16175_v47 }
 0x419   : > { %12903 = vmatprep.mubr.msk.bf16.mxu1 %vm15397_vm4, %v17765_v44 }
 0x420   : > { %12904 = vmatmul.mubr.msk.bf16.gmra.mrb[64].mxu1 %vm4953_vm2, %v16185_v15 }
 0x421   : > { %12907 = vmatprep.mubr.msk.bf16.mxu1 %vm15397_vm4, %v17765_v44 }
 0x425   : > { %v6714_v39 = vpop.permute.xlu0 %6713 }
 0x426   : > { %v6741_v45 = vsel %vm6739_vm3, %v16115_v10, %v6714_v39  ;;  %v6767_v54 = vmax.f32 %v16039_v22, %v6714_v39 }
 0x427   : > { %v6766_v59 = vmax.f32 %v15984_v34, %v6741_v45  ;;  %v6720_v24 = vpop.permute.xlu1 %6719 }
 0x428   : > { %12908 = vmatmul.mubr.msk.bf16.gmra.mrb[68].mxu1 %vm4953_vm2, %v16196_v48  ;;  %v6743_v47 = vsel %vm6739_vm3, %v16123_v8, %v6720_v24  ;;  %v6770_v15 = vmax.f32 %v16043_v43, %v6720_v24  ;;  %vm11111_vm2 = vcmask 33792  }
 0x429   : > { %v6769_v21 = vmax.f32 %v15990_v46, %v6743_v47  ;;  %v6791_v42 = vpop.permute.xlu0 %6790 }
 0x42c   : > { %v6797_v50 = vpop.permute.xlu1 %6796 }
 0x42d   : > { %v6793_v5 = vpop.permute.xlu0 %6792 }
 0x42e   : > { %v6821_v10 = vsel %vm6820_vm5, %v6791_v42, %v6793_v5 }
 0x42f   : > { %v16282_v22 = vmax.f32 %v6765_v17, %v6821_v10 }
 0x430   : > { %v6726_v34 = vpop.permute.xlu1 %6725 }
 0x431   : > { %v6745_v48 = vsel %vm6739_vm3, %v16131_v33, %v6726_v34  ;;  %v6773_v8 = vmax.f32 %v16051_v63, %v6726_v34  ;;  %v6799_v46 = vpop.permute.xlu0 %6798 }
 0x432   : > { %v6772_v43 = vmax.f32 %v16002_v52, %v6745_v48  ;;  %v6823_v61 = vsel %vm6820_vm5, %v6797_v50, %v6799_v46  ;;  %v6746_v52 = vsel %vm6739_vm3, %v6728_v16, %v16139_v20 }
 0x433   : > { %v16292_v60 = vmax.f32 %v6768_v18, %v6823_v61  ;;  %v6774_v18 = vmax.f32 %v16005_v56, %v6746_v52 }
 0x434   : > { %v6732_v26 = vpop.permute.xlu1 %6731 }
 0x435   : > { %v6747_v32 = vsel %vm6739_vm3, %v16139_v20, %v6732_v26  ;;  %v6776_v1 = vmax.f32 %v16056_v9, %v6732_v26  ;;  %v6803_v33 = vpop.permute.xlu0 %6802 }
 0x436   : > { %v6775_v17 = vmax.f32 %v16008_v62, %v6747_v32 }
 0x438   : > { %v6809_v63 = vpop.permute.xlu1 %6808 }
 0x439   : > { %v6805_v28 = vpop.permute.xlu0 %6804 }
 0x43a   : > { %v6825_v19 = vsel %vm6820_vm5, %v6803_v33, %v6805_v28 }
 0x43b   : > { %v16304_v37 = vmax.f32 %v6771_v41, %v6825_v19 }
 0x43c   : > { %v6738_v12 = vpop.permute.xlu1 %6737 }
 0x43d   : > { %v6749_v14 = vsel %vm6739_vm3, %v16143_v3, %v6738_v12  ;;  %v6779_v9 = vmax.f32 %v16063_v23, %v6738_v12 }
 0x43e   : > { %v6778_v62 = vmax.f32 %v16020_v11, %v6749_v14  ;;  %v6811_v13 = vpop.permute.xlu0 %6810 }
 0x43f   : > { %v6827_v20 = vsel %vm6820_vm5, %v6809_v63, %v6811_v13 }
 0x440   : > { %v6815_v49 = vpop.permute.xlu1 %6814  ;;  %v16312_v55 = vmax.f32 %v6774_v18, %v6827_v20 }
 0x444   : > { %v6817_v38 = vpop.permute.xlu1 %6816 }
 0x445   : > { %v6829_v27 = vsel %vm6820_vm5, %v6815_v49, %v6817_v38 }
 0x446   : > { %v16318_v7 = vmax.f32 %v6777_v4, %v6829_v27 }
 0x44e   : > { %v6872_v41 = vpop.permute.xlu0 %6871  ;;  %v6795_v23 = vpop.permute.xlu1 %6794 }
 0x44f   : > { %v6822_v11 = vsel %vm6820_vm5, %v6793_v5, %v6795_v23  ;;  %v16321_v3 = vmax.f32 %v6767_v54, %v6795_v23 }
 0x450   : > { %v16323_v56 = vmax.f32 %v6766_v59, %v6822_v11 }
 0x452   : > { %v16325_v35 = vpop.permute.xlu0 %6873 }
 0x453   : > { %v16329_v40 = vsel %vm6901_vm6, %v6872_v41, %v16325_v35  ;;  %v6801_v30 = vpop.permute.xlu1 %6800  ;;  %v14480_v41 = vld [vmem:[%s17736_s3 + $0x18c] ss:$12 sps:$4 sm:$0xff]  }
 0x454   : > { %v6927_v6 = vmax.f32 %v16282_v22, %v16329_v40  ;;  %v6824_v25 = vsel %vm6820_vm5, %v6799_v46, %v6801_v30  ;;  %v16334_v4 = vmax.f32 %v6770_v15, %v6801_v30 }
 0x455   : > { %v16336_v31 = vmax.f32 %v6769_v21, %v6824_v25 }
 0x456   : > { %v16338_v57 = vpop.permute.xlu0 %6879 }
 0x457   : > { %v6878_v53 = vpop.permute.xlu1 %6877 }
 0x458   : > { %v16342_v58 = vsel %vm6901_vm6, %v6878_v53, %v16338_v57 }
 0x459   : > { %v6930_v36 = vmax.f32 %v16292_v60, %v16342_v58 }
 0x45a   : > { %v6884_v2 = vpop.permute.xlu0 %6883 }
 0x45b   : > { %v6807_v29 = vpop.permute.xlu1 %6806 }
 0x45c   : > { %v6826_v51 = vsel %vm6820_vm5, %v6805_v28, %v6807_v29  ;;  %v16347_v16 = vmax.f32 %v6773_v8, %v6807_v29  ;;  %v14485_v29 = vld [vmem:[%s17736_s3 + $0x1a8] ss:$12 sps:$4 sm:$0xff]  }
 0x45d   : > { %v16349_v39 = vmax.f32 %v6772_v43, %v6826_v51 }
 0x45e   : > { %v16351_v45 = vpop.permute.xlu0 %6885 }
 0x45f   : > { %v16355_v54 = vsel %vm6901_vm6, %v6884_v2, %v16351_v45  ;;  %v6813_v59 = vpop.permute.xlu1 %6812 }
 0x460   : > { %v6933_v24 = vmax.f32 %v16304_v37, %v16355_v54  ;;  %v6828_v47 = vsel %vm6820_vm5, %v6811_v13, %v6813_v59  ;;  %v16360_v15 = vmax.f32 %v6776_v1, %v6813_v59 }
 0x461   : > { %v16362_v21 = vmax.f32 %v6775_v17, %v6828_v47  ;;  %v14483_v47 = vld [vmem:[%s17736_s3 + $0x1a4] ss:$12 sps:$4 sm:$0xff]  }
 0x462   : > { %v16364_v42 = vpop.permute.xlu0 %6891 }
 0x466   : > { %v6819_v50 = vpop.permute.xlu0 %6818 }
 0x467   : > { %v6830_v5 = vsel %vm6820_vm5, %v6817_v38, %v6819_v50  ;;  %v16367_v10 = vmax.f32 %v6779_v9, %v6819_v50  ;;  %v14482_v38 = vld [vmem:[%s17736_s3 + $0x190] ss:$12 sps:$4 sm:$0xff]  }
 0x468   : > { %v16369_v34 = vmax.f32 %v6778_v62, %v6830_v5  ;;  %7603 = vmatprep.subr.bf16.mxu1 %v14482_v38  ;;  %v14488_v5 = vld [vmem:[%s17736_s3 + $0x1c0] ss:$12 sps:$4 sm:$0xff]  }
 0x469   : > { %7604 = vmatpush1.bf16.msra.mxu1 %v14480_v41  ;;  %v14512_v38 = vld [vmem:[%s17736_s3 + $0x26c] ss:$12 sps:$4 sm:$0xff]   ;;  %v14498_v41 = vld [vmem:[%s17736_s3 + $0x21c] ss:$12 sps:$4 sm:$0xff]  }
 0x46a   : > { %7605 = vmatprep.subr.bf16.mxu1 %v14485_v29 }
 0x46d   : > { %7606 = vmatpush1.bf16.msra.mxu1 %v14483_v47 }
 0x46e   : > { %7607 = vmatprep.subr.bf16.mxu1 %v14488_v5  ;;  %v14506_v5 = vld [vmem:[%s17736_s3 + $0x250] ss:$12 sps:$4 sm:$0xff]  }
 0x48b   : > { %v6199_v48 = vpop.f32.mrb[24].mxu0 }
 0x48c   : > { %6952 = vrot.lane.b32.xlu0 %v6199_v48, %s15398_s22  ;;  %6875 = vrot.lane.b32.xlu1 %v6199_v48, %s15395_s27  ;;  %v6201_v8 = vpop.f32.mrb[25].mxu0 }
 0x48d   : > { %v6203_v43 = vpop.f32.mrb[26].mxu0 }
 0x48e   : > { %v6205_v46 = vpop.f32.mrb[27].mxu0 }
 0x490   : > { %6954 = vrot.lane.b32.xlu0 %v6201_v8, %s15398_s22  ;;  %6881 = vrot.lane.b32.xlu1 %v6203_v43, %s15395_s27  ;;  %v14486_v8 = vld [vmem:[%s17736_s3 + $0x1bc] ss:$12 sps:$4 sm:$0xff]  }
 0x491   : > { %7608 = vmatpush1.bf16.msra.mxu1 %v14486_v8 }
 0x493   : > { %v6209_v61 = vpop.f32.mrb[28].mxu0 }
 0x494   : > { %6958 = vrot.lane.b32.xlu1 %v6203_v43, %s15398_s22  ;;  %6960 = vrot.lane.b32.xlu0 %v6205_v46, %s15398_s22  ;;  %v6211_v26 = vpop.f32.mrb[29].mxu0 }
 0x495   : > { %v6213_v32 = vpop.f32.mrb[30].mxu0 }
 0x496   : > { %v6215_v1 = vpop.f32.mrb[31].mxu0 }
 0x498   : > { %6964 = vrot.lane.b32.xlu0 %v6209_v61, %s15398_s22  ;;  %6887 = vrot.lane.b32.xlu1 %v6209_v61, %s15395_s27 }
 0x49b   : > { %v16379_v17 = vpop.f32.mrb[32].mxu0 }
 0x49c   : > { %6966 = vrot.lane.b32.xlu0 %v6211_v26, %s15398_s22  ;;  %6893 = vrot.lane.b32.xlu1 %v6213_v32, %s15395_s27  ;;  %v6221_v33 = vpop.f32.mrb[33].mxu0 }
 0x49d   : > { %v6223_v63 = vpop.f32.mrb[34].mxu0 }
 0x49e   : > { %v6224_v28 = vpop.f32.mrb[35].mxu0 }
 0x4a0   : > { %6970 = vrot.lane.b32.xlu1 %v6213_v32, %s15398_s22  ;;  %6972 = vrot.lane.b32.xlu0 %v6215_v1, %s15398_s22  ;;  %v14489_v32 = vld [vmem:[%s17736_s3 + $0x1d4] ss:$12 sps:$4 sm:$0xff]   ;;  %v14491_v1 = vld [vmem:[%s17736_s3 + $0x1d8] ss:$12 sps:$4 sm:$0xff]  }
 0x4a1   : > { %7609 = vmatprep.subr.bf16.mxu1 %v14491_v1 }
 0x4a2   : > { %7610 = vmatpush1.bf16.msra.mxu1 %v14489_v32 }
 0x4a4   : > { %6899 = vrot.lane.b32.xlu1 %v16379_v17, %s15395_s27 }
 0x4a8   : > { %6978 = vrot.lane.b32.xlu1 %v6221_v33, %s15398_s22 }
 0x4ae   : > { %v12693_v52 = vpop.f32.mrb[36].mxu0 }
 0x4af   : > { %v12694_v19 = vpop.f32.mrb[37].mxu0 }
 0x4b0   : > { %v16388_v14 = vadd.f32 %v12694_v19, %v12693_v52  ;;  %v12696_v9 = vpop.f32.mrb[38].mxu0  ;;  %v14492_v19 = vld [vmem:[%s17736_s3 + $0x1ec] ss:$12 sps:$4 sm:$0xff]  }
 0x4b1   : > { %v12697_v18 = vpop.f32.mrb[39].mxu0 }
 0x4b2   : > { %v16392_v20 = vadd.f32 %v12697_v18, %v12696_v9  ;;  %v14497_v9 = vld [vmem:[%s17736_s3 + $0x208] ss:$12 sps:$4 sm:$0xff]  }
 0x4b3   : > { %v6443_v12 = vpop.f32.mrb[36].mxu1  ;;  %v14507_v18 = vld [vmem:[%s17736_s3 + $0x254] ss:$12 sps:$4 sm:$0xff]  }
 0x4b4   : > { %v6445_v62 = vpop.f32.mrb[37].mxu1  ;;  %6956 = vrot.lane.b32.xlu1 %v6443_v12, %s15398_s22  ;;  %12786 = vmatprep.subr.bf16.mxu0 %v14507_v18  ;;  %v14509_v18 = vld [vmem:[%s17736_s3 + $0x264] ss:$12 sps:$4 sm:$0xff]  }
 0x4b5   : > { %v6447_v13 = vpop.f32.mrb[38].mxu1  ;;  %7035 = vrot.lane.b32.xlu0 %v6445_v62, %s15399_s2  ;;  %v14495_v62 = vld [vmem:[%s17736_s3 + $0x204] ss:$12 sps:$4 sm:$0xff]  }
 0x4b6   : > { %v6449_v49 = vpop.f32.mrb[39].mxu1 }
 0x4b7   : > { %v12699_v27 = vpop.f32.mrb[40].mxu0 }
 0x4b8   : > { %7033 = vrot.lane.b32.xlu1 %v6443_v12, %s15399_s2  ;;  %v12700_v23 = vpop.f32.mrb[41].mxu0  ;;  %v14494_v12 = vld [vmem:[%s17736_s3 + $0x1f0] ss:$12 sps:$4 sm:$0xff]  }
 0x4b9   : > { %7039 = vrot.lane.b32.xlu0 %v6447_v13, %s15399_s2  ;;  %v16402_v30 = vadd.f32 %v12700_v23, %v12699_v27  ;;  %v12702_v25 = vpop.f32.mrb[42].mxu0  ;;  %7611 = vmatprep.subr.bf16.mxu1 %v14494_v12  ;;  %v14513_v27 = vld [vmem:[%s17736_s3 + $0x1ac] ss:$12 sps:$4 sm:$0xff]  }
 0x4ba   : > { %v12703_v2 = vpop.f32.mrb[43].mxu0  ;;  %7612 = vmatpush1.bf16.msra.mxu1 %v14492_v19  ;;  %v14503_v23 = vld [vmem:[%s17736_s3 + $0x238] ss:$12 sps:$4 sm:$0xff]  }
 0x4bb   : > { %v6453_v11 = vpop.f32.mrb[40].mxu1  ;;  %v16409_v59 = vadd.f32 %v12703_v2, %v12702_v25  ;;  %7613 = vmatprep.subr.bf16.mxu1 %v14497_v9 }
 0x4bc   : > { %v6455_v53 = vpop.f32.mrb[41].mxu1  ;;  %6962 = vrot.lane.b32.xlu1 %v6447_v13, %s15398_s22  ;;  %v14508_v13 = vld [vmem:[%s17736_s3 + $0x194] ss:$12 sps:$4 sm:$0xff]  }
 0x4bd   : > { %v6457_v51 = vpop.f32.mrb[42].mxu1  ;;  %7041 = vrot.lane.b32.xlu0 %v6449_v49, %s15399_s2  ;;  %v14500_v49 = vld [vmem:[%s17736_s3 + $0x220] ss:$12 sps:$4 sm:$0xff]   ;;  %12787 = vmatpush3.bf16.msra.mxu0 %v14508_v13 }
 0x4be   : > { %v6459_v50 = vpop.f32.mrb[43].mxu1  ;;  %7614 = vmatpush1.bf16.msra.mxu1 %v14495_v62  ;;  %12788 = vmatprep.subr.bf16.mxu0 %v14512_v38 }
 0x4bf   : > { %v12705_v48 = vpop.f32.mrb[44].mxu0  ;;  %7615 = vmatprep.subr.bf16.mxu1 %v14500_v49 }
 0x4c0   : > { %6968 = vrot.lane.b32.xlu1 %v6453_v11, %s15398_s22  ;;  %v12706_v43 = vpop.f32.mrb[45].mxu0 }
 0x4c1   : > { %7047 = vrot.lane.b32.xlu0 %v6455_v53, %s15399_s2  ;;  %v16422_v61 = vadd.f32 %v12706_v43, %v12705_v48  ;;  %v12708_v26 = vpop.f32.mrb[46].mxu0  ;;  %12789 = vmatpush3.bf16.msra.mxu0 %v14513_v27 }
 0x4c2   : > { %v12709_v63 = vpop.f32.mrb[47].mxu0  ;;  %7616 = vmatpush1.bf16.msra.mxu1 %v14498_v41 }
 0x4c3   : > { %v6463_v46 = vpop.f32.mrb[44].mxu1  ;;  %7617 = vmatprep.subr.bf16.mxu1 %v14503_v23  ;;  %v14511_v63 = vld [vmem:[%s17736_s3 + $0x268] ss:$12 sps:$4 sm:$0xff]  }
 0x4c4   : > { %v6465_v33 = vpop.f32.mrb[45].mxu1  ;;  %7045 = vrot.lane.b32.xlu1 %v6453_v11, %s15399_s2 }
 0x4c5   : > { %v6467_v28 = vpop.f32.mrb[46].mxu1  ;;  %7051 = vrot.lane.b32.xlu0 %v6457_v51, %s15399_s2 }
 0x4c6   : > { %v6468_v52 = vpop.f32.mrb[47].mxu1 }
 0x4c8   : > { %6974 = vrot.lane.b32.xlu1 %v6457_v51, %s15398_s22  ;;  %v14501_v51 = vld [vmem:[%s17736_s3 + $0x234] ss:$12 sps:$4 sm:$0xff]  }
 0x4c9   : > { %7053 = vrot.lane.b32.xlu0 %v6459_v50, %s15399_s2  ;;  %7618 = vmatpush1.bf16.msra.mxu1 %v14501_v51 }
 0x4ca   : > { %7619 = vmatprep.subr.bf16.mxu1 %v14506_v5 }
 0x4cd   : > { %6980 = vrot.lane.b32.xlu0 %v6463_v46, %s15398_s22 }
 0x4d0   : > { %v12761_v11 = vpop.f32.mrb[48].mxu0 }
 0x4d1   : > { %7059 = vrot.lane.b32.xlu0 %v6465_v33, %s15399_s2  ;;  %v12762_v25 = vpop.f32.mrb[49].mxu0  ;;  %v14504_v33 = vld [vmem:[%s17736_s3 + $0x24c] ss:$12 sps:$4 sm:$0xff]  }
 0x4d2   : > { %v12763_v2 = vadd.f32 %v12762_v25, %v12761_v11  ;;  %v12764_v29 = vpop.f32.mrb[50].mxu0  ;;  %7620 = vmatpush1.bf16.msra.mxu1 %v14504_v33  ;;  %v14516_v25 = vld [vmem:[%s17736_s3 + $0x280] ss:$12 sps:$4 sm:$0xff]  }
 0x4d3   : > { %v12727_v53 = vpop.f32.mrb[48].mxu1  ;;  %v12765_v50 = vpop.f32.mrb[51].mxu0  ;;  %7621 = vmatprep.subr.bf16.mxu1 %v14511_v63 }
 0x4d4   : > { %v12728_v47 = vpop.f32.mrb[49].mxu1  ;;  %v12766_v43 = vadd.f32 %v12765_v50, %v12764_v29 }
 0x4d5   : > { %v12729_v48 = vadd.f32 %v12728_v47, %v12727_v53  ;;  %v12730_v8 = vpop.f32.mrb[50].mxu1  ;;  %7057 = vrot.lane.b32.xlu0 %v6463_v46, %s15399_s2  ;;  %v14517_v53 = vld [vmem:[%s17736_s3 + $0x284] ss:$12 sps:$4 sm:$0xff]   ;;  %v14514_v47 = vld [vmem:[%s17736_s3 + $0x27c] ss:$12 sps:$4 sm:$0xff]  }
 0x4d6   : > { %v12731_v26 = vpop.f32.mrb[51].mxu1  ;;  %7622 = vmatpush1.bf16.msra.mxu1 %v14509_v18  ;;  %12790 = vmatprep.subr.bf16.mxu0 %v14517_v53 }
 0x4d7   : > { %v6561_v32 = vadd.f32 %v12729_v48, %v16388_v14  ;;  %v12732_v1 = vadd.f32 %v12731_v26, %v12730_v8  ;;  %7623 = vmatprep.subr.bf16.mxu1 %v14516_v25  ;;  %v14533_v25 = vld [vmem:[%s17736_s3 + $0x20c] ss:$12 sps:$4 sm:$0xff]  }
 0x4d8   : > { %v12767_v52 = vpop.f32.mrb[52].mxu0 }
 0x4d9   : > { %v6564_v28 = vadd.f32 %v12732_v1, %v16392_v20  ;;  %v6617_v19 = vadd.f32 %v12763_v2, %v6561_v32  ;;  %v12768_v46 = vpop.f32.mrb[53].mxu0  ;;  %v14521_v32 = vld [vmem:[%s17736_s3 + $0x298] ss:$12 sps:$4 sm:$0xff]   ;;  %v14522_v1 = vld [vmem:[%s17736_s3 + $0x29c] ss:$12 sps:$4 sm:$0xff]  }
 0x4da   : > { %v12769_v9 = vadd.f32 %v12768_v46, %v12767_v52  ;;  %v12770_v62 = vpop.f32.mrb[54].mxu0  ;;  %7624 = vmatpush1.bf16.msra.mxu1 %v14514_v47  ;;  %v14523_v52 = vld [vmem:[%s17736_s3 + $0x1dc] ss:$12 sps:$4 sm:$0xff]  }
 0x4db   : > { %v12733_v12 = vpop.f32.mrb[52].mxu1  ;;  %v6620_v14 = vadd.f32 %v12766_v43, %v6564_v28  ;;  %v12771_v49 = vpop.f32.mrb[55].mxu0  ;;  %v14519_v28 = vld [vmem:[%s17736_s3 + $0x294] ss:$12 sps:$4 sm:$0xff]   ;;  %7625 = vmatprep.subr.bf16.mxu1 %v14521_v32  ;;  %v14534_v47 = vld [vmem:[%s17736_s3 + $0x2dc] ss:$12 sps:$4 sm:$0xff]  }
 0x4dc   : > { %v12734_v13 = vpop.f32.mrb[53].mxu1  ;;  %v12772_v41 = vadd.f32 %v12771_v49, %v12770_v62  ;;  %v14527_v62 = vld [vmem:[%s17736_s3 + $0x2b4] ss:$12 sps:$4 sm:$0xff]   ;;  %v14543_v32 = vld [vmem:[%s17736_s3 + $0x23c] ss:$12 sps:$4 sm:$0xff]  }
 0x4dd   : > { %v12735_v38 = vadd.f32 %v12734_v13, %v12733_v12  ;;  %v12736_v27 = vpop.f32.mrb[54].mxu1  ;;  %v14524_v13 = vld [vmem:[%s17736_s3 + $0x2ac] ss:$12 sps:$4 sm:$0xff]   ;;  %v14528_v49 = vld [vmem:[%s17736_s3 + $0x1f4] ss:$12 sps:$4 sm:$0xff]  }
 0x4de   : > { %v12737_v23 = vpop.f32.mrb[55].mxu1  ;;  %7626 = vmatpush1.bf16.msra.mxu1 %v14519_v28 }
 0x4df   : > { %v6569_v20 = vadd.f32 %v12735_v38, %v16402_v30  ;;  %v12738_v11 = vadd.f32 %v12737_v23, %v12736_v27  ;;  %v14518_v30 = vld [vmem:[%s17736_s3 + $0x1c4] ss:$12 sps:$4 sm:$0xff]   ;;  %v14532_v23 = vld [vmem:[%s17736_s3 + $0x2cc] ss:$12 sps:$4 sm:$0xff]  }
 0x4e0   : > { %v12773_v29 = vpop.f32.mrb[56].mxu0  ;;  %12791 = vmatpush3.bf16.msra.mxu0 %v14518_v30 }
 0x4e1   : > { %v6572_v2 = vadd.f32 %v12738_v11, %v16409_v59  ;;  %v6625_v51 = vadd.f32 %v12769_v9, %v6569_v20  ;;  %v12774_v50 = vpop.f32.mrb[57].mxu0  ;;  %12792 = vmatprep.subr.bf16.mxu0 %v14522_v1  ;;  %v14526_v9 = vld [vmem:[%s17736_s3 + $0x2b0] ss:$12 sps:$4 sm:$0xff]  }
 0x4e2   : > { %v12775_v48 = vadd.f32 %v12774_v50, %v12773_v29  ;;  %v12776_v43 = vpop.f32.mrb[58].mxu0  ;;  %7627 = vmatprep.subr.bf16.mxu1 %v14526_v9  ;;  %v14529_v11 = vld [vmem:[%s17736_s3 + $0x2c4] ss:$12 sps:$4 sm:$0xff]  }
 0x4e3   : > { %v12739_v5 = vpop.f32.mrb[56].mxu1  ;;  %v6628_v8 = vadd.f32 %v12772_v41, %v6572_v2  ;;  %v12777_v26 = vpop.f32.mrb[59].mxu0  ;;  %7628 = vmatpush1.bf16.msra.mxu1 %v14524_v13  ;;  %v14531_v41 = vld [vmem:[%s17736_s3 + $0x2c8] ss:$12 sps:$4 sm:$0xff]   ;;  %v14536_v2 = vld [vmem:[%s17736_s3 + $0x2e0] ss:$12 sps:$4 sm:$0xff]  }
 0x4e4   : > { %v12740_v59 = vpop.f32.mrb[57].mxu1  ;;  %12793 = vmatpush3.bf16.msra.mxu0 %v14523_v52  ;;  %7629 = vmatprep.subr.bf16.mxu1 %v14531_v41  ;;  %v14537_v29 = vld [vmem:[%s17736_s3 + $0x2e4] ss:$12 sps:$4 sm:$0xff]   ;;  %v14542_v43 = vld [vmem:[%s17736_s3 + $0x2fc] ss:$12 sps:$4 sm:$0xff]  }
 0x4e5   : > { %v12741_v33 = vadd.f32 %v12740_v59, %v12739_v5  ;;  %v12742_v63 = vpop.f32.mrb[58].mxu1  ;;  %12794 = vmatprep.subr.bf16.mxu0 %v14527_v62  ;;  %v14539_v26 = vld [vmem:[%s17736_s3 + $0x2f4] ss:$12 sps:$4 sm:$0xff]  }
 0x4e6   : > { %v12743_v46 = vpop.f32.mrb[59].mxu1  ;;  %v16568_v63 = vpop.permute.xlu0 %6895 }
 0x4e7   : > { %v6577_v12 = vadd.f32 %v12741_v33, %v16422_v61  ;;  %7630 = vmatpush1.bf16.msra.mxu1 %v14529_v11  ;;  %v16565_v33 = vpop.permute.xlu1 %6889 }
 0x4e8   : > { %12795 = vmatpush3.bf16.msra.mxu0 %v14528_v49  ;;  %7631 = vmatprep.subr.bf16.mxu1 %v14536_v2  ;;  %v6908_v60 = vsel %vm6901_vm6, %v16565_v33, %v16364_v42 }
 0x4e9   : > { %v6633_v18 = vadd.f32 %v12775_v48, %v6577_v12  ;;  %12796 = vmatprep.subr.bf16.mxu0 %v14532_v23  ;;  %v14541_v48 = vld [vmem:[%s17736_s3 + $0x2f8] ss:$12 sps:$4 sm:$0xff]  }
 0x4eb   : > { %v6672_v61 = vpop.f32.mrb[60].mxu1  ;;  %7632 = vmatpush1.bf16.msra.mxu1 %v14534_v47 }
 0x4ec   : > { %v6673_v38 = vadd.f32 %v6672_v61, %v6617_v19  ;;  %v12901_v27 = vpop.f32.mrb[61].mxu1  ;;  %12797 = vmatpush3.bf16.msra.mxu0 %v14533_v25  ;;  %7633 = vmatprep.subr.bf16.mxu1 %v14541_v48  ;;  %v16589_v61 = vpop.permute.xlu0 %6897 }
 0x4ed   : > { %v6675_v20 = vpop.f32.mrb[62].mxu1  ;;  %12798 = vmatprep.subr.bf16.mxu0 %v14537_v29  ;;  %v16599_v27 = vld [vmem:[%s17736_s3 + $0x314] ss:$0 sps:$4 sm:$0x11]  }
 0x4ee   : > { %v6676_v53 = vadd.f32 %v6675_v20, %v6620_v14  ;;  %v12902_v19 = vpop.f32.mrb[63].mxu1  ;;  %7037 = vrot.lane.b32.xlu1 %v6673_v38, %s15399_s2  ;;  %v14538_v14 = vld [vmem:[%s17736_s3 + $0x224] ss:$12 sps:$4 sm:$0xff]  }
 0x4ef   : > { %7634 = vmatpush1.bf16.msra.mxu1 %v14539_v26 }
 0x4f0   : > { %12799 = vmatpush3.bf16.msra.mxu0 %v14538_v14  ;;  %v7106_v14 = vlaneseq }
 0x4f1   : > { %12800 = vmatprep.subr.bf16.mxu0 %v14542_v43 }
 0x4f2   : > { %7043 = vrot.lane.b32.xlu1 %v6676_v53, %s15399_s2 }
 0x4f3   : > { %v6680_v30 = vpop.f32.mrb[64].mxu1 }
 0x4f4   : > { %v6681_v50 = vadd.f32 %v6680_v30, %v6625_v51  ;;  %v12905_v5 = vpop.f32.mrb[65].mxu1  ;;  %12801 = vmatpush3.bf16.msra.mxu0 %v14543_v32  ;;  %v7104_v32 = vld [vmem:[#allocation5] sm:$0x7] }
 0x4f5   : > { %v6683_v59 = vpop.f32.mrb[66].mxu1  ;;  %13295 = vmatprep.subr.msk.bf16.mxu0 %vm7593_vm7, %v16599_v27  ;;  %v7107_v5 = vshrl.u32 %v7106_v14, 7 }
 0x4f6   : > { %v6684_v51 = vadd.f32 %v6683_v59, %v6628_v8  ;;  %v12906_v1 = vpop.f32.mrb[67].mxu1  ;;  %7049 = vrot.lane.b32.xlu1 %v6681_v50, %s15399_s2  ;;  %v16573_v8 = vld [vmem:[%s17736_s3 + $0x30c] sm:$0x11] }
 0x4f7   : > { %v12165_v62 = vcombine.high %v16573_v8, %v16573_v8  ;;  %v16618_v26 = vsub.s32 0, %v7107_v5 }
 0x4f9   : > { %12167 = vmatprep.subr.msk.bf16.mxu1 %vm7593_vm7, %v12165_v62 }
 0x4fa   : > { %7055 = vrot.lane.b32.xlu1 %v6684_v51, %s15399_s2 }
 0x4fb   : > { %v6688_v28 = vpop.f32.mrb[68].mxu1 }
 0x4fc   : > { %v6689_v52 = vadd.f32 %v6688_v28, %v6633_v18  ;;  %v12909_v46 = vpop.f32.mrb[69].mxu1 }
 0x4fd   : > { %v6691_v12 = vpop.f32.mrb[70].mxu1 }
 0x4fe   : > { %6976 = vrot.lane.b32.xlu1 %v16379_v17, %s15398_s22  ;;  %v12910_v9 = vpop.f32.mrb[71].mxu1  ;;  %v16579_v13 = vpop.permute.xlu1 %6875  ;;  %v16626_v12 = vrot.slane %v7104_v32, %v16618_v26  ;;  %s15292_s22 = scalar_lea.vmem %s15291_s18, 64 }
 0x4ff   : > { %v16584_v18 = vsel %vm6901_vm6, %v16325_v35, %v16579_v13  ;;  %v6929_v49 = vmax.f32 %v16321_v3, %v16579_v13  ;;  %v6953_v41 = vpop.permute.xlu0 %6952 }
 0x500   : > { %v6928_v17 = vmax.f32 %v16323_v56, %v16584_v18 }
 0x502   : > { %7061 = vrot.lane.b32.xlu1 %v6689_v52, %s15399_s2  ;;  %v16594_v38 = vpop.permute.xlu1 %6881  ;;  %s17808_s2 = sld [smem:[#allocation29_spill]] }
 0x503   : > { %v6932_v35 = vmax.f32 %v16334_v4, %v16594_v38  ;;  %v6955_v20 = vpop.permute.xlu0 %6954 }
 0x504   : > { %v6983_v59 = vsel %vm6982_vm8, %v6953_v41, %v6955_v20 }
 0x505   : > { %v7008_v1 = vmax.f32 %v6927_v6, %v6983_v59 }
 0x506   : > { %v6959_v23 = vpop.permute.xlu1 %6958 }
 0x507   : > { %v6961_v53 = vpop.permute.xlu0 %6960 }
 0x508   : > { %v6985_v46 = vsel %vm6982_vm8, %v6959_v23, %v6961_v53  ;;  %s683_s8 = sand.u32 1, %s17808_s2  }
 0x509   : > { %v7011_v41 = vmax.f32 %v6930_v36, %v6985_v46  ;;  %s11330_s6 = sshll.u32 %s683_s8, 1 }
 0x50a   : > { %v16605_v11 = vpop.permute.xlu1 %6887  ;;  %s685_s1 = scalar_lea.vmem [#allocation20], %s11330_s6 }
 0x50b   : > { %v6965_v2 = vpop.permute.xlu0 %6964  ;;  %v6907_v3 = vsel %vm6901_vm6, %v16351_v45, %v16605_v11  ;;  %v6935_v13 = vmax.f32 %v16347_v16, %v16605_v11  ;;  %s11138_s27 = sshll.u32 %s685_s1, 4  ;;  %s17692_s27 = int_to_ptr.vmem [resolvable:$true] %s11138_s27 }
 0x50c   : > { %v6934_v45 = vmax.f32 %v16349_v39, %v6907_v3  ;;  %s15286_s21 = scalar_lea.vmem %s17692_s27, 32  ;;  %p15293_p5 = scmp.lt.s32.totalorder %s17692_s27, %s15291_s18 }
 0x50d   : > { %p15287_p13 = scmp.ne.s32.totalorder %s17692_s27, %s15286_s21  ;;  %p15294_p9 = scmp.lt.s32.totalorder %s15292_s22, %s15286_s21 }
 0x50e   : > { %v16607_v25 = vpop.permute.xlu1 %6893 }
 0x50f   : > { %v16611_v47 = vpop.permute.xlu0 %6966  ;;  %v6909_v16 = vsel %vm6901_vm6, %v16364_v42, %v16607_v25  ;;  %v6938_v11 = vmax.f32 %v16360_v15, %v16607_v25  ;;  %p15288_p0 = pnand %p15287_p13, %p17812_p1  ;;  %p15295_p12 = por %p15294_p9, %p15293_p5 }
 0x510   : > { %v6987_v23 = vsel %vm6982_vm8, %v6965_v2, %v16611_v47  ;;  %v6936_v2 = vmax.f32 %v16312_v55, %v6908_v60  ;;  %v6905_v55 = vsel %vm6901_vm6, %v16338_v57, %v16594_v38  ;;  %v6937_v42 = vmax.f32 %v16362_v21, %v6909_v16 }
 0x511   : > { %v7014_v36 = vmax.f32 %v6933_v24, %v6987_v23  ;;  %p15289_p6 = pneg %p15288_p0 }
 0x512   : > { %v6971_v19 = vpop.permute.xlu1 %6970 }
 0x513   : > { %v16615_v50 = vpop.permute.xlu0 %6972  ;;  %p15296_p10 = pnand %p15295_p12, %p15289_p6 }
 0x514   : > { %v6989_v46 = vsel %vm6982_vm8, %v6971_v19, %v16615_v50  ;;  %v7116_v19 = vsub.s32 2, %v7107_v5 }
 0x516   : > { %v16609_v29 = vpop.permute.xlu1 %6899 }
 0x51a   : > { %v16613_v30 = vpop.permute.xlu1 %6978 }
 0x526   : > { %v6957_v48 = vpop.permute.xlu1 %6956 }
 0x527   : > { %v7036_v43 = vpop.permute.xlu0 %7035  ;;  %v7010_v60 = vmax.f32 %v6929_v49, %v6957_v48 }
 0x52a   : > { %v7034_v51 = vpop.permute.xlu1 %7033 }
 0x52b   : > { %v7064_v28 = vsel %vm7063_vm9, %v7034_v51, %v7036_v43  ;;  %v7040_v52 = vpop.permute.xlu0 %7039 }
 0x52c   : > { %v7089_v9 = vmax.f32 %v7008_v1, %v7064_v28 }
 0x52e   : > { %v6963_v62 = vpop.permute.xlu1 %6962  ;;  %v7121_v22 = vadd.f32 %v16626_v12, %v7089_v9 }
 0x52f   : > { %v7042_v14 = vpop.permute.xlu0 %7041  ;;  %v7013_v56 = vmax.f32 %v6932_v35, %v6963_v62 }
 0x530   : > { %v7066_v44 = vsel %vm7063_vm9, %v7040_v52, %v7042_v14  ;;  %v7136_v0 = vmax.f32 %v7121_v22, 0.0 }
 0x531   : > { %v7092_v40 = vmax.f32 %v7011_v41, %v7066_v44  ;;  %v7017_v41 = vmax.f32 %v6936_v2, %v6989_v46  ;;  %v16666_v46 = vrot.slane %v7104_v32, %v7116_v19  ;;  %v6931_v2 = vmax.f32 %v16336_v31, %v6905_v55 }
 0x532   : > { %v6969_v6 = vpop.permute.xlu1 %6968  ;;  %v6910_v55 = vsel %vm6901_vm6, %v16568_v63, %v16589_v61 }
 0x533   : > { %v7124_v59 = vadd.f32 %v16626_v12, %v7092_v40  ;;  %v7048_v51 = vpop.permute.xlu0 %7047  ;;  %v6988_v31 = vsel %vm6982_vm8, %v16611_v47, %v6969_v6  ;;  %v7016_v38 = vmax.f32 %v6935_v13, %v6969_v6 }
 0x534   : > { %v7015_v47 = vmax.f32 %v6934_v45, %v6988_v31 }
 0x535   : > { %v7139_v1 = vmax.f32 %v7124_v59, 0.0 }
 0x536   : > { %v7046_v58 = vpop.permute.xlu1 %7045 }
 0x537   : > { %v16642_v28 = vpack.c.bf16 %v7139_v1, %v7136_v0  ;;  %v7068_v44 = vsel %vm7063_vm9, %v7046_v58, %v7048_v51  ;;  %v7052_v52 = vpop.permute.xlu0 %7051  ;;  %v6984_v1 = vsel %vm6982_vm8, %v6955_v20, %v6957_v48  ;;  %v16654_v58 = vsub.s32 1, %v7107_v5 }
 0x538   : > { %v7095_v9 = vmax.f32 %v7014_v36, %v7068_v44  ;;  %v7009_v36 = vmax.f32 %v6928_v17, %v6984_v1 }
 0x539   : > { %v16671_v57 = vrot.slane %v7104_v32, %v16654_v58 }
 0x53a   : > { %v7127_v40 = vadd.f32 %v16626_v12, %v7095_v9  ;;  %v6975_v23 = vpop.permute.xlu1 %6974 }
 0x53b   : > { %v7054_v22 = vpop.permute.xlu0 %7053  ;;  %v7019_v1 = vmax.f32 %v6938_v11, %v6975_v23  ;;  %v7303_v11 = vrot.slane %v16642_v28, 1 }
 0x53c   : > { %v7070_v33 = vsel %vm7063_vm9, %v7052_v52, %v7054_v22  ;;  %v7142_v0 = vmax.f32 %v7127_v40, 0.0  ;;  %v6986_v52 = vsel %vm6982_vm8, %v6961_v53, %v6963_v62  ;;  %v6990_v62 = vsel %vm6982_vm8, %v16615_v50, %v6975_v23 }
 0x53d   : > { %v7098_v59 = vmax.f32 %v7017_v41, %v7070_v33  ;;  %v7012_v18 = vmax.f32 %v6931_v2, %v6986_v52  ;;  %v7018_v25 = vmax.f32 %v6937_v42, %v6990_v62  ;;  %v6911_v23 = vsel %vm6901_vm6, %v16589_v61, %v16609_v29 }
 0x53e   : > { %v6940_v61 = vmax.f32 %v16369_v34, %v6911_v23  ;;  %v7601_v62 = vsel %vm7593_vm7, %v16599_v27, 0 }
 0x53f   : > { %v7130_v37 = vadd.f32 %v16626_v12, %v7098_v59  ;;  %v6981_v49 = vpop.permute.xlu0 %6980 }
 0x541   : > { %v7145_v54 = vmax.f32 %v7130_v37, 0.0 }
 0x543   : > { %v16651_v24 = vpack.c.bf16 %v7145_v54, %v7142_v0  ;;  %v7060_v6 = vpop.permute.xlu0 %7059 }
 0x545   : > { %v7304_v34 = vrot.slane %v16651_v24, 1 }
 0x547   : > { %v7058_v63 = vpop.permute.xlu0 %7057 }
 0x560   : > { %v7038_v44 = vpop.permute.xlu1 %7037 }
 0x561   : > { %v7065_v20 = vsel %vm7063_vm9, %v7036_v43, %v7038_v44  ;;  %v7091_v5 = vmax.f32 %v7010_v60, %v7038_v44 }
 0x562   : > { %v7090_v9 = vmax.f32 %v7009_v36, %v7065_v20  ;;  %v6939_v20 = vmax.f32 %v16318_v7, %v6910_v55 }
 0x563   : > { %v7123_v53 = vadd.f32 %v16666_v46, %v7091_v5  ;;  %v6941_v5 = vmax.f32 %v16367_v10, %v16609_v29  ;;  %v7072_v10 = vsel %vm7063_vm9, %v7058_v63, %v7060_v6  ;;  %v14557_v63 = vld [vmem:[%s17736_s3 + $0x34] ss:$12 sps:$4 sm:$0xff]  }
 0x564   : > { %v7044_v17 = vpop.permute.xlu1 %7043  ;;  %v7122_v32 = vadd.f32 %v16671_v57, %v7090_v9 }
 0x565   : > { %v7067_v48 = vsel %vm7063_vm9, %v7042_v14, %v7044_v17  ;;  %v7094_v43 = vmax.f32 %v7013_v56, %v7044_v17  ;;  %v7138_v41 = vmax.f32 %v7123_v53, 0.0  ;;  %v7022_v31 = vmax.f32 %v6941_v5, %v6981_v49  ;;  %v14550_v5 = vld [vmem:[%s17736_s3 + $0x18] ss:$12 sps:$4 sm:$0xff]  }
 0x566   : > { %v7093_v4 = vmax.f32 %v7012_v18, %v7067_v48  ;;  %v7137_v37 = vmax.f32 %v7122_v32, 0.0  ;;  %v12164_v53 = vcombine.low %v16573_v8, %v16573_v8 }
 0x567   : > { %v7126_v35 = vadd.f32 %v16666_v46, %v7094_v43 }
 0x568   : > { %v7125_v14 = vadd.f32 %v16671_v57, %v7093_v4  ;;  %v7050_v39 = vpop.permute.xlu1 %7049 }
 0x569   : > { %v7141_v33 = vmax.f32 %v7126_v35, 0.0  ;;  %v7069_v40 = vsel %vm7063_vm9, %v7048_v51, %v7050_v39  ;;  %v7097_v59 = vmax.f32 %v7016_v38, %v7050_v39 }
 0x56a   : > { %v7140_v0 = vmax.f32 %v7125_v14, 0.0  ;;  %v7096_v54 = vmax.f32 %v7015_v47, %v7069_v40  ;;  %v7595_v47 = vsel %vm7593_vm7, %v12164_v53, 0  ;;  %v14570_v53 = vld [vmem:[%s17736_s3 + $0x78] ss:$12 sps:$4 sm:$0xff]  }
 0x56b   : > { %v16698_v15 = vpack.c.bf16 %v7141_v33, %v7138_v41  ;;  %v7129_v51 = vadd.f32 %v16666_v46, %v7097_v59  ;;  %v7305_v59 = vsel %vm4963_vm0, %v7303_v11, %v7304_v34  ;;  %v14585_v11 = vld [vmem:[%s17736_s3 + $0xc0] ss:$12 sps:$4 sm:$0xff]  }
 0x56c   : > { %v16700_v19 = vpack.c.bf16 %v7140_v0, %v7137_v37  ;;  %v7056_v50 = vpop.permute.xlu1 %7055  ;;  %v7128_v36 = vadd.f32 %v16671_v57, %v7096_v54 }
 0x56d   : > { %v7071_v60 = vsel %vm7063_vm9, %v7054_v22, %v7056_v50  ;;  %v7100_v21 = vmax.f32 %v7019_v1, %v7056_v50  ;;  %v6992_v22 = vsel %vm6982_vm8, %v16613_v30, %v6981_v49  ;;  %v7144_v3 = vmax.f32 %v7129_v51, 0.0  ;;  %v7224_v49 = vld [vmem:[%s17736_s3 + $0x180] sm:$0x11] }
 0x56e   : > { %v7099_v44 = vmax.f32 %v7018_v25, %v7071_v60  ;;  %v7143_v18 = vmax.f32 %v7128_v36, 0.0  ;;  %v7021_v48 = vmax.f32 %v6940_v61, %v6992_v22  ;;  %v7306_v35 = vrot.slane %v16700_v19, 1  ;;  %v14547_v36 = vld [vmem:[%s17736_s3] ss:$12 sps:$4 sm:$0xff]   ;;  %v14567_v61 = vld [vmem:[%s17736_s3 + $0x64] ss:$12 sps:$4 sm:$0xff]  }
 0x56f   : > { %v7132_v52 = vadd.f32 %v16666_v46, %v7100_v21  ;;  %v12221_v33 = vcombine.high %v7224_v49, %v7224_v49  ;;  %v7309_v1 = vrot.slane %v16698_v15, 1  ;;  %v17806_v51 = vmov 0   ;;  %v14562_v22 = vld [vmem:[%s17736_s3 + $0x4c] ss:$12 sps:$4 sm:$0xff]  }
 0x570   : > { %v7131_v2 = vadd.f32 %v16671_v57, %v7099_v44  ;;  %v6977_v9 = vpop.permute.xlu1 %6976  ;;  %v12220_v60 = vcombine.low %v7224_v49, %v7224_v49  ;;  %v14552_v44 = vld [vmem:[%s17736_s3 + $0x1c] ss:$12 sps:$4 sm:$0xff]   ;;  %v14583_v49 = vld [vmem:[%s17736_s3 + $0x140] ss:$12 sps:$4 sm:$0xff]  }
 0x571   : > { %v7147_v56 = vmax.f32 %v7132_v52, 0.0  ;;  %v6991_v13 = vsel %vm6982_vm8, %v6977_v9, %v16613_v30  ;;  %v14559_v9 = vld [vmem:[%s17736_s3 + $0x8] ss:$12 sps:$4 sm:$0xff]  }
 0x572   : > { %v7146_v17 = vmax.f32 %v7131_v2, 0.0  ;;  %v7020_v7 = vmax.f32 %v6939_v20, %v6991_v13  ;;  %v8078_v23 = vsel %vm7593_vm7, %v12220_v60, 0  ;;  %v14558_v20 = vld [vmem:[%s17736_s3 + $0xc8] ss:$12 sps:$4 sm:$0xff]   ;;  %v14555_v2 = vld [vmem:[%s17736_s3 + $0x30] ss:$12 sps:$4 sm:$0xff]  }
 0x573   : > { %v16722_v29 = vpack.c.bf16 %v7147_v56, %v7144_v3  ;;  %v14563_v3 = vld [vmem:[%s17736_s3 + $0xe0] ss:$12 sps:$4 sm:$0xff]   ;;  %v14560_v56 = vld [vmem:[%s17736_s3 + $0x48] ss:$12 sps:$4 sm:$0xff]  }
 0x574   : > { %v16726_v43 = vpack.c.bf16 %v7146_v17, %v7143_v18  ;;  %v7101_v45 = vmax.f32 %v7020_v7, %v7072_v10  ;;  %v7062_v32 = vpop.permute.xlu1 %7061  ;;  %v14564_v13 = vld [vmem:[%s17736_s3 + $0x20] ss:$12 sps:$4 sm:$0xff]   ;;  %v14568_v18 = vld [vmem:[%s17736_s3 + $0xf8] ss:$12 sps:$4 sm:$0xff]   ;;  %v14573_v10 = vld [vmem:[%s17736_s3 + $0x110] ss:$12 sps:$4 sm:$0xff]  }
 0x575   : > { %v7073_v30 = vsel %vm7063_vm9, %v7060_v6, %v7062_v32  ;;  %v7103_v4 = vmax.f32 %v7022_v31, %v7062_v32  ;;  %v7310_v0 = vrot.slane %v16722_v29, 1  ;;  %v14565_v17 = vld [vmem:[%s17736_s3 + $0x60] ss:$12 sps:$4 sm:$0xff]   ;;  %v14569_v7 = vld [vmem:[%s17736_s3 + $0x38] ss:$12 sps:$4 sm:$0xff]  }
 0x576   : > { %v7133_v16 = vadd.f32 %v16626_v12, %v7101_v45  ;;  %v7102_v38 = vmax.f32 %v7021_v48, %v7073_v30  ;;  %v7307_v8 = vrot.slane %v16726_v43, 1  ;;  %v14549_v12 = vld [vmem:[%s17736_s3 + $0x4] ss:$12 sps:$4 sm:$0xff]   ;;  %v14572_v31 = vld [vmem:[%s17736_s3 + $0x7c] ss:$12 sps:$4 sm:$0xff]  }
 0x577   : > { %v7135_v40 = vadd.f32 %v16666_v46, %v7103_v4  ;;  %v7311_v55 = vsel %vm4963_vm0, %v7309_v1, %v7310_v0  ;;  %v14574_v48 = vld [vmem:[%s17736_s3 + $0x50] ss:$12 sps:$4 sm:$0xff]   ;;  %v14577_v45 = vld [vmem:[%s17736_s3 + $0x94] ss:$12 sps:$4 sm:$0xff]   ;;  %v14605_v1 = vld [vmem:[%s17736_s3 + $0x138] ss:$12 sps:$4 sm:$0xff]  }
 0x578   : > { %v7148_v14 = vmax.f32 %v7133_v16, 0.0  ;;  %v7134_v39 = vadd.f32 %v16671_v57, %v7102_v38  ;;  %v7308_v41 = vsel %vm4963_vm0, %v7306_v35, %v7307_v8  ;;  %v14578_v32 = vld [vmem:[%s17736_s3 + $0x128] ss:$12 sps:$4 sm:$0xff]   ;;  %v14575_v30 = vld [vmem:[%s17736_s3 + $0x90] ss:$12 sps:$4 sm:$0xff]  }
 0x579   : > { %7635 = vmatprep.mubr.bf16.mxu1 %v7308_v41  ;;  %7741 = vmatprep.mubr.bf16.mxu0 %v7308_v41  ;;  %v7150_v57 = vmax.f32 %v7135_v40, 0.0  ;;  %v14579_v4 = vld [vmem:[%s17736_s3 + $0x68] ss:$12 sps:$4 sm:$0xff]   ;;  %v14584_v38 = vld [vmem:[%s17736_s3 + $0x80] ss:$12 sps:$4 sm:$0xff]  }
 0x57a   : > { %v16747_v42 = vpack.c.bf16 %v7148_v14, %v7148_v14  ;;  %v7149_v6 = vmax.f32 %v7134_v39, 0.0  ;;  %7636 = vmatmul.mubr.bf16.vlgmr.msra.gmra.mrb[72].mxu1 %v7305_v59  ;;  %7742 = vmatmul.mubr.bf16.vlgmr.msra.gmra.mrb[60].mxu0 %v7305_v59  ;;  %v14580_v16 = vld [vmem:[%s17736_s3 + $0xa8] ss:$12 sps:$4 sm:$0xff]   ;;  %v14587_v35 = vld [vmem:[%s17736_s3 + $0xc4] ss:$12 sps:$4 sm:$0xff]  }
 0x57b   : > { %7657 = vmatpush1.bf16.msra.mxu1 %v7595_v47  ;;  %12912 = vmatpush3.bf16.msra.mxu0 %v7601_v62  ;;  %v16757_v25 = vpack.c.bf16 %v7150_v57, %v7150_v57  ;;  %v14589_v47 = vld [vmem:[%s17736_s3 + $0x98] ss:$12 sps:$4 sm:$0xff]   ;;  %v14592_v62 = vld [vmem:[%s17736_s3 + $0xdc] ss:$12 sps:$4 sm:$0xff]   ;;  %v14608_v57 = vld [vmem:[%s17736_s3 + $0x3e0] ss:$12 sps:$4 sm:$0xff]  }
 0x57c   : > { %v16749_v27 = vpack.c.bf16 %v7149_v6, %v7149_v6  ;;  %8086 = vmatprep.subr.bf16.mxu1 %v14549_v12  ;;  %12223 = vmatprep.subr.msk.bf16.mxu0 %vm7593_vm7, %v12221_v33  ;;  %v7312_v37 = vrot.slane %v16747_v42, 1  ;;  %v14593_v14 = vld [vmem:[%s17736_s3 + $0x170] ss:$12 sps:$4 sm:$0xff]   ;;  %v14590_v39 = vld [vmem:[%s17736_s3 + $0xd8] ss:$12 sps:$4 sm:$0xff]  }
 0x57d   : > { %v7316_v21 = vrot.slane %v16757_v25, 1  ;;  %v14594_v41 = vld [vmem:[%s17736_s3 + $0xb0] ss:$12 sps:$4 sm:$0xff]   ;;  %v14597_v12 = vld [vmem:[%s17736_s3 + $0xf4] ss:$12 sps:$4 sm:$0xff]  }
 0x57e   : > { %v7314_v46 = vrot.slane %v16749_v27, 1  ;;  %v7313_v50 = vsel %vm4963_vm0, %v7304_v34, %v7312_v37  ;;  %v14582_v34 = vld [vmem:[%s17736_s3 + $0xac] ss:$12 sps:$4 sm:$0xff]   ;;  %v14604_v33 = vld [vmem:[%s17736_s3 + $0x188] ss:$0 sps:$4 sm:$0x11]  }
 0x57f   : > { %v7317_v52 = vsel %vm4963_vm0, %v7310_v0, %v7316_v21  ;;  %v14595_v40 = vld [vmem:[%s17736_s3 + $0xf0] ss:$12 sps:$4 sm:$0xff]   ;;  %v14600_v59 = vld [vmem:[%s17736_s3 + $0x10c] ss:$12 sps:$4 sm:$0xff]   ;;  %v8084_v6 = vsel %vm7593_vm7, %v14604_v33, 0  ;;  %v8362_v21 = vrot.slane %v16726_v43, 2 }
 0x580   : > { %v7315_v54 = vsel %vm4963_vm0, %v7307_v8, %v7314_v46  ;;  %v14588_v8 = vld [vmem:[%s17736_s3 + $0x158] ss:$12 sps:$4 sm:$0xff]   ;;  %v14598_v37 = vld [vmem:[%s17736_s3 + $0x108] ss:$12 sps:$4 sm:$0xff]   ;;  %v14601_v0 = vld [vmem:[%s17736_s3 + $0x120] ss:$12 sps:$4 sm:$0xff]  }
 0x581   : > { %7645 = vmatprep.mubr.bf16.mxu1 %v7315_v54  ;;  %7749 = vmatprep.mubr.bf16.mxu0 %v7315_v54  ;;  %v14603_v46 = vld [vmem:[%s17736_s3 + $0x124] ss:$12 sps:$4 sm:$0xff]   ;;  %v14607_v54 = vld [vmem:[%s17736_s3 + $0x13c] ss:$12 sps:$4 sm:$0xff]   ;;  %v14612_v60 = vld [vmem:[%s17736_s3 + $0x320] ss:$12 sps:$4 sm:$0xff]  }
 0x582   : > { %7646 = vmatmul.mubr.bf16.gmra.mrb[76].mxu1 %v7313_v50  ;;  %7750 = vmatmul.mubr.bf16.gmra.mrb[64].mxu0 %v7313_v50  ;;  %v14611_v50 = vld [vmem:[%s17736_s3 + $0x154] ss:$12 sps:$4 sm:$0xff]   ;;  %vm11067_vm0 = vcmask 1044480  }
 0x583   : > { %12913 = vmatprep.mubr.msk.bf16.mxu0 %vm7586_vm10, %v7311_v55  ;;  %7688 = vmatprep.mubr.bf16.mxu1 %v17806_v51 }
 0x58a   : > { %12168 = vmatmul.mubr.msk.bf16.vlgmr.msra.gmra.mrb[72].mxu1 %vm7586_vm10, %v7311_v55  ;;  %12914 = vmatmul.mubr.msk.bf16.vlgmr.msra.gmra.mrb[68].mxu0 %vm7586_vm10, %v7317_v52  ;;  %v14609_v55 = vld [vmem:[%s17736_s3 + $0x150] ss:$12 sps:$4 sm:$0xff]  }
 0x58b   : > { %8087 = vmatpush1.bf16.msra.mxu1 %v14547_v36  ;;  %8140 = vmatpush1.bf16.msra.mxu0 %v8078_v23  ;;  %v14613_v36 = vld [vmem:[%s17736_s3 + $0x3f8] ss:$12 sps:$4 sm:$0xff]  }
 0x58c   : > { %8088 = vmatprep.subr.bf16.mxu1 %v14552_v44  ;;  %7698 = vmatprep.mubr.bf16.mxu1 %v17806_v51  ;;  %v8361_v44 = vrot.slane %v16700_v19, 2  ;;  %v14616_v23 = vld [vmem:[%s17736_s3 + $0x16c] ss:$12 sps:$4 sm:$0xff]  }
 0x58d   : > { %8171 = vmatprep.mubr.bf16.mxu0 %v17806_v51  ;;  %12817 = vmatprep.subr.bf16.mxu0 %v14558_v20  ;;  %v14614_v20 = vld [vmem:[%s17736_s3 + $0x168] ss:$12 sps:$4 sm:$0xff]  }
 0x58f   : > { %8089 = vmatpush1.bf16.msra.mxu1 %v14550_v5  ;;  %v14618_v5 = vld [vmem:[%s17736_s3 + $0x410] ss:$12 sps:$4 sm:$0xff]  }
 0x590   : > { %8090 = vmatprep.subr.bf16.mxu1 %v14557_v63  ;;  %v14621_v63 = vld [vmem:[%s17736_s3 + $0x31c] ss:$12 sps:$4 sm:$0xff]  }
 0x592   : > { %12169 = vmatmul.mubr.msk.bf16.gmra.mrb[76].mxu1 %vm7586_vm10, %v7317_v52  ;;  %12224 = vmatmul.mubr.msk.bf16.vlgmr.msra.gmra.mrb[72].mxu0 %vm7586_vm10, %v16698_v15  ;;  %v8363_v52 = vsel %vm8357_vm11, %v8361_v44, %v8362_v21  ;;  %v14678_v44 = vld [vmem:[%s17736_s3 + $0x484] ss:$12 sps:$4 sm:$0xff]  }
 0x593   : > { %8091 = vmatpush1.bf16.msra.mxu1 %v14555_v2  ;;  %12818 = vmatpush3.bf16.msra.mxu0 %v14559_v9  ;;  %v14622_v2 = vld [vmem:[%s17736_s3 + $0x350] ss:$12 sps:$4 sm:$0xff]   ;;  %v14619_v9 = vld [vmem:[%s17736_s3 + $0x318] ss:$12 sps:$4 sm:$0xff]  }
 0x594   : > { %8118 = vmatprep.mubr.bf16.mxu1 %v16700_v19  ;;  %8092 = vmatprep.subr.bf16.mxu1 %v14562_v22  ;;  %v14623_v22 = vld [vmem:[%s17736_s3 + $0x428] ss:$12 sps:$4 sm:$0xff]  }
 0x595   : > { %12819 = vmatprep.subr.bf16.mxu0 %v14563_v3  ;;  %8181 = vmatprep.mubr.bf16.mxu0 %v17806_v51  ;;  %v14626_v3 = vld [vmem:[%s17736_s3 + $0x334] ss:$12 sps:$4 sm:$0xff]  }
 0x597   : > { %8093 = vmatpush1.bf16.msra.mxu1 %v14560_v56  ;;  %12820 = vmatpush3.bf16.msra.mxu0 %v14564_v13  ;;  %v14627_v56 = vld [vmem:[%s17736_s3 + $0x368] ss:$12 sps:$4 sm:$0xff]   ;;  %v14624_v13 = vld [vmem:[%s17736_s3 + $0x330] ss:$12 sps:$4 sm:$0xff]  }
 0x598   : > { %8094 = vmatprep.subr.bf16.mxu1 %v14567_v61  ;;  %12821 = vmatprep.subr.bf16.mxu0 %v14568_v18  ;;  %v14628_v61 = vld [vmem:[%s17736_s3 + $0x440] ss:$12 sps:$4 sm:$0xff]  }
 0x599   : > { %v14631_v18 = vld [vmem:[%s17736_s3 + $0x34c] ss:$12 sps:$4 sm:$0xff]  }
 0x59a   : > { %12225 = vmatmul.mubr.msk.bf16.gmra.mrb[76].mxu0 %vm7586_vm10, %v16722_v29 }
 0x59b   : > { %8095 = vmatpush1.bf16.msra.mxu1 %v14565_v17  ;;  %12822 = vmatpush3.bf16.msra.mxu0 %v14569_v7  ;;  %v14632_v17 = vld [vmem:[%s17736_s3 + $0x380] ss:$12 sps:$4 sm:$0xff]   ;;  %v14629_v7 = vld [vmem:[%s17736_s3 + $0x348] ss:$12 sps:$4 sm:$0xff]  }
 0x59c   : > { %8224 = vmatprep.mubr.bf16.mxu0 %v16700_v19  ;;  %8096 = vmatprep.subr.bf16.mxu1 %v14572_v31  ;;  %v14617_v19 = vld [vmem:[%s17736_s3 + $0x338] ss:$12 sps:$4 sm:$0xff]  }
 0x59d   : > { %12823 = vmatprep.subr.bf16.mxu0 %v14573_v10  ;;  %v14633_v31 = vld [vmem:[%s17736_s3 + $0x458] ss:$12 sps:$4 sm:$0xff]  }
 0x59e   : > { %v14636_v10 = vld [vmem:[%s17736_s3 + $0x364] ss:$12 sps:$4 sm:$0xff]  }
 0x59f   : > { %8097 = vmatpush1.bf16.msra.mxu1 %v14570_v53  ;;  %12824 = vmatpush3.bf16.msra.mxu0 %v14574_v48  ;;  %v14637_v53 = vld [vmem:[%s17736_s3 + $0x398] ss:$12 sps:$4 sm:$0xff]   ;;  %v14634_v48 = vld [vmem:[%s17736_s3 + $0x360] ss:$12 sps:$4 sm:$0xff]  }
 0x5a0   : > { %8098 = vmatprep.subr.bf16.mxu1 %v14577_v45  ;;  %12825 = vmatprep.subr.bf16.mxu0 %v14578_v32  ;;  %v14638_v45 = vld [vmem:[%s17736_s3 + $0x470] ss:$12 sps:$4 sm:$0xff]  }
 0x5a1   : > { %v14641_v32 = vld [vmem:[%s17736_s3 + $0x37c] ss:$12 sps:$4 sm:$0xff]  }
 0x5a3   : > { %8099 = vmatpush1.bf16.msra.mxu1 %v14575_v30  ;;  %12826 = vmatpush3.bf16.msra.mxu0 %v14579_v4  ;;  %v14642_v30 = vld [vmem:[%s17736_s3 + $0x3b0] ss:$12 sps:$4 sm:$0xff]   ;;  %v14639_v4 = vld [vmem:[%s17736_s3 + $0x378] ss:$12 sps:$4 sm:$0xff]  }
 0x5a4   : > { %8100 = vmatprep.subr.bf16.mxu1 %v14582_v34  ;;  %12827 = vmatprep.subr.bf16.mxu0 %v14583_v49  ;;  %v14643_v34 = vld [vmem:[%s17736_s3 + $0x488] ss:$12 sps:$4 sm:$0xff]  }
 0x5a5   : > { %v14646_v49 = vld [vmem:[%s17736_s3 + $0x394] ss:$12 sps:$4 sm:$0xff]  }
 0x5a7   : > { %8101 = vmatpush1.bf16.msra.mxu1 %v14580_v16  ;;  %12828 = vmatpush3.bf16.msra.mxu0 %v14584_v38  ;;  %v14647_v16 = vld [vmem:[%s17736_s3 + $0x3c8] ss:$12 sps:$4 sm:$0xff]   ;;  %v14644_v38 = vld [vmem:[%s17736_s3 + $0x390] ss:$12 sps:$4 sm:$0xff]  }
 0x5a8   : > { %8102 = vmatprep.subr.bf16.mxu1 %v14587_v35  ;;  %12829 = vmatprep.subr.bf16.mxu0 %v14588_v8  ;;  %v14657_v35 = vld [vmem:[%s17736_s3 + $0x4a0] ss:$0 sps:$4 sm:$0x11]   ;;  %v8359_v8 = vrot.slane %v16651_v24, 2 }
 0x5ab   : > { %8103 = vmatpush1.bf16.msra.mxu1 %v14585_v11  ;;  %12830 = vmatpush3.bf16.msra.mxu0 %v14589_v47  ;;  %v14650_v11 = vld [vmem:[%s17736_s3 + $0x3ac] ss:$12 sps:$4 sm:$0xff]   ;;  %v8369_v47 = vrot.slane %v16749_v27, 2 }
 0x5ac   : > { %8104 = vmatprep.subr.bf16.mxu1 %v14592_v62  ;;  %12831 = vmatprep.subr.bf16.mxu0 %v14593_v14  ;;  %v8358_v62 = vrot.slane %v16642_v28, 2  ;;  %v14648_v14 = vld [vmem:[%s17736_s3 + $0x3a8] ss:$12 sps:$4 sm:$0xff]   ;;  %v14651_v27 = vld [vmem:[%s17736_s3 + $0x3c0] ss:$12 sps:$4 sm:$0xff]  }
 0x5af   : > { %8105 = vmatpush1.bf16.msra.mxu1 %v14590_v39  ;;  %12832 = vmatpush3.bf16.msra.mxu0 %v14594_v41  ;;  %v8654_v39 = vsel %vm7593_vm7, %v14657_v35, 0  ;;  %v14653_v41 = vld [vmem:[%s17736_s3 + $0x3c4] ss:$12 sps:$4 sm:$0xff]  }
 0x5b0   : > { %8106 = vmatprep.subr.bf16.mxu1 %v14597_v12  ;;  %13296 = vmatprep.subr.msk.bf16.mxu0 %vm7593_vm7, %v14604_v33  ;;  %v8367_v12 = vrot.slane %v16747_v42, 2  ;;  %v14656_v33 = vld [vmem:[%s17736_s3 + $0x3dc] ss:$12 sps:$4 sm:$0xff]   ;;  %v14660_v42 = vld [vmem:[%s17736_s3 + $0x3f4] ss:$12 sps:$4 sm:$0xff]  }
 0x5b2   : > { %8225 = vmatmul.mubr.bf16.vlgmr.msra.gmra.mrb[80].mxu0 %v16642_v28 }
 0x5b3   : > { %8107 = vmatpush1.bf16.msra.mxu1 %v14595_v40  ;;  %8232 = vmatprep.mubr.bf16.mxu0 %v16726_v43  ;;  %v8365_v40 = vrot.slane %v16722_v29, 2 }
 0x5b4   : > { %8108 = vmatprep.subr.bf16.mxu1 %v14600_v59  ;;  %12918 = vmatpush3.bf16.msra.mxu0 %v8084_v6  ;;  %v8364_v59 = vrot.slane %v16698_v15, 2  ;;  %v8368_v6 = vsel %vm8357_vm11, %v8359_v8, %v8367_v12 }
 0x5b5   : > { %12848 = vmatprep.subr.bf16.mxu0 %v14608_v57 }
 0x5b6   : > { %v8366_v57 = vsel %vm8357_vm11, %v8364_v59, %v8365_v40 }
 0x5b7   : > { %8109 = vmatpush1.bf16.msra.mxu1 %v14598_v37  ;;  %v8371_v37 = vrot.slane %v16757_v25, 2  ;;  %v14664_v25 = vld [vmem:[%s17736_s3 + $0x420] ss:$12 sps:$4 sm:$0xff]  }
 0x5b8   : > { %8110 = vmatprep.subr.bf16.mxu1 %v14603_v46  ;;  %v14661_v46 = vld [vmem:[%s17736_s3 + $0x408] ss:$12 sps:$4 sm:$0xff]  }
 0x5ba   : > { %8233 = vmatmul.mubr.bf16.gmra.mrb[84].mxu0 %v16651_v24 }
 0x5bb   : > { %8111 = vmatpush1.bf16.msra.mxu1 %v14601_v0  ;;  %12919 = vmatprep.mubr.msk.bf16.mxu0 %vm7586_vm10, %v16698_v15  ;;  %v14663_v15 = vld [vmem:[%s17736_s3 + $0x40c] ss:$12 sps:$4 sm:$0xff]   ;;  %v8372_v0 = vsel %vm8357_vm11, %v8365_v40, %v8371_v37 }
 0x5bc   : > { %8112 = vmatprep.subr.bf16.mxu1 %v14607_v54  ;;  %v14666_v54 = vld [vmem:[%s17736_s3 + $0x424] ss:$12 sps:$4 sm:$0xff]  }
 0x5bf   : > { %8113 = vmatpush1.bf16.msra.mxu1 %v14605_v1  ;;  %v14669_v1 = vld [vmem:[%s17736_s3 + $0x43c] ss:$12 sps:$4 sm:$0xff]  }
 0x5c0   : > { %8114 = vmatprep.subr.bf16.mxu1 %v14611_v50  ;;  %v14667_v50 = vld [vmem:[%s17736_s3 + $0x438] ss:$12 sps:$4 sm:$0xff]  }
 0x5c2   : > { %12920 = vmatmul.mubr.msk.bf16.vlgmr.msra.gmra.mrb[68].mxu0 %vm7586_vm10, %v16722_v29  ;;  %v14658_v29 = vld [vmem:[%s17736_s3 + $0x3f0] ss:$12 sps:$4 sm:$0xff]  }
 0x5c3   : > { %12849 = vmatpush3.bf16.msra.mxu0 %v14612_v60  ;;  %8115 = vmatpush1.bf16.msra.mxu1 %v14609_v55  ;;  %v14672_v55 = vld [vmem:[%s17736_s3 + $0x454] ss:$12 sps:$4 sm:$0xff]   ;;  %v14670_v60 = vld [vmem:[%s17736_s3 + $0x450] ss:$12 sps:$4 sm:$0xff]  }
 0x5c4   : > { %8794 = vmatprep.mubr.bf16.mxu0 %v8363_v52  ;;  %12850 = vmatprep.subr.bf16.mxu0 %v14613_v36  ;;  %v14673_v36 = vld [vmem:[%s17736_s3 + $0x468] ss:$12 sps:$4 sm:$0xff]  }
 0x5c5   : > { %8116 = vmatprep.subr.bf16.mxu1 %v14616_v23  ;;  %v12292_v23 = vld [vmem:[%s17736_s3 + $0x498] sm:$0x11] }
 0x5c7   : > { %12851 = vmatpush3.bf16.msra.mxu0 %v14617_v19  ;;  %8117 = vmatpush1.bf16.msra.mxu1 %v14614_v20  ;;  %v12343_v20 = vcombine.high %v12292_v23, %v12292_v23  ;;  %v12342_v19 = vcombine.low %v12292_v23, %v12292_v23 }
 0x5c8   : > { %12852 = vmatprep.subr.bf16.mxu0 %v14618_v5  ;;  %8656 = vmatprep.subr.bf16.mxu1 %v14621_v63 }
 0x5c9   : > { %v8648_v5 = vsel %vm7593_vm7, %v12342_v19, 0 }
 0x5ca   : > { %8119 = vmatmul.mubr.bf16.vlgmr.msra.gmra.mrb[72].mxu1 %v16642_v28  ;;  %v8370_v28 = vsel %vm8357_vm11, %v8362_v21, %v8369_v47  ;;  %v14675_v21 = vld [vmem:[%s17736_s3 + $0x46c] ss:$12 sps:$4 sm:$0xff]  }
 0x5cb   : > { %12853 = vmatpush3.bf16.msra.mxu0 %v14622_v2  ;;  %8128 = vmatprep.mubr.bf16.mxu1 %v16726_v43  ;;  %v14654_v43 = vld [vmem:[%s17736_s3 + $0x3d8] ss:$12 sps:$4 sm:$0xff]  }
 0x5cc   : > { %8657 = vmatpush1.bf16.msra.mxu1 %v14619_v9  ;;  %12854 = vmatprep.subr.bf16.mxu0 %v14623_v22 }
 0x5cd   : > { %8658 = vmatprep.subr.bf16.mxu1 %v14626_v3 }
 0x5cf   : > { %12855 = vmatpush3.bf16.msra.mxu0 %v14627_v56 }
 0x5d0   : > { %8659 = vmatpush1.bf16.msra.mxu1 %v14624_v13  ;;  %12856 = vmatprep.subr.bf16.mxu0 %v14628_v61 }
 0x5d1   : > { %8660 = vmatprep.subr.bf16.mxu1 %v14631_v18 }
 0x5d2   : > { %8129 = vmatmul.mubr.bf16.gmra.mrb[76].mxu1 %v16651_v24  ;;  %v8360_v24 = vsel %vm8357_vm11, %v8358_v62, %v8359_v8 }
 0x5d3   : > { %12857 = vmatpush3.bf16.msra.mxu0 %v14632_v17  ;;  %8688 = vmatprep.mubr.bf16.mxu1 %v8363_v52  ;;  %v14676_v52 = vld [vmem:[%s17736_s3 + $0x480] ss:$12 sps:$4 sm:$0xff]  }
 0x5d4   : > { %8661 = vmatpush1.bf16.msra.mxu1 %v14629_v7  ;;  %12858 = vmatprep.subr.bf16.mxu0 %v14633_v31 }
 0x5d5   : > { %8662 = vmatprep.subr.bf16.mxu1 %v14636_v10 }
 0x5d7   : > { %12859 = vmatpush3.bf16.msra.mxu0 %v14637_v53 }
 0x5d8   : > { %8663 = vmatpush1.bf16.msra.mxu1 %v14634_v48  ;;  %12860 = vmatprep.subr.bf16.mxu0 %v14638_v45 }
 0x5d9   : > { %8664 = vmatprep.subr.bf16.mxu1 %v14641_v32 }
 0x5db   : > { %12861 = vmatpush3.bf16.msra.mxu0 %v14642_v30 }
 0x5dc   : > { %8665 = vmatpush1.bf16.msra.mxu1 %v14639_v4  ;;  %12862 = vmatprep.subr.bf16.mxu0 %v14643_v34 }
 0x5dd   : > { %8666 = vmatprep.subr.bf16.mxu1 %v14646_v49 }
 0x5df   : > { %12863 = vmatpush3.bf16.msra.mxu0 %v14647_v16 }
 0x5e0   : > { %8667 = vmatpush1.bf16.msra.mxu1 %v14644_v38  ;;  %13297 = vmatprep.subr.msk.bf16.mxu0 %vm7593_vm7, %v14657_v35 }
 0x5e1   : > { %8668 = vmatprep.subr.bf16.mxu1 %v14650_v11 }
 0x5e2   : > { %8795 = vmatmul.mubr.bf16.vlgmr.msra.gmra.mrb[88].mxu0 %v8360_v24 }
 0x5e3   : > { %8802 = vmatprep.mubr.bf16.mxu0 %v8370_v28  ;;  %12924 = vmatpush3.bf16.msra.mxu0 %v8654_v39 }
 0x5e4   : > { %8669 = vmatpush1.bf16.msra.mxu1 %v14648_v14 }
 0x5e5   : > { %8670 = vmatprep.subr.bf16.mxu1 %v14653_v41 }
 0x5e8   : > { %8671 = vmatpush1.bf16.msra.mxu1 %v14651_v27 }
 0x5e9   : > { %8672 = vmatprep.subr.bf16.mxu1 %v14656_v33 }
 0x5ea   : > { %8803 = vmatmul.mubr.bf16.gmra.mrb[92].mxu0 %v8368_v6 }
 0x5eb   : > { %12925 = vmatprep.mubr.msk.bf16.mxu0 %vm7586_vm10, %v8366_v57 }
 0x5ec   : > { %8673 = vmatpush1.bf16.msra.mxu1 %v14654_v43 }
 0x5ed   : > { %8674 = vmatprep.subr.bf16.mxu1 %v14660_v42 }
 0x5f0   : > { %8675 = vmatpush1.bf16.msra.mxu1 %v14658_v29 }
 0x5f1   : > { %8676 = vmatprep.subr.bf16.mxu1 %v14663_v15 }
 0x5f2   : > { %12926 = vmatmul.mubr.msk.bf16.vlgmr.msra.gmra.mrb[68].mxu0 %vm7586_vm10, %v8372_v0 }
 0x5f3   : > { %9042 = vmatprep.mubr.bf16.mxu0 %v17806_v51 }
 0x5f4   : > { %8677 = vmatpush1.bf16.msra.mxu1 %v14661_v46 }
 0x5f5   : > { %8678 = vmatprep.subr.bf16.mxu1 %v14666_v54 }
 0x5f8   : > { %8679 = vmatpush1.bf16.msra.mxu1 %v14664_v25 }
 0x5f9   : > { %8680 = vmatprep.subr.bf16.mxu1 %v14669_v1 }
 0x5fc   : > { %8681 = vmatpush1.bf16.msra.mxu1 %v14667_v50 }
 0x5fd   : > { %8682 = vmatprep.subr.bf16.mxu1 %v14672_v55 }
 0x600   : > { %8683 = vmatpush1.bf16.msra.mxu1 %v14670_v60 }
 0x601   : > { %8684 = vmatprep.subr.bf16.mxu1 %v14675_v21 }
 0x604   : > { %8685 = vmatpush1.bf16.msra.mxu1 %v14673_v36 }
 0x605   : > { %8686 = vmatprep.subr.bf16.mxu1 %v14678_v44 }
 0x608   : > { %8687 = vmatpush1.bf16.msra.mxu1 %v14676_v52 }
 0x609   : > { %12345 = vmatprep.subr.msk.bf16.mxu1 %vm7593_vm7, %v12343_v20 }
 0x60b   : > { %8689 = vmatmul.mubr.bf16.vlgmr.msra.gmra.mrb[80].mxu1 %v8360_v24 }
 0x60c   : > { %8698 = vmatprep.mubr.bf16.mxu1 %v8370_v28  ;;  %8710 = vmatpush1.bf16.msra.mxu1 %v8648_v5 }
 0x613   : > { %8699 = vmatmul.mubr.bf16.gmra.mrb[84].mxu1 %v8368_v6 }
 0x614   : > { %8741 = vmatprep.mubr.bf16.mxu1 %v17806_v51 }
 0x61b   : > { %12346 = vmatmul.mubr.msk.bf16.vlgmr.msra.gmra.mrb[80].mxu1 %vm7586_vm10, %v8366_v57 }
 0x61c   : > { %8751 = vmatprep.mubr.bf16.mxu1 %v17806_v51 }
 0x623   : > { %12347 = vmatmul.mubr.msk.bf16.gmra.mrb[84].mxu1 %vm7586_vm10, %v8372_v0 }
 0x64d   : > { %v12802_v63 = vpop.f32.mrb[60].mxu0 }
 0x64e   : > { %v12803_v2 = vpop.f32.mrb[61].mxu0 }
 0x64f   : > { %v12804_v9 = vadd.f32 %v12803_v2, %v12802_v63  ;;  %v12805_v22 = vpop.f32.mrb[62].mxu0 }
 0x650   : > { %v12806_v3 = vpop.f32.mrb[63].mxu0 }
 0x651   : > { %v12807_v56 = vadd.f32 %v12806_v3, %v12805_v22 }
 0x655   : > { %v12808_v13 = vpop.f32.mrb[64].mxu0 }
 0x656   : > { %v12809_v61 = vpop.f32.mrb[65].mxu0 }
 0x657   : > { %v12810_v18 = vadd.f32 %v12809_v61, %v12808_v13  ;;  %v12811_v17 = vpop.f32.mrb[66].mxu0 }
 0x658   : > { %v12812_v7 = vpop.f32.mrb[67].mxu0 }
 0x659   : > { %v12813_v31 = vadd.f32 %v12812_v7, %v12811_v17 }
 0x665   : > { %v8173_v10 = vpop.f32.mrb[72].mxu0 }
 0x666   : > { %v8175_v53 = vpop.f32.mrb[73].mxu0 }
 0x667   : > { %v8177_v48 = vpop.f32.mrb[74].mxu0 }
 0x668   : > { %v8179_v45 = vpop.f32.mrb[75].mxu0 }
 0x66d   : > { %v8183_v32 = vpop.f32.mrb[76].mxu0 }
 0x66e   : > { %v8185_v30 = vpop.f32.mrb[77].mxu0 }
 0x66f   : > { %v8187_v4 = vpop.f32.mrb[78].mxu0 }
 0x670   : > { %v8189_v34 = vpop.f32.mrb[79].mxu0 }
 0x685   : > { %v12833_v49 = vpop.f32.mrb[80].mxu0 }
 0x686   : > { %v12834_v16 = vpop.f32.mrb[81].mxu0 }
 0x687   : > { %v12835_v38 = vadd.f32 %v12834_v16, %v12833_v49  ;;  %v12836_v35 = vpop.f32.mrb[82].mxu0  ;;  %v14687_v49 = vld [vmem:[%s17738_s5 + $0x20] ss:$8 sps:$4 sm:$0xff]  }
 0x688   : > { %v12837_v8 = vpop.f32.mrb[83].mxu0 }
 0x689   : > { %v12988_v11 = vadd.f32 %v12835_v38, %v12804_v9  ;;  %v12838_v47 = vadd.f32 %v12837_v8, %v12836_v35  ;;  %v14692_v8 = vld [vmem:[%s17738_s5 + $0x34] ss:$8 sps:$4 sm:$0xff]  }
 0x68b   : > { %v12994_v62 = vadd.f32 %v12838_v47, %v12807_v56 }
 0x68d   : > { %v12839_v14 = vpop.f32.mrb[84].mxu0 }
 0x68e   : > { %v12840_v39 = vpop.f32.mrb[85].mxu0 }
 0x68f   : > { %v12841_v24 = vadd.f32 %v12840_v39, %v12839_v14  ;;  %v12842_v41 = vpop.f32.mrb[86].mxu0 }
 0x690   : > { %v12843_v28 = vpop.f32.mrb[87].mxu0 }
 0x691   : > { %v12985_v27 = vadd.f32 %v12841_v24, %v12810_v18  ;;  %v12844_v12 = vadd.f32 %v12843_v28, %v12842_v41  ;;  %v14695_v41 = vld [vmem:[%s17738_s5 + $0x44] ss:$8 sps:$4 sm:$0xff]  }
 0x693   : > { %v12991_v33 = vadd.f32 %v12844_v12, %v12813_v31 }
 0x69d   : > { %v8120_v40 = vpop.f32.mrb[72].mxu1 }
 0x69e   : > { %v12969_v43 = vadd.f32 %v8173_v10, %v8120_v40  ;;  %v8122_v59 = vpop.f32.mrb[73].mxu1 }
 0x69f   : > { %v12971_v6 = vadd.f32 %v8175_v53, %v8122_v59  ;;  %v8124_v42 = vpop.f32.mrb[74].mxu1 }
 0x6a0   : > { %v12973_v57 = vadd.f32 %v8177_v48, %v8124_v42  ;;  %v8126_v29 = vpop.f32.mrb[75].mxu1 }
 0x6a1   : > { %v12975_v37 = vadd.f32 %v8179_v45, %v8126_v29  ;;  %v14683_v45 = vld [vmem:[%s17738_s5 + $0x4] ss:$8 sps:$4 sm:$0xff]  }
 0x6a2   : > { %9010 = vmatprep.subr.bf16.mxu0 %v14683_v45  ;;  %v14713_v45 = vld [vmem:[%s17738_s5 + $0xa4] ss:$8 sps:$4 sm:$0xff]  }
 0x6a5   : > { %v8130_v15 = vpop.f32.mrb[76].mxu1 }
 0x6a6   : > { %v12977_v46 = vadd.f32 %v8183_v32, %v8130_v15  ;;  %v8132_v0 = vpop.f32.mrb[77].mxu1  ;;  %v14681_v32 = vld [vmem:[%s17738_s5] ss:$8 sps:$4 sm:$0xff]  }
 0x6a7   : > { %v17114_v54 = vadd.f32 %v8185_v30, %v8132_v0  ;;  %v8134_v25 = vpop.f32.mrb[78].mxu1  ;;  %9011 = vmatpush1.bf16.msra.mxu0 %v14681_v32  ;;  %v14686_v30 = vld [vmem:[%s17738_s5 + $0x14] ss:$8 sps:$4 sm:$0xff]   ;;  %v14711_v32 = vld [vmem:[%s17738_s5 + $0xa0] ss:$8 sps:$4 sm:$0xff]  }
 0x6a8   : > { %v17116_v1 = vadd.f32 %v8187_v4, %v8134_v25  ;;  %v8136_v50 = vpop.f32.mrb[79].mxu1  ;;  %v14684_v4 = vld [vmem:[%s17738_s5 + $0x10] ss:$8 sps:$4 sm:$0xff]   ;;  %9012 = vmatprep.subr.bf16.mxu0 %v14686_v30  ;;  %v14716_v30 = vld [vmem:[%s17738_s5 + $0xb4] ss:$8 sps:$4 sm:$0xff]  }
 0x6a9   : > { %v17118_v55 = vadd.f32 %v8189_v34, %v8136_v50  ;;  %v14689_v34 = vld [vmem:[%s17738_s5 + $0x24] ss:$8 sps:$4 sm:$0xff]  }
 0x6ab   : > { %9013 = vmatpush1.bf16.msra.mxu0 %v14684_v4  ;;  %v14714_v4 = vld [vmem:[%s17738_s5 + $0xb0] ss:$8 sps:$4 sm:$0xff]  }
 0x6ac   : > { %9014 = vmatprep.subr.bf16.mxu0 %v14689_v34  ;;  %v14719_v34 = vld [vmem:[%s17738_s5 + $0xc4] ss:$8 sps:$4 sm:$0xff]  }
 0x6af   : > { %9015 = vmatpush1.bf16.msra.mxu0 %v14687_v49  ;;  %v14717_v49 = vld [vmem:[%s17738_s5 + $0xc0] ss:$8 sps:$4 sm:$0xff]  }
 0x6b0   : > { %9016 = vmatprep.subr.bf16.mxu0 %v14692_v8  ;;  %v14725_v8 = vld [vmem:[%s17738_s5 + $0xe4] ss:$8 sps:$4 sm:$0xff]  }
 0x6b5   : > { %v12864_v60 = vpop.f32.mrb[88].mxu0 }
 0x6b6   : > { %v12865_v21 = vpop.f32.mrb[89].mxu0 }
 0x6b7   : > { %v12866_v36 = vadd.f32 %v12865_v21, %v12864_v60  ;;  %v12867_v44 = vpop.f32.mrb[90].mxu0 }
 0x6b8   : > { %v12868_v23 = vpop.f32.mrb[91].mxu0 }
 0x6b9   : > { %v12869_v52 = vadd.f32 %v12868_v23, %v12867_v44  ;;  %v12989_v20 = vadd.f32 %v12988_v11, %v12866_v36 }
 0x6bb   : > { %v12995_v19 = vadd.f32 %v12994_v62, %v12869_v52  ;;  %v14690_v62 = vld [vmem:[%s17738_s5 + $0x30] ss:$8 sps:$4 sm:$0xff]  }
 0x6bc   : > { %9017 = vmatpush1.bf16.msra.mxu0 %v14690_v62  ;;  %v14726_v62 = vld [vmem:[%s17738_s5 + $0xf0] ss:$8 sps:$4 sm:$0xff]  }
 0x6bd   : > { %v12870_v5 = vpop.f32.mrb[92].mxu0  ;;  %9118 = vmatprep.subr.bf16.mxu0 %v14695_v41  ;;  %v14734_v41 = vld [vmem:[%s17738_s5 + $0x114] ss:$8 sps:$4 sm:$0xff]  }
 0x6be   : > { %v12871_v63 = vpop.f32.mrb[93].mxu0 }
 0x6bf   : > { %v12872_v2 = vadd.f32 %v12871_v63, %v12870_v5  ;;  %v12873_v9 = vpop.f32.mrb[94].mxu0  ;;  %v14693_v63 = vld [vmem:[%s17738_s5 + $0x40] ss:$8 sps:$4 sm:$0xff]  }
 0x6c0   : > { %v12874_v22 = vpop.f32.mrb[95].mxu0 }
 0x6c1   : > { %v12875_v3 = vadd.f32 %v12874_v22, %v12873_v9  ;;  %v12986_v56 = vadd.f32 %v12985_v27, %v12872_v2  ;;  %v14698_v9 = vld [vmem:[%s17738_s5 + $0x54] ss:$8 sps:$4 sm:$0xff]   ;;  %v14696_v22 = vld [vmem:[%s17738_s5 + $0x50] ss:$8 sps:$4 sm:$0xff]  }
 0x6c3   : > { %v12992_v13 = vadd.f32 %v12991_v33, %v12875_v3  ;;  %v14701_v3 = vld [vmem:[%s17738_s5 + $0x64] ss:$8 sps:$4 sm:$0xff]  }
 0x6c5   : > { %v12927_v61 = vpop.f32.mrb[68].mxu0 }
 0x6c6   : > { %v17120_v18 = vadd.f32 %v12986_v56, %v12927_v61  ;;  %v8845_v17 = vpop.f32.mrb[69].mxu0  ;;  %v14699_v56 = vld [vmem:[%s17738_s5 + $0x60] ss:$8 sps:$4 sm:$0xff]   ;;  %v14702_v61 = vld [vmem:[%s17738_s5 + $0x70] ss:$8 sps:$4 sm:$0xff]  }
 0x6c7   : > { %v12990_v7 = vadd.f32 %v12989_v20, %v8845_v17  ;;  %v12928_v31 = vpop.f32.mrb[70].mxu0  ;;  %v14707_v17 = vld [vmem:[%s17738_s5 + $0x84] ss:$8 sps:$4 sm:$0xff]  }
 0x6c8   : > { %v17122_v10 = vadd.f32 %v12992_v13, %v12928_v31  ;;  %v8848_v53 = vpop.f32.mrb[71].mxu0  ;;  %v14704_v13 = vld [vmem:[%s17738_s5 + $0x74] ss:$8 sps:$4 sm:$0xff]  }
 0x6c9   : > { %v12996_v48 = vadd.f32 %v12995_v19, %v8848_v53  ;;  %v14710_v53 = vld [vmem:[%s17738_s5 + $0x94] ss:$8 sps:$4 sm:$0xff]  }
 0x6ee   : > { %v8743_v16 = vpop.f32.mrb[80].mxu1 }
 0x6ef   : > { %v12970_v38 = vadd.f32 %v12969_v43, %v8743_v16  ;;  %v8745_v35 = vpop.f32.mrb[81].mxu1 }
 0x6f0   : > { %v12972_v11 = vadd.f32 %v12971_v6, %v8745_v35  ;;  %v8747_v47 = vpop.f32.mrb[82].mxu1  ;;  %v14720_v35 = vld [vmem:[%s17738_s5 + $0xd0] ss:$8 sps:$4 sm:$0xff]  }
 0x6f1   : > { %v12974_v14 = vadd.f32 %v12973_v57, %v8747_v47  ;;  %8876 = vrot.lane.b32.xlu1 %v12970_v38, %s15400_s0  ;;  %v8749_v39 = vpop.f32.mrb[83].mxu1  ;;  %v14728_v47 = vld [vmem:[%s17738_s5 + $0xf4] ss:$8 sps:$4 sm:$0xff]  }
 0x6f2   : > { %v12976_v24 = vadd.f32 %v12975_v37, %v8749_v39  ;;  %v14729_v39 = vld [vmem:[%s17738_s5 + $0x100] ss:$8 sps:$4 sm:$0xff]  }
 0x6f3   : > { %8878 = vrot.lane.b32.xlu0 %v12974_v14, %s15400_s0 }
 0x6f5   : > { %8900 = vrot.lane.b32.xlu1 %v12972_v11, %s15400_s0 }
 0x6f6   : > { %v8753_v28 = vpop.f32.mrb[84].mxu1 }
 0x6f7   : > { %v17151_v27 = vadd.f32 %v12977_v46, %v8753_v28  ;;  %8902 = vrot.lane.b32.xlu0 %v12976_v24, %s15400_s0  ;;  %v8755_v12 = vpop.f32.mrb[85].mxu1  ;;  %v14732_v28 = vld [vmem:[%s17738_s5 + $0x110] ss:$8 sps:$4 sm:$0xff]  }
 0x6f8   : > { %v17154_v33 = vadd.f32 %v17114_v54, %v8755_v12  ;;  %v8757_v40 = vpop.f32.mrb[86].mxu1  ;;  %v14737_v12 = vld [vmem:[%s17738_s5 + $0x124] ss:$8 sps:$4 sm:$0xff]  }
 0x6f9   : > { %v17157_v43 = vadd.f32 %v17116_v1, %v8757_v40  ;;  %8924 = vrot.lane.b32.xlu1 %v12990_v7, %s15400_s0  ;;  %v8759_v59 = vpop.f32.mrb[87].mxu1  ;;  %v14735_v40 = vld [vmem:[%s17738_s5 + $0x120] ss:$8 sps:$4 sm:$0xff]  }
 0x6fa   : > { %v17160_v6 = vadd.f32 %v17118_v55, %v8759_v59  ;;  %v17168_v55 = vld [vmem:[#allocation7] ss:$0 sm:$0xff]  ;;  %v14740_v59 = vld [vmem:[%s17738_s5 + $0x134] ss:$8 sps:$4 sm:$0xff]  }
 0x6fb   : > { %8926 = vrot.lane.b32.xlu0 %v12996_v48, %s15400_s0 }
 0x6fd   : > { %8880 = vrot.lane.b32.xlu1 %v17151_v27, %s15400_s0 }
 0x6ff   : > { %8882 = vrot.lane.b32.xlu0 %v17157_v43, %s15400_s0 }
 0x701   : > { %8904 = vrot.lane.b32.xlu1 %v17154_v33, %s15400_s0 }
 0x703   : > { %8906 = vrot.lane.b32.xlu0 %v17160_v6, %s15400_s0 }
 0x705   : > { %8928 = vrot.lane.b32.xlu1 %v17120_v18, %s15400_s0 }
 0x707   : > { %8930 = vrot.lane.b32.xlu0 %v17122_v10, %s15400_s0  ;;  %s11125_s0 = scalar_lea.sflag [#allocation4], %s683_s8 }
 0x763   : > { %v8877_v42 = vpop.permute.xlu1 %8876 }
 0x764   : > { %v8888_v57 = vmax.f32 %v12970_v38, %v8877_v42  ;;  %v14722_v38 = vld [vmem:[%s17738_s5 + $0xd4] ss:$8 sps:$4 sm:$0xff]   ;;  %v14738_v42 = vld [vmem:[%s17738_s5 + $0x130] ss:$8 sps:$4 sm:$0xff]  }
 0x765   : > { %v8879_v29 = vpop.permute.xlu0 %8878 }
 0x766   : > { %v8889_v37 = vmax.f32 %v12974_v14, %v8879_v29  ;;  %v8892_v15 = vmax.f32 %v8888_v57, %v12972_v11  ;;  %v14723_v11 = vld [vmem:[%s17738_s5 + $0xe0] ss:$8 sps:$4 sm:$0xff]   ;;  %v14731_v14 = vld [vmem:[%s17738_s5 + $0x104] ss:$8 sps:$4 sm:$0xff]  }
 0x767   : > { %v8901_v46 = vpop.permute.xlu1 %8900  ;;  %v14743_v57 = vld [vmem:[%s17738_s5 + $0x144] ss:$8 sps:$4 sm:$0xff]   ;;  %v14741_v29 = vld [vmem:[%s17738_s5 + $0x140] ss:$8 sps:$4 sm:$0xff]  }
 0x768   : > { %v8912_v0 = vmax.f32 %v8892_v15, %v8901_v46  ;;  %v8893_v54 = vmax.f32 %v8889_v37, %v12976_v24  ;;  %v14746_v15 = vld [vmem:[%s17738_s5 + $0x154] ss:$8 sps:$4 sm:$0xff]   ;;  %v14744_v46 = vld [vmem:[%s17738_s5 + $0x150] ss:$8 sps:$4 sm:$0xff]  }
 0x769   : > { %v8903_v25 = vpop.permute.xlu0 %8902 }
 0x76a   : > { %v8913_v1 = vmax.f32 %v8893_v54, %v8903_v25  ;;  %v8916_v50 = vmax.f32 %v8912_v0, %v12990_v7  ;;  %v14705_v7 = vld [vmem:[%s17738_s5 + $0x80] ss:$8 sps:$4 sm:$0xff]   ;;  %v14749_v0 = vld [vmem:[%s17738_s5 + $0x164] ss:$8 sps:$4 sm:$0xff]   ;;  %v14752_v25 = vld [vmem:[%s17738_s5 + $0x174] ss:$8 sps:$4 sm:$0xff]  }
 0x76b   : > { %v8925_v60 = vpop.permute.xlu1 %8924  ;;  %v14747_v54 = vld [vmem:[%s17738_s5 + $0x160] ss:$8 sps:$4 sm:$0xff]  }
 0x76c   : > { %v8936_v21 = vmax.f32 %v8916_v50, %v8925_v60  ;;  %v8917_v36 = vmax.f32 %v8913_v1, %v12996_v48  ;;  %v14708_v48 = vld [vmem:[%s17738_s5 + $0x90] ss:$8 sps:$4 sm:$0xff]   ;;  %v14755_v50 = vld [vmem:[%s17738_s5 + $0x184] ss:$8 sps:$4 sm:$0xff]   ;;  %v14753_v60 = vld [vmem:[%s17738_s5 + $0x180] ss:$8 sps:$4 sm:$0xff]  }
 0x76d   : > { %v8927_v44 = vpop.permute.xlu0 %8926  ;;  %v14750_v1 = vld [vmem:[%s17738_s5 + $0x170] ss:$8 sps:$4 sm:$0xff]  }
 0x76e   : > { %v8947_v23 = vadd.f32 %v17168_v55, %v8936_v21  ;;  %v8937_v52 = vmax.f32 %v8917_v36, %v8927_v44  ;;  %v14758_v36 = vld [vmem:[%s17738_s5 + $0x194] ss:$8 sps:$4 sm:$0xff]   ;;  %v14756_v44 = vld [vmem:[%s17738_s5 + $0x190] ss:$8 sps:$4 sm:$0xff]  }
 0x770   : > { %v8948_v20 = vadd.f32 %v17168_v55, %v8937_v52  ;;  %v8951_v19 = vmax.f32 %v8947_v23, 0.0  ;;  %v14761_v23 = vld [vmem:[%s17738_s5 + $0x1a4] ss:$8 sps:$4 sm:$0xff]   ;;  %v14759_v52 = vld [vmem:[%s17738_s5 + $0x1a0] ss:$8 sps:$4 sm:$0xff]  }
 0x772   : > { %v8952_v5 = vmax.f32 %v8948_v20, 0.0  ;;  %v14764_v20 = vld [vmem:[%s17738_s5 + $0x1b4] ss:$8 sps:$4 sm:$0xff]  }
 0x774   : > { %v17175_v2 = vpack.c.bf16 %v8952_v5, %v8951_v19  ;;  %v14762_v19 = vld [vmem:[%s17738_s5 + $0x1b0] ss:$8 sps:$4 sm:$0xff]   ;;  %v14767_v5 = vld [vmem:[%s17738_s5 + $0x1c4] ss:$8 sps:$4 sm:$0xff]  }
 0x776   : > { %12359 = vmatmul.mubr.msk.bf16.vlgmr.msra.gmra.mrb[96].mxu0 %vm9006_vm12, %v17175_v2  ;;  %v9074_v31 = vrot.slane %v17175_v2, 1  ;;  %v9170_v16 = vrot.slane %v17175_v2, 2  ;;  %v9266_v24 = vrot.slane %v17175_v2, 3  ;;  %v9362_v37 = vrot.slane %v17175_v2, 4 }
 0x777   : > { %9119 = vmatpush1.bf16.msra.mxu0 %v14693_v63  ;;  %9150 = vmatprep.mubr.bf16.mxu0 %v17806_v51  ;;  %v9458_v21 = vrot.slane %v17175_v2, 5  ;;  %v14765_v63 = vld [vmem:[%s17738_s5 + $0x1c0] ss:$8 sps:$4 sm:$0xff]  }
 0x778   : > { %9120 = vmatprep.subr.bf16.mxu0 %v14698_v9  ;;  %v9554_v9 = vrot.slane %v17175_v2, 6 }
 0x77b   : > { %9121 = vmatpush1.bf16.msra.mxu0 %v14696_v22  ;;  %v14770_v22 = vld [vmem:[%s17738_s5 + $0x1d4] ss:$8 sps:$4 sm:$0xff]  }
 0x77c   : > { %9122 = vmatprep.subr.bf16.mxu0 %v14701_v3  ;;  %v8883_v3 = vpop.permute.xlu0 %8882 }
 0x77f   : > { %9123 = vmatpush1.bf16.msra.mxu0 %v14699_v56  ;;  %v8881_v56 = vpop.permute.xlu1 %8880 }
 0x780   : > { %9124 = vmatprep.subr.bf16.mxu0 %v14704_v13  ;;  %v14768_v13 = vld [vmem:[%s17738_s5 + $0x1d0] ss:$8 sps:$4 sm:$0xff]  }
 0x783   : > { %9125 = vmatpush1.bf16.msra.mxu0 %v14702_v61  ;;  %v8891_v61 = vmax.f32 %v17157_v43, %v8883_v3  ;;  %v8907_v43 = vpop.permute.xlu0 %8906  ;;  %v14801_v3 = vld [vmem:[%s17738_s5 + $0x280] ss:$8 sps:$4 sm:$0xff]  }
 0x784   : > { %9214 = vmatprep.subr.bf16.mxu0 %v14707_v17  ;;  %v14773_v17 = vld [vmem:[%s17738_s5 + $0x1e4] ss:$8 sps:$4 sm:$0xff]  }
 0x786   : > { %12376 = vmatmul.mubr.msk.bf16.vlgmr.msra.gmra.mrb[96].mxu0 %vm9006_vm12, %v9074_v31  ;;  %v14771_v31 = vld [vmem:[%s17738_s5 + $0x1e0] ss:$8 sps:$4 sm:$0xff]  }
 0x787   : > { %9215 = vmatpush1.bf16.msra.mxu0 %v14705_v7  ;;  %9246 = vmatprep.mubr.bf16.mxu0 %v17806_v51  ;;  %v8890_v7 = vmax.f32 %v17151_v27, %v8881_v56  ;;  %v14774_v27 = vld [vmem:[%s17738_s5 + $0x1f0] ss:$8 sps:$4 sm:$0xff]  }
 0x788   : > { %9216 = vmatprep.subr.bf16.mxu0 %v14710_v53  ;;  %v8895_v53 = vmax.f32 %v8891_v61, %v17160_v6  ;;  %v14779_v6 = vld [vmem:[%s17738_s5 + $0x204] ss:$8 sps:$4 sm:$0xff]   ;;  %v14897_v61 = vld [vmem:[#allocation10 + $0x80] ss:$8 sps:$4 sm:$0xff]  }
 0x78b   : > { %9217 = vmatpush1.bf16.msra.mxu0 %v14708_v48  ;;  %v14776_v48 = vld [vmem:[%s17738_s5 + $0x1f4] ss:$8 sps:$4 sm:$0xff]  }
 0x78c   : > { %9218 = vmatprep.subr.bf16.mxu0 %v14713_v45  ;;  %v8894_v45 = vmax.f32 %v8890_v7, %v17154_v33  ;;  %v14804_v7 = vld [vmem:[%s17738_s5 + $0x290] ss:$8 sps:$4 sm:$0xff]  }
 0x78f   : > { %9219 = vmatpush1.bf16.msra.mxu0 %v14711_v32  ;;  %v8905_v32 = vpop.permute.xlu1 %8904 }
 0x790   : > { %9220 = vmatprep.subr.bf16.mxu0 %v14716_v30  ;;  %v8915_v30 = vmax.f32 %v8895_v53, %v8907_v43  ;;  %v14900_v53 = vld [vmem:[#allocation10 + $0x90] ss:$8 sps:$4 sm:$0xff]  }
 0x791   : > { %v14807_v43 = vld [vmem:[%s17738_s5 + $0x2a0] ss:$8 sps:$4 sm:$0xff]  }
 0x792   : > { %v8919_v33 = vmax.f32 %v8915_v30, %v17122_v10  ;;  %v14780_v10 = vld [vmem:[%s17738_s5 + $0x210] ss:$8 sps:$4 sm:$0xff]   ;;  %v14815_v30 = vld [vmem:[%s17738_s5 + $0x2c4] ss:$8 sps:$4 sm:$0xff]  }
 0x793   : > { %9221 = vmatpush1.bf16.msra.mxu0 %v14714_v4  ;;  %v8914_v4 = vmax.f32 %v8894_v45, %v8905_v32  ;;  %v14812_v45 = vld [vmem:[%s17738_s5 + $0x2b4] ss:$8 sps:$4 sm:$0xff]   ;;  %v14903_v32 = vld [vmem:[#allocation10 + $0xa0] ss:$8 sps:$4 sm:$0xff]  }
 0x794   : > { %9310 = vmatprep.subr.bf16.mxu0 %v14719_v34  ;;  %v14777_v34 = vld [vmem:[%s17738_s5 + $0x200] ss:$8 sps:$4 sm:$0xff]  }
 0x796   : > { %12393 = vmatmul.mubr.msk.bf16.vlgmr.msra.gmra.mrb[96].mxu0 %vm9006_vm12, %v9170_v16  ;;  %v14782_v16 = vld [vmem:[%s17738_s5 + $0x214] ss:$8 sps:$4 sm:$0xff]  }
 0x797   : > { %9311 = vmatpush1.bf16.msra.mxu0 %v14717_v49  ;;  %9342 = vmatprep.mubr.bf16.mxu0 %v17806_v51  ;;  %v9650_v49 = vrot.slane %v17175_v2, 7  ;;  %v14878_v2 = vld [vmem:[#allocation10 + $0x14] ss:$8 sps:$4 sm:$0xff]  }
 0x798   : > { %9312 = vmatprep.subr.bf16.mxu0 %v14722_v38  ;;  %v8931_v38 = vpop.permute.xlu0 %8930 }
 0x79b   : > { %9313 = vmatpush1.bf16.msra.mxu0 %v14720_v35  ;;  %v8918_v35 = vmax.f32 %v8914_v4, %v17120_v18  ;;  %v14876_v18 = vld [vmem:[#allocation10 + $0x10] ss:$8 sps:$4 sm:$0xff]  }
 0x79c   : > { %9314 = vmatprep.subr.bf16.mxu0 %v14725_v8  ;;  %v14873_v8 = vld [vmem:[#allocation10] ss:$8 sps:$4 sm:$0xff]  }
 0x79f   : > { %9315 = vmatpush1.bf16.msra.mxu0 %v14723_v11  ;;  %v14875_v11 = vld [vmem:[#allocation10 + $0x4] ss:$8 sps:$4 sm:$0xff]  }
 0x7a0   : > { %9316 = vmatprep.subr.bf16.mxu0 %v14728_v47  ;;  %v8929_v47 = vpop.permute.xlu1 %8928  ;;  %10682 = vmatprep.subr.bf16.mxu1 %v14875_v11  ;;  %v14825_v11 = vld [vmem:[%s17738_s5 + $0x300] ss:$8 sps:$4 sm:$0xff]  }
 0x7a1   : > { %10683 = vmatpush1.bf16.msra.mxu1 %v14873_v8  ;;  %v14827_v8 = vld [vmem:[%s17738_s5 + $0x304] ss:$8 sps:$4 sm:$0xff]  }
 0x7a2   : > { %10684 = vmatprep.subr.bf16.mxu1 %v14878_v2  ;;  %v14828_v2 = vld [vmem:[%s17738_s5 + $0x310] ss:$8 sps:$4 sm:$0xff]  }
 0x7a3   : > { %9317 = vmatpush1.bf16.msra.mxu0 %v14726_v62  ;;  %v8939_v62 = vmax.f32 %v8919_v33, %v8931_v38  ;;  %v14816_v33 = vld [vmem:[%s17738_s5 + $0x2d0] ss:$8 sps:$4 sm:$0xff]   ;;  %v14824_v38 = vld [vmem:[%s17738_s5 + $0x2f4] ss:$8 sps:$4 sm:$0xff]  }
 0x7a4   : > { %9406 = vmatprep.subr.bf16.mxu0 %v14731_v14  ;;  %v14785_v14 = vld [vmem:[%s17738_s5 + $0x224] ss:$8 sps:$4 sm:$0xff]  }
 0x7a5   : > { %10685 = vmatpush1.bf16.msra.mxu1 %v14876_v18  ;;  %v14836_v18 = vld [vmem:[%s17738_s5 + $0x334] ss:$8 sps:$4 sm:$0xff]  }
 0x7a6   : > { %12410 = vmatmul.mubr.msk.bf16.vlgmr.msra.gmra.mrb[96].mxu0 %vm9006_vm12, %v9266_v24  ;;  %v14881_v24 = vld [vmem:[#allocation10 + $0x24] ss:$8 sps:$4 sm:$0xff]  }
 0x7a7   : > { %9407 = vmatpush1.bf16.msra.mxu0 %v14729_v39  ;;  %9438 = vmatprep.mubr.bf16.mxu0 %v17806_v51  ;;  %v8938_v39 = vmax.f32 %v8918_v35, %v8929_v47  ;;  %v14822_v35 = vld [vmem:[%s17738_s5 + $0x2f0] ss:$8 sps:$4 sm:$0xff]  }
 0x7a8   : > { %9408 = vmatprep.subr.bf16.mxu0 %v14734_v41  ;;  %v14783_v41 = vld [vmem:[%s17738_s5 + $0x220] ss:$8 sps:$4 sm:$0xff]   ;;  %10686 = vmatprep.subr.bf16.mxu1 %v14881_v24  ;;  %v14839_v24 = vld [vmem:[%s17738_s5 + $0x344] ss:$8 sps:$4 sm:$0xff]  }
 0x7ab   : > { %9409 = vmatpush1.bf16.msra.mxu0 %v14732_v28  ;;  %v8950_v28 = vadd.f32 %v17168_v55, %v8939_v62  ;;  %v14833_v62 = vld [vmem:[%s17738_s5 + $0x324] ss:$8 sps:$4 sm:$0xff]  }
 0x7ac   : > { %9410 = vmatprep.subr.bf16.mxu0 %v14737_v12  ;;  %v14788_v12 = vld [vmem:[%s17738_s5 + $0x234] ss:$8 sps:$4 sm:$0xff]  }
 0x7af   : > { %9411 = vmatpush1.bf16.msra.mxu0 %v14735_v40  ;;  %v14879_v40 = vld [vmem:[#allocation10 + $0x20] ss:$8 sps:$4 sm:$0xff]  }
 0x7b0   : > { %9412 = vmatprep.subr.bf16.mxu0 %v14740_v59  ;;  %v8949_v59 = vadd.f32 %v17168_v55, %v8938_v39  ;;  %10687 = vmatpush1.bf16.msra.mxu1 %v14879_v40  ;;  %v14789_v55 = vld [vmem:[%s17738_s5 + $0x240] ss:$8 sps:$4 sm:$0xff]   ;;  %v14834_v39 = vld [vmem:[%s17738_s5 + $0x330] ss:$8 sps:$4 sm:$0xff]  }
 0x7b1   : > { %v14840_v40 = vld [vmem:[%s17738_s5 + $0x350] ss:$8 sps:$4 sm:$0xff]  }
 0x7b3   : > { %9413 = vmatpush1.bf16.msra.mxu0 %v14738_v42  ;;  %v14884_v42 = vld [vmem:[#allocation10 + $0x34] ss:$8 sps:$4 sm:$0xff]  }
 0x7b4   : > { %9502 = vmatprep.subr.bf16.mxu0 %v14743_v57  ;;  %v14786_v57 = vld [vmem:[%s17738_s5 + $0x230] ss:$8 sps:$4 sm:$0xff]   ;;  %10688 = vmatprep.subr.bf16.mxu1 %v14884_v42  ;;  %v14843_v42 = vld [vmem:[%s17738_s5 + $0x360] ss:$8 sps:$4 sm:$0xff]  }
 0x7b6   : > { %12427 = vmatmul.mubr.msk.bf16.vlgmr.msra.gmra.mrb[96].mxu0 %vm9006_vm12, %v9362_v37  ;;  %v14791_v37 = vld [vmem:[%s17738_s5 + $0x244] ss:$8 sps:$4 sm:$0xff]  }
 0x7b7   : > { %9503 = vmatpush1.bf16.msra.mxu0 %v14741_v29  ;;  %9534 = vmatprep.mubr.bf16.mxu0 %v17806_v51  ;;  %v8954_v29 = vmax.f32 %v8950_v28, 0.0 }
 0x7b8   : > { %9504 = vmatprep.subr.bf16.mxu0 %v14746_v15  ;;  %v14882_v15 = vld [vmem:[#allocation10 + $0x30] ss:$8 sps:$4 sm:$0xff]  }
 0x7b9   : > { %10689 = vmatpush1.bf16.msra.mxu1 %v14882_v15  ;;  %v14849_v15 = vld [vmem:[%s17738_s5 + $0x380] ss:$8 sps:$4 sm:$0xff]  }
 0x7bb   : > { %9505 = vmatpush1.bf16.msra.mxu0 %v14744_v46  ;;  %v8953_v46 = vmax.f32 %v8949_v59, 0.0  ;;  %v14845_v59 = vld [vmem:[%s17738_s5 + $0x364] ss:$8 sps:$4 sm:$0xff]  }
 0x7bc   : > { %9506 = vmatprep.subr.bf16.mxu0 %v14749_v0  ;;  %v14887_v0 = vld [vmem:[#allocation10 + $0x44] ss:$8 sps:$4 sm:$0xff]  }
 0x7bd   : > { %10690 = vmatprep.subr.bf16.mxu1 %v14887_v0  ;;  %v14854_v0 = vld [vmem:[%s17738_s5 + $0x394] ss:$8 sps:$4 sm:$0xff]  }
 0x7bf   : > { %9507 = vmatpush1.bf16.msra.mxu0 %v14747_v54  ;;  %v17401_v54 = vpack.c.bf16 %v8954_v29, %v8953_v46  ;;  %v14846_v29 = vld [vmem:[%s17738_s5 + $0x370] ss:$8 sps:$4 sm:$0xff]  }
 0x7c0   : > { %9508 = vmatprep.subr.bf16.mxu0 %v14752_v25  ;;  %v14794_v25 = vld [vmem:[%s17738_s5 + $0x254] ss:$8 sps:$4 sm:$0xff]  }
 0x7c1   : > { %v9842_v56 = vrot.slane %v17401_v54, 1  ;;  %v9938_v4 = vrot.slane %v17401_v54, 2  ;;  %v10034_v47 = vrot.slane %v17401_v54, 3  ;;  %v10130_v28 = vrot.slane %v17401_v54, 4 }
 0x7c2   : > { %v10226_v46 = vrot.slane %v17401_v54, 5 }
 0x7c3   : > { %9509 = vmatpush1.bf16.msra.mxu0 %v14750_v1  ;;  %v14885_v1 = vld [vmem:[#allocation10 + $0x40] ss:$8 sps:$4 sm:$0xff]  }
 0x7c4   : > { %9598 = vmatprep.subr.bf16.mxu0 %v14755_v50  ;;  %v14890_v50 = vld [vmem:[#allocation10 + $0x54] ss:$8 sps:$4 sm:$0xff]   ;;  %10691 = vmatpush1.bf16.msra.mxu1 %v14885_v1  ;;  %v14855_v1 = vld [vmem:[%s17738_s5 + $0x3a0] ss:$8 sps:$4 sm:$0xff]  }
 0x7c5   : > { %10692 = vmatprep.subr.bf16.mxu1 %v14890_v50  ;;  %v14860_v50 = vld [vmem:[%s17738_s5 + $0x3b4] ss:$8 sps:$4 sm:$0xff]  }
 0x7c6   : > { %12444 = vmatmul.mubr.msk.bf16.vlgmr.msra.gmra.mrb[96].mxu0 %vm9006_vm12, %v9458_v21  ;;  %v14797_v21 = vld [vmem:[%s17738_s5 + $0x264] ss:$8 sps:$4 sm:$0xff]  }
 0x7c7   : > { %9599 = vmatpush1.bf16.msra.mxu0 %v14753_v60  ;;  %9630 = vmatprep.mubr.bf16.mxu0 %v17806_v51  ;;  %v14792_v60 = vld [vmem:[%s17738_s5 + $0x250] ss:$8 sps:$4 sm:$0xff]  }
 0x7c8   : > { %9600 = vmatprep.subr.bf16.mxu0 %v14758_v36  ;;  %v14888_v36 = vld [vmem:[#allocation10 + $0x50] ss:$8 sps:$4 sm:$0xff]  }
 0x7c9   : > { %10693 = vmatpush1.bf16.msra.mxu1 %v14888_v36  ;;  %v14861_v36 = vld [vmem:[%s17738_s5 + $0x3c0] ss:$8 sps:$4 sm:$0xff]  }
 0x7cb   : > { %9601 = vmatpush1.bf16.msra.mxu0 %v14756_v44  ;;  %v14893_v44 = vld [vmem:[#allocation10 + $0x64] ss:$8 sps:$4 sm:$0xff]  }
 0x7cc   : > { %9602 = vmatprep.subr.bf16.mxu0 %v14761_v23  ;;  %v14795_v23 = vld [vmem:[%s17738_s5 + $0x260] ss:$8 sps:$4 sm:$0xff]   ;;  %10694 = vmatprep.subr.bf16.mxu1 %v14893_v44  ;;  %v10322_v44 = vrot.slane %v17401_v54, 6 }
 0x7cf   : > { %9603 = vmatpush1.bf16.msra.mxu0 %v14759_v52  ;;  %v14800_v52 = vld [vmem:[%s17738_s5 + $0x274] ss:$8 sps:$4 sm:$0xff]  }
 0x7d0   : > { %9604 = vmatprep.subr.bf16.mxu0 %v14764_v20  ;;  %v14891_v20 = vld [vmem:[#allocation10 + $0x60] ss:$8 sps:$4 sm:$0xff]  }
 0x7d1   : > { %10695 = vmatpush1.bf16.msra.mxu1 %v14891_v20  ;;  %v14869_v20 = vld [vmem:[%s17738_s5 + $0x3e4] ss:$8 sps:$4 sm:$0xff]  }
 0x7d3   : > { %9605 = vmatpush1.bf16.msra.mxu0 %v14762_v19  ;;  %v14896_v19 = vld [vmem:[#allocation10 + $0x74] ss:$8 sps:$4 sm:$0xff]  }
 0x7d4   : > { %9694 = vmatprep.subr.bf16.mxu0 %v14767_v5  ;;  %v14798_v5 = vld [vmem:[%s17738_s5 + $0x270] ss:$8 sps:$4 sm:$0xff]   ;;  %10696 = vmatprep.subr.bf16.mxu1 %v14896_v19  ;;  %v14867_v19 = vld [vmem:[%s17738_s5 + $0x3e0] ss:$8 sps:$4 sm:$0xff]  }
 0x7d6   : > { %12461 = vmatmul.mubr.msk.bf16.vlgmr.msra.gmra.mrb[96].mxu0 %vm9006_vm12, %v9554_v9  ;;  %v14894_v9 = vld [vmem:[#allocation10 + $0x70] ss:$8 sps:$4 sm:$0xff]  }
 0x7d7   : > { %9695 = vmatpush1.bf16.msra.mxu0 %v14765_v63  ;;  %9726 = vmatprep.mubr.bf16.mxu0 %v17806_v51  ;;  %v14803_v63 = vld [vmem:[%s17738_s5 + $0x284] ss:$8 sps:$4 sm:$0xff]  }
 0x7d8   : > { %9696 = vmatprep.subr.bf16.mxu0 %v14770_v22  ;;  %v14899_v22 = vld [vmem:[#allocation10 + $0x84] ss:$8 sps:$4 sm:$0xff]   ;;  %10697 = vmatpush1.bf16.msra.mxu1 %v14894_v9  ;;  %v10418_v9 = vrot.slane %v17401_v54, 7 }
 0x7d9   : > { %10698 = vmatprep.subr.bf16.mxu1 %v14899_v22  ;;  %v14908_v22 = vld [vmem:[#allocation10 + $0xb4] ss:$8 sps:$4 sm:$0xff]  }
 0x7db   : > { %9697 = vmatpush1.bf16.msra.mxu0 %v14768_v13  ;;  %v14806_v13 = vld [vmem:[%s17738_s5 + $0x294] ss:$8 sps:$4 sm:$0xff]  }
 0x7dc   : > { %9698 = vmatprep.subr.bf16.mxu0 %v14773_v17  ;;  %v14902_v17 = vld [vmem:[#allocation10 + $0x94] ss:$8 sps:$4 sm:$0xff]   ;;  %10699 = vmatpush1.bf16.msra.mxu1 %v14897_v61 }
 0x7dd   : > { %10700 = vmatprep.subr.bf16.mxu1 %v14902_v17 }
 0x7df   : > { %9699 = vmatpush1.bf16.msra.mxu0 %v14771_v31  ;;  %v14809_v31 = vld [vmem:[%s17738_s5 + $0x2a4] ss:$8 sps:$4 sm:$0xff]  }
 0x7e0   : > { %9700 = vmatprep.subr.bf16.mxu0 %v14776_v48  ;;  %v14905_v48 = vld [vmem:[#allocation10 + $0xa4] ss:$8 sps:$4 sm:$0xff]   ;;  %10701 = vmatpush1.bf16.msra.mxu1 %v14900_v53 }
 0x7e1   : > { %10702 = vmatprep.subr.bf16.mxu1 %v14905_v48 }
 0x7e3   : > { %9701 = vmatpush1.bf16.msra.mxu0 %v14774_v27  ;;  %v14810_v27 = vld [vmem:[%s17738_s5 + $0x2b0] ss:$8 sps:$4 sm:$0xff]  }
 0x7e4   : > { %9789 = vmatprep.subr.bf16.mxu0 %v14779_v6  ;;  %10703 = vmatpush1.bf16.msra.mxu1 %v14903_v32  ;;  %v14813_v6 = vld [vmem:[%s17738_s5 + $0x2c0] ss:$8 sps:$4 sm:$0xff]  }
 0x7e5   : > { %10704 = vmatprep.subr.bf16.mxu1 %v14908_v22 }
 0x7e6   : > { %12478 = vmatmul.mubr.msk.bf16.vlgmr.msra.gmra.mrb[96].mxu0 %vm9006_vm12, %v9650_v49  ;;  %v14821_v49 = vld [vmem:[%s17738_s5 + $0x2e4] ss:$8 sps:$4 sm:$0xff]  }
 0x7e7   : > { %9790 = vmatpush1.bf16.msra.mxu0 %v14777_v34  ;;  %9821 = vmatprep.mubr.bf16.mxu0 %v17806_v51  ;;  %v14818_v34 = vld [vmem:[%s17738_s5 + $0x2d4] ss:$8 sps:$4 sm:$0xff]  }
 0x7e8   : > { %9791 = vmatprep.subr.bf16.mxu0 %v14782_v16  ;;  %v14819_v16 = vld [vmem:[%s17738_s5 + $0x2e0] ss:$8 sps:$4 sm:$0xff]  }
 0x7eb   : > { %9792 = vmatpush1.bf16.msra.mxu0 %v14780_v10  ;;  %v14830_v10 = vld [vmem:[%s17738_s5 + $0x314] ss:$8 sps:$4 sm:$0xff]  }
 0x7ec   : > { %9793 = vmatprep.subr.bf16.mxu0 %v14785_v14  ;;  %v14831_v14 = vld [vmem:[%s17738_s5 + $0x320] ss:$8 sps:$4 sm:$0xff]  }
 0x7ef   : > { %9794 = vmatpush1.bf16.msra.mxu0 %v14783_v41  ;;  %v14837_v41 = vld [vmem:[%s17738_s5 + $0x340] ss:$8 sps:$4 sm:$0xff]  }
 0x7f0   : > { %9795 = vmatprep.subr.bf16.mxu0 %v14788_v12  ;;  %v14842_v12 = vld [vmem:[%s17738_s5 + $0x354] ss:$8 sps:$4 sm:$0xff]  }
 0x7f3   : > { %9796 = vmatpush1.bf16.msra.mxu0 %v14786_v57  ;;  %v14848_v57 = vld [vmem:[%s17738_s5 + $0x374] ss:$8 sps:$4 sm:$0xff]  }
 0x7f4   : > { %9886 = vmatprep.subr.bf16.mxu0 %v14791_v37  ;;  %v14851_v37 = vld [vmem:[%s17738_s5 + $0x384] ss:$8 sps:$4 sm:$0xff]  }
 0x7f6   : > { %12495 = vmatmul.mubr.msk.bf16.vlgmr.msra.gmra.mrb[96].mxu0 %vm9006_vm12, %v17401_v54 }
 0x7f7   : > { %9887 = vmatpush1.bf16.msra.mxu0 %v14789_v55  ;;  %9918 = vmatprep.mubr.bf16.mxu0 %v17806_v51  ;;  %v14852_v55 = vld [vmem:[%s17738_s5 + $0x390] ss:$8 sps:$4 sm:$0xff]  }
 0x7f8   : > { %9888 = vmatprep.subr.bf16.mxu0 %v14794_v25  ;;  %v14857_v25 = vld [vmem:[%s17738_s5 + $0x3a4] ss:$8 sps:$4 sm:$0xff]  }
 0x7fb   : > { %9889 = vmatpush1.bf16.msra.mxu0 %v14792_v60  ;;  %v14858_v60 = vld [vmem:[%s17738_s5 + $0x3b0] ss:$8 sps:$4 sm:$0xff]  }
 0x7fc   : > { %9890 = vmatprep.subr.bf16.mxu0 %v14797_v21  ;;  %v14863_v21 = vld [vmem:[%s17738_s5 + $0x3c4] ss:$8 sps:$4 sm:$0xff]  }
 0x7ff   : > { %9891 = vmatpush1.bf16.msra.mxu0 %v14795_v23  ;;  %v14866_v23 = vld [vmem:[%s17738_s5 + $0x3d4] ss:$8 sps:$4 sm:$0xff]  }
 0x800   : > { %9892 = vmatprep.subr.bf16.mxu0 %v14800_v52  ;;  %v14864_v52 = vld [vmem:[%s17738_s5 + $0x3d0] ss:$8 sps:$4 sm:$0xff]  }
 0x803   : > { %9893 = vmatpush1.bf16.msra.mxu0 %v14798_v5  ;;  %v14872_v5 = vld [vmem:[%s17738_s5 + $0x3f4] ss:$8 sps:$4 sm:$0xff]  }
 0x804   : > { %9982 = vmatprep.subr.bf16.mxu0 %v14803_v63  ;;  %v14870_v63 = vld [vmem:[%s17738_s5 + $0x3f0] ss:$8 sps:$4 sm:$0xff]  }
 0x806   : > { %12512 = vmatmul.mubr.msk.bf16.vlgmr.msra.gmra.mrb[96].mxu0 %vm9006_vm12, %v9842_v56  ;;  %v10533_v56 = vld [vmem:[#allocation10 + $0xc0] sm:$0xff] }
 0x807   : > { %9983 = vmatpush1.bf16.msra.mxu0 %v14801_v3  ;;  %10014 = vmatprep.mubr.bf16.mxu0 %v17806_v51  ;;  %v14906_v3 = vld [vmem:[#allocation10 + $0xb0] ss:$8 sps:$4 sm:$0xff]   ;;  %v12639_v61 = vcombine.low %v10533_v56, %v10533_v56 }
 0x808   : > { %9984 = vmatprep.subr.bf16.mxu0 %v14806_v13  ;;  %10705 = vmatpush1.bf16.msra.mxu1 %v14906_v3  ;;  %v12640_v13 = vcombine.high %v10533_v56, %v10533_v56  ;;  %v12658_v3 = vld [vmem:[#allocation16] ss:$0 sm:$0xff] }
 0x809   : > { %v10677_v17 = vsel %vm10675_vm13, %v12639_v61, 0 }
 0x80a   : > { %12641 = vmatprep.subr.msk.bf16.mxu1 %vm10675_vm13, %v12640_v13 }
 0x80b   : > { %9985 = vmatpush1.bf16.msra.mxu0 %v14804_v7  ;;  %v8957_v7 = vld [vmem:[#allocation8] sm:$0x3] }
 0x80c   : > { %9986 = vmatprep.subr.bf16.mxu0 %v14809_v31  ;;  %10707 = vmatpush1.bf16.msra.mxu1 %v10677_v17  ;;  %v9055_v54 = vrot.slane %v8957_v7, %v16618_v26  ;;  %v9059_v31 = vrot.slane %v8957_v7, %v16654_v58 }
 0x80d   : > { %10840 = vmatprep.subr.bf16.mxu1 %v17806_v51 }
 0x80f   : > { %9987 = vmatpush1.bf16.msra.mxu0 %v14807_v43 }
 0x810   : > { %9988 = vmatprep.subr.bf16.mxu0 %v14812_v45 }
 0x813   : > { %9989 = vmatpush1.bf16.msra.mxu0 %v14810_v27 }
 0x814   : > { %10078 = vmatprep.subr.bf16.mxu0 %v14815_v30 }
 0x816   : > { %12529 = vmatmul.mubr.msk.bf16.vlgmr.msra.gmra.mrb[96].mxu0 %vm9006_vm12, %v9938_v4 }
 0x817   : > { %10079 = vmatpush1.bf16.msra.mxu0 %v14813_v6  ;;  %10110 = vmatprep.mubr.bf16.mxu0 %v17806_v51 }
 0x818   : > { %10080 = vmatprep.subr.bf16.mxu0 %v14818_v34  ;;  %v14911_v34 = vld [vmem:[%s17742_s9] sm:$0xff]  }
 0x81b   : > { %10081 = vmatpush1.bf16.msra.mxu0 %v14816_v33 }
 0x81c   : > { %10082 = vmatprep.subr.bf16.mxu0 %v14821_v49  ;;  %v14912_v49 = vld [vmem:[%s17742_s9 + $0x8] sm:$0xff]  }
 0x81f   : > { %10083 = vmatpush1.bf16.msra.mxu0 %v14819_v16  ;;  %v14913_v16 = vld [vmem:[%s17742_s9 + $0x10] sm:$0xff]  }
 0x820   : > { %10084 = vmatprep.subr.bf16.mxu0 %v14824_v38  ;;  %v14914_v38 = vld [vmem:[%s17742_s9 + $0x18] sm:$0xff]  }
 0x823   : > { %10085 = vmatpush1.bf16.msra.mxu0 %v14822_v35  ;;  %v14915_v35 = vld [vmem:[%s17742_s9 + $0x20] sm:$0xff]  }
 0x824   : > { %10174 = vmatprep.subr.bf16.mxu0 %v14827_v8  ;;  %v14916_v8 = vld [vmem:[%s17742_s9 + $0x28] sm:$0xff]  }
 0x826   : > { %12546 = vmatmul.mubr.msk.bf16.vlgmr.msra.gmra.mrb[96].mxu0 %vm9006_vm12, %v10034_v47  ;;  %v14918_v47 = vld [vmem:[%s17742_s9 + $0x38] sm:$0xff]  }
 0x827   : > { %10175 = vmatpush1.bf16.msra.mxu0 %v14825_v11  ;;  %10206 = vmatprep.mubr.bf16.mxu0 %v17806_v51  ;;  %v14917_v11 = vld [vmem:[%s17742_s9 + $0x30] sm:$0xff]  }
 0x828   : > { %10176 = vmatprep.subr.bf16.mxu0 %v14830_v10  ;;  %v14919_v10 = vld [vmem:[%s17742_s9 + $0x40] sm:$0xff]  }
 0x82b   : > { %10177 = vmatpush1.bf16.msra.mxu0 %v14828_v2  ;;  %v14920_v2 = vld [vmem:[%s17742_s9 + $0x48] sm:$0xff]  }
 0x82c   : > { %10178 = vmatprep.subr.bf16.mxu0 %v14833_v62  ;;  %v14921_v62 = vld [vmem:[%s17742_s9 + $0x50] sm:$0xff]  }
 0x82f   : > { %10179 = vmatpush1.bf16.msra.mxu0 %v14831_v14  ;;  %v14922_v14 = vld [vmem:[%s17742_s9 + $0x58] sm:$0xff]  }
 0x830   : > { %10180 = vmatprep.subr.bf16.mxu0 %v14836_v18  ;;  %v14923_v18 = vld [vmem:[%s17742_s9 + $0x60] ss:$0 sps:$4 sm:$0xff]  }
 0x833   : > { %10181 = vmatpush1.bf16.msra.mxu0 %v14834_v39  ;;  %v10838_v39 = vsel %vm10675_vm13, %v14923_v18, 0 }
 0x834   : > { %10270 = vmatprep.subr.bf16.mxu0 %v14839_v24  ;;  %v17807_v24 = vmov 0.0  }
 0x836   : > { %12563 = vmatmul.mubr.msk.bf16.vlgmr.msra.gmra.mrb[96].mxu0 %vm9006_vm12, %v10130_v28 }
 0x837   : > { %10271 = vmatpush1.bf16.msra.mxu0 %v14837_v41  ;;  %10302 = vmatprep.mubr.bf16.mxu0 %v17806_v51  ;;  %v10534_v41 = vld [vmem:[#allocation11] sm:$0x3] }
 0x838   : > { %10272 = vmatprep.subr.bf16.mxu0 %v14842_v12  ;;  %v10539_v28 = vrot.slane %v10534_v41, %v16618_v26  ;;  %v10543_v12 = vrot.slane %v10534_v41, %v16654_v58  ;;  %v14926_v26 = vld [vmem:[#allocation14 + $0x10] sm:$0xff]   ;;  %v14927_v58 = vld [vmem:[#allocation14 + $0x18] ss:$0 sps:$4 sm:$0x11]  }
 0x83b   : > { %10273 = vmatpush1.bf16.msra.mxu0 %v14840_v40 }
 0x83c   : > { %10274 = vmatprep.subr.bf16.mxu0 %v14845_v59 }
 0x83f   : > { %10275 = vmatpush1.bf16.msra.mxu0 %v14843_v42 }
 0x840   : > { %10276 = vmatprep.subr.bf16.mxu0 %v14848_v57 }
 0x843   : > { %10277 = vmatpush1.bf16.msra.mxu0 %v14846_v29 }
 0x844   : > { %10366 = vmatprep.subr.bf16.mxu0 %v14851_v37 }
 0x846   : > { %12580 = vmatmul.mubr.msk.bf16.vlgmr.msra.gmra.mrb[96].mxu0 %vm9006_vm12, %v10226_v46 }
 0x847   : > { %10367 = vmatpush1.bf16.msra.mxu0 %v14849_v15  ;;  %10398 = vmatprep.mubr.bf16.mxu0 %v17806_v51 }
 0x848   : > { %10368 = vmatprep.subr.bf16.mxu0 %v14854_v0  ;;  %v14924_v0 = vld [vmem:[#allocation14] sm:$0xff]  }
 0x84b   : > { %10369 = vmatpush1.bf16.msra.mxu0 %v14852_v55 }
 0x84c   : > { %10370 = vmatprep.subr.bf16.mxu0 %v14857_v25  ;;  %v14925_v25 = vld [vmem:[#allocation14 + $0x8] sm:$0xff]  }
 0x84f   : > { %10371 = vmatpush1.bf16.msra.mxu0 %v14855_v1  ;;  %v10922_v1 = vsel %vm7593_vm7, %v14927_v58, 0 }
 0x850   : > { %10372 = vmatprep.subr.bf16.mxu0 %v14860_v50  ;;  %v12643_v50 = vld [vmem:[#allocation13] ss:$0 sm:$0xff] }
 0x853   : > { %10373 = vmatpush1.bf16.msra.mxu0 %v14858_v60 }
 0x854   : > { %10462 = vmatprep.subr.bf16.mxu0 %v14863_v21 }
 0x856   : > { %12597 = vmatmul.mubr.msk.bf16.vlgmr.msra.gmra.mrb[96].mxu0 %vm9006_vm12, %v10322_v44 }
 0x857   : > { %10463 = vmatpush1.bf16.msra.mxu0 %v14861_v36  ;;  %10494 = vmatprep.mubr.bf16.mxu0 %v17806_v51 }
 0x858   : > { %10464 = vmatprep.subr.bf16.mxu0 %v14866_v23 }
 0x85b   : > { %10465 = vmatpush1.bf16.msra.mxu0 %v14864_v52 }
 0x85c   : > { %10466 = vmatprep.subr.bf16.mxu0 %v14869_v20  ;;  %v14928_v20 = vld [vmem:[%s17746_s13] sm:$0xff]  }
 0x85f   : > { %10467 = vmatpush1.bf16.msra.mxu0 %v14867_v19 }
 0x860   : > { %10468 = vmatprep.subr.bf16.mxu0 %v14872_v5  ;;  %v14929_v5 = vld [vmem:[%s17746_s13 + $0x8] sm:$0xff]  }
 0x863   : > { %10469 = vmatpush1.bf16.msra.mxu0 %v14870_v63  ;;  %v14930_v63 = vld [vmem:[%s17746_s13 + $0x10] sm:$0xff]  }
 0x866   : > { %12614 = vmatmul.mubr.msk.bf16.vlgmr.msra.gmra.mrb[96].mxu0 %vm9006_vm12, %v10418_v9  ;;  %v14931_v9 = vld [vmem:[%s17746_s13 + $0x18] ss:$0 sps:$4 sm:$0x11]  }
 0x867   : > { %v11005_v22 = vsel %vm7593_vm7, %v14931_v9, 0 }
 0x939   : > { %v10496_v53 = vpop.f32.mrb[96].mxu0 }
 0x93a   : > { %v12997_v48 = vadd.f32 %v10496_v53, %v9055_v54  ;;  %v10498_v43 = vpop.f32.mrb[97].mxu0  ;;  %v14932_v53 = vld [vmem:[%s17748_s15] sm:$0x1f]  }
 0x93b   : > { %v12998_v45 = vadd.f32 %v10498_v43, %v9059_v31  ;;  %v10500_v32 = vpop.f32.mrb[98].mxu0  ;;  %v12664_v43 = vld [vmem:[#allocation17] ss:$0 sm:$0xff] }
 0x93c   : > { %v10505_v27 = vmax.f32 %v12997_v48, 0.0  ;;  %v10501_v30 = vpop.f32.mrb[99].mxu0  ;;  %v11069_v48 = vsel %vm11067_vm0, %v14932_v53, 0 }
 0x93d   : > { %v10506_v6 = vmax.f32 %v12998_v45, 0.0 }
 0x93e   : > { %v10507_v33 = vpack.c.bf16 %v10505_v27, %v10505_v27 }
 0x93f   : > { %v10508_v4 = vpack.c.bf16 %v10506_v6, %v10506_v6 }
 0x941   : > { %12642 = vmatprep.mubr.msk.bf16.mxu1 %vm10671_vm14, %v10508_v4 }
 0x942   : > { %10715 = vmatmul.mubr.bf16.vlgmr.msra.gmra.mrb[88].mxu1 %v10507_v33  ;;  %v12670_v33 = vld [vmem:[#allocation19] ss:$0 sm:$0xff] }
 0x943   : > { %10841 = vmatpush1.bf16.msra.mxu1 %v14911_v34 }
 0x944   : > { %10842 = vmatprep.subr.bf16.mxu1 %v17806_v51 }
 0x947   : > { %10843 = vmatpush1.bf16.msra.mxu1 %v14912_v49 }
 0x948   : > { %10844 = vmatprep.subr.bf16.mxu1 %v17806_v51 }
 0x94b   : > { %10845 = vmatpush1.bf16.msra.mxu1 %v14913_v16 }
 0x94c   : > { %10846 = vmatprep.subr.bf16.mxu1 %v17806_v51 }
 0x94f   : > { %10847 = vmatpush1.bf16.msra.mxu1 %v14914_v38 }
 0x950   : > { %10848 = vmatprep.subr.bf16.mxu1 %v17806_v51 }
 0x953   : > { %10849 = vmatpush1.bf16.msra.mxu1 %v14915_v35 }
 0x954   : > { %10850 = vmatprep.subr.bf16.mxu1 %v17806_v51 }
 0x957   : > { %10851 = vmatpush1.bf16.msra.mxu1 %v14916_v8 }
 0x958   : > { %10852 = vmatprep.subr.bf16.mxu1 %v17806_v51 }
 0x95b   : > { %10853 = vmatpush1.bf16.msra.mxu1 %v14917_v11 }
 0x95c   : > { %10854 = vmatprep.subr.bf16.mxu1 %v17806_v51 }
 0x95f   : > { %10855 = vmatpush1.bf16.msra.mxu1 %v14918_v47 }
 0x960   : > { %10856 = vmatprep.subr.bf16.mxu1 %v17806_v51 }
 0x963   : > { %10857 = vmatpush1.bf16.msra.mxu1 %v14919_v10 }
 0x964   : > { %10858 = vmatprep.subr.bf16.mxu1 %v17806_v51 }
 0x967   : > { %10859 = vmatpush1.bf16.msra.mxu1 %v14920_v2 }
 0x968   : > { %10860 = vmatprep.subr.bf16.mxu1 %v17806_v51 }
 0x96b   : > { %10861 = vmatpush1.bf16.msra.mxu1 %v14921_v62 }
 0x96c   : > { %10862 = vmatprep.subr.bf16.mxu1 %v17806_v51 }
 0x96f   : > { %10863 = vmatpush1.bf16.msra.mxu1 %v14922_v14 }
 0x970   : > { %10864 = vmatprep.subr.bf16.mxu1 %v17806_v51 }
 0x973   : > { %10865 = vmatpush1.bf16.msra.mxu1 %v10838_v39 }
 0x974   : > { %12929 = vmatprep.subr.bf16.mxu1 %v17807_v24 }
 0xa15   : > { %v10716_v40 = vpop.f32.mrb[88].mxu1 }
 0xa16   : > { %v10717_v59 = vadd.f32 %v10716_v40, %v10539_v28  ;;  %v10718_v42 = vpop.f32.mrb[89].mxu1 }
 0xa17   : > { %v10719_v57 = vadd.f32 %v10718_v42, %v10543_v12  ;;  %v10720_v29 = vpop.f32.mrb[90].mxu1 }
 0xa18   : > { %v10723_v51 = vmax.f32 %v10717_v59, 0.0  ;;  %v10721_v37 = vpop.f32.mrb[91].mxu1 }
 0xa19   : > { %v10724_v15 = vmax.f32 %v10719_v57, 0.0 }
 0xa1a   : > { %v10725_v55 = vpack.c.bf16 %v10723_v51, %v10723_v51 }
 0xa1b   : > { %v10726_v46 = vpack.c.bf16 %v10724_v15, %v10724_v15 }
 0xa1d   : > { %12657 = vmatprep.mubr.msk.bf16.mxu1 %vm10671_vm14, %v10726_v46 }
 0xa1e   : > { %10873 = vmatmul.mubr.bf16.vlgmr.msra.gmra.mrb[92].mxu1 %v10725_v55 }
 0xa1f   : > { %12930 = vmatpush3.bf16.msra.mxu1 %v14924_v0  ;;  %12937 = vmatprep.mubr.msk.bf16.mxu1 %vm15397_vm4, %v17807_v24 }
 0xa20   : > { %12931 = vmatprep.subr.bf16.mxu1 %v17807_v24 }
 0xa23   : > { %12932 = vmatpush3.bf16.msra.mxu1 %v14925_v25 }
 0xa24   : > { %12933 = vmatprep.subr.bf16.mxu1 %v17807_v24 }
 0xa27   : > { %12934 = vmatpush3.bf16.msra.mxu1 %v14926_v26 }
 0xa28   : > { %12935 = vmatprep.subr.bf16.mxu1 %v17807_v24 }
 0xa2b   : > { %12936 = vmatpush3.bf16.msra.mxu1 %v10922_v1 }
 0xa2c   : > { %12941 = vmatprep.subr.bf16.mxu1 %v17807_v24 }
 0xaf1   : > { %v10874_v60 = vpop.f32.mrb[92].mxu1 }
 0xaf2   : > { %v10875_v21 = vadd.f32 %v12643_v50, %v10874_v60  ;;  %v10876_v36 = vpop.f32.mrb[93].mxu1 }
 0xaf3   : > { %v10877_v44 = vpop.f32.mrb[94].mxu1 }
 0xaf4   : > { %v10880_v23 = vmax.f32 %v10875_v21, 0.0  ;;  %v10878_v52 = vpop.f32.mrb[95].mxu1 }
 0xaf6   : > { %v10881_v19 = vpack.c.bf16 %v10880_v23, %v10880_v23 }
 0xaf8   : > { %12938 = vmatmul.mubr.msk.bf16.vlgmr.msra.gmra.mrb[96].mxu1 %vm10917_vm15, %v10881_v19 }
 0xaf9   : > { %12942 = vmatpush3.bf16.msra.mxu1 %v14928_v20  ;;  %12949 = vmatprep.mubr.msk.bf16.mxu1 %vm15397_vm4, %v17807_v24 }
 0xafa   : > { %12943 = vmatprep.subr.bf16.mxu1 %v17807_v24 }
 0xafd   : > { %12944 = vmatpush3.bf16.msra.mxu1 %v14929_v5 }
 0xafe   : > { %12945 = vmatprep.subr.bf16.mxu1 %v17807_v24 }
 0xb01   : > { %12946 = vmatpush3.bf16.msra.mxu1 %v14930_v63 }
 0xb02   : > { %12947 = vmatprep.subr.bf16.mxu1 %v17807_v24 }
 0xb05   : > { %12948 = vmatpush3.bf16.msra.mxu1 %v11005_v22 }
 0xb06   : > { %12953 = vmatprep.subr.bf16.mxu1 %v17807_v24 }
 0xbcb   : > { %v10958_v56 = vpop.f32.mrb[96].mxu1 }
 0xbcc   : > { %v10959_v13 = vadd.f32 %v12658_v3, %v10958_v56  ;;  %v12939_v61 = vpop.f32.mrb[97].mxu1 }
 0xbcd   : > { %v10961_v17 = vpop.f32.mrb[98].mxu1 }
 0xbce   : > { %v10964_v7 = vmax.f32 %v10959_v13, 0.0  ;;  %v12940_v54 = vpop.f32.mrb[99].mxu1 }
 0xbd0   : > { %v10965_v31 = vpack.c.bf16 %v10964_v7, %v10964_v7 }
 0xbd2   : > { %12950 = vmatmul.mubr.msk.bf16.vlgmr.msra.gmra.mrb[100].mxu1 %vm10917_vm15, %v10965_v31 }
 0xbd3   : > { %12955 = vmatprep.mubr.msk.bf16.mxu1 %vm15397_vm4, %v17807_v24  ;;  %12954 = vmatpush3.bf16.msra.mxu1 %v11069_v48 }
 0xca5   : > { %v11041_v45 = vpop.f32.mrb[100].mxu1 }
 0xca6   : > { %v11042_v32 = vadd.f32 %v12664_v43, %v11041_v45  ;;  %v12951_v27 = vpop.f32.mrb[101].mxu1 }
 0xca7   : > { %v11044_v30 = vpop.f32.mrb[102].mxu1 }
 0xca8   : > { %v11047_v6 = vmax.f32 %v11042_v32, 0.0  ;;  %v12952_v4 = vpop.f32.mrb[103].mxu1 }
 0xcaa   : > { %v11048_v34 = vpack.c.bf16 %v11047_v6, %v11047_v6 }
 0xcac   : > { %12956 = vmatmul.mubr.msk.bf16.vlgmr.msra.gmra.mrb[104].mxu1 %vm11063_vm1, %v11048_v34 }
 0xd7f   : > { %v11105_v49 = vpop.f32.mrb[104].mxu1 }
 0xd80   : > { %v11106_v16 = vadd.f32 %v12670_v33, %v11105_v49  ;;  %v12957_v38 = vpop.f32.mrb[105].mxu1 }
 0xd81   : > { %v11108_v35 = vpop.f32.mrb[106].mxu1 }
 0xd82   : > { %v12958_v8 = vpop.f32.mrb[107].mxu1  ;;  %v11112_v11 = vsel %vm11111_vm2, %v11106_v16, -inf }
 0xd83   : > { %11113 = vmax.xlane.f32.xlu1 %v11112_v11 }
 0xe10   : > { %v11114_v47 = vpop.xlane.xlu1 %11113 }
 0xe11   : > { %v11115_v10 = vsub.f32 %v11106_v16, %v11114_v47 }
 0xe13   : > { %v11116_v2 = vmul.f32 1.442695, %v11115_v10 }
 0xe15   : > { %14933 = vpow2.f32 %v11116_v2 }
 0xe1f   : > { %v14934_v62 = vpop.eup %14933 }
 0xe20   : > { %v11118_v14 = vsel %vm11111_vm2, %v14934_v62, 0.0 }
 0xe21   : > { %11119 = vadd.xlane.f32.xlu0 %v11118_v14 }
 0xeae   : > { %v11120_v18 = vpop.xlane.xlu0 %11119 }
 0xeaf   : > { %14935 = vrcp.f32 %v11120_v18 }
 0xeb9   : > { %v14936_v39 = vpop.eup %14935 }
 0xeba   : > { %v11122_v24 = vmul.f32 %v14936_v39, %v14934_v62 }
 0xebc   : > { %11123 = vst.msk [vmem:[%s685_s1] sm:$0x3] %vm11111_vm2, %v11122_v24 }
 0xebd   : > { %15299 = shalt.err (!%p15296_p10)
}
 0xebe   : > { %s15300_s29 = scalar_lea.hbm %s17690_s30, 32  ;;  %s15304_s6 = scalar_lea.hbm %s17811_s20, 64 }
 0xebf   : > { %p15301_p2 = scmp.ne.s32.totalorder %s17690_s30, %s15300_s29  ;;  %p15305_p7 = scmp.lt.u32.totalorder %s17690_s30, %s17811_s20 }
 0xec0   : > { %p15306_p8 = scmp.lt.u32.totalorder %s15304_s6, %s15300_s29  ;;  %p15308_p13 = scmp.lt.u32.totalorder %s15300_s29, %s17690_s30 }
 0xec1   : > { %p15302_p3 = pnand %p15301_p2, %p17812_p1 }
 0xec2   : > { %p15307_p11 = por %p15306_p8, %p15305_p7 }
 0xec3   : > { %p15303_p4 = pneg %p15302_p3 }
 0xec4   : > { %p15309_p0 = por %p15308_p13, %p15307_p11 }
 0xec6   : > { %p15310_p6 = pnand %p15309_p0, %p15303_p4 }
 0xec8   : > { %15313 = shalt.err (!%p15310_p6)
}
 0xec9   : > { %13343 = dma.vmem_to_hbm [thread:$0]  (%p17812_p1), %s17692_s27, 32, %s17690_s30, %s11125_s0  }
 0xeca PF: > { %s17813_s17 = sld [smem:[#allocation31_spill]]  ;;  %s17814_s25 = sld [smem:[#allocation28_spill]] }
 0xecb   : > { %s17815_s26 = sld [smem:[#allocation35_spill]] }
 0xed0   : > { %p13405_p5 = scmp.ge.s32.totalorder %s17813_s17, 2  ;;  %s11150_s21 = sand.u32 1, %s17814_s25  }
 0xed1   : > { %p17816_p9 = scmp.ne.s32.totalorder %s17815_s26, 0  ;;  %s11151_s28 = scalar_lea.sflag [#allocation4], %s11150_s21 }
 0xed3   : > { %p13380_p12 = pnand %p13405_p5, %p17816_p9 }
 0xed5   : > { %15355 = dma.done.wait (!%p13380_p12), %s11151_s28, 32  }
 0xed6   : > { %15357 = vsyncadd (!%p13380_p12), %s11151_s28, 4294967264  ;;  %s17817_s27 = sld [smem:[#allocation32_spill]]  ;;  %s17818_s24 = sld [smem:[#allocation29_spill]] }
 0xed7   : > { %s17819_s25 = sld [smem:[#allocation30_spill]]  ;;  %s17820_s26 = sld [smem:[#allocation33_spill]] }
 0xedc   : > { %p33_p10 = scmp.ge.s32.totalorder %s17817_s27, 4  }
 0xede   :  { %35 = sbr.rel (!%p33_p10) target bundleno = 16 (0x10), region = 185 }
 0xee5   :  { %11156 = vsyncpa [#allocation3], 1 }
 0xee6   :  { %11158 = vsyncpa [#allocation3 + $0x1], 1 }
 0xee7   :  { %11159 = vsyncpa [#allocation6], 1 }
 0xee8   :  { %11160 = vsyncpa [#allocation9], 1 }
 0xee9   :  { %11161 = vsyncpa [#allocation12], 1 }
 0xeea   :  { %11162 = vsyncpa [#allocation15], 1 }
 0xeeb   :  { %11163 = vsyncpa [#allocation18], 1 }
 0xeec   :  { %11164 = vsyncpa [#allocation4], 1 }
 0xeed   :  { %11166 = vsyncpa [#allocation4 + $0x1], 1 }

</bundles_post_ra>
